<compile_context>
chip_gen: v7x
topology: tpu7x:2x2x1
jax: 0.10.0
libtpu: 0.0.40
codegen_flags: <defaults>
</compile_context>

<pallas_src>
import jax
import jax.numpy as jnp
from jax.experimental import pallas as pl
from jax.experimental.pallas import tpu as pltpu

LANES = 128


def _round_up(n, m):
    return ((n + m - 1) // m) * m


# ----------------------------- Pallas kernels ------------------------------

def _stage1_kernel(cols_ref, w_ref, b_ref, o_ref):
    """Fused conv1 (im2col matmul) + bias + ReLU + 2x2 maxpool.

    cols_ref: (4*P, 32)  four pool-window row blocks of P rows, each ordered
                         (b, hp, wp).
    w_ref:    (32, 128)  conv1 weights (zero padded), b_ref: (1, 128) bias.
    o_ref:    (P, 128)   pooled activations, channels on lanes.
    """
    P = o_ref.shape[0]
    w = w_ref[...]
    b = b_ref[...]

    def window(s):
        # Static slice; offsets s*P are multiples of 8 (sublane aligned).
        y = jnp.dot(cols_ref[s * P:(s + 1) * P, :], w,
                    preferred_element_type=jnp.float32)
        return jnp.maximum(y + b, 0.0)

    o_ref[...] = jnp.maximum(jnp.maximum(window(0), window(1)),
                             jnp.maximum(window(2), window(3)))


def _stage2_kernel(cols_ref, w2_ref, b2_ref, wf1_ref, bf1_ref,
                   wf2_ref, bf2_ref, wf3_ref, bf3_ref, o_ref):
    """Fused conv2 matmul + bias + ReLU + 2x2 maxpool + fc1 + fc2 + fc3.

    cols_ref: (4*P, 256)      P = 25 * Bp rows ordered (hp2, wp2, b).
    wf1_ref:  (25, 128, 128)  fc1 weights regrouped per pooled spatial position.
    o_ref:    (Bp, 128)       logits (first 2 lanes valid).
    """
    Bp = o_ref.shape[0]
    P = cols_ref.shape[0] // 4
    n_pos = P // Bp                      # 25 spatial positions after pool2

    w2 = w2_ref[...]
    b2 = b2_ref[...]

    def window(s):
        y = jnp.dot(cols_ref[s * P:(s + 1) * P, :], w2,
                    preferred_element_type=jnp.float32)
        return jnp.maximum(y + b2, 0.0)

    pooled = jnp.maximum(jnp.maximum(window(0), window(1)),
                         jnp.maximum(window(2), window(3)))      # (P, 128)

    # fc1: sum over the 25 pooled spatial positions; rows p*Bp:(p+1)*Bp are the
    # batch for spatial position p (all slice offsets are multiples of 8).
    # Unrolled static loop of 25 tiny MXU dots; total work is negligible and
    # avoids any cross-tile reshape/transpose inside the kernel.
    acc = jnp.zeros((Bp, LANES), jnp.float32)
    for p in range(n_pos):
        acc = acc + jnp.dot(pooled[p * Bp:(p + 1) * Bp, :], wf1_ref[p],
                            preferred_element_type=jnp.float32)
    h1 = jnp.maximum(acc + bf1_ref[...], 0.0)
    h2 = jnp.maximum(jnp.dot(h1, wf2_ref[...],
                             preferred_element_type=jnp.float32) + bf2_ref[...],
                     0.0)
    o_ref[...] = (jnp.dot(h2, wf3_ref[...],
                          preferred_element_type=jnp.float32) + bf3_ref[...])


# ----------------------------- pallas_call glue ------------------------------

def _vmem_spec(shape):
    n = len(shape)
    return pl.BlockSpec(shape, lambda i, _n=n: (0,) * _n)


def _single_block_call(kernel, out_shape, operands, flops, bytes_accessed):
    return pl.pallas_call(
        kernel,
        out_shape=out_shape,
        grid=(1,),
        in_specs=[_vmem_spec(a.shape) for a in operands],
        out_specs=_vmem_spec(out_shape.shape),
        compiler_params=pltpu.CompilerParams(
            dimension_semantics=("arbitrary",)),
        cost_estimate=pl.CostEstimate(flops=int(flops), transcendentals=0,
                                      bytes_accessed=int(bytes_accessed)),
    )(*operands)


# --------------------------- weight / input prep -----------------------------

def prep_weights(params):
    """One-time repack of PyTorch-layout weights into zero-padded, lane-dense
    matmul operands (tiny XLA glue; done outside the kernels)."""
    f32 = jnp.float32
    # conv1: (6,1,5,5) -> (25, 6) -> (32, 128); rows ordered k = i*5 + j.
    w1 = params["conv1_w"].reshape(6, 25).T.astype(f32)
    w1p = jnp.zeros((32, LANES), f32).at[:25, :6].set(w1)
    b1p = jnp.zeros((1, LANES), f32).at[0, :6].set(params["conv1_b"].astype(f32))
    # conv2: (16,6,5,5) -> (150, 16); rows ordered (i, j, cin) -> pad to (256,128).
    w2 = params["conv2_w"].transpose(2, 3, 1, 0).reshape(150, 16).astype(f32)
    w2p = jnp.zeros((256, LANES), f32).at[:150, :16].set(w2)
    b2p = jnp.zeros((1, LANES), f32).at[0, :16].set(params["conv2_b"].astype(f32))
    # fc1: rows of fc1_w are ordered c*25 + p (PyTorch NCHW flatten); regroup
    # into one (128, 128) block per pooled spatial position p.
    wf1 = params["fc1_w"].reshape(16, 25, 120).transpose(1, 0, 2).astype(f32)
    wf1p = jnp.zeros((25, LANES, LANES), f32).at[:, :16, :120].set(wf1)
    bf1p = jnp.zeros((1, LANES), f32).at[0, :120].set(params["fc1_b"].astype(f32))
    wf2p = jnp.zeros((LANES, LANES), f32).at[:120, :84].set(
        params["fc2_w"].astype(f32))
    bf2p = jnp.zeros((1, LANES), f32).at[0, :84].set(params["fc2_b"].astype(f32))
    wf3p = jnp.zeros((LANES, LANES), f32).at[:84, :2].set(
        params["fc3_w"].astype(f32))
    bf3p = jnp.zeros((1, LANES), f32).at[0, :2].set(params["fc3_b"].astype(f32))
    return dict(w1p=w1p, b1p=b1p, w2p=w2p, b2p=b2p, wf1p=wf1p, bf1p=bf1p,
                wf2p=wf2p, bf2p=bf2p, wf3p=wf3p, bf3p=bf3p)


def _conv1_patches(x, b_even):
    """x: (B,1,32,32) -> cols1 (4 * b_even*196, 32). Rows are grouped by the
    2x2 pool-window offset (dh, dw) and ordered (b, hp, wp) inside a group."""
    B = x.shape[0]
    x2 = x[:, 0].astype(jnp.float32)                      # (B, 32, 32)
    if b_even > B:
        x2 = jnp.pad(x2, ((0, b_even - B), (0, 0), (0, 0)))
    pat = jnp.stack([x2[:, i:i + 28, j:j + 28]
                     for i in range(5) for j in range(5)], axis=-1)  # (Bp,28,28,25)
    pat = pat.reshape(b_even, 14, 2, 14, 2, 25)           # (b, hp, dh, wp, dw, k)
    pat = pat.transpose(2, 4, 0, 1, 3, 5)                 # (dh, dw, b, hp, wp, k)
    cols = pat.reshape(4 * b_even * 196, 25)
    return jnp.pad(cols, ((0, 0), (0, 32 - 25)))


def _conv2_patches(pooled1, b_even, b_pad8):
    """pooled1: (b_even*196, 128), rows (b, hp, wp), lanes = conv1 channels.
    Returns cols2 (4 * 25 * b_pad8, 256). Rows are grouped by the pool-2 window
    offset (dh, dw) and ordered (hp2, wp2, b) inside a group, so fc1 can take
    contiguous Bp-row slices per spatial position inside the kernel."""
    p1 = pooled1[:, :6].reshape(b_even, 14, 14, 6)
    if b_pad8 > b_even:
        p1 = jnp.pad(p1, ((0, b_pad8 - b_even), (0, 0), (0, 0), (0, 0)))
    pat = jnp.stack([p1[:, i:i + 10, j:j + 10, :]
                     for i in range(5) for j in range(5)], axis=3)  # (Bp,10,10,25,6)
    pat = pat.reshape(b_pad8, 5, 2, 5, 2, 150)            # (b, hp2, dh, wp2, dw, f)
    pat = pat.transpose(2, 4, 1, 3, 0, 5)                 # (dh, dw, hp2, wp2, b, f)
    cols = pat.reshape(4 * 25 * b_pad8, 150)
    return jnp.pad(cols, ((0, 0), (0, 256 - 150)))


# ------------------------------- LeNet5 model --------------------------------

def init_params(key):
    ks = jax.random.split(key, 10)

    def u(k, shape, fan_in):
        bound = 1.0 / jnp.sqrt(fan_in)
        return jax.random.uniform(k, shape, jnp.float32, -bound, bound)

    return {
        "conv1_w": u(ks[0], (6, 1, 5, 5), 1 * 5 * 5),
        "conv1_b": u(ks[1], (6,), 1 * 5 * 5),
        "conv2_w": u(ks[2], (16, 6, 5, 5), 6 * 5 * 5),
        "conv2_b": u(ks[3], (16,), 6 * 5 * 5),
        "fc1_w": u(ks[4], (400, 120), 400),
        "fc1_b": u(ks[5], (120,), 400),
        "fc2_w": u(ks[6], (120, 84), 120),
        "fc2_b": u(ks[7], (84,), 120),
        "fc3_w": u(ks[8], (84, 2), 84),
        "fc3_b": u(ks[9], (2,), 84),
    }


def lenet5_forward(params, x):
    B = x.shape[0]
    b_even = _round_up(B, 2)     # keeps stage-1 pool blocks (196*b_even) 8-aligned
    b_pad8 = _round_up(B, 8)     # keeps stage-2 / fc row blocks 8-aligned
    # Weight repack is tiny constant-shape XLA glue (runs per call under jit).
    # TODO(synk): hoist prep_weights out of the jitted forward if params are static.
    w = prep_weights(params)

    # ---- stage 1: conv1 + bias + ReLU + pool1 (one pallas_call) ----
    cols1 = _conv1_patches(x, b_even)                     # (4*P1, 32)
    P1 = b_even * 196
    out1_shape = jax.ShapeDtypeStruct((P1, LANES), jnp.float32)
    flops1 = 2 * (4 * P1) * 32 * LANES
    bytes1 = 4 * (cols1.size + w["w1p"].size + w["b1p"].size + P1 * LANES)
    pooled1 = _single_block_call(_stage1_kernel, out1_shape,
                                 (cols1, w["w1p"], w["b1p"]), flops1, bytes1)

    # ---- stage 2: conv2 + bias + ReLU + pool2 + fc1 + fc2 + fc3 ----
    cols2 = _conv2_patches(pooled1, b_even, b_pad8)       # (4*P2, 256)
    P2 = 25 * b_pad8
    out2_shape = jax.ShapeDtypeStruct((b_pad8, LANES), jnp.float32)
    flops2 = (2 * (4 * P2) * 256 * LANES
              + 25 * 2 * b_pad8 * LANES * LANES
              + 2 * 2 * b_pad8 * LANES * LANES)
    bytes2 = 4 * (cols2.size + w["w2p"].size + w["wf1p"].size
                  + 3 * LANES * LANES + 5 * LANES + b_pad8 * LANES)
    logits = _single_block_call(
        _stage2_kernel, out2_shape,
        (cols2, w["w2p"], w["b2p"], w["wf1p"], w["bf1p"],
         w["wf2p"], w["bf2p"], w["wf3p"], w["bf3p"]),
        flops2, bytes2)

    return logits[:B, :2]


# ---------------------------- Pure-JAX reference ----------------------------

def lenet5_reference(params, x):
    def conv(x, w, b):
        y = jax.lax.conv_general_dilated(
            x, w, window_strides=(1, 1), padding="VALID",
            dimension_numbers=("NCHW", "OIHW", "NCHW"))
        return jax.nn.relu(y + b[None, :, None, None])

    def pool(x):
        return jax.lax.reduce_window(
            x, -jnp.inf, jax.lax.max,
            window_dimensions=(1, 1, 2, 2), window_strides=(1, 1, 2, 2),
            padding="VALID")

    x = pool(conv(x, params["conv1_w"], params["conv1_b"]))
    x = pool(conv(x, params["conv2_w"], params["conv2_b"]))
    x = x.reshape(x.shape[0], -1)
    x = jax.nn.relu(x @ params["fc1_w"] + params["fc1_b"])
    x = jax.nn.relu(x @ params["fc2_w"] + params["fc2_b"])
    x = x @ params["fc3_w"] + params["fc3_b"]
    return x


# ---------------------------------- main -------------------------------------

if __name__ == "__main__":
    key = jax.random.PRNGKey(0)
    k_param, k_x = jax.random.split(key)
    params = init_params(k_param)
    # LeNet-5 geometry requires 32x32 single-channel input -> fc1 input of 400.
    x = jax.random.normal(k_x, (2, 1, 32, 32), dtype=jnp.float32)

    fwd = jax.jit(lenet5_forward)
    out = jax.block_until_ready(fwd(params, x))
    assert out.shape == (2, 2), out.shape

    ref = jax.block_until_ready(lenet5_reference(params, x))
    assert jnp.allclose(out, ref, rtol=2e-2, atol=2e-2), (out, ref)

    print("KERNEL_OK")
</pallas_src>

<mosaic_0001>
module attributes {stable_mosaic.version = 11 : i64} {
  func.func @_stage1_kernel(%arg0: i32, %arg1: memref<1568x32xf32, #tpu.memory_space<vmem>>, %arg2: memref<32x128xf32, #tpu.memory_space<vmem>>, %arg3: memref<1x128xf32, #tpu.memory_space<vmem>>, %arg4: memref<392x128xf32, #tpu.memory_space<vmem>>) attributes {dimension_semantics = [#tpu.dimension_semantics<arbitrary>], iteration_bounds = array<i64: 1>, scalar_prefetch = 0 : i64, scratch_operands = 0 : i64, tpu.core_type = #tpu.core_type<tc>, window_params = [{pipeline_mode = #tpu.pipeline_mode<synchronous>, transform_indices = @transform_0, window_bounds = array<i64: 1568, 32>}, {pipeline_mode = #tpu.pipeline_mode<synchronous>, transform_indices = @transform_1, window_bounds = array<i64: 32, 128>}, {pipeline_mode = #tpu.pipeline_mode<synchronous>, transform_indices = @transform_2, window_bounds = array<i64: 1, 128>}, {pipeline_mode = #tpu.pipeline_mode<synchronous>, transform_indices = @transform_3, window_bounds = array<i64: 392, 128>}]} {
    %c0 = arith.constant 0 : index
    %c0_0 = arith.constant 0 : index
    %0 = vector.load %arg2[%c0, %c0_0] : memref<32x128xf32, #tpu.memory_space<vmem>>, vector<32x128xf32>
    %c0_1 = arith.constant 0 : index
    %c0_2 = arith.constant 0 : index
    %1 = vector.load %arg3[%c0_1, %c0_2] : memref<1x128xf32, #tpu.memory_space<vmem>>, vector<1x128xf32>
    %c0_3 = arith.constant 0 : index
    %c0_4 = arith.constant 0 : index
    %2 = vector.load %arg1[%c0_3, %c0_4] : memref<1568x32xf32, #tpu.memory_space<vmem>>, vector<392x32xf32>
    %cst = arith.constant dense<0.000000e+00> : vector<392x128xf32>
    %3 = tpu.matmul %2, %0, %cst {dimension_numbers = #tpu.dot_dimension_numbers<[1], [0], [0], [1], [0, 0, 1, 1], [], []>} : vector<392x32xf32>, vector<32x128xf32>, vector<392x128xf32> -> vector<392x128xf32>
    %4 = vector.broadcast %1 : vector<1x128xf32> to vector<392x128xf32>
    %5 = arith.addf %3, %4 : vector<392x128xf32>
    %cst_5 = arith.constant 0.000000e+00 : f32
    %6 = vector.broadcast %cst_5 : f32 to vector<392x128xf32>
    %7 = arith.maximumf %5, %6 : vector<392x128xf32>
    %c392 = arith.constant 392 : index
    %c0_6 = arith.constant 0 : index
    %8 = vector.load %arg1[%c392, %c0_6] : memref<1568x32xf32, #tpu.memory_space<vmem>>, vector<392x32xf32>
    %cst_7 = arith.constant dense<0.000000e+00> : vector<392x128xf32>
    %9 = tpu.matmul %8, %0, %cst_7 {dimension_numbers = #tpu.dot_dimension_numbers<[1], [0], [0], [1], [0, 0, 1, 1], [], []>} : vector<392x32xf32>, vector<32x128xf32>, vector<392x128xf32> -> vector<392x128xf32>
    %10 = vector.broadcast %1 : vector<1x128xf32> to vector<392x128xf32>
    %11 = arith.addf %9, %10 : vector<392x128xf32>
    %cst_8 = arith.constant 0.000000e+00 : f32
    %12 = vector.broadcast %cst_8 : f32 to vector<392x128xf32>
    %13 = arith.maximumf %11, %12 : vector<392x128xf32>
    %14 = arith.maximumf %7, %13 : vector<392x128xf32>
    %c784 = arith.constant 784 : index
    %c0_9 = arith.constant 0 : index
    %15 = vector.load %arg1[%c784, %c0_9] : memref<1568x32xf32, #tpu.memory_space<vmem>>, vector<392x32xf32>
    %cst_10 = arith.constant dense<0.000000e+00> : vector<392x128xf32>
    %16 = tpu.matmul %15, %0, %cst_10 {dimension_numbers = #tpu.dot_dimension_numbers<[1], [0], [0], [1], [0, 0, 1, 1], [], []>} : vector<392x32xf32>, vector<32x128xf32>, vector<392x128xf32> -> vector<392x128xf32>
    %17 = vector.broadcast %1 : vector<1x128xf32> to vector<392x128xf32>
    %18 = arith.addf %16, %17 : vector<392x128xf32>
    %cst_11 = arith.constant 0.000000e+00 : f32
    %19 = vector.broadcast %cst_11 : f32 to vector<392x128xf32>
    %20 = arith.maximumf %18, %19 : vector<392x128xf32>
    %c1176 = arith.constant 1176 : index
    %c0_12 = arith.constant 0 : index
    %21 = vector.load %arg1[%c1176, %c0_12] : memref<1568x32xf32, #tpu.memory_space<vmem>>, vector<392x32xf32>
    %cst_13 = arith.constant dense<0.000000e+00> : vector<392x128xf32>
    %22 = tpu.matmul %21, %0, %cst_13 {dimension_numbers = #tpu.dot_dimension_numbers<[1], [0], [0], [1], [0, 0, 1, 1], [], []>} : vector<392x32xf32>, vector<32x128xf32>, vector<392x128xf32> -> vector<392x128xf32>
    %23 = vector.broadcast %1 : vector<1x128xf32> to vector<392x128xf32>
    %24 = arith.addf %22, %23 : vector<392x128xf32>
    %cst_14 = arith.constant 0.000000e+00 : f32
    %25 = vector.broadcast %cst_14 : f32 to vector<392x128xf32>
    %26 = arith.maximumf %24, %25 : vector<392x128xf32>
    %27 = arith.maximumf %20, %26 : vector<392x128xf32>
    %28 = arith.maximumf %14, %27 : vector<392x128xf32>
    %c0_15 = arith.constant 0 : index
    %c0_16 = arith.constant 0 : index
    %29 = vector.load %arg4[%c0_15, %c0_16] : memref<392x128xf32, #tpu.memory_space<vmem>>, vector<392x128xf32>
    tpu.vector_store %arg4[%c0_15, %c0_16], %28 {strides = array<i32>} : memref<392x128xf32, #tpu.memory_space<vmem>>, vector<392x128xf32>,
    return
  }
  func.func @transform_0(%arg0: i32) -> (i32, i32) {
    %c0_i32 = arith.constant 0 : i32
    %c0_i32_0 = arith.constant 0 : i32
    %c0_i32_1 = arith.constant 0 : i32
    return %c0_i32, %c0_i32_0 : i32, i32
  }
  func.func @transform_1(%arg0: i32) -> (i32, i32) {
    %c0_i32 = arith.constant 0 : i32
    %c0_i32_0 = arith.constant 0 : i32
    %c0_i32_1 = arith.constant 0 : i32
    return %c0_i32, %c0_i32_0 : i32, i32
  }
  func.func @transform_2(%arg0: i32) -> (i32, i32) {
    %c0_i32 = arith.constant 0 : i32
    %c0_i32_0 = arith.constant 0 : i32
    %c0_i32_1 = arith.constant 0 : i32
    return %c0_i32, %c0_i32_0 : i32, i32
  }
  func.func @transform_3(%arg0: i32) -> (i32, i32) {
    %c0_i32 = arith.constant 0 : i32
    %c0_i32_0 = arith.constant 0 : i32
    %c0_i32_1 = arith.constant 0 : i32
    return %c0_i32, %c0_i32_0 : i32, i32
  }
}

module attributes {stable_mosaic.version = 11 : i64} {
  func.func @_stage2_kernel(%arg0: i32, %arg1: memref<800x256xf32, #tpu.memory_space<vmem>>, %arg2: memref<256x128xf32, #tpu.memory_space<vmem>>, %arg3: memref<1x128xf32, #tpu.memory_space<vmem>>, %arg4: memref<25x128x128xf32, #tpu.memory_space<vmem>>, %arg5: memref<1x128xf32, #tpu.memory_space<vmem>>, %arg6: memref<128x128xf32, #tpu.memory_space<vmem>>, %arg7: memref<1x128xf32, #tpu.memory_space<vmem>>, %arg8: memref<128x128xf32, #tpu.memory_space<vmem>>, %arg9: memref<1x128xf32, #tpu.memory_space<vmem>>, %arg10: memref<8x128xf32, #tpu.memory_space<vmem>>) attributes {dimension_semantics = [#tpu.dimension_semantics<arbitrary>], iteration_bounds = array<i64: 1>, scalar_prefetch = 0 : i64, scratch_operands = 0 : i64, tpu.core_type = #tpu.core_type<tc>, window_params = [{pipeline_mode = #tpu.pipeline_mode<synchronous>, transform_indices = @transform_0, window_bounds = array<i64: 800, 256>}, {pipeline_mode = #tpu.pipeline_mode<synchronous>, transform_indices = @transform_1, window_bounds = array<i64: 256, 128>}, {pipeline_mode = #tpu.pipeline_mode<synchronous>, transform_indices = @transform_2, window_bounds = array<i64: 1, 128>}, {pipeline_mode = #tpu.pipeline_mode<synchronous>, transform_indices = @transform_3, window_bounds = array<i64: 25, 128, 128>}, {pipeline_mode = #tpu.pipeline_mode<synchronous>, transform_indices = @transform_4, window_bounds = array<i64: 1, 128>}, {pipeline_mode = #tpu.pipeline_mode<synchronous>, transform_indices = @transform_5, window_bounds = array<i64: 128, 128>}, {pipeline_mode = #tpu.pipeline_mode<synchronous>, transform_indices = @transform_6, window_bounds = array<i64: 1, 128>}, {pipeline_mode = #tpu.pipeline_mode<synchronous>, transform_indices = @transform_7, window_bounds = array<i64: 128, 128>}, {pipeline_mode = #tpu.pipeline_mode<synchronous>, transform_indices = @transform_8, window_bounds = array<i64: 1, 128>}, {pipeline_mode = #tpu.pipeline_mode<synchronous>, transform_indices = @transform_9, window_bounds = array<i64: 8, 128>}]} {
    %c0 = arith.constant 0 : index
    %c0_0 = arith.constant 0 : index
    %0 = vector.load %arg2[%c0, %c0_0] : memref<256x128xf32, #tpu.memory_space<vmem>>, vector<256x128xf32>
    %c0_1 = arith.constant 0 : index
    %c0_2 = arith.constant 0 : index
    %1 = vector.load %arg3[%c0_1, %c0_2] : memref<1x128xf32, #tpu.memory_space<vmem>>, vector<1x128xf32>
    %c0_3 = arith.constant 0 : index
    %c0_4 = arith.constant 0 : index
    %2 = vector.load %arg1[%c0_3, %c0_4] : memref<800x256xf32, #tpu.memory_space<vmem>>, vector<200x256xf32>
    %cst = arith.constant dense<0.000000e+00> : vector<200x128xf32>
    %3 = tpu.matmul %2, %0, %cst {dimension_numbers = #tpu.dot_dimension_numbers<[1], [0], [0], [1], [0, 0, 1, 1], [], []>} : vector<200x256xf32>, vector<256x128xf32>, vector<200x128xf32> -> vector<200x128xf32>
    %4 = vector.broadcast %1 : vector<1x128xf32> to vector<200x128xf32>
    %5 = arith.addf %3, %4 : vector<200x128xf32>
    %cst_5 = arith.constant 0.000000e+00 : f32
    %6 = vector.broadcast %cst_5 : f32 to vector<200x128xf32>
    %7 = arith.maximumf %5, %6 : vector<200x128xf32>
    %c200 = arith.constant 200 : index
    %c0_6 = arith.constant 0 : index
    %8 = vector.load %arg1[%c200, %c0_6] : memref<800x256xf32, #tpu.memory_space<vmem>>, vector<200x256xf32>
    %cst_7 = arith.constant dense<0.000000e+00> : vector<200x128xf32>
    %9 = tpu.matmul %8, %0, %cst_7 {dimension_numbers = #tpu.dot_dimension_numbers<[1], [0], [0], [1], [0, 0, 1, 1], [], []>} : vector<200x256xf32>, vector<256x128xf32>, vector<200x128xf32> -> vector<200x128xf32>
    %10 = vector.broadcast %1 : vector<1x128xf32> to vector<200x128xf32>
    %11 = arith.addf %9, %10 : vector<200x128xf32>
    %cst_8 = arith.constant 0.000000e+00 : f32
    %12 = vector.broadcast %cst_8 : f32 to vector<200x128xf32>
    %13 = arith.maximumf %11, %12 : vector<200x128xf32>
    %14 = arith.maximumf %7, %13 : vector<200x128xf32>
    %c400 = arith.constant 400 : index
    %c0_9 = arith.constant 0 : index
    %15 = vector.load %arg1[%c400, %c0_9] : memref<800x256xf32, #tpu.memory_space<vmem>>, vector<200x256xf32>
    %cst_10 = arith.constant dense<0.000000e+00> : vector<200x128xf32>
    %16 = tpu.matmul %15, %0, %cst_10 {dimension_numbers = #tpu.dot_dimension_numbers<[1], [0], [0], [1], [0, 0, 1, 1], [], []>} : vector<200x256xf32>, vector<256x128xf32>, vector<200x128xf32> -> vector<200x128xf32>
    %17 = vector.broadcast %1 : vector<1x128xf32> to vector<200x128xf32>
    %18 = arith.addf %16, %17 : vector<200x128xf32>
    %cst_11 = arith.constant 0.000000e+00 : f32
    %19 = vector.broadcast %cst_11 : f32 to vector<200x128xf32>
    %20 = arith.maximumf %18, %19 : vector<200x128xf32>
    %c600 = arith.constant 600 : index
    %c0_12 = arith.constant 0 : index
    %21 = vector.load %arg1[%c600, %c0_12] : memref<800x256xf32, #tpu.memory_space<vmem>>, vector<200x256xf32>
    %cst_13 = arith.constant dense<0.000000e+00> : vector<200x128xf32>
    %22 = tpu.matmul %21, %0, %cst_13 {dimension_numbers = #tpu.dot_dimension_numbers<[1], [0], [0], [1], [0, 0, 1, 1], [], []>} : vector<200x256xf32>, vector<256x128xf32>, vector<200x128xf32> -> vector<200x128xf32>
    %23 = vector.broadcast %1 : vector<1x128xf32> to vector<200x128xf32>
    %24 = arith.addf %22, %23 : vector<200x128xf32>
    %cst_14 = arith.constant 0.000000e+00 : f32
    %25 = vector.broadcast %cst_14 : f32 to vector<200x128xf32>
    %26 = arith.maximumf %24, %25 : vector<200x128xf32>
    %27 = arith.maximumf %20, %26 : vector<200x128xf32>
    %28 = arith.maximumf %14, %27 : vector<200x128xf32>
    %cst_15 = arith.constant 0.000000e+00 : f32
    %29 = vector.broadcast %cst_15 : f32 to vector<8x128xf32>
    %30 = vector.extract_strided_slice %28 {offsets = [0, 0], sizes = [8, 128], strides = [1, 1]} : vector<200x128xf32> to vector<8x128xf32>
    %c0_16 = arith.constant 0 : index
    %c0_17 = arith.constant 0 : index
    %c0_18 = arith.constant 0 : index
    %31 = vector.load %arg4[%c0_16, %c0_17, %c0_18] : memref<25x128x128xf32, #tpu.memory_space<vmem>>, vector<1x128x128xf32>
    %32 = vector.shape_cast %31 : vector<1x128x128xf32> to vector<128x128xf32>
    %cst_19 = arith.constant dense<0.000000e+00> : vector<8x128xf32>
    %33 = tpu.matmul %30, %32, %cst_19 {dimension_numbers = #tpu.dot_dimension_numbers<[1], [0], [0], [1], [0, 0, 1, 1], [], []>} : vector<8x128xf32>, vector<128x128xf32>, vector<8x128xf32> -> vector<8x128xf32>
    %34 = arith.addf %29, %33 : vector<8x128xf32>
    %35 = vector.extract_strided_slice %28 {offsets = [8, 0], sizes = [8, 128], strides = [1, 1]} : vector<200x128xf32> to vector<8x128xf32>
    %c1 = arith.constant 1 : index
    %c0_20 = arith.constant 0 : index
    %c0_21 = arith.constant 0 : index
    %36 = vector.load %arg4[%c1, %c0_20, %c0_21] : memref<25x128x128xf32, #tpu.memory_space<vmem>>, vector<1x128x128xf32>
    %37 = vector.shape_cast %36 : vector<1x128x128xf32> to vector<128x128xf32>
    %cst_22 = arith.constant dense<0.000000e+00> : vector<8x128xf32>
    %38 = tpu.matmul %35, %37, %cst_22 {dimension_numbers = #tpu.dot_dimension_numbers<[1], [0], [0], [1], [0, 0, 1, 1], [], []>} : vector<8x128xf32>, vector<128x128xf32>, vector<8x128xf32> -> vector<8x128xf32>
    %39 = arith.addf %34, %38 : vector<8x128xf32>
    %40 = vector.extract_strided_slice %28 {offsets = [16, 0], sizes = [8, 128], strides = [1, 1]} : vector<200x128xf32> to vector<8x128xf32>
    %c2 = arith.constant 2 : index
    %c0_23 = arith.constant 0 : index
    %c0_24 = arith.constant 0 : index
    %41 = vector.load %arg4[%c2, %c0_23, %c0_24] : memref<25x128x128xf32, #tpu.memory_space<vmem>>, vector<1x128x128xf32>
    %42 = vector.shape_cast %41 : vector<1x128x128xf32> to vector<128x128xf32>
    %cst_25 = arith.constant dense<0.000000e+00> : vector<8x128xf32>
    %43 = tpu.matmul %40, %42, %cst_25 {dimension_numbers = #tpu.dot_dimension_numbers<[1], [0], [0], [1], [0, 0, 1, 1], [], []>} : vector<8x128xf32>, vector<128x128xf32>, vector<8x128xf32> -> vector<8x128xf32>
    %44 = arith.addf %39, %43 : vector<8x128xf32>
    %45 = vector.extract_strided_slice %28 {offsets = [24, 0], sizes = [8, 128], strides = [1, 1]} : vector<200x128xf32> to vector<8x128xf32>
    %c3 = arith.constant 3 : index
    %c0_26 = arith.constant 0 : index
    %c0_27 = arith.constant 0 : index
    %46 = vector.load %arg4[%c3, %c0_26, %c0_27] : memref<25x128x128xf32, #tpu.memory_space<vmem>>, vector<1x128x128xf32>
    %47 = vector.shape_cast %46 : vector<1x128x128xf32> to vector<128x128xf32>
    %cst_28 = arith.constant dense<0.000000e+00> : vector<8x128xf32>
    %48 = tpu.matmul %45, %47, %cst_28 {dimension_numbers = #tpu.dot_dimension_numbers<[1], [0], [0], [1], [0, 0, 1, 1], [], []>} : vector<8x128xf32>, vector<128x128xf32>, vector<8x128xf32> -> vector<8x128xf32>
    %49 = arith.addf %44, %48 : vector<8x128xf32>
    %50 = vector.extract_strided_slice %28 {offsets = [32, 0], sizes = [8, 128], strides = [1, 1]} : vector<200x128xf32> to vector<8x128xf32>
    %c4 = arith.constant 4 : index
    %c0_29 = arith.constant 0 : index
    %c0_30 = arith.constant 0 : index
    %51 = vector.load %arg4[%c4, %c0_29, %c0_30] : memref<25x128x128xf32, #tpu.memory_space<vmem>>, vector<1x128x128xf32>
    %52 = vector.shape_cast %51 : vector<1x128x128xf32> to vector<128x128xf32>
    %cst_31 = arith.constant dense<0.000000e+00> : vector<8x128xf32>
    %53 = tpu.matmul %50, %52, %cst_31 {dimension_numbers = #tpu.dot_dimension_numbers<[1], [0], [0], [1], [0, 0, 1, 1], [], []>} : vector<8x128xf32>, vector<128x128xf32>, vector<8x128xf32> -> vector<8x128xf32>
    %54 = arith.addf %49, %53 : vector<8x128xf32>
    %55 = vector.extract_strided_slice %28 {offsets = [40, 0], sizes = [8, 128], strides = [1, 1]} : vector<200x128xf32> to vector<8x128xf32>
    %c5 = arith.constant 5 : index
    %c0_32 = arith.constant 0 : index
    %c0_33 = arith.constant 0 : index
    %56 = vector.load %arg4[%c5, %c0_32, %c0_33] : memref<25x128x128xf32, #tpu.memory_space<vmem>>, vector<1x128x128xf32>
    %57 = vector.shape_cast %56 : vector<1x128x128xf32> to vector<128x128xf32>
    %cst_34 = arith.constant dense<0.000000e+00> : vector<8x128xf32>
    %58 = tpu.matmul %55, %57, %cst_34 {dimension_numbers = #tpu.dot_dimension_numbers<[1], [0], [0], [1], [0, 0, 1, 1], [], []>} : vector<8x128xf32>, vector<128x128xf32>, vector<8x128xf32> -> vector<8x128xf32>
    %59 = arith.addf %54, %58 : vector<8x128xf32>
    %60 = vector.extract_strided_slice %28 {offsets = [48, 0], sizes = [8, 128], strides = [1, 1]} : vector<200x128xf32> to vector<8x128xf32>
    %c6 = arith.constant 6 : index
    %c0_35 = arith.constant 0 : index
    %c0_36 = arith.constant 0 : index
    %61 = vector.load %arg4[%c6, %c0_35, %c0_36] : memref<25x128x128xf32, #tpu.memory_space<vmem>>, vector<1x128x128xf32>
    %62 = vector.shape_cast %61 : vector<1x128x128xf32> to vector<128x128xf32>
    %cst_37 = arith.constant dense<0.000000e+00> : vector<8x128xf32>
    %63 = tpu.matmul %60, %62, %cst_37 {dimension_numbers = #tpu.dot_dimension_numbers<[1], [0], [0], [1], [0, 0, 1, 1], [], []>} : vector<8x128xf32>, vector<128x128xf32>, vector<8x128xf32> -> vector<8x128xf32>
    %64 = arith.addf %59, %63 : vector<8x128xf32>
    %65 = vector.extract_strided_slice %28 {offsets = [56, 0], sizes = [8, 128], strides = [1, 1]} : vector<200x128xf32> to vector<8x128xf32>
    %c7 = arith.constant 7 : index
    %c0_38 = arith.constant 0 : index
    %c0_39 = arith.constant 0 : index
    %66 = vector.load %arg4[%c7, %c0_38, %c0_39] : memref<25x128x128xf32, #tpu.memory_space<vmem>>, vector<1x128x128xf32>
    %67 = vector.shape_cast %66 : vector<1x128x128xf32> to vector<128x128xf32>
    %cst_40 = arith.constant dense<0.000000e+00> : vector<8x128xf32>
    %68 = tpu.matmul %65, %67, %cst_40 {dimension_numbers = #tpu.dot_dimension_numbers<[1], [0], [0], [1], [0, 0, 1, 1], [], []>} : vector<8x128xf32>, vector<128x128xf32>, vector<8x128xf32> -> vector<8x128xf32>
    %69 = arith.addf %64, %68 : vector<8x128xf32>
    %70 = vector.extract_strided_slice %28 {offsets = [64, 0], sizes = [8, 128], strides = [1, 1]} : vector<200x128xf32> to vector<8x128xf32>
    %c8 = arith.constant 8 : index
    %c0_41 = arith.constant 0 : index
    %c0_42 = arith.constant 0 : index
    %71 = vector.load %arg4[%c8, %c0_41, %c0_42] : memref<25x128x128xf32, #tpu.memory_space<vmem>>, vector<1x128x128xf32>
    %72 = vector.shape_cast %71 : vector<1x128x128xf32> to vector<128x128xf32>
    %cst_43 = arith.constant dense<0.000000e+00> : vector<8x128xf32>
    %73 = tpu.matmul %70, %72, %cst_43 {dimension_numbers = #tpu.dot_dimension_numbers<[1], [0], [0], [1], [0, 0, 1, 1], [], []>} : vector<8x128xf32>, vector<128x128xf32>, vector<8x128xf32> -> vector<8x128xf32>
    %74 = arith.addf %69, %73 : vector<8x128xf32>
    %75 = vector.extract_strided_slice %28 {offsets = [72, 0], sizes = [8, 128], strides = [1, 1]} : vector<200x128xf32> to vector<8x128xf32>
    %c9 = arith.constant 9 : index
    %c0_44 = arith.constant 0 : index
    %c0_45 = arith.constant 0 : index
    %76 = vector.load %arg4[%c9, %c0_44, %c0_45] : memref<25x128x128xf32, #tpu.memory_space<vmem>>, vector<1x128x128xf32>
    %77 = vector.shape_cast %76 : vector<1x128x128xf32> to vector<128x128xf32>
    %cst_46 = arith.constant dense<0.000000e+00> : vector<8x128xf32>
    %78 = tpu.matmul %75, %77, %cst_46 {dimension_numbers = #tpu.dot_dimension_numbers<[1], [0], [0], [1], [0, 0, 1, 1], [], []>} : vector<8x128xf32>, vector<128x128xf32>, vector<8x128xf32> -> vector<8x128xf32>
    %79 = arith.addf %74, %78 : vector<8x128xf32>
    %80 = vector.extract_strided_slice %28 {offsets = [80, 0], sizes = [8, 128], strides = [1, 1]} : vector<200x128xf32> to vector<8x128xf32>
    %c10 = arith.constant 10 : index
    %c0_47 = arith.constant 0 : index
    %c0_48 = arith.constant 0 : index
    %81 = vector.load %arg4[%c10, %c0_47, %c0_48] : memref<25x128x128xf32, #tpu.memory_space<vmem>>, vector<1x128x128xf32>
    %82 = vector.shape_cast %81 : vector<1x128x128xf32> to vector<128x128xf32>
    %cst_49 = arith.constant dense<0.000000e+00> : vector<8x128xf32>
    %83 = tpu.matmul %80, %82, %cst_49 {dimension_numbers = #tpu.dot_dimension_numbers<[1], [0], [0], [1], [0, 0, 1, 1], [], []>} : vector<8x128xf32>, vector<128x128xf32>, vector<8x128xf32> -> vector<8x128xf32>
    %84 = arith.addf %79, %83 : vector<8x128xf32>
    %85 = vector.extract_strided_slice %28 {offsets = [88, 0], sizes = [8, 128], strides = [1, 1]} : vector<200x128xf32> to vector<8x128xf32>
    %c11 = arith.constant 11 : index
    %c0_50 = arith.constant 0 : index
    %c0_51 = arith.constant 0 : index
    %86 = vector.load %arg4[%c11, %c0_50, %c0_51] : memref<25x128x128xf32, #tpu.memory_space<vmem>>, vector<1x128x128xf32>
    %87 = vector.shape_cast %86 : vector<1x128x128xf32> to vector<128x128xf32>
    %cst_52 = arith.constant dense<0.000000e+00> : vector<8x128xf32>
    %88 = tpu.matmul %85, %87, %cst_52 {dimension_numbers = #tpu.dot_dimension_numbers<[1], [0], [0], [1], [0, 0, 1, 1], [], []>} : vector<8x128xf32>, vector<128x128xf32>, vector<8x128xf32> -> vector<8x128xf32>
    %89 = arith.addf %84, %88 : vector<8x128xf32>
    %90 = vector.extract_strided_slice %28 {offsets = [96, 0], sizes = [8, 128], strides = [1, 1]} : vector<200x128xf32> to vector<8x128xf32>
    %c12 = arith.constant 12 : index
    %c0_53 = arith.constant 0 : index
    %c0_54 = arith.constant 0 : index
    %91 = vector.load %arg4[%c12, %c0_53, %c0_54] : memref<25x128x128xf32, #tpu.memory_space<vmem>>, vector<1x128x128xf32>
    %92 = vector.shape_cast %91 : vector<1x128x128xf32> to vector<128x128xf32>
    %cst_55 = arith.constant dense<0.000000e+00> : vector<8x128xf32>
    %93 = tpu.matmul %90, %92, %cst_55 {dimension_numbers = #tpu.dot_dimension_numbers<[1], [0], [0], [1], [0, 0, 1, 1], [], []>} : vector<8x128xf32>, vector<128x128xf32>, vector<8x128xf32> -> vector<8x128xf32>
    %94 = arith.addf %89, %93 : vector<8x128xf32>
    %95 = vector.extract_strided_slice %28 {offsets = [104, 0], sizes = [8, 128], strides = [1, 1]} : vector<200x128xf32> to vector<8x128xf32>
    %c13 = arith.constant 13 : index
    %c0_56 = arith.constant 0 : index
    %c0_57 = arith.constant 0 : index
    %96 = vector.load %arg4[%c13, %c0_56, %c0_57] : memref<25x128x128xf32, #tpu.memory_space<vmem>>, vector<1x128x128xf32>
    %97 = vector.shape_cast %96 : vector<1x128x128xf32> to vector<128x128xf32>
    %cst_58 = arith.constant dense<0.000000e+00> : vector<8x128xf32>
    %98 = tpu.matmul %95, %97, %cst_58 {dimension_numbers = #tpu.dot_dimension_numbers<[1], [0], [0], [1], [0, 0, 1, 1], [], []>} : vector<8x128xf32>, vector<128x128xf32>, vector<8x128xf32> -> vector<8x128xf32>
    %99 = arith.addf %94, %98 : vector<8x128xf32>
    %100 = vector.extract_strided_slice %28 {offsets = [112, 0], sizes = [8, 128], strides = [1, 1]} : vector<200x128xf32> to vector<8x128xf32>
    %c14 = arith.constant 14 : index
    %c0_59 = arith.constant 0 : index
    %c0_60 = arith.constant 0 : index
    %101 = vector.load %arg4[%c14, %c0_59, %c0_60] : memref<25x128x128xf32, #tpu.memory_space<vmem>>, vector<1x128x128xf32>
    %102 = vector.shape_cast %101 : vector<1x128x128xf32> to vector<128x128xf32>
    %cst_61 = arith.constant dense<0.000000e+00> : vector<8x128xf32>
    %103 = tpu.matmul %100, %102, %cst_61 {dimension_numbers = #tpu.dot_dimension_numbers<[1], [0], [0], [1], [0, 0, 1, 1], [], []>} : vector<8x128xf32>, vector<128x128xf32>, vector<8x128xf32> -> vector<8x128xf32>
    %104 = arith.addf %99, %103 : vector<8x128xf32>
    %105 = vector.extract_strided_slice %28 {offsets = [120, 0], sizes = [8, 128], strides = [1, 1]} : vector<200x128xf32> to vector<8x128xf32>
    %c15 = arith.constant 15 : index
    %c0_62 = arith.constant 0 : index
    %c0_63 = arith.constant 0 : index
    %106 = vector.load %arg4[%c15, %c0_62, %c0_63] : memref<25x128x128xf32, #tpu.memory_space<vmem>>, vector<1x128x128xf32>
    %107 = vector.shape_cast %106 : vector<1x128x128xf32> to vector<128x128xf32>
    %cst_64 = arith.constant dense<0.000000e+00> : vector<8x128xf32>
    %108 = tpu.matmul %105, %107, %cst_64 {dimension_numbers = #tpu.dot_dimension_numbers<[1], [0], [0], [1], [0, 0, 1, 1], [], []>} : vector<8x128xf32>, vector<128x128xf32>, vector<8x128xf32> -> vector<8x128xf32>
    %109 = arith.addf %104, %108 : vector<8x128xf32>
    %110 = vector.extract_strided_slice %28 {offsets = [128, 0], sizes = [8, 128], strides = [1, 1]} : vector<200x128xf32> to vector<8x128xf32>
    %c16 = arith.constant 16 : index
    %c0_65 = arith.constant 0 : index
    %c0_66 = arith.constant 0 : index
    %111 = vector.load %arg4[%c16, %c0_65, %c0_66] : memref<25x128x128xf32, #tpu.memory_space<vmem>>, vector<1x128x128xf32>
    %112 = vector.shape_cast %111 : vector<1x128x128xf32> to vector<128x128xf32>
    %cst_67 = arith.constant dense<0.000000e+00> : vector<8x128xf32>
    %113 = tpu.matmul %110, %112, %cst_67 {dimension_numbers = #tpu.dot_dimension_numbers<[1], [0], [0], [1], [0, 0, 1, 1], [], []>} : vector<8x128xf32>, vector<128x128xf32>, vector<8x128xf32> -> vector<8x128xf32>
    %114 = arith.addf %109, %113 : vector<8x128xf32>
    %115 = vector.extract_strided_slice %28 {offsets = [136, 0], sizes = [8, 128], strides = [1, 1]} : vector<200x128xf32> to vector<8x128xf32>
    %c17 = arith.constant 17 : index
    %c0_68 = arith.constant 0 : index
    %c0_69 = arith.constant 0 : index
    %116 = vector.load %arg4[%c17, %c0_68, %c0_69] : memref<25x128x128xf32, #tpu.memory_space<vmem>>, vector<1x128x128xf32>
    %117 = vector.shape_cast %116 : vector<1x128x128xf32> to vector<128x128xf32>
    %cst_70 = arith.constant dense<0.000000e+00> : vector<8x128xf32>
    %118 = tpu.matmul %115, %117, %cst_70 {dimension_numbers = #tpu.dot_dimension_numbers<[1], [0], [0], [1], [0, 0, 1, 1], [], []>} : vector<8x128xf32>, vector<128x128xf32>, vector<8x128xf32> -> vector<8x128xf32>
    %119 = arith.addf %114, %118 : vector<8x128xf32>
    %120 = vector.extract_strided_slice %28 {offsets = [144, 0], sizes = [8, 128], strides = [1, 1]} : vector<200x128xf32> to vector<8x128xf32>
    %c18 = arith.constant 18 : index
    %c0_71 = arith.constant 0 : index
    %c0_72 = arith.constant 0 : index
    %121 = vector.load %arg4[%c18, %c0_71, %c0_72] : memref<25x128x128xf32, #tpu.memory_space<vmem>>, vector<1x128x128xf32>
    %122 = vector.shape_cast %121 : vector<1x128x128xf32> to vector<128x128xf32>
    %cst_73 = arith.constant dense<0.000000e+00> : vector<8x128xf32>
    %123 = tpu.matmul %120, %122, %cst_73 {dimension_numbers = #tpu.dot_dimension_numbers<[1], [0], [0], [1], [0, 0, 1, 1], [], []>} : vector<8x128xf32>, vector<128x128xf32>, vector<8x128xf32> -> vector<8x128xf32>
    %124 = arith.addf %119, %123 : vector<8x128xf32>
    %125 = vector.extract_strided_slice %28 {offsets = [152, 0], sizes = [8, 128], strides = [1, 1]} : vector<200x128xf32> to vector<8x128xf32>
    %c19 = arith.constant 19 : index
    %c0_74 = arith.constant 0 : index
    %c0_75 = arith.constant 0 : index
    %126 = vector.load %arg4[%c19, %c0_74, %c0_75] : memref<25x128x128xf32, #tpu.memory_space<vmem>>, vector<1x128x128xf32>
    %127 = vector.shape_cast %126 : vector<1x128x128xf32> to vector<128x128xf32>
    %cst_76 = arith.constant dense<0.000000e+00> : vector<8x128xf32>
    %128 = tpu.matmul %125, %127, %cst_76 {dimension_numbers = #tpu.dot_dimension_numbers<[1], [0], [0], [1], [0, 0, 1, 1], [], []>} : vector<8x128xf32>, vector<128x128xf32>, vector<8x128xf32> -> vector<8x128xf32>
    %129 = arith.addf %124, %128 : vector<8x128xf32>
    %130 = vector.extract_strided_slice %28 {offsets = [160, 0], sizes = [8, 128], strides = [1, 1]} : vector<200x128xf32> to vector<8x128xf32>
    %c20 = arith.constant 20 : index
    %c0_77 = arith.constant 0 : index
    %c0_78 = arith.constant 0 : index
    %131 = vector.load %arg4[%c20, %c0_77, %c0_78] : memref<25x128x128xf32, #tpu.memory_space<vmem>>, vector<1x128x128xf32>
    %132 = vector.shape_cast %131 : vector<1x128x128xf32> to vector<128x128xf32>
    %cst_79 = arith.constant dense<0.000000e+00> : vector<8x128xf32>
    %133 = tpu.matmul %130, %132, %cst_79 {dimension_numbers = #tpu.dot_dimension_numbers<[1], [0], [0], [1], [0, 0, 1, 1], [], []>} : vector<8x128xf32>, vector<128x128xf32>, vector<8x128xf32> -> vector<8x128xf32>
    %134 = arith.addf %129, %133 : vector<8x128xf32>
    %135 = vector.extract_strided_slice %28 {offsets = [168, 0], sizes = [8, 128], strides = [1, 1]} : vector<200x128xf32> to vector<8x128xf32>
    %c21 = arith.constant 21 : index
    %c0_80 = arith.constant 0 : index
    %c0_81 = arith.constant 0 : index
    %136 = vector.load %arg4[%c21, %c0_80, %c0_81] : memref<25x128x128xf32, #tpu.memory_space<vmem>>, vector<1x128x128xf32>
    %137 = vector.shape_cast %136 : vector<1x128x128xf32> to vector<128x128xf32>
    %cst_82 = arith.constant dense<0.000000e+00> : vector<8x128xf32>
    %138 = tpu.matmul %135, %137, %cst_82 {dimension_numbers = #tpu.dot_dimension_numbers<[1], [0], [0], [1], [0, 0, 1, 1], [], []>} : vector<8x128xf32>, vector<128x128xf32>, vector<8x128xf32> -> vector<8x128xf32>
    %139 = arith.addf %134, %138 : vector<8x128xf32>
    %140 = vector.extract_strided_slice %28 {offsets = [176, 0], sizes = [8, 128], strides = [1, 1]} : vector<200x128xf32> to vector<8x128xf32>
    %c22 = arith.constant 22 : index
    %c0_83 = arith.constant 0 : index
    %c0_84 = arith.constant 0 : index
    %141 = vector.load %arg4[%c22, %c0_83, %c0_84] : memref<25x128x128xf32, #tpu.memory_space<vmem>>, vector<1x128x128xf32>
    %142 = vector.shape_cast %141 : vector<1x128x128xf32> to vector<128x128xf32>
    %cst_85 = arith.constant dense<0.000000e+00> : vector<8x128xf32>
    %143 = tpu.matmul %140, %142, %cst_85 {dimension_numbers = #tpu.dot_dimension_numbers<[1], [0], [0], [1], [0, 0, 1, 1], [], []>} : vector<8x128xf32>, vector<128x128xf32>, vector<8x128xf32> -> vector<8x128xf32>
    %144 = arith.addf %139, %143 : vector<8x128xf32>
    %145 = vector.extract_strided_slice %28 {offsets = [184, 0], sizes = [8, 128], strides = [1, 1]} : vector<200x128xf32> to vector<8x128xf32>
    %c23 = arith.constant 23 : index
    %c0_86 = arith.constant 0 : index
    %c0_87 = arith.constant 0 : index
    %146 = vector.load %arg4[%c23, %c0_86, %c0_87] : memref<25x128x128xf32, #tpu.memory_space<vmem>>, vector<1x128x128xf32>
    %147 = vector.shape_cast %146 : vector<1x128x128xf32> to vector<128x128xf32>
    %cst_88 = arith.constant dense<0.000000e+00> : vector<8x128xf32>
    %148 = tpu.matmul %145, %147, %cst_88 {dimension_numbers = #tpu.dot_dimension_numbers<[1], [0], [0], [1], [0, 0, 1, 1], [], []>} : vector<8x128xf32>, vector<128x128xf32>, vector<8x128xf32> -> vector<8x128xf32>
    %149 = arith.addf %144, %148 : vector<8x128xf32>
    %150 = vector.extract_strided_slice %28 {offsets = [192, 0], sizes = [8, 128], strides = [1, 1]} : vector<200x128xf32> to vector<8x128xf32>
    %c24 = arith.constant 24 : index
    %c0_89 = arith.constant 0 : index
    %c0_90 = arith.constant 0 : index
    %151 = vector.load %arg4[%c24, %c0_89, %c0_90] : memref<25x128x128xf32, #tpu.memory_space<vmem>>, vector<1x128x128xf32>
    %152 = vector.shape_cast %151 : vector<1x128x128xf32> to vector<128x128xf32>
    %cst_91 = arith.constant dense<0.000000e+00> : vector<8x128xf32>
    %153 = tpu.matmul %150, %152, %cst_91 {dimension_numbers = #tpu.dot_dimension_numbers<[1], [0], [0], [1], [0, 0, 1, 1], [], []>} : vector<8x128xf32>, vector<128x128xf32>, vector<8x128xf32> -> vector<8x128xf32>
    %154 = arith.addf %149, %153 : vector<8x128xf32>
    %c0_92 = arith.constant 0 : index
    %c0_93 = arith.constant 0 : index
    %155 = vector.load %arg5[%c0_92, %c0_93] : memref<1x128xf32, #tpu.memory_space<vmem>>, vector<1x128xf32>
    %156 = vector.broadcast %155 : vector<1x128xf32> to vector<8x128xf32>
    %157 = arith.addf %154, %156 : vector<8x128xf32>
    %cst_94 = arith.constant 0.000000e+00 : f32
    %158 = vector.broadcast %cst_94 : f32 to vector<8x128xf32>
    %159 = arith.maximumf %157, %158 : vector<8x128xf32>
    %c0_95 = arith.constant 0 : index
    %c0_96 = arith.constant 0 : index
    %160 = vector.load %arg6[%c0_95, %c0_96] : memref<128x128xf32, #tpu.memory_space<vmem>>, vector<128x128xf32>
    %cst_97 = arith.constant dense<0.000000e+00> : vector<8x128xf32>
    %161 = tpu.matmul %159, %160, %cst_97 {dimension_numbers = #tpu.dot_dimension_numbers<[1], [0], [0], [1], [0, 0, 1, 1], [], []>} : vector<8x128xf32>, vector<128x128xf32>, vector<8x128xf32> -> vector<8x128xf32>
    %c0_98 = arith.constant 0 : index
    %c0_99 = arith.constant 0 : index
    %162 = vector.load %arg7[%c0_98, %c0_99] : memref<1x128xf32, #tpu.memory_space<vmem>>, vector<1x128xf32>
    %163 = vector.broadcast %162 : vector<1x128xf32> to vector<8x128xf32>
    %164 = arith.addf %161, %163 : vector<8x128xf32>
    %cst_100 = arith.constant 0.000000e+00 : f32
    %165 = vector.broadcast %cst_100 : f32 to vector<8x128xf32>
    %166 = arith.maximumf %164, %165 : vector<8x128xf32>
    %c0_101 = arith.constant 0 : index
    %c0_102 = arith.constant 0 : index
    %167 = vector.load %arg8[%c0_101, %c0_102] : memref<128x128xf32, #tpu.memory_space<vmem>>, vector<128x128xf32>
    %cst_103 = arith.constant dense<0.000000e+00> : vector<8x128xf32>
    %168 = tpu.matmul %166, %167, %cst_103 {dimension_numbers = #tpu.dot_dimension_numbers<[1], [0], [0], [1], [0, 0, 1, 1], [], []>} : vector<8x128xf32>, vector<128x128xf32>, vector<8x128xf32> -> vector<8x128xf32>
    %c0_104 = arith.constant 0 : index
    %c0_105 = arith.constant 0 : index
    %169 = vector.load %arg9[%c0_104, %c0_105] : memref<1x128xf32, #tpu.memory_space<vmem>>, vector<1x128xf32>
    %170 = vector.broadcast %169 : vector<1x128xf32> to vector<8x128xf32>
    %171 = arith.addf %168, %170 : vector<8x128xf32>
    %c0_106 = arith.constant 0 : index
    %c0_107 = arith.constant 0 : index
    %172 = vector.load %arg10[%c0_106, %c0_107] : memref<8x128xf32, #tpu.memory_space<vmem>>, vector<8x128xf32>
    tpu.vector_store %arg10[%c0_106, %c0_107], %171 {strides = array<i32>} : memref<8x128xf32, #tpu.memory_space<vmem>>, vector<8x128xf32>,
    return
  }
  func.func @transform_0(%arg0: i32) -> (i32, i32) {
    %c0_i32 = arith.constant 0 : i32
    %c0_i32_0 = arith.constant 0 : i32
    %c0_i32_1 = arith.constant 0 : i32
    return %c0_i32, %c0_i32_0 : i32, i32
  }
  func.func @transform_1(%arg0: i32) -> (i32, i32) {
    %c0_i32 = arith.constant 0 : i32
    %c0_i32_0 = arith.constant 0 : i32
    %c0_i32_1 = arith.constant 0 : i32
    return %c0_i32, %c0_i32_0 : i32, i32
  }
  func.func @transform_2(%arg0: i32) -> (i32, i32) {
    %c0_i32 = arith.constant 0 : i32
    %c0_i32_0 = arith.constant 0 : i32
    %c0_i32_1 = arith.constant 0 : i32
    return %c0_i32, %c0_i32_0 : i32, i32
  }
  func.func @transform_3(%arg0: i32) -> (i32, i32, i32) {
    %c0_i32 = arith.constant 0 : i32
    %c0_i32_0 = arith.constant 0 : i32
    %c0_i32_1 = arith.constant 0 : i32
    %c0_i32_2 = arith.constant 0 : i32
    return %c0_i32, %c0_i32_0, %c0_i32_1 : i32, i32, i32
  }
  func.func @transform_4(%arg0: i32) -> (i32, i32) {
    %c0_i32 = arith.constant 0 : i32
    %c0_i32_0 = arith.constant 0 : i32
    %c0_i32_1 = arith.constant 0 : i32
    return %c0_i32, %c0_i32_0 : i32, i32
  }
  func.func @transform_5(%arg0: i32) -> (i32, i32) {
    %c0_i32 = arith.constant 0 : i32
    %c0_i32_0 = arith.constant 0 : i32
    %c0_i32_1 = arith.constant 0 : i32
    return %c0_i32, %c0_i32_0 : i32, i32
  }
  func.func @transform_6(%arg0: i32) -> (i32, i32) {
    %c0_i32 = arith.constant 0 : i32
    %c0_i32_0 = arith.constant 0 : i32
    %c0_i32_1 = arith.constant 0 : i32
    return %c0_i32, %c0_i32_0 : i32, i32
  }
  func.func @transform_7(%arg0: i32) -> (i32, i32) {
    %c0_i32 = arith.constant 0 : i32
    %c0_i32_0 = arith.constant 0 : i32
    %c0_i32_1 = arith.constant 0 : i32
    return %c0_i32, %c0_i32_0 : i32, i32
  }
  func.func @transform_8(%arg0: i32) -> (i32, i32) {
    %c0_i32 = arith.constant 0 : i32
    %c0_i32_0 = arith.constant 0 : i32
    %c0_i32_1 = arith.constant 0 : i32
    return %c0_i32, %c0_i32_0 : i32, i32
  }
  func.func @transform_9(%arg0: i32) -> (i32, i32) {
    %c0_i32 = arith.constant 0 : i32
    %c0_i32_0 = arith.constant 0 : i32
    %c0_i32_1 = arith.constant 0 : i32
    return %c0_i32, %c0_i32_0 : i32, i32
  }
}

</mosaic_0001>

<bundles_post_ra>
// kernel: lenet5_forward.2
= control target key start
LH: loop header
LB: loop body
LE: loop exit
PB: predicated region body
PF: predicated region fallthrough
CT: control target
= control target key end

     0   :  { %v3504_v0 = vmov 0.0|0.0   ;;  %vm3505_vm0 = vmmov 0   ;;  %v3506_v6 = vmov 0.0   ;;  %vm74_vm1 = vcmask 261120   ;;  %s5220_s1 = inlined_call_operand.vmem [shape: f32[32,128], index: 1, kind: input, shape index: {}]   ;;  %s5221_s0 = inlined_call_operand.vmem [shape: f32[1568,32], index: 0, kind: input, shape index: {}]   ;;  %s5222_s2 = inlined_call_operand.vmem [shape: f32[1,128], index: 2, kind: input, shape index: {}]   ;;  %s5223_s3 = inlined_call_operand.vmem [shape: f32[392,128], index: 3, kind: output, shape index: {}]  }
   0x1   :  { %3475 = vmatprep.subr.bf16.mxu0 %v3504_v0  ;;  %3481 = vmatprep.subr.bf16.mxu1 %v3504_v0  ;;  %v14_v1 = vld [vmem:[%s5220_s1] sm:$0xff]  ;;  %v15_v2 = vld [vmem:[%s5220_s1 + $0x8] sm:$0xff]  ;;  %v16_v3 = vld [vmem:[%s5220_s1 + $0x10] sm:$0xff] }
   0x2   :  { %v3476_v4 = vpack.c.bf16 %v15_v2, %v14_v1  ;;  %v17_v5 = vld [vmem:[%s5220_s1 + $0x18] sm:$0xff]  ;;  %2863 = vmatprep.mubr.msk.f32.mxu0 %vm3505_vm0, %v3506_v6  ;;  %3018 = vmatprep.mubr.msk.f32.mxu1 %vm3505_vm0, %v3506_v6  ;;  %v19_v8 = vld [vmem:[%s5221_s0] sm:$0xff]  ;;  %v581_v9 = vld [vmem:[%s5221_s0 + $0x188] sm:$0xff] }
   0x3   :  { %v3479_v7 = vpack.c.bf16 %v17_v5, %v16_v3  ;;  %v20_v10 = vld [vmem:[%s5221_s0 + $0x8] sm:$0xff]  ;;  %v582_v11 = vld [vmem:[%s5221_s0 + $0x190] sm:$0xff]  ;;  %v583_v13 = vld [vmem:[%s5221_s0 + $0x198] sm:$0xff] }
   0x4   :  { %3477 = vmatpush3.bf16.msra.mxu0 %v3476_v4  ;;  %3483 = vmatpush3.bf16.msra.mxu1 %v3476_v4  ;;  %v21_v12 = vld [vmem:[%s5221_s0 + $0x10] sm:$0xff]  ;;  %v22_v14 = vld [vmem:[%s5221_s0 + $0x18] sm:$0xff]  ;;  %v584_v15 = vld [vmem:[%s5221_s0 + $0x1a0] sm:$0xff] }
   0x5   :  { %3478 = vmatprep.subr.bf16.mxu0 %v3504_v0  ;;  %3484 = vmatprep.subr.bf16.mxu1 %v3504_v0  ;;  %v23_v16 = vld [vmem:[%s5221_s0 + $0x20] sm:$0xff]  ;;  %v585_v17 = vld [vmem:[%s5221_s0 + $0x1a8] sm:$0xff]  ;;  %v586_v19 = vld [vmem:[%s5221_s0 + $0x1b0] sm:$0xff] }
   0x6   :  { %v24_v18 = vld [vmem:[%s5221_s0 + $0x28] sm:$0xff]  ;;  %v25_v20 = vld [vmem:[%s5221_s0 + $0x30] sm:$0xff]  ;;  %v587_v21 = vld [vmem:[%s5221_s0 + $0x1b8] sm:$0xff] }
   0x7   :  { %v26_v22 = vld [vmem:[%s5221_s0 + $0x38] sm:$0xff]  ;;  %v588_v23 = vld [vmem:[%s5221_s0 + $0x1c0] sm:$0xff]  ;;  %v589_v25 = vld [vmem:[%s5221_s0 + $0x1c8] sm:$0xff] }
   0x8   :  { %3480 = vmatpush3.bf16.msra.mxu0 %v3479_v7  ;;  %3486 = vmatpush3.bf16.msra.mxu1 %v3479_v7  ;;  %v27_v24 = vld [vmem:[%s5221_s0 + $0x40] sm:$0xff]  ;;  %v28_v26 = vld [vmem:[%s5221_s0 + $0x48] sm:$0xff]  ;;  %v590_v27 = vld [vmem:[%s5221_s0 + $0x1d0] sm:$0xff] }
   0x9   :  { %3487 = vmatprep.subr.bf16.mxu0 %v3504_v0  ;;  %3493 = vmatprep.subr.bf16.mxu1 %v3504_v0  ;;  %v29_v28 = vld [vmem:[%s5221_s0 + $0x50] sm:$0xff]  ;;  %v591_v29 = vld [vmem:[%s5221_s0 + $0x1d8] sm:$0xff]  ;;  %v592_v31 = vld [vmem:[%s5221_s0 + $0x1e0] sm:$0xff] }
   0xa   :  { %v30_v30 = vld [vmem:[%s5221_s0 + $0x58] sm:$0xff]  ;;  %v31_v32 = vld [vmem:[%s5221_s0 + $0x60] sm:$0xff]  ;;  %v593_v33 = vld [vmem:[%s5221_s0 + $0x1e8] sm:$0xff] }
   0xb   :  { %2864 = vmatmul.mubr.msk.f32.vlgmr.msra.gmra.mrb[0].mxu0 %vm74_vm1, %v19_v8  ;;  %3019 = vmatmul.mubr.msk.f32.vlgmr.msra.gmra.mrb[0].mxu1 %vm74_vm1, %v581_v9  ;;  %v32_v34 = vld [vmem:[%s5221_s0 + $0x68] sm:$0xff]  ;;  %v594_v35 = vld [vmem:[%s5221_s0 + $0x1f0] sm:$0xff]  ;;  %v595_v37 = vld [vmem:[%s5221_s0 + $0x1f8] sm:$0xff] }
   0xc   :  { %3489 = vmatpush3.bf16.msra.mxu0 %v3476_v4  ;;  %3495 = vmatpush3.bf16.msra.mxu1 %v3476_v4  ;;  %v33_v36 = vld [vmem:[%s5221_s0 + $0x70] sm:$0xff]  ;;  %v34_v38 = vld [vmem:[%s5221_s0 + $0x78] sm:$0xff]  ;;  %v596_v39 = vld [vmem:[%s5221_s0 + $0x200] sm:$0xff] }
   0xd   :  { %2866 = vmatprep.mubr.msk.f32.mxu0 %vm3505_vm0, %v3506_v6  ;;  %3021 = vmatprep.mubr.msk.f32.mxu1 %vm3505_vm0, %v3506_v6  ;;  %v35_v40 = vld [vmem:[%s5221_s0 + $0x80] sm:$0xff]  ;;  %v597_v41 = vld [vmem:[%s5221_s0 + $0x208] sm:$0xff]  ;;  %v598_v43 = vld [vmem:[%s5221_s0 + $0x210] sm:$0xff] }
   0xe   :  { %3490 = vmatprep.subr.bf16.mxu0 %v3504_v0  ;;  %3496 = vmatprep.subr.bf16.mxu1 %v3504_v0  ;;  %v36_v42 = vld [vmem:[%s5221_s0 + $0x88] sm:$0xff]  ;;  %v37_v44 = vld [vmem:[%s5221_s0 + $0x90] sm:$0xff]  ;;  %v599_v45 = vld [vmem:[%s5221_s0 + $0x218] sm:$0xff] }
   0xf   :  { %2867 = vmatmul.mubr.msk.f32.gmra.mrb[2].mxu0 %vm74_vm1, %v20_v10  ;;  %3022 = vmatmul.mubr.msk.f32.gmra.mrb[2].mxu1 %vm74_vm1, %v582_v11  ;;  %v38_v46 = vld [vmem:[%s5221_s0 + $0x98] sm:$0xff]  ;;  %v600_v47 = vld [vmem:[%s5221_s0 + $0x220] sm:$0xff]  ;;  %v601_v49 = vld [vmem:[%s5221_s0 + $0x228] sm:$0xff] }
  0x10   :  { %2869 = vmatprep.mubr.msk.f32.mxu0 %vm3505_vm0, %v3506_v6  ;;  %3024 = vmatprep.mubr.msk.f32.mxu1 %vm3505_vm0, %v3506_v6  ;;  %v39_v48 = vld [vmem:[%s5221_s0 + $0xa0] sm:$0xff]  ;;  %v40_v50 = vld [vmem:[%s5221_s0 + $0xa8] sm:$0xff]  ;;  %v602_v51 = vld [vmem:[%s5221_s0 + $0x230] sm:$0xff] }
  0x11   :  { %3492 = vmatpush3.bf16.msra.mxu0 %v3479_v7  ;;  %3498 = vmatpush3.bf16.msra.mxu1 %v3479_v7  ;;  %v41_v52 = vld [vmem:[%s5221_s0 + $0xb0] sm:$0xff]  ;;  %v603_v53 = vld [vmem:[%s5221_s0 + $0x238] sm:$0xff]  ;;  %v604_v55 = vld [vmem:[%s5221_s0 + $0x240] sm:$0xff] }
  0x12   :  { %v42_v54 = vld [vmem:[%s5221_s0 + $0xb8] sm:$0xff]  ;;  %v43_v56 = vld [vmem:[%s5221_s0 + $0xc0] sm:$0xff]  ;;  %v605_v57 = vld [vmem:[%s5221_s0 + $0x248] sm:$0xff] }
  0x13   :  { %2870 = vmatmul.mubr.msk.f32.gmra.mrb[4].mxu0 %vm74_vm1, %v21_v12  ;;  %3025 = vmatmul.mubr.msk.f32.gmra.mrb[4].mxu1 %vm74_vm1, %v583_v13  ;;  %v44_v58 = vld [vmem:[%s5221_s0 + $0xc8] sm:$0xff]  ;;  %v606_v59 = vld [vmem:[%s5221_s0 + $0x250] sm:$0xff]  ;;  %v607_v61 = vld [vmem:[%s5221_s0 + $0x258] sm:$0xff] }
  0x14   :  { %2872 = vmatprep.mubr.msk.f32.mxu0 %vm3505_vm0, %v3506_v6  ;;  %3027 = vmatprep.mubr.msk.f32.mxu1 %vm3505_vm0, %v3506_v6  ;;  %v45_v60 = vld [vmem:[%s5221_s0 + $0xd0] sm:$0xff]  ;;  %v46_v62 = vld [vmem:[%s5221_s0 + $0xd8] sm:$0xff]  ;;  %v608_v63 = vld [vmem:[%s5221_s0 + $0x260] sm:$0xff] }
  0x15   :  { %v47_v0 = vld [vmem:[%s5221_s0 + $0xe0] sm:$0xff]  ;;  %v609_v1 = vld [vmem:[%s5221_s0 + $0x268] sm:$0xff]  ;;  %v610_v3 = vld [vmem:[%s5221_s0 + $0x270] sm:$0xff] }
  0x16   :  { %v48_v2 = vld [vmem:[%s5221_s0 + $0xe8] sm:$0xff]  ;;  %v49_v4 = vld [vmem:[%s5221_s0 + $0xf0] sm:$0xff]  ;;  %v611_v5 = vld [vmem:[%s5221_s0 + $0x278] sm:$0xff] }
  0x17   :  { %2873 = vmatmul.mubr.msk.f32.gmra.mrb[6].mxu0 %vm74_vm1, %v22_v14  ;;  %3028 = vmatmul.mubr.msk.f32.gmra.mrb[6].mxu1 %vm74_vm1, %v584_v15  ;;  %v50_v7 = vld [vmem:[%s5221_s0 + $0xf8] sm:$0xff]  ;;  %v612_v8 = vld [vmem:[%s5221_s0 + $0x280] sm:$0xff]  ;;  %v613_v10 = vld [vmem:[%s5221_s0 + $0x288] sm:$0xff] }
  0x18   :  { %2875 = vmatprep.mubr.msk.f32.mxu0 %vm3505_vm0, %v3506_v6  ;;  %3030 = vmatprep.mubr.msk.f32.mxu1 %vm3505_vm0, %v3506_v6  ;;  %v51_v9 = vld [vmem:[%s5221_s0 + $0x100] sm:$0xff]  ;;  %v52_v11 = vld [vmem:[%s5221_s0 + $0x108] sm:$0xff]  ;;  %v614_v12 = vld [vmem:[%s5221_s0 + $0x290] sm:$0xff] }
  0x19   :  { %v53_v13 = vld [vmem:[%s5221_s0 + $0x110] sm:$0xff]  ;;  %v615_v14 = vld [vmem:[%s5221_s0 + $0x298] sm:$0xff] }
  0x1a   :  { %v54_v15 = vld [vmem:[%s5221_s0 + $0x118] sm:$0xff] }
  0x1b   :  { %2876 = vmatmul.mubr.msk.f32.gmra.mrb[8].mxu0 %vm74_vm1, %v23_v16  ;;  %3031 = vmatmul.mubr.msk.f32.gmra.mrb[8].mxu1 %vm74_vm1, %v585_v17  ;;  %v616_v16 = vld [vmem:[%s5221_s0 + $0x2a0] sm:$0xff] }
  0x1c   :  { %2878 = vmatprep.mubr.msk.f32.mxu0 %vm3505_vm0, %v3506_v6  ;;  %3033 = vmatprep.mubr.msk.f32.mxu1 %vm3505_vm0, %v3506_v6  ;;  %v55_v17 = vld [vmem:[%s5221_s0 + $0x120] sm:$0xff] }
  0x1f   :  { %2879 = vmatmul.mubr.msk.f32.gmra.mrb[10].mxu0 %vm74_vm1, %v24_v18  ;;  %3034 = vmatmul.mubr.msk.f32.gmra.mrb[10].mxu1 %vm74_vm1, %v586_v19  ;;  %v617_v18 = vld [vmem:[%s5221_s0 + $0x2a8] sm:$0xff] }
  0x20   :  { %2881 = vmatprep.mubr.msk.f32.mxu0 %vm3505_vm0, %v3506_v6  ;;  %3036 = vmatprep.mubr.msk.f32.mxu1 %vm3505_vm0, %v3506_v6  ;;  %v56_v19 = vld [vmem:[%s5221_s0 + $0x128] sm:$0xff] }
  0x23   :  { %2882 = vmatmul.mubr.msk.f32.gmra.mrb[12].mxu0 %vm74_vm1, %v25_v20  ;;  %3037 = vmatmul.mubr.msk.f32.gmra.mrb[12].mxu1 %vm74_vm1, %v587_v21  ;;  %v618_v20 = vld [vmem:[%s5221_s0 + $0x2b0] sm:$0xff] }
  0x24   :  { %2884 = vmatprep.mubr.msk.f32.mxu0 %vm3505_vm0, %v3506_v6  ;;  %3039 = vmatprep.mubr.msk.f32.mxu1 %vm3505_vm0, %v3506_v6  ;;  %v57_v21 = vld [vmem:[%s5221_s0 + $0x130] sm:$0xff] }
  0x27   :  { %2885 = vmatmul.mubr.msk.f32.gmra.mrb[14].mxu0 %vm74_vm1, %v26_v22  ;;  %3040 = vmatmul.mubr.msk.f32.gmra.mrb[14].mxu1 %vm74_vm1, %v588_v23  ;;  %v619_v22 = vld [vmem:[%s5221_s0 + $0x2b8] sm:$0xff] }
  0x28   :  { %2887 = vmatprep.mubr.msk.f32.mxu0 %vm3505_vm0, %v3506_v6  ;;  %3042 = vmatprep.mubr.msk.f32.mxu1 %vm3505_vm0, %v3506_v6  ;;  %v58_v23 = vld [vmem:[%s5221_s0 + $0x138] sm:$0xff] }
  0x2b   :  { %2888 = vmatmul.mubr.msk.f32.gmra.mrb[16].mxu0 %vm74_vm1, %v27_v24  ;;  %3043 = vmatmul.mubr.msk.f32.gmra.mrb[16].mxu1 %vm74_vm1, %v589_v25  ;;  %v620_v24 = vld [vmem:[%s5221_s0 + $0x2c0] sm:$0xff] }
  0x2c   :  { %2890 = vmatprep.mubr.msk.f32.mxu0 %vm3505_vm0, %v3506_v6  ;;  %3045 = vmatprep.mubr.msk.f32.mxu1 %vm3505_vm0, %v3506_v6  ;;  %v59_v25 = vld [vmem:[%s5221_s0 + $0x140] sm:$0xff] }
  0x2f   :  { %2891 = vmatmul.mubr.msk.f32.gmra.mrb[18].mxu0 %vm74_vm1, %v28_v26  ;;  %3046 = vmatmul.mubr.msk.f32.gmra.mrb[18].mxu1 %vm74_vm1, %v590_v27  ;;  %v621_v26 = vld [vmem:[%s5221_s0 + $0x2c8] sm:$0xff] }
  0x30   :  { %2893 = vmatprep.mubr.msk.f32.mxu0 %vm3505_vm0, %v3506_v6  ;;  %3048 = vmatprep.mubr.msk.f32.mxu1 %vm3505_vm0, %v3506_v6  ;;  %v60_v27 = vld [vmem:[%s5221_s0 + $0x148] sm:$0xff] }
  0x33   :  { %2894 = vmatmul.mubr.msk.f32.gmra.mrb[20].mxu0 %vm74_vm1, %v29_v28  ;;  %3049 = vmatmul.mubr.msk.f32.gmra.mrb[20].mxu1 %vm74_vm1, %v591_v29  ;;  %v622_v28 = vld [vmem:[%s5221_s0 + $0x2d0] sm:$0xff] }
  0x34   :  { %2896 = vmatprep.mubr.msk.f32.mxu0 %vm3505_vm0, %v3506_v6  ;;  %3051 = vmatprep.mubr.msk.f32.mxu1 %vm3505_vm0, %v3506_v6  ;;  %v61_v29 = vld [vmem:[%s5221_s0 + $0x150] sm:$0xff] }
  0x37   :  { %2897 = vmatmul.mubr.msk.f32.gmra.mrb[22].mxu0 %vm74_vm1, %v30_v30  ;;  %3052 = vmatmul.mubr.msk.f32.gmra.mrb[22].mxu1 %vm74_vm1, %v592_v31  ;;  %v623_v30 = vld [vmem:[%s5221_s0 + $0x2d8] sm:$0xff] }
  0x38   :  { %2899 = vmatprep.mubr.msk.f32.mxu0 %vm3505_vm0, %v3506_v6  ;;  %3054 = vmatprep.mubr.msk.f32.mxu1 %vm3505_vm0, %v3506_v6  ;;  %v62_v31 = vld [vmem:[%s5221_s0 + $0x158] sm:$0xff] }
  0x3b   :  { %2900 = vmatmul.mubr.msk.f32.gmra.mrb[24].mxu0 %vm74_vm1, %v31_v32  ;;  %3055 = vmatmul.mubr.msk.f32.gmra.mrb[24].mxu1 %vm74_vm1, %v593_v33  ;;  %v624_v32 = vld [vmem:[%s5221_s0 + $0x2e0] sm:$0xff] }
  0x3c   :  { %2902 = vmatprep.mubr.msk.f32.mxu0 %vm3505_vm0, %v3506_v6  ;;  %3057 = vmatprep.mubr.msk.f32.mxu1 %vm3505_vm0, %v3506_v6  ;;  %v63_v33 = vld [vmem:[%s5221_s0 + $0x160] sm:$0xff] }
  0x3f   :  { %2903 = vmatmul.mubr.msk.f32.gmra.mrb[26].mxu0 %vm74_vm1, %v32_v34  ;;  %3058 = vmatmul.mubr.msk.f32.gmra.mrb[26].mxu1 %vm74_vm1, %v594_v35  ;;  %v625_v34 = vld [vmem:[%s5221_s0 + $0x2e8] sm:$0xff] }
  0x40   :  { %2905 = vmatprep.mubr.msk.f32.mxu0 %vm3505_vm0, %v3506_v6  ;;  %3060 = vmatprep.mubr.msk.f32.mxu1 %vm3505_vm0, %v3506_v6  ;;  %v64_v35 = vld [vmem:[%s5221_s0 + $0x168] sm:$0xff] }
  0x43   :  { %2906 = vmatmul.mubr.msk.f32.gmra.mrb[28].mxu0 %vm74_vm1, %v33_v36  ;;  %3061 = vmatmul.mubr.msk.f32.gmra.mrb[28].mxu1 %vm74_vm1, %v595_v37  ;;  %v626_v36 = vld [vmem:[%s5221_s0 + $0x2f0] sm:$0xff] }
  0x44   :  { %2908 = vmatprep.mubr.msk.f32.mxu0 %vm3505_vm0, %v3506_v6  ;;  %3063 = vmatprep.mubr.msk.f32.mxu1 %vm3505_vm0, %v3506_v6  ;;  %v65_v37 = vld [vmem:[%s5221_s0 + $0x170] sm:$0xff] }
  0x47   :  { %2909 = vmatmul.mubr.msk.f32.gmra.mrb[30].mxu0 %vm74_vm1, %v34_v38  ;;  %3064 = vmatmul.mubr.msk.f32.gmra.mrb[30].mxu1 %vm74_vm1, %v596_v39  ;;  %v627_v38 = vld [vmem:[%s5221_s0 + $0x2f8] sm:$0xff] }
  0x48   :  { %2911 = vmatprep.mubr.msk.f32.mxu0 %vm3505_vm0, %v3506_v6  ;;  %3066 = vmatprep.mubr.msk.f32.mxu1 %vm3505_vm0, %v3506_v6  ;;  %v66_v39 = vld [vmem:[%s5221_s0 + $0x178] sm:$0xff] }
  0x4b   :  { %2912 = vmatmul.mubr.msk.f32.gmra.mrb[32].mxu0 %vm74_vm1, %v35_v40  ;;  %3067 = vmatmul.mubr.msk.f32.gmra.mrb[32].mxu1 %vm74_vm1, %v597_v41  ;;  %v628_v40 = vld [vmem:[%s5221_s0 + $0x300] sm:$0xff] }
  0x4c   :  { %2914 = vmatprep.mubr.msk.f32.mxu0 %vm3505_vm0, %v3506_v6  ;;  %3069 = vmatprep.mubr.msk.f32.mxu1 %vm3505_vm0, %v3506_v6  ;;  %v67_v41 = vld [vmem:[%s5221_s0 + $0x180] sm:$0xff] }
  0x4f   :  { %2915 = vmatmul.mubr.msk.f32.gmra.mrb[34].mxu0 %vm74_vm1, %v36_v42  ;;  %3070 = vmatmul.mubr.msk.f32.gmra.mrb[34].mxu1 %vm74_vm1, %v598_v43  ;;  %v629_v42 = vld [vmem:[%s5221_s0 + $0x308] sm:$0xff]  ;;  %v1185_v43 = vld [vmem:[%s5221_s0 + $0x310] sm:$0xff] }
  0x50   :  { %2917 = vmatprep.mubr.msk.f32.mxu0 %vm3505_vm0, %v3506_v6  ;;  %3072 = vmatprep.mubr.msk.f32.mxu1 %vm3505_vm0, %v3506_v6 }
  0x53   :  { %2918 = vmatmul.mubr.msk.f32.gmra.mrb[36].mxu0 %vm74_vm1, %v37_v44  ;;  %3073 = vmatmul.mubr.msk.f32.gmra.mrb[36].mxu1 %vm74_vm1, %v599_v45  ;;  %v1740_v44 = vld [vmem:[%s5221_s0 + $0x498] sm:$0xff] }
  0x54   :  { %2920 = vmatprep.mubr.msk.f32.mxu0 %vm3505_vm0, %v3506_v6  ;;  %3075 = vmatprep.mubr.msk.f32.mxu1 %vm3505_vm0, %v3506_v6  ;;  %v1186_v45 = vld [vmem:[%s5221_s0 + $0x318] sm:$0xff] }
  0x57   :  { %2921 = vmatmul.mubr.msk.f32.gmra.mrb[38].mxu0 %vm74_vm1, %v38_v46  ;;  %3076 = vmatmul.mubr.msk.f32.gmra.mrb[38].mxu1 %vm74_vm1, %v600_v47  ;;  %v1741_v46 = vld [vmem:[%s5221_s0 + $0x4a0] sm:$0xff] }
  0x58   :  { %2923 = vmatprep.mubr.msk.f32.mxu0 %vm3505_vm0, %v3506_v6  ;;  %3078 = vmatprep.mubr.msk.f32.mxu1 %vm3505_vm0, %v3506_v6  ;;  %v1187_v47 = vld [vmem:[%s5221_s0 + $0x320] sm:$0xff] }
  0x5b   :  { %2924 = vmatmul.mubr.msk.f32.gmra.mrb[40].mxu0 %vm74_vm1, %v39_v48  ;;  %3079 = vmatmul.mubr.msk.f32.gmra.mrb[40].mxu1 %vm74_vm1, %v601_v49  ;;  %v1742_v48 = vld [vmem:[%s5221_s0 + $0x4a8] sm:$0xff] }
  0x5c   :  { %2926 = vmatprep.mubr.msk.f32.mxu0 %vm3505_vm0, %v3506_v6  ;;  %3081 = vmatprep.mubr.msk.f32.mxu1 %vm3505_vm0, %v3506_v6  ;;  %v1188_v49 = vld [vmem:[%s5221_s0 + $0x328] sm:$0xff] }
  0x5f   :  { %2927 = vmatmul.mubr.msk.f32.gmra.mrb[42].mxu0 %vm74_vm1, %v40_v50  ;;  %3082 = vmatmul.mubr.msk.f32.gmra.mrb[42].mxu1 %vm74_vm1, %v602_v51  ;;  %v1743_v50 = vld [vmem:[%s5221_s0 + $0x4b0] sm:$0xff]  ;;  %v4178_v51 = vld [vmem:[%s5222_s2] ss:$0 sm:$0xff] }
  0x60   :  { %2929 = vmatprep.mubr.msk.f32.mxu0 %vm3505_vm0, %v3506_v6  ;;  %3084 = vmatprep.mubr.msk.f32.mxu1 %vm3505_vm0, %v3506_v6 }
  0x63   :  { %2930 = vmatmul.mubr.msk.f32.gmra.mrb[44].mxu0 %vm74_vm1, %v41_v52  ;;  %3085 = vmatmul.mubr.msk.f32.gmra.mrb[44].mxu1 %vm74_vm1, %v603_v53  ;;  %v1189_v52 = vld [vmem:[%s5221_s0 + $0x330] sm:$0xff]  ;;  %v1744_v53 = vld [vmem:[%s5221_s0 + $0x4b8] sm:$0xff] }
  0x64   :  { %2932 = vmatprep.mubr.msk.f32.mxu0 %vm3505_vm0, %v3506_v6  ;;  %3087 = vmatprep.mubr.msk.f32.mxu1 %vm3505_vm0, %v3506_v6 }
  0x67   :  { %2933 = vmatmul.mubr.msk.f32.gmra.mrb[46].mxu0 %vm74_vm1, %v42_v54  ;;  %3088 = vmatmul.mubr.msk.f32.gmra.mrb[46].mxu1 %vm74_vm1, %v604_v55 }
  0x68   :  { %2935 = vmatprep.mubr.msk.f32.mxu0 %vm3505_vm0, %v3506_v6  ;;  %3090 = vmatprep.mubr.msk.f32.mxu1 %vm3505_vm0, %v3506_v6 }
  0x6b   :  { %2936 = vmatmul.mubr.msk.f32.gmra.mrb[48].mxu0 %vm74_vm1, %v43_v56  ;;  %3091 = vmatmul.mubr.msk.f32.gmra.mrb[48].mxu1 %vm74_vm1, %v605_v57 }
  0x6c   :  { %2938 = vmatprep.mubr.msk.f32.mxu0 %vm3505_vm0, %v3506_v6  ;;  %3093 = vmatprep.mubr.msk.f32.mxu1 %vm3505_vm0, %v3506_v6 }
  0x6f   :  { %2939 = vmatmul.mubr.msk.f32.gmra.mrb[50].mxu0 %vm74_vm1, %v44_v58  ;;  %3094 = vmatmul.mubr.msk.f32.gmra.mrb[50].mxu1 %vm74_vm1, %v606_v59 }
  0x70   :  { %2941 = vmatprep.mubr.msk.f32.mxu0 %vm3505_vm0, %v3506_v6  ;;  %3096 = vmatprep.mubr.msk.f32.mxu1 %vm3505_vm0, %v3506_v6 }
  0x73   :  { %2942 = vmatmul.mubr.msk.f32.gmra.mrb[52].mxu0 %vm74_vm1, %v45_v60  ;;  %3097 = vmatmul.mubr.msk.f32.gmra.mrb[52].mxu1 %vm74_vm1, %v607_v61  ;;  %v1190_v60 = vld [vmem:[%s5221_s0 + $0x338] sm:$0xff]  ;;  %v1745_v61 = vld [vmem:[%s5221_s0 + $0x4c0] sm:$0xff] }
  0x74   :  { %2944 = vmatprep.mubr.msk.f32.mxu0 %vm3505_vm0, %v3506_v6  ;;  %3099 = vmatprep.mubr.msk.f32.mxu1 %vm3505_vm0, %v3506_v6 }
  0x77   :  { %2945 = vmatmul.mubr.msk.f32.gmra.mrb[54].mxu0 %vm74_vm1, %v46_v62  ;;  %3100 = vmatmul.mubr.msk.f32.gmra.mrb[54].mxu1 %vm74_vm1, %v608_v63 }
  0x78   :  { %2947 = vmatprep.mubr.msk.f32.mxu0 %vm3505_vm0, %v3506_v6  ;;  %3102 = vmatprep.mubr.msk.f32.mxu1 %vm3505_vm0, %v3506_v6 }
  0x7b   :  { %2948 = vmatmul.mubr.msk.f32.gmra.mrb[56].mxu0 %vm74_vm1, %v47_v0  ;;  %3103 = vmatmul.mubr.msk.f32.gmra.mrb[56].mxu1 %vm74_vm1, %v609_v1 }
  0x7c   :  { %2950 = vmatprep.mubr.msk.f32.mxu0 %vm3505_vm0, %v3506_v6  ;;  %3105 = vmatprep.mubr.msk.f32.mxu1 %vm3505_vm0, %v3506_v6 }
  0x7f   :  { %2951 = vmatmul.mubr.msk.f32.gmra.mrb[58].mxu0 %vm74_vm1, %v48_v2  ;;  %3106 = vmatmul.mubr.msk.f32.gmra.mrb[58].mxu1 %vm74_vm1, %v610_v3 }
  0x80   :  { %2953 = vmatprep.mubr.msk.f32.mxu0 %vm3505_vm0, %v3506_v6  ;;  %3108 = vmatprep.mubr.msk.f32.mxu1 %vm3505_vm0, %v3506_v6 }
  0x83   :  { %2954 = vmatmul.mubr.msk.f32.gmra.mrb[60].mxu0 %vm74_vm1, %v49_v4  ;;  %3109 = vmatmul.mubr.msk.f32.gmra.mrb[60].mxu1 %vm74_vm1, %v611_v5 }
  0x84   :  { %2956 = vmatprep.mubr.msk.f32.mxu0 %vm3505_vm0, %v3506_v6  ;;  %3111 = vmatprep.mubr.msk.f32.mxu1 %vm3505_vm0, %v3506_v6 }
  0x87   :  { %2957 = vmatmul.mubr.msk.f32.gmra.mrb[62].mxu0 %vm74_vm1, %v50_v7  ;;  %3112 = vmatmul.mubr.msk.f32.gmra.mrb[62].mxu1 %vm74_vm1, %v612_v8  ;;  %v1191_v8 = vld [vmem:[%s5221_s0 + $0x340] sm:$0xff] }
  0x88   :  { %2959 = vmatprep.mubr.msk.f32.mxu0 %vm3505_vm0, %v3506_v6  ;;  %3114 = vmatprep.mubr.msk.f32.mxu1 %vm3505_vm0, %v3506_v6 }
  0x8b   :  { %2960 = vmatmul.mubr.msk.f32.gmra.mrb[64].mxu0 %vm74_vm1, %v51_v9  ;;  %3115 = vmatmul.mubr.msk.f32.gmra.mrb[64].mxu1 %vm74_vm1, %v613_v10  ;;  %v1746_v9 = vld [vmem:[%s5221_s0 + $0x4c8] sm:$0xff] }
  0x8c   :  { %2962 = vmatprep.mubr.msk.f32.mxu0 %vm3505_vm0, %v3506_v6  ;;  %3117 = vmatprep.mubr.msk.f32.mxu1 %vm3505_vm0, %v3506_v6 }
  0x8f   :  { %2963 = vmatmul.mubr.msk.f32.gmra.mrb[66].mxu0 %vm74_vm1, %v52_v11  ;;  %3118 = vmatmul.mubr.msk.f32.gmra.mrb[66].mxu1 %vm74_vm1, %v614_v12 }
  0x90   :  { %2965 = vmatprep.mubr.msk.f32.mxu0 %vm3505_vm0, %v3506_v6  ;;  %3120 = vmatprep.mubr.msk.f32.mxu1 %vm3505_vm0, %v3506_v6 }
  0x93   :  { %2966 = vmatmul.mubr.msk.f32.gmra.mrb[68].mxu0 %vm74_vm1, %v53_v13  ;;  %3121 = vmatmul.mubr.msk.f32.gmra.mrb[68].mxu1 %vm74_vm1, %v615_v14 }
  0x94   :  { %2968 = vmatprep.mubr.msk.f32.mxu0 %vm3505_vm0, %v3506_v6  ;;  %3123 = vmatprep.mubr.msk.f32.mxu1 %vm3505_vm0, %v3506_v6 }
  0x97   :  { %2969 = vmatmul.mubr.msk.f32.gmra.mrb[70].mxu0 %vm74_vm1, %v54_v15  ;;  %3124 = vmatmul.mubr.msk.f32.gmra.mrb[70].mxu1 %vm74_vm1, %v616_v16 }
  0x98   :  { %2971 = vmatprep.mubr.msk.f32.mxu0 %vm3505_vm0, %v3506_v6  ;;  %3126 = vmatprep.mubr.msk.f32.mxu1 %vm3505_vm0, %v3506_v6 }
  0x9b   :  { %2972 = vmatmul.mubr.msk.f32.gmra.mrb[72].mxu0 %vm74_vm1, %v55_v17  ;;  %3127 = vmatmul.mubr.msk.f32.gmra.mrb[72].mxu1 %vm74_vm1, %v617_v18 }
  0x9c   :  { %2974 = vmatprep.mubr.msk.f32.mxu0 %vm3505_vm0, %v3506_v6  ;;  %3129 = vmatprep.mubr.msk.f32.mxu1 %vm3505_vm0, %v3506_v6 }
  0x9f   :  { %2975 = vmatmul.mubr.msk.f32.gmra.mrb[74].mxu0 %vm74_vm1, %v56_v19  ;;  %3130 = vmatmul.mubr.msk.f32.gmra.mrb[74].mxu1 %vm74_vm1, %v618_v20  ;;  %v1192_v19 = vld [vmem:[%s5221_s0 + $0x348] sm:$0xff]  ;;  %v1747_v20 = vld [vmem:[%s5221_s0 + $0x4d0] sm:$0xff] }
  0xa0   :  { %2977 = vmatprep.mubr.msk.f32.mxu0 %vm3505_vm0, %v3506_v6  ;;  %3132 = vmatprep.mubr.msk.f32.mxu1 %vm3505_vm0, %v3506_v6 }
  0xa3   :  { %2978 = vmatmul.mubr.msk.f32.gmra.mrb[76].mxu0 %vm74_vm1, %v57_v21  ;;  %3133 = vmatmul.mubr.msk.f32.gmra.mrb[76].mxu1 %vm74_vm1, %v619_v22 }
  0xa4   :  { %2980 = vmatprep.mubr.msk.f32.mxu0 %vm3505_vm0, %v3506_v6  ;;  %3135 = vmatprep.mubr.msk.f32.mxu1 %vm3505_vm0, %v3506_v6 }
  0xa7   :  { %2981 = vmatmul.mubr.msk.f32.gmra.mrb[78].mxu0 %vm74_vm1, %v58_v23  ;;  %3136 = vmatmul.mubr.msk.f32.gmra.mrb[78].mxu1 %vm74_vm1, %v620_v24 }
  0xa8   :  { %2983 = vmatprep.mubr.msk.f32.mxu0 %vm3505_vm0, %v3506_v6  ;;  %3138 = vmatprep.mubr.msk.f32.mxu1 %vm3505_vm0, %v3506_v6 }
  0xab   :  { %2984 = vmatmul.mubr.msk.f32.gmra.mrb[80].mxu0 %vm74_vm1, %v59_v25  ;;  %3139 = vmatmul.mubr.msk.f32.gmra.mrb[80].mxu1 %vm74_vm1, %v621_v26 }
  0xac   :  { %2986 = vmatprep.mubr.msk.f32.mxu0 %vm3505_vm0, %v3506_v6  ;;  %3141 = vmatprep.mubr.msk.f32.mxu1 %vm3505_vm0, %v3506_v6 }
  0xaf   :  { %2987 = vmatmul.mubr.msk.f32.gmra.mrb[82].mxu0 %vm74_vm1, %v60_v27  ;;  %3142 = vmatmul.mubr.msk.f32.gmra.mrb[82].mxu1 %vm74_vm1, %v622_v28 }
  0xb0   :  { %2989 = vmatprep.mubr.msk.f32.mxu0 %vm3505_vm0, %v3506_v6  ;;  %3144 = vmatprep.mubr.msk.f32.mxu1 %vm3505_vm0, %v3506_v6 }
  0xb3   :  { %2990 = vmatmul.mubr.msk.f32.gmra.mrb[84].mxu0 %vm74_vm1, %v61_v29  ;;  %3145 = vmatmul.mubr.msk.f32.gmra.mrb[84].mxu1 %vm74_vm1, %v623_v30  ;;  %v1193_v30 = vld [vmem:[%s5221_s0 + $0x350] sm:$0xff] }
  0xb4   :  { %2992 = vmatprep.mubr.msk.f32.mxu0 %vm3505_vm0, %v3506_v6  ;;  %3147 = vmatprep.mubr.msk.f32.mxu1 %vm3505_vm0, %v3506_v6 }
  0xb7   :  { %2993 = vmatmul.mubr.msk.f32.gmra.mrb[86].mxu0 %vm74_vm1, %v62_v31  ;;  %3148 = vmatmul.mubr.msk.f32.gmra.mrb[86].mxu1 %vm74_vm1, %v624_v32  ;;  %v1748_v31 = vld [vmem:[%s5221_s0 + $0x4d8] sm:$0xff] }
  0xb8   :  { %2995 = vmatprep.mubr.msk.f32.mxu0 %vm3505_vm0, %v3506_v6  ;;  %3150 = vmatprep.mubr.msk.f32.mxu1 %vm3505_vm0, %v3506_v6 }
  0xbb   :  { %2996 = vmatmul.mubr.msk.f32.gmra.mrb[88].mxu0 %vm74_vm1, %v63_v33  ;;  %3151 = vmatmul.mubr.msk.f32.gmra.mrb[88].mxu1 %vm74_vm1, %v625_v34 }
  0xbc   :  { %2998 = vmatprep.mubr.msk.f32.mxu0 %vm3505_vm0, %v3506_v6  ;;  %3153 = vmatprep.mubr.msk.f32.mxu1 %vm3505_vm0, %v3506_v6 }
  0xbf   :  { %2999 = vmatmul.mubr.msk.f32.gmra.mrb[90].mxu0 %vm74_vm1, %v64_v35  ;;  %3154 = vmatmul.mubr.msk.f32.gmra.mrb[90].mxu1 %vm74_vm1, %v626_v36 }
  0xc0   :  { %3001 = vmatprep.mubr.msk.f32.mxu0 %vm3505_vm0, %v3506_v6  ;;  %3156 = vmatprep.mubr.msk.f32.mxu1 %vm3505_vm0, %v3506_v6 }
  0xc3   :  { %3002 = vmatmul.mubr.msk.f32.gmra.mrb[92].mxu0 %vm74_vm1, %v65_v37  ;;  %3157 = vmatmul.mubr.msk.f32.gmra.mrb[92].mxu1 %vm74_vm1, %v627_v38 }
  0xc4   :  { %3004 = vmatprep.mubr.msk.f32.mxu0 %vm3505_vm0, %v3506_v6  ;;  %3159 = vmatprep.mubr.msk.f32.mxu1 %vm3505_vm0, %v3506_v6 }
  0xc7   :  { %3005 = vmatmul.mubr.msk.f32.gmra.mrb[94].mxu0 %vm74_vm1, %v66_v39  ;;  %3160 = vmatmul.mubr.msk.f32.gmra.mrb[94].mxu1 %vm74_vm1, %v628_v40 }
  0xc8   :  { %3007 = vmatprep.mubr.msk.f32.mxu0 %vm3505_vm0, %v3506_v6  ;;  %3162 = vmatprep.mubr.msk.f32.mxu1 %vm3505_vm0, %v3506_v6 }
  0xcb   :  { %3008 = vmatmul.mubr.msk.f32.gmra.mrb[96].mxu0 %vm74_vm1, %v67_v41  ;;  %3163 = vmatmul.mubr.msk.f32.gmra.mrb[96].mxu1 %vm74_vm1, %v629_v42  ;;  %v1194_v41 = vld [vmem:[%s5221_s0 + $0x358] sm:$0xff]  ;;  %v1749_v42 = vld [vmem:[%s5221_s0 + $0x4e0] sm:$0xff] }
  0xcc   :  { %3173 = vmatprep.mubr.msk.f32.mxu0 %vm3505_vm0, %v3506_v6  ;;  %3328 = vmatprep.mubr.msk.f32.mxu1 %vm3505_vm0, %v3506_v6 }
  0xcf   :  { %3174 = vmatmul.mubr.msk.f32.vlgmr.msra.gmra.mrb[98].mxu0 %vm74_vm1, %v1185_v43  ;;  %3329 = vmatmul.mubr.msk.f32.vlgmr.msra.gmra.mrb[98].mxu1 %vm74_vm1, %v1740_v44 }
  0xd0   :  { %3176 = vmatprep.mubr.msk.f32.mxu0 %vm3505_vm0, %v3506_v6  ;;  %3331 = vmatprep.mubr.msk.f32.mxu1 %vm3505_vm0, %v3506_v6 }
  0xd3   :  { %3177 = vmatmul.mubr.msk.f32.gmra.mrb[100].mxu0 %vm74_vm1, %v1186_v45  ;;  %3332 = vmatmul.mubr.msk.f32.gmra.mrb[100].mxu1 %vm74_vm1, %v1741_v46 }
  0xd4   :  { %3179 = vmatprep.mubr.msk.f32.mxu0 %vm3505_vm0, %v3506_v6  ;;  %3334 = vmatprep.mubr.msk.f32.mxu1 %vm3505_vm0, %v3506_v6 }
  0xd7   :  { %3180 = vmatmul.mubr.msk.f32.gmra.mrb[102].mxu0 %vm74_vm1, %v1187_v47  ;;  %3335 = vmatmul.mubr.msk.f32.gmra.mrb[102].mxu1 %vm74_vm1, %v1742_v48 }
  0xd8   :  { %3182 = vmatprep.mubr.msk.f32.mxu0 %vm3505_vm0, %v3506_v6  ;;  %3337 = vmatprep.mubr.msk.f32.mxu1 %vm3505_vm0, %v3506_v6 }
  0xdb   :  { %3183 = vmatmul.mubr.msk.f32.gmra.mrb[104].mxu0 %vm74_vm1, %v1188_v49  ;;  %3338 = vmatmul.mubr.msk.f32.gmra.mrb[104].mxu1 %vm74_vm1, %v1743_v50 }
  0xdc   :  { %3185 = vmatprep.mubr.msk.f32.mxu0 %vm3505_vm0, %v3506_v6  ;;  %3340 = vmatprep.mubr.msk.f32.mxu1 %vm3505_vm0, %v3506_v6 }
  0xde   :  { %v288_v54 = vpop.f32.mrb[0].mxu0  ;;  %v843_v55 = vpop.f32.mrb[0].mxu1 }
  0xdf   :  { %v289_v56 = vadd.f32 %v4178_v51, %v288_v54  ;;  %v844_v57 = vadd.f32 %v4178_v51, %v843_v55  ;;  %v2865_v58 = vpop.f32.mrb[1].mxu0  ;;  %v3020_v59 = vpop.f32.mrb[1].mxu1  ;;  %3186 = vmatmul.mubr.msk.f32.gmra.mrb[106].mxu0 %vm74_vm1, %v1189_v52  ;;  %3341 = vmatmul.mubr.msk.f32.gmra.mrb[106].mxu1 %vm74_vm1, %v1744_v53  ;;  %v1195_v53 = vld [vmem:[%s5221_s0 + $0x360] sm:$0xff]  ;;  %v1750_v54 = vld [vmem:[%s5221_s0 + $0x4e8] sm:$0xff] }
  0xe0   :  { %3188 = vmatprep.mubr.msk.f32.mxu0 %vm3505_vm0, %v3506_v6  ;;  %3343 = vmatprep.mubr.msk.f32.mxu1 %vm3505_vm0, %v3506_v6 }
  0xe1   :  { %v532_v62 = vmax.f32 %v289_v56, 0.0  ;;  %v1087_v63 = vmax.f32 %v844_v57, 0.0 }
  0xe2   :  { %v293_v0 = vpop.f32.mrb[2].mxu0  ;;  %v848_v1 = vpop.f32.mrb[2].mxu1 }
  0xe3   :  { %v4204_v2 = vmax.f32 %v532_v62, %v1087_v63  ;;  %v294_v3 = vadd.f32 %v4178_v51, %v293_v0  ;;  %v849_v4 = vadd.f32 %v4178_v51, %v848_v1  ;;  %v2868_v5 = vpop.f32.mrb[3].mxu0  ;;  %v3023_v7 = vpop.f32.mrb[3].mxu1  ;;  %3189 = vmatmul.mubr.msk.f32.gmra.mrb[108].mxu0 %vm74_vm1, %v1190_v60  ;;  %3344 = vmatmul.mubr.msk.f32.gmra.mrb[108].mxu1 %vm74_vm1, %v1745_v61  ;;  %v1196_v0 = vld [vmem:[%s5221_s0 + $0x368] sm:$0xff]  ;;  %v1751_v1 = vld [vmem:[%s5221_s0 + $0x4f0] sm:$0xff] }
  0xe4   :  { %3191 = vmatprep.mubr.msk.f32.mxu0 %vm3505_vm0, %v3506_v6  ;;  %3346 = vmatprep.mubr.msk.f32.mxu1 %vm3505_vm0, %v3506_v6 }
  0xe5   :  { %v533_v10 = vmax.f32 %v294_v3, 0.0  ;;  %v1088_v11 = vmax.f32 %v849_v4, 0.0 }
  0xe6   :  { %v298_v12 = vpop.f32.mrb[4].mxu0  ;;  %v853_v13 = vpop.f32.mrb[4].mxu1 }
  0xe7   :  { %v4220_v14 = vmax.f32 %v533_v10, %v1088_v11  ;;  %v299_v15 = vadd.f32 %v4178_v51, %v298_v12  ;;  %v854_v16 = vadd.f32 %v4178_v51, %v853_v13  ;;  %v2871_v17 = vpop.f32.mrb[5].mxu0  ;;  %v3026_v18 = vpop.f32.mrb[5].mxu1  ;;  %3192 = vmatmul.mubr.msk.f32.gmra.mrb[110].mxu0 %vm74_vm1, %v1191_v8  ;;  %3347 = vmatmul.mubr.msk.f32.gmra.mrb[110].mxu1 %vm74_vm1, %v1746_v9  ;;  %v1197_v13 = vld [vmem:[%s5221_s0 + $0x370] sm:$0xff] }
  0xe8   :  { %3194 = vmatprep.mubr.msk.f32.mxu0 %vm3505_vm0, %v3506_v6  ;;  %3349 = vmatprep.mubr.msk.f32.mxu1 %vm3505_vm0, %v3506_v6 }
  0xe9   :  { %v534_v21 = vmax.f32 %v299_v15, 0.0  ;;  %v1089_v22 = vmax.f32 %v854_v16, 0.0  ;;  %v1752_v15 = vld [vmem:[%s5221_s0 + $0x4f8] sm:$0xff] }
  0xea   :  { %v303_v23 = vpop.f32.mrb[6].mxu0  ;;  %v858_v24 = vpop.f32.mrb[6].mxu1 }
  0xeb   :  { %v4236_v25 = vmax.f32 %v534_v21, %v1089_v22  ;;  %v304_v26 = vadd.f32 %v4178_v51, %v303_v23  ;;  %v859_v27 = vadd.f32 %v4178_v51, %v858_v24  ;;  %v2874_v28 = vpop.f32.mrb[7].mxu0  ;;  %v3029_v29 = vpop.f32.mrb[7].mxu1  ;;  %3195 = vmatmul.mubr.msk.f32.gmra.mrb[112].mxu0 %vm74_vm1, %v1192_v19  ;;  %3350 = vmatmul.mubr.msk.f32.gmra.mrb[112].mxu1 %vm74_vm1, %v1747_v20 }
  0xec   :  { %3197 = vmatprep.mubr.msk.f32.mxu0 %vm3505_vm0, %v3506_v6  ;;  %3352 = vmatprep.mubr.msk.f32.mxu1 %vm3505_vm0, %v3506_v6 }
  0xed   :  { %v535_v32 = vmax.f32 %v304_v26, 0.0  ;;  %v1090_v33 = vmax.f32 %v859_v27, 0.0  ;;  %v1198_v26 = vld [vmem:[%s5221_s0 + $0x378] sm:$0xff]  ;;  %v1753_v27 = vld [vmem:[%s5221_s0 + $0x500] sm:$0xff] }
  0xee   :  { %v308_v34 = vpop.f32.mrb[8].mxu0  ;;  %v863_v35 = vpop.f32.mrb[8].mxu1 }
  0xef   :  { %v4252_v36 = vmax.f32 %v535_v32, %v1090_v33  ;;  %v309_v37 = vadd.f32 %v4178_v51, %v308_v34  ;;  %v864_v38 = vadd.f32 %v4178_v51, %v863_v35  ;;  %v2877_v39 = vpop.f32.mrb[9].mxu0  ;;  %v3032_v40 = vpop.f32.mrb[9].mxu1  ;;  %3198 = vmatmul.mubr.msk.f32.gmra.mrb[114].mxu0 %vm74_vm1, %v1193_v30  ;;  %3353 = vmatmul.mubr.msk.f32.gmra.mrb[114].mxu1 %vm74_vm1, %v1748_v31 }
  0xf0   :  { %3200 = vmatprep.mubr.msk.f32.mxu0 %vm3505_vm0, %v3506_v6  ;;  %3355 = vmatprep.mubr.msk.f32.mxu1 %vm3505_vm0, %v3506_v6  ;;  %v1754_v39 = vld [vmem:[%s5221_s0 + $0x508] sm:$0xff] }
  0xf1   :  { %v536_v43 = vmax.f32 %v309_v37, 0.0  ;;  %v1091_v44 = vmax.f32 %v864_v38, 0.0  ;;  %v1199_v38 = vld [vmem:[%s5221_s0 + $0x380] sm:$0xff] }
  0xf2   :  { %v313_v45 = vpop.f32.mrb[10].mxu0  ;;  %v868_v46 = vpop.f32.mrb[10].mxu1 }
  0xf3   :  { %v4268_v47 = vmax.f32 %v536_v43, %v1091_v44  ;;  %v314_v48 = vadd.f32 %v4178_v51, %v313_v45  ;;  %v869_v49 = vadd.f32 %v4178_v51, %v868_v46  ;;  %v2880_v50 = vpop.f32.mrb[11].mxu0  ;;  %v3035_v52 = vpop.f32.mrb[11].mxu1  ;;  %3201 = vmatmul.mubr.msk.f32.gmra.mrb[116].mxu0 %vm74_vm1, %v1194_v41  ;;  %3356 = vmatmul.mubr.msk.f32.gmra.mrb[116].mxu1 %vm74_vm1, %v1749_v42 }
  0xf4   :  { %3203 = vmatprep.mubr.msk.f32.mxu0 %vm3505_vm0, %v3506_v6  ;;  %3358 = vmatprep.mubr.msk.f32.mxu1 %vm3505_vm0, %v3506_v6  ;;  %v1200_v50 = vld [vmem:[%s5221_s0 + $0x388] sm:$0xff]  ;;  %v1755_v52 = vld [vmem:[%s5221_s0 + $0x510] sm:$0xff] }
  0xf5   :  { %v537_v55 = vmax.f32 %v314_v48, 0.0  ;;  %v1092_v56 = vmax.f32 %v869_v49, 0.0 }
  0xf6   :  { %v318_v57 = vpop.f32.mrb[12].mxu0  ;;  %v873_v58 = vpop.f32.mrb[12].mxu1 }
  0xf7   :  { %v4284_v59 = vmax.f32 %v537_v55, %v1092_v56  ;;  %v319_v60 = vadd.f32 %v4178_v51, %v318_v57  ;;  %v874_v61 = vadd.f32 %v4178_v51, %v873_v58  ;;  %v2883_v62 = vpop.f32.mrb[13].mxu0  ;;  %v3038_v63 = vpop.f32.mrb[13].mxu1  ;;  %3204 = vmatmul.mubr.msk.f32.gmra.mrb[118].mxu0 %vm74_vm1, %v1195_v53  ;;  %3359 = vmatmul.mubr.msk.f32.gmra.mrb[118].mxu1 %vm74_vm1, %v1750_v54 }
  0xf8   :  { %3206 = vmatprep.mubr.msk.f32.mxu0 %vm3505_vm0, %v3506_v6  ;;  %3361 = vmatprep.mubr.msk.f32.mxu1 %vm3505_vm0, %v3506_v6  ;;  %v1201_v63 = vld [vmem:[%s5221_s0 + $0x390] sm:$0xff] }
  0xf9   :  { %v538_v3 = vmax.f32 %v319_v60, 0.0  ;;  %v1093_v4 = vmax.f32 %v874_v61, 0.0 }
  0xfa   :  { %v323_v5 = vpop.f32.mrb[14].mxu0  ;;  %v878_v7 = vpop.f32.mrb[14].mxu1 }
  0xfb   :  { %v4300_v8 = vmax.f32 %v538_v3, %v1093_v4  ;;  %v324_v9 = vadd.f32 %v4178_v51, %v323_v5  ;;  %v879_v10 = vadd.f32 %v4178_v51, %v878_v7  ;;  %v2886_v11 = vpop.f32.mrb[15].mxu0  ;;  %v3041_v12 = vpop.f32.mrb[15].mxu1  ;;  %3207 = vmatmul.mubr.msk.f32.gmra.mrb[120].mxu0 %vm74_vm1, %v1196_v0  ;;  %3362 = vmatmul.mubr.msk.f32.gmra.mrb[120].mxu1 %vm74_vm1, %v1751_v1  ;;  %v1756_v0 = vld [vmem:[%s5221_s0 + $0x518] sm:$0xff] }
  0xfc   :  { %3209 = vmatprep.mubr.msk.f32.mxu0 %vm3505_vm0, %v3506_v6  ;;  %3364 = vmatprep.mubr.msk.f32.mxu1 %vm3505_vm0, %v3506_v6 }
  0xfd   :  { %v539_v16 = vmax.f32 %v324_v9, 0.0  ;;  %v1094_v17 = vmax.f32 %v879_v10, 0.0 }
  0xfe   :  { %v328_v18 = vpop.f32.mrb[16].mxu0  ;;  %v883_v19 = vpop.f32.mrb[16].mxu1 }
  0xff   :  { %v4316_v20 = vmax.f32 %v539_v16, %v1094_v17  ;;  %v329_v21 = vadd.f32 %v4178_v51, %v328_v18  ;;  %v884_v22 = vadd.f32 %v4178_v51, %v883_v19  ;;  %v2889_v23 = vpop.f32.mrb[17].mxu0  ;;  %v3044_v24 = vpop.f32.mrb[17].mxu1  ;;  %3210 = vmatmul.mubr.msk.f32.gmra.mrb[122].mxu0 %vm74_vm1, %v1197_v13  ;;  %3365 = vmatmul.mubr.msk.f32.gmra.mrb[122].mxu1 %vm74_vm1, %v1752_v15  ;;  %v1202_v13 = vld [vmem:[%s5221_s0 + $0x398] sm:$0xff]  ;;  %v1757_v15 = vld [vmem:[%s5221_s0 + $0x520] sm:$0xff] }
 0x100   :  { %3212 = vmatprep.mubr.msk.f32.mxu0 %vm3505_vm0, %v3506_v6  ;;  %3367 = vmatprep.mubr.msk.f32.mxu1 %vm3505_vm0, %v3506_v6 }
 0x101   :  { %v540_v28 = vmax.f32 %v329_v21, 0.0  ;;  %v1095_v29 = vmax.f32 %v884_v22, 0.0 }
 0x102   :  { %v333_v30 = vpop.f32.mrb[18].mxu0  ;;  %v888_v31 = vpop.f32.mrb[18].mxu1 }
 0x103   :  { %v4332_v32 = vmax.f32 %v540_v28, %v1095_v29  ;;  %v334_v33 = vadd.f32 %v4178_v51, %v333_v30  ;;  %v889_v34 = vadd.f32 %v4178_v51, %v888_v31  ;;  %v2892_v35 = vpop.f32.mrb[19].mxu0  ;;  %v3047_v37 = vpop.f32.mrb[19].mxu1  ;;  %3213 = vmatmul.mubr.msk.f32.gmra.mrb[124].mxu0 %vm74_vm1, %v1198_v26  ;;  %3368 = vmatmul.mubr.msk.f32.gmra.mrb[124].mxu1 %vm74_vm1, %v1753_v27  ;;  %v1203_v27 = vld [vmem:[%s5221_s0 + $0x3a0] sm:$0xff]  ;;  %v1758_v28 = vld [vmem:[%s5221_s0 + $0x528] sm:$0xff] }
 0x104   :  { %3215 = vmatprep.mubr.msk.f32.mxu0 %vm3505_vm0, %v3506_v6  ;;  %3370 = vmatprep.mubr.msk.f32.mxu1 %vm3505_vm0, %v3506_v6 }
 0x105   :  { %v541_v40 = vmax.f32 %v334_v33, 0.0  ;;  %v1096_v41 = vmax.f32 %v889_v34, 0.0 }
 0x106   :  { %v338_v42 = vpop.f32.mrb[20].mxu0  ;;  %v893_v43 = vpop.f32.mrb[20].mxu1 }
 0x107   :  { %v4348_v44 = vmax.f32 %v541_v40, %v1096_v41  ;;  %v339_v45 = vadd.f32 %v4178_v51, %v338_v42  ;;  %v894_v46 = vadd.f32 %v4178_v51, %v893_v43  ;;  %v2895_v48 = vpop.f32.mrb[21].mxu0  ;;  %v3050_v49 = vpop.f32.mrb[21].mxu1  ;;  %3216 = vmatmul.mubr.msk.f32.gmra.mrb[126].mxu0 %vm74_vm1, %v1199_v38  ;;  %3371 = vmatmul.mubr.msk.f32.gmra.mrb[126].mxu1 %vm74_vm1, %v1754_v39  ;;  %v1204_v40 = vld [vmem:[%s5221_s0 + $0x3a8] sm:$0xff]  ;;  %v1759_v41 = vld [vmem:[%s5221_s0 + $0x530] sm:$0xff] }
 0x108   :  { %3218 = vmatprep.mubr.msk.f32.mxu0 %vm3505_vm0, %v3506_v6  ;;  %3373 = vmatprep.mubr.msk.f32.mxu1 %vm3505_vm0, %v3506_v6 }
 0x109   :  { %v542_v53 = vmax.f32 %v339_v45, 0.0  ;;  %v1097_v54 = vmax.f32 %v894_v46, 0.0 }
 0x10a   :  { %v343_v55 = vpop.f32.mrb[22].mxu0  ;;  %v898_v56 = vpop.f32.mrb[22].mxu1 }
 0x10b   :  { %v4364_v57 = vmax.f32 %v542_v53, %v1097_v54  ;;  %v344_v58 = vadd.f32 %v4178_v51, %v343_v55  ;;  %v899_v60 = vadd.f32 %v4178_v51, %v898_v56  ;;  %v2898_v61 = vpop.f32.mrb[23].mxu0  ;;  %v3053_v62 = vpop.f32.mrb[23].mxu1  ;;  %3219 = vmatmul.mubr.msk.f32.gmra.mrb[128].mxu0 %vm74_vm1, %v1200_v50  ;;  %3374 = vmatmul.mubr.msk.f32.gmra.mrb[128].mxu1 %vm74_vm1, %v1755_v52  ;;  %v1205_v54 = vld [vmem:[%s5221_s0 + $0x3b0] sm:$0xff]  ;;  %v1760_v55 = vld [vmem:[%s5221_s0 + $0x538] sm:$0xff] }
 0x10c   :  { %3221 = vmatprep.mubr.msk.f32.mxu0 %vm3505_vm0, %v3506_v6  ;;  %3376 = vmatprep.mubr.msk.f32.mxu1 %vm3505_vm0, %v3506_v6 }
 0x10d   :  { %v543_v1 = vmax.f32 %v344_v58, 0.0  ;;  %v1098_v3 = vmax.f32 %v899_v60, 0.0 }
 0x10e   :  { %v348_v4 = vpop.f32.mrb[24].mxu0  ;;  %v903_v5 = vpop.f32.mrb[24].mxu1 }
 0x10f   :  { %v4380_v7 = vmax.f32 %v543_v1, %v1098_v3  ;;  %v349_v9 = vadd.f32 %v4178_v51, %v348_v4  ;;  %v904_v10 = vadd.f32 %v4178_v51, %v903_v5  ;;  %v2901_v11 = vpop.f32.mrb[25].mxu0  ;;  %v3056_v12 = vpop.f32.mrb[25].mxu1  ;;  %3222 = vmatmul.mubr.msk.f32.gmra.mrb[130].mxu0 %vm74_vm1, %v1201_v63  ;;  %3377 = vmatmul.mubr.msk.f32.gmra.mrb[130].mxu1 %vm74_vm1, %v1756_v0  ;;  %v1206_v4 = vld [vmem:[%s5221_s0 + $0x3b8] sm:$0xff]  ;;  %v1761_v5 = vld [vmem:[%s5221_s0 + $0x540] sm:$0xff] }
 0x110   :  { %3224 = vmatprep.mubr.msk.f32.mxu0 %vm3505_vm0, %v3506_v6  ;;  %3379 = vmatprep.mubr.msk.f32.mxu1 %vm3505_vm0, %v3506_v6 }
 0x111   :  { %v544_v16 = vmax.f32 %v349_v9, 0.0  ;;  %v1099_v17 = vmax.f32 %v904_v10, 0.0 }
 0x112   :  { %v353_v18 = vpop.f32.mrb[26].mxu0  ;;  %v908_v19 = vpop.f32.mrb[26].mxu1 }
 0x113   :  { %v4396_v21 = vmax.f32 %v544_v16, %v1099_v17  ;;  %v354_v22 = vadd.f32 %v4178_v51, %v353_v18  ;;  %v909_v23 = vadd.f32 %v4178_v51, %v908_v19  ;;  %v2904_v24 = vpop.f32.mrb[27].mxu0  ;;  %v3059_v26 = vpop.f32.mrb[27].mxu1  ;;  %3225 = vmatmul.mubr.msk.f32.gmra.mrb[132].mxu0 %vm74_vm1, %v1202_v13  ;;  %3380 = vmatmul.mubr.msk.f32.gmra.mrb[132].mxu1 %vm74_vm1, %v1757_v15  ;;  %v1207_v19 = vld [vmem:[%s5221_s0 + $0x3c0] sm:$0xff] }
 0x114   :  { %3227 = vmatprep.mubr.msk.f32.mxu0 %vm3505_vm0, %v3506_v6  ;;  %3382 = vmatprep.mubr.msk.f32.mxu1 %vm3505_vm0, %v3506_v6 }
 0x115   :  { %v545_v29 = vmax.f32 %v354_v22, 0.0  ;;  %v1100_v30 = vmax.f32 %v909_v23, 0.0  ;;  %v1762_v22 = vld [vmem:[%s5221_s0 + $0x548] sm:$0xff] }
 0x116   :  { %v358_v31 = vpop.f32.mrb[28].mxu0  ;;  %v913_v33 = vpop.f32.mrb[28].mxu1 }
 0x117   :  { %v4412_v34 = vmax.f32 %v545_v29, %v1100_v30  ;;  %v359_v35 = vadd.f32 %v4178_v51, %v358_v31  ;;  %v914_v37 = vadd.f32 %v4178_v51, %v913_v33  ;;  %v2907_v38 = vpop.f32.mrb[29].mxu0  ;;  %v3062_v39 = vpop.f32.mrb[29].mxu1  ;;  %3228 = vmatmul.mubr.msk.f32.gmra.mrb[134].mxu0 %vm74_vm1, %v1203_v27  ;;  %3383 = vmatmul.mubr.msk.f32.gmra.mrb[134].mxu1 %vm74_vm1, %v1758_v28 }
 0x118   :  { %3230 = vmatprep.mubr.msk.f32.mxu0 %vm3505_vm0, %v3506_v6  ;;  %3385 = vmatprep.mubr.msk.f32.mxu1 %vm3505_vm0, %v3506_v6 }
 0x119   :  { %v546_v42 = vmax.f32 %v359_v35, 0.0  ;;  %v1101_v43 = vmax.f32 %v914_v37, 0.0  ;;  %v1208_v35 = vld [vmem:[%s5221_s0 + $0x3c8] sm:$0xff]  ;;  %v1763_v37 = vld [vmem:[%s5221_s0 + $0x550] sm:$0xff] }
 0x11a   :  { %v363_v45 = vpop.f32.mrb[30].mxu0  ;;  %v918_v46 = vpop.f32.mrb[30].mxu1 }
 0x11b   :  { %v4428_v48 = vmax.f32 %v546_v42, %v1101_v43  ;;  %v364_v49 = vadd.f32 %v4178_v51, %v363_v45  ;;  %v919_v50 = vadd.f32 %v4178_v51, %v918_v46  ;;  %v2910_v52 = vpop.f32.mrb[31].mxu0  ;;  %v3065_v53 = vpop.f32.mrb[31].mxu1  ;;  %3231 = vmatmul.mubr.msk.f32.gmra.mrb[136].mxu0 %vm74_vm1, %v1204_v40  ;;  %3386 = vmatmul.mubr.msk.f32.gmra.mrb[136].mxu1 %vm74_vm1, %v1759_v41 }
 0x11c   :  { %3233 = vmatprep.mubr.msk.f32.mxu0 %vm3505_vm0, %v3506_v6  ;;  %3388 = vmatprep.mubr.msk.f32.mxu1 %vm3505_vm0, %v3506_v6  ;;  %v1764_v52 = vld [vmem:[%s5221_s0 + $0x558] sm:$0xff] }
 0x11d   :  { %v547_v56 = vmax.f32 %v364_v49, 0.0  ;;  %v1102_v58 = vmax.f32 %v919_v50, 0.0  ;;  %v1209_v50 = vld [vmem:[%s5221_s0 + $0x3d0] sm:$0xff] }
 0x11e   :  { %v368_v60 = vpop.f32.mrb[32].mxu0  ;;  %v923_v61 = vpop.f32.mrb[32].mxu1 }
 0x11f   :  { %v4444_v62 = vmax.f32 %v547_v56, %v1102_v58  ;;  %v369_v63 = vadd.f32 %v4178_v51, %v368_v60  ;;  %v924_v0 = vadd.f32 %v4178_v51, %v923_v61  ;;  %v2913_v1 = vpop.f32.mrb[33].mxu0  ;;  %v3068_v3 = vpop.f32.mrb[33].mxu1  ;;  %3234 = vmatmul.mubr.msk.f32.gmra.mrb[138].mxu0 %vm74_vm1, %v1205_v54  ;;  %3389 = vmatmul.mubr.msk.f32.gmra.mrb[138].mxu1 %vm74_vm1, %v1760_v55 }
 0x120   :  { %3236 = vmatprep.mubr.msk.f32.mxu0 %vm3505_vm0, %v3506_v6  ;;  %3391 = vmatprep.mubr.msk.f32.mxu1 %vm3505_vm0, %v3506_v6  ;;  %v1210_v1 = vld [vmem:[%s5221_s0 + $0x3d8] sm:$0xff]  ;;  %v1765_v3 = vld [vmem:[%s5221_s0 + $0x560] sm:$0xff] }
 0x121   :  { %v548_v9 = vmax.f32 %v369_v63, 0.0  ;;  %v1103_v10 = vmax.f32 %v924_v0, 0.0 }
 0x122   :  { %v373_v11 = vpop.f32.mrb[34].mxu0  ;;  %v928_v12 = vpop.f32.mrb[34].mxu1 }
 0x123   :  { %v4460_v13 = vmax.f32 %v548_v9, %v1103_v10  ;;  %v374_v15 = vadd.f32 %v4178_v51, %v373_v11  ;;  %v929_v16 = vadd.f32 %v4178_v51, %v928_v12  ;;  %v2916_v17 = vpop.f32.mrb[35].mxu0  ;;  %v3071_v18 = vpop.f32.mrb[35].mxu1  ;;  %3237 = vmatmul.mubr.msk.f32.gmra.mrb[140].mxu0 %vm74_vm1, %v1206_v4  ;;  %3392 = vmatmul.mubr.msk.f32.gmra.mrb[140].mxu1 %vm74_vm1, %v1761_v5 }
 0x124   :  { %3239 = vmatprep.mubr.msk.f32.mxu0 %vm3505_vm0, %v3506_v6  ;;  %3394 = vmatprep.mubr.msk.f32.mxu1 %vm3505_vm0, %v3506_v6  ;;  %v1211_v18 = vld [vmem:[%s5221_s0 + $0x3e0] sm:$0xff] }
 0x125   :  { %v549_v23 = vmax.f32 %v374_v15, 0.0  ;;  %v1104_v24 = vmax.f32 %v929_v16, 0.0 }
 0x126   :  { %v378_v26 = vpop.f32.mrb[36].mxu0  ;;  %v933_v27 = vpop.f32.mrb[36].mxu1 }
 0x127   :  { %v4476_v28 = vmax.f32 %v549_v23, %v1104_v24  ;;  %v379_v29 = vadd.f32 %v4178_v51, %v378_v26  ;;  %v934_v30 = vadd.f32 %v4178_v51, %v933_v27  ;;  %v2919_v31 = vpop.f32.mrb[37].mxu0  ;;  %v3074_v33 = vpop.f32.mrb[37].mxu1  ;;  %3240 = vmatmul.mubr.msk.f32.gmra.mrb[142].mxu0 %vm74_vm1, %v1207_v19  ;;  %3395 = vmatmul.mubr.msk.f32.gmra.mrb[142].mxu1 %vm74_vm1, %v1762_v22  ;;  %v1766_v19 = vld [vmem:[%s5221_s0 + $0x568] sm:$0xff] }
 0x128   :  { %3242 = vmatprep.mubr.msk.f32.mxu0 %vm3505_vm0, %v3506_v6  ;;  %3397 = vmatprep.mubr.msk.f32.mxu1 %vm3505_vm0, %v3506_v6 }
 0x129   :  { %v550_v38 = vmax.f32 %v379_v29, 0.0  ;;  %v1105_v39 = vmax.f32 %v934_v30, 0.0 }
 0x12a   :  { %v383_v40 = vpop.f32.mrb[38].mxu0  ;;  %v938_v41 = vpop.f32.mrb[38].mxu1 }
 0x12b   :  { %v4492_v42 = vmax.f32 %v550_v38, %v1105_v39  ;;  %v384_v43 = vadd.f32 %v4178_v51, %v383_v40  ;;  %v939_v45 = vadd.f32 %v4178_v51, %v938_v41  ;;  %v2922_v46 = vpop.f32.mrb[39].mxu0  ;;  %v3077_v49 = vpop.f32.mrb[39].mxu1  ;;  %3243 = vmatmul.mubr.msk.f32.gmra.mrb[144].mxu0 %vm74_vm1, %v1208_v35  ;;  %3398 = vmatmul.mubr.msk.f32.gmra.mrb[144].mxu1 %vm74_vm1, %v1763_v37  ;;  %v1212_v35 = vld [vmem:[%s5221_s0 + $0x3e8] sm:$0xff]  ;;  %v1767_v37 = vld [vmem:[%s5221_s0 + $0x570] sm:$0xff] }
 0x12c   :  { %3245 = vmatprep.mubr.msk.f32.mxu0 %vm3505_vm0, %v3506_v6  ;;  %3400 = vmatprep.mubr.msk.f32.mxu1 %vm3505_vm0, %v3506_v6 }
 0x12d   :  { %v551_v53 = vmax.f32 %v384_v43, 0.0  ;;  %v1106_v54 = vmax.f32 %v939_v45, 0.0 }
 0x12e   :  { %v388_v55 = vpop.f32.mrb[40].mxu0  ;;  %v943_v56 = vpop.f32.mrb[40].mxu1 }
 0x12f   :  { %v4508_v58 = vmax.f32 %v551_v53, %v1106_v54  ;;  %v389_v60 = vadd.f32 %v4178_v51, %v388_v55  ;;  %v944_v61 = vadd.f32 %v4178_v51, %v943_v56  ;;  %v2925_v63 = vpop.f32.mrb[41].mxu0  ;;  %v3080_v0 = vpop.f32.mrb[41].mxu1  ;;  %3246 = vmatmul.mubr.msk.f32.gmra.mrb[146].mxu0 %vm74_vm1, %v1209_v50  ;;  %3401 = vmatmul.mubr.msk.f32.gmra.mrb[146].mxu1 %vm74_vm1, %v1764_v52  ;;  %v1213_v52 = vld [vmem:[%s5221_s0 + $0x3f0] sm:$0xff]  ;;  %v1768_v53 = vld [vmem:[%s5221_s0 + $0x578] sm:$0xff] }
 0x130   :  { %3248 = vmatprep.mubr.msk.f32.mxu0 %vm3505_vm0, %v3506_v6  ;;  %3403 = vmatprep.mubr.msk.f32.mxu1 %vm3505_vm0, %v3506_v6 }
 0x131   :  { %v552_v4 = vmax.f32 %v389_v60, 0.0  ;;  %v1107_v5 = vmax.f32 %v944_v61, 0.0 }
 0x132   :  { %v393_v9 = vpop.f32.mrb[42].mxu0  ;;  %v948_v10 = vpop.f32.mrb[42].mxu1 }
 0x133   :  { %v4524_v11 = vmax.f32 %v552_v4, %v1107_v5  ;;  %v394_v12 = vadd.f32 %v4178_v51, %v393_v9  ;;  %v949_v15 = vadd.f32 %v4178_v51, %v948_v10  ;;  %v2928_v16 = vpop.f32.mrb[43].mxu0  ;;  %v3083_v17 = vpop.f32.mrb[43].mxu1  ;;  %3249 = vmatmul.mubr.msk.f32.gmra.mrb[148].mxu0 %vm74_vm1, %v1210_v1  ;;  %3404 = vmatmul.mubr.msk.f32.gmra.mrb[148].mxu1 %vm74_vm1, %v1765_v3  ;;  %v1214_v4 = vld [vmem:[%s5221_s0 + $0x3f8] sm:$0xff]  ;;  %v1769_v5 = vld [vmem:[%s5221_s0 + $0x580] sm:$0xff] }
 0x134   :  { %3251 = vmatprep.mubr.msk.f32.mxu0 %vm3505_vm0, %v3506_v6  ;;  %3406 = vmatprep.mubr.msk.f32.mxu1 %vm3505_vm0, %v3506_v6 }
 0x135   :  { %v553_v22 = vmax.f32 %v394_v12, 0.0  ;;  %v1108_v23 = vmax.f32 %v949_v15, 0.0 }
 0x136   :  { %v398_v24 = vpop.f32.mrb[44].mxu0  ;;  %v953_v26 = vpop.f32.mrb[44].mxu1 }
 0x137   :  { %v4540_v27 = vmax.f32 %v553_v22, %v1108_v23  ;;  %v399_v29 = vadd.f32 %v4178_v51, %v398_v24  ;;  %v954_v30 = vadd.f32 %v4178_v51, %v953_v26  ;;  %v2931_v31 = vpop.f32.mrb[45].mxu0  ;;  %v3086_v33 = vpop.f32.mrb[45].mxu1  ;;  %3252 = vmatmul.mubr.msk.f32.gmra.mrb[150].mxu0 %vm74_vm1, %v1211_v18  ;;  %3407 = vmatmul.mubr.msk.f32.gmra.mrb[150].mxu1 %vm74_vm1, %v1766_v19  ;;  %v1215_v23 = vld [vmem:[%s5221_s0 + $0x400] sm:$0xff]  ;;  %v1770_v24 = vld [vmem:[%s5221_s0 + $0x588] sm:$0xff] }
 0x138   :  { %3254 = vmatprep.mubr.msk.f32.mxu0 %vm3505_vm0, %v3506_v6  ;;  %3409 = vmatprep.mubr.msk.f32.mxu1 %vm3505_vm0, %v3506_v6 }
 0x139   :  { %v554_v38 = vmax.f32 %v399_v29, 0.0  ;;  %v1109_v39 = vmax.f32 %v954_v30, 0.0 }
 0x13a   :  { %v403_v40 = vpop.f32.mrb[46].mxu0  ;;  %v958_v41 = vpop.f32.mrb[46].mxu1 }
 0x13b   :  { %v4556_v43 = vmax.f32 %v554_v38, %v1109_v39  ;;  %v404_v45 = vadd.f32 %v4178_v51, %v403_v40  ;;  %v959_v46 = vadd.f32 %v4178_v51, %v958_v41  ;;  %v2934_v49 = vpop.f32.mrb[47].mxu0  ;;  %v3089_v50 = vpop.f32.mrb[47].mxu1  ;;  %3255 = vmatmul.mubr.msk.f32.gmra.mrb[152].mxu0 %vm74_vm1, %v1212_v35  ;;  %3410 = vmatmul.mubr.msk.f32.gmra.mrb[152].mxu1 %vm74_vm1, %v1767_v37  ;;  %v1216_v40 = vld [vmem:[%s5221_s0 + $0x408] sm:$0xff]  ;;  %v1771_v41 = vld [vmem:[%s5221_s0 + $0x590] sm:$0xff] }
 0x13c   :  { %3257 = vmatprep.mubr.msk.f32.mxu0 %vm3505_vm0, %v3506_v6  ;;  %3412 = vmatprep.mubr.msk.f32.mxu1 %vm3505_vm0, %v3506_v6 }
 0x13d   :  { %v555_v54 = vmax.f32 %v404_v45, 0.0  ;;  %v1110_v55 = vmax.f32 %v959_v46, 0.0 }
 0x13e   :  { %v408_v56 = vpop.f32.mrb[48].mxu0  ;;  %v963_v60 = vpop.f32.mrb[48].mxu1 }
 0x13f   :  { %v4572_v61 = vmax.f32 %v555_v54, %v1110_v55  ;;  %v409_v63 = vadd.f32 %v4178_v51, %v408_v56  ;;  %v964_v0 = vadd.f32 %v4178_v51, %v963_v60  ;;  %v2937_v1 = vpop.f32.mrb[49].mxu0  ;;  %v3092_v3 = vpop.f32.mrb[49].mxu1  ;;  %3258 = vmatmul.mubr.msk.f32.gmra.mrb[154].mxu0 %vm74_vm1, %v1213_v52  ;;  %3413 = vmatmul.mubr.msk.f32.gmra.mrb[154].mxu1 %vm74_vm1, %v1768_v53  ;;  %v1217_v60 = vld [vmem:[%s5221_s0 + $0x410] sm:$0xff] }
 0x140   :  { %3260 = vmatprep.mubr.msk.f32.mxu0 %vm3505_vm0, %v3506_v6  ;;  %3415 = vmatprep.mubr.msk.f32.mxu1 %vm3505_vm0, %v3506_v6 }
 0x141   :  { %v556_v9 = vmax.f32 %v409_v63, 0.0  ;;  %v1111_v10 = vmax.f32 %v964_v0, 0.0  ;;  %v1772_v63 = vld [vmem:[%s5221_s0 + $0x598] sm:$0xff] }
 0x142   :  { %v413_v12 = vpop.f32.mrb[50].mxu0  ;;  %v968_v15 = vpop.f32.mrb[50].mxu1 }
 0x143   :  { %v4588_v16 = vmax.f32 %v556_v9, %v1111_v10  ;;  %v414_v17 = vadd.f32 %v4178_v51, %v413_v12  ;;  %v969_v18 = vadd.f32 %v4178_v51, %v968_v15  ;;  %v2940_v19 = vpop.f32.mrb[51].mxu0  ;;  %v3095_v22 = vpop.f32.mrb[51].mxu1  ;;  %3261 = vmatmul.mubr.msk.f32.gmra.mrb[156].mxu0 %vm74_vm1, %v1214_v4  ;;  %3416 = vmatmul.mubr.msk.f32.gmra.mrb[156].mxu1 %vm74_vm1, %v1769_v5 }
 0x144   :  { %3263 = vmatprep.mubr.msk.f32.mxu0 %vm3505_vm0, %v3506_v6  ;;  %3418 = vmatprep.mubr.msk.f32.mxu1 %vm3505_vm0, %v3506_v6 }
 0x145   :  { %v557_v26 = vmax.f32 %v414_v17, 0.0  ;;  %v1112_v29 = vmax.f32 %v969_v18, 0.0  ;;  %v1218_v17 = vld [vmem:[%s5221_s0 + $0x418] sm:$0xff]  ;;  %v1773_v18 = vld [vmem:[%s5221_s0 + $0x5a0] sm:$0xff] }
 0x146   :  { %v418_v30 = vpop.f32.mrb[52].mxu0  ;;  %v973_v31 = vpop.f32.mrb[52].mxu1 }
 0x147   :  { %v4604_v33 = vmax.f32 %v557_v26, %v1112_v29  ;;  %v419_v35 = vadd.f32 %v4178_v51, %v418_v30  ;;  %v974_v37 = vadd.f32 %v4178_v51, %v973_v31  ;;  %v2943_v38 = vpop.f32.mrb[53].mxu0  ;;  %v3098_v39 = vpop.f32.mrb[53].mxu1  ;;  %3264 = vmatmul.mubr.msk.f32.gmra.mrb[158].mxu0 %vm74_vm1, %v1215_v23  ;;  %3419 = vmatmul.mubr.msk.f32.gmra.mrb[158].mxu1 %vm74_vm1, %v1770_v24 }
 0x148   :  { %3266 = vmatprep.mubr.msk.f32.mxu0 %vm3505_vm0, %v3506_v6  ;;  %3421 = vmatprep.mubr.msk.f32.mxu1 %vm3505_vm0, %v3506_v6  ;;  %v1774_v38 = vld [vmem:[%s5221_s0 + $0x5a8] sm:$0xff] }
 0x149   :  { %v558_v45 = vmax.f32 %v419_v35, 0.0  ;;  %v1113_v46 = vmax.f32 %v974_v37, 0.0  ;;  %v1219_v37 = vld [vmem:[%s5221_s0 + $0x420] sm:$0xff] }
 0x14a   :  { %v423_v49 = vpop.f32.mrb[54].mxu0  ;;  %v978_v50 = vpop.f32.mrb[54].mxu1 }
 0x14b   :  { %v4620_v52 = vmax.f32 %v558_v45, %v1113_v46  ;;  %v424_v53 = vadd.f32 %v4178_v51, %v423_v49  ;;  %v979_v54 = vadd.f32 %v4178_v51, %v978_v50  ;;  %v2946_v55 = vpop.f32.mrb[55].mxu0  ;;  %v3101_v56 = vpop.f32.mrb[55].mxu1  ;;  %3267 = vmatmul.mubr.msk.f32.gmra.mrb[160].mxu0 %vm74_vm1, %v1216_v40  ;;  %3422 = vmatmul.mubr.msk.f32.gmra.mrb[160].mxu1 %vm74_vm1, %v1771_v41 }
 0x14c   :  { %3269 = vmatprep.mubr.msk.f32.mxu0 %vm3505_vm0, %v3506_v6  ;;  %3424 = vmatprep.mubr.msk.f32.mxu1 %vm3505_vm0, %v3506_v6  ;;  %v1220_v55 = vld [vmem:[%s5221_s0 + $0x428] sm:$0xff]  ;;  %v1775_v56 = vld [vmem:[%s5221_s0 + $0x5b0] sm:$0xff] }
 0x14d   :  { %v559_v0 = vmax.f32 %v424_v53, 0.0  ;;  %v1114_v1 = vmax.f32 %v979_v54, 0.0 }
 0x14e   :  { %v428_v3 = vpop.f32.mrb[56].mxu0  ;;  %v983_v4 = vpop.f32.mrb[56].mxu1 }
 0x14f   :  { %v4636_v5 = vmax.f32 %v559_v0, %v1114_v1  ;;  %v429_v9 = vadd.f32 %v4178_v51, %v428_v3  ;;  %v984_v10 = vadd.f32 %v4178_v51, %v983_v4  ;;  %v2949_v12 = vpop.f32.mrb[57].mxu0  ;;  %v3104_v15 = vpop.f32.mrb[57].mxu1  ;;  %3270 = vmatmul.mubr.msk.f32.gmra.mrb[162].mxu0 %vm74_vm1, %v1217_v60  ;;  %3425 = vmatmul.mubr.msk.f32.gmra.mrb[162].mxu1 %vm74_vm1, %v1772_v63 }
 0x150   :  { %3272 = vmatprep.mubr.msk.f32.mxu0 %vm3505_vm0, %v3506_v6  ;;  %3427 = vmatprep.mubr.msk.f32.mxu1 %vm3505_vm0, %v3506_v6  ;;  %v1221_v15 = vld [vmem:[%s5221_s0 + $0x430] sm:$0xff] }
 0x151   :  { %v560_v19 = vmax.f32 %v429_v9, 0.0  ;;  %v1115_v22 = vmax.f32 %v984_v10, 0.0 }
 0x152   :  { %v433_v23 = vpop.f32.mrb[58].mxu0  ;;  %v988_v24 = vpop.f32.mrb[58].mxu1 }
 0x153   :  { %v4652_v26 = vmax.f32 %v560_v19, %v1115_v22  ;;  %v434_v29 = vadd.f32 %v4178_v51, %v433_v23  ;;  %v989_v30 = vadd.f32 %v4178_v51, %v988_v24  ;;  %v2952_v31 = vpop.f32.mrb[59].mxu0  ;;  %v3107_v35 = vpop.f32.mrb[59].mxu1  ;;  %3273 = vmatmul.mubr.msk.f32.gmra.mrb[164].mxu0 %vm74_vm1, %v1218_v17  ;;  %3428 = vmatmul.mubr.msk.f32.gmra.mrb[164].mxu1 %vm74_vm1, %v1773_v18  ;;  %v1776_v17 = vld [vmem:[%s5221_s0 + $0x5b8] sm:$0xff] }
 0x154   :  { %3275 = vmatprep.mubr.msk.f32.mxu0 %vm3505_vm0, %v3506_v6  ;;  %3430 = vmatprep.mubr.msk.f32.mxu1 %vm3505_vm0, %v3506_v6 }
 0x155   :  { %v561_v39 = vmax.f32 %v434_v29, 0.0  ;;  %v1116_v40 = vmax.f32 %v989_v30, 0.0 }
 0x156   :  { %v438_v41 = vpop.f32.mrb[60].mxu0  ;;  %v993_v45 = vpop.f32.mrb[60].mxu1 }
 0x157   :  { %v4668_v46 = vmax.f32 %v561_v39, %v1116_v40  ;;  %v439_v49 = vadd.f32 %v4178_v51, %v438_v41  ;;  %v994_v50 = vadd.f32 %v4178_v51, %v993_v45  ;;  %v2955_v53 = vpop.f32.mrb[61].mxu0  ;;  %v3110_v54 = vpop.f32.mrb[61].mxu1  ;;  %3276 = vmatmul.mubr.msk.f32.gmra.mrb[166].mxu0 %vm74_vm1, %v1219_v37  ;;  %3431 = vmatmul.mubr.msk.f32.gmra.mrb[166].mxu1 %vm74_vm1, %v1774_v38  ;;  %v1222_v37 = vld [vmem:[%s5221_s0 + $0x438] sm:$0xff]  ;;  %v1777_v38 = vld [vmem:[%s5221_s0 + $0x5c0] sm:$0xff] }
 0x158   :  { %3278 = vmatprep.mubr.msk.f32.mxu0 %vm3505_vm0, %v3506_v6  ;;  %3433 = vmatprep.mubr.msk.f32.mxu1 %vm3505_vm0, %v3506_v6 }
 0x159   :  { %v562_v60 = vmax.f32 %v439_v49, 0.0  ;;  %v1117_v63 = vmax.f32 %v994_v50, 0.0 }
 0x15a   :  { %v443_v0 = vpop.f32.mrb[62].mxu0  ;;  %v998_v1 = vpop.f32.mrb[62].mxu1 }
 0x15b   :  { %v4684_v3 = vmax.f32 %v562_v60, %v1117_v63  ;;  %v444_v4 = vadd.f32 %v4178_v51, %v443_v0  ;;  %v999_v9 = vadd.f32 %v4178_v51, %v998_v1  ;;  %v2958_v10 = vpop.f32.mrb[63].mxu0  ;;  %v3113_v12 = vpop.f32.mrb[63].mxu1  ;;  %3279 = vmatmul.mubr.msk.f32.gmra.mrb[168].mxu0 %vm74_vm1, %v1220_v55  ;;  %3434 = vmatmul.mubr.msk.f32.gmra.mrb[168].mxu1 %vm74_vm1, %v1775_v56  ;;  %v1223_v56 = vld [vmem:[%s5221_s0 + $0x440] sm:$0xff] }
 0x15c   :  { %3281 = vmatprep.mubr.msk.f32.mxu0 %vm3505_vm0, %v3506_v6  ;;  %3436 = vmatprep.mubr.msk.f32.mxu1 %vm3505_vm0, %v3506_v6 }
 0x15d   :  { %v563_v18 = vmax.f32 %v444_v4, 0.0  ;;  %v1118_v19 = vmax.f32 %v999_v9, 0.0  ;;  %v4737_v9 = vld [vmem:[%s5222_s2] ss:$0 sm:$0xff] }
 0x15e   :  { %v448_v22 = vpop.f32.mrb[64].mxu0  ;;  %v1003_v23 = vpop.f32.mrb[64].mxu1 }
 0x15f   :  { %v4700_v24 = vmax.f32 %v563_v18, %v1118_v19  ;;  %v449_v29 = vadd.f32 %v4178_v51, %v448_v22  ;;  %v1004_v30 = vadd.f32 %v4178_v51, %v1003_v23  ;;  %v2961_v31 = vpop.f32.mrb[65].mxu0  ;;  %v3116_v35 = vpop.f32.mrb[65].mxu1  ;;  %3282 = vmatmul.mubr.msk.f32.gmra.mrb[170].mxu0 %vm74_vm1, %v1221_v15  ;;  %3437 = vmatmul.mubr.msk.f32.gmra.mrb[170].mxu1 %vm74_vm1, %v1776_v17  ;;  %v1224_v18 = vld [vmem:[%s5221_s0 + $0x448] sm:$0xff]  ;;  %v1779_v19 = vld [vmem:[%s5221_s0 + $0x5d0] sm:$0xff] }
 0x160   :  { %3284 = vmatprep.mubr.msk.f32.mxu0 %vm3505_vm0, %v3506_v6  ;;  %3439 = vmatprep.mubr.msk.f32.mxu1 %vm3505_vm0, %v3506_v6 }
 0x161   :  { %v564_v39 = vmax.f32 %v449_v29, 0.0  ;;  %v1119_v40 = vmax.f32 %v1004_v30, 0.0 }
 0x162   :  { %v453_v41 = vpop.f32.mrb[66].mxu0  ;;  %v1008_v45 = vpop.f32.mrb[66].mxu1 }
 0x163   :  { %v4716_v49 = vmax.f32 %v564_v39, %v1119_v40  ;;  %v454_v50 = vadd.f32 %v4178_v51, %v453_v41  ;;  %v1009_v53 = vadd.f32 %v4178_v51, %v1008_v45  ;;  %v2964_v54 = vpop.f32.mrb[67].mxu0  ;;  %v3119_v55 = vpop.f32.mrb[67].mxu1  ;;  %3285 = vmatmul.mubr.msk.f32.gmra.mrb[172].mxu0 %vm74_vm1, %v1222_v37  ;;  %3440 = vmatmul.mubr.msk.f32.gmra.mrb[172].mxu1 %vm74_vm1, %v1777_v38  ;;  %v1778_v51 = vld [vmem:[%s5221_s0 + $0x5c8] sm:$0xff]  ;;  %v1225_v40 = vld [vmem:[%s5221_s0 + $0x450] sm:$0xff]  ;;  %v1780_v41 = vld [vmem:[%s5221_s0 + $0x5d8] sm:$0xff] }
 0x164   :  { %3287 = vmatprep.mubr.msk.f32.mxu0 %vm3505_vm0, %v3506_v6  ;;  %3442 = vmatprep.mubr.msk.f32.mxu1 %vm3505_vm0, %v3506_v6 }
 0x165   :  { %v565_v60 = vmax.f32 %v454_v50, 0.0  ;;  %v1120_v63 = vmax.f32 %v1009_v53, 0.0 }
 0x166   :  { %v458_v0 = vpop.f32.mrb[68].mxu0  ;;  %v1013_v1 = vpop.f32.mrb[68].mxu1 }
 0x167   :  { %v4732_v4 = vmax.f32 %v565_v60, %v1120_v63  ;;  %v459_v10 = vadd.f32 %v4737_v9, %v458_v0  ;;  %v1014_v12 = vadd.f32 %v4737_v9, %v1013_v1  ;;  %v2967_v15 = vpop.f32.mrb[69].mxu0  ;;  %v3122_v17 = vpop.f32.mrb[69].mxu1  ;;  %3288 = vmatmul.mubr.msk.f32.gmra.mrb[174].mxu0 %vm74_vm1, %v1223_v56  ;;  %3443 = vmatmul.mubr.msk.f32.gmra.mrb[174].mxu1 %vm74_vm1, %v1778_v51  ;;  %v1226_v0 = vld [vmem:[%s5221_s0 + $0x458] sm:$0xff]  ;;  %v1781_v1 = vld [vmem:[%s5221_s0 + $0x5e0] sm:$0xff] }
 0x168   :  { %3290 = vmatprep.mubr.msk.f32.mxu0 %vm3505_vm0, %v3506_v6  ;;  %3445 = vmatprep.mubr.msk.f32.mxu1 %vm3505_vm0, %v3506_v6 }
 0x169   :  { %v566_v22 = vmax.f32 %v459_v10, 0.0  ;;  %v1121_v23 = vmax.f32 %v1014_v12, 0.0 }
 0x16a   :  { %v463_v29 = vpop.f32.mrb[70].mxu0  ;;  %v1018_v30 = vpop.f32.mrb[70].mxu1 }
 0x16b   :  { %v4753_v31 = vmax.f32 %v566_v22, %v1121_v23  ;;  %v464_v35 = vadd.f32 %v4737_v9, %v463_v29  ;;  %v1019_v37 = vadd.f32 %v4737_v9, %v1018_v30  ;;  %v2970_v38 = vpop.f32.mrb[71].mxu0  ;;  %v3125_v39 = vpop.f32.mrb[71].mxu1  ;;  %3291 = vmatmul.mubr.msk.f32.gmra.mrb[176].mxu0 %vm74_vm1, %v1224_v18  ;;  %3446 = vmatmul.mubr.msk.f32.gmra.mrb[176].mxu1 %vm74_vm1, %v1779_v19  ;;  %v1227_v30 = vld [vmem:[%s5221_s0 + $0x460] sm:$0xff] }
 0x16c   :  { %3293 = vmatprep.mubr.msk.f32.mxu0 %vm3505_vm0, %v3506_v6  ;;  %3448 = vmatprep.mubr.msk.f32.mxu1 %vm3505_vm0, %v3506_v6 }
 0x16d   :  { %v567_v45 = vmax.f32 %v464_v35, 0.0  ;;  %v1122_v50 = vmax.f32 %v1019_v37, 0.0  ;;  %v1782_v35 = vld [vmem:[%s5221_s0 + $0x5e8] sm:$0xff] }
 0x16e   :  { %v468_v53 = vpop.f32.mrb[72].mxu0  ;;  %v1023_v54 = vpop.f32.mrb[72].mxu1 }
 0x16f   :  { %v4769_v55 = vmax.f32 %v567_v45, %v1122_v50  ;;  %v469_v56 = vadd.f32 %v4737_v9, %v468_v53  ;;  %v1024_v51 = vadd.f32 %v4737_v9, %v1023_v54  ;;  %v2973_v60 = vpop.f32.mrb[73].mxu0  ;;  %v3128_v63 = vpop.f32.mrb[73].mxu1  ;;  %3294 = vmatmul.mubr.msk.f32.gmra.mrb[178].mxu0 %vm74_vm1, %v1225_v40  ;;  %3449 = vmatmul.mubr.msk.f32.gmra.mrb[178].mxu1 %vm74_vm1, %v1780_v41 }
 0x170   :  { %3296 = vmatprep.mubr.msk.f32.mxu0 %vm3505_vm0, %v3506_v6  ;;  %3451 = vmatprep.mubr.msk.f32.mxu1 %vm3505_vm0, %v3506_v6 }
 0x171   :  { %v568_v10 = vmax.f32 %v469_v56, 0.0  ;;  %v1123_v12 = vmax.f32 %v1024_v51, 0.0  ;;  %v1228_v56 = vld [vmem:[%s5221_s0 + $0x468] sm:$0xff]  ;;  %v1783_v51 = vld [vmem:[%s5221_s0 + $0x5f0] sm:$0xff] }
 0x172   :  { %v473_v15 = vpop.f32.mrb[74].mxu0  ;;  %v1028_v17 = vpop.f32.mrb[74].mxu1 }
 0x173   :  { %v4785_v18 = vmax.f32 %v568_v10, %v1123_v12  ;;  %v474_v19 = vadd.f32 %v4737_v9, %v473_v15  ;;  %v1029_v22 = vadd.f32 %v4737_v9, %v1028_v17  ;;  %v2976_v23 = vpop.f32.mrb[75].mxu0  ;;  %v3131_v29 = vpop.f32.mrb[75].mxu1  ;;  %3297 = vmatmul.mubr.msk.f32.gmra.mrb[180].mxu0 %vm74_vm1, %v1226_v0  ;;  %3452 = vmatmul.mubr.msk.f32.gmra.mrb[180].mxu1 %vm74_vm1, %v1781_v1 }
 0x174   :  { %3299 = vmatprep.mubr.msk.f32.mxu0 %vm3505_vm0, %v3506_v6  ;;  %3454 = vmatprep.mubr.msk.f32.mxu1 %vm3505_vm0, %v3506_v6  ;;  %v1784_v23 = vld [vmem:[%s5221_s0 + $0x5f8] sm:$0xff] }
 0x175   :  { %v569_v37 = vmax.f32 %v474_v19, 0.0  ;;  %v1124_v38 = vmax.f32 %v1029_v22, 0.0  ;;  %v1229_v22 = vld [vmem:[%s5221_s0 + $0x470] sm:$0xff] }
 0x176   :  { %v478_v39 = vpop.f32.mrb[76].mxu0  ;;  %v1033_v40 = vpop.f32.mrb[76].mxu1 }
 0x177   :  { %v4801_v41 = vmax.f32 %v569_v37, %v1124_v38  ;;  %v479_v45 = vadd.f32 %v4737_v9, %v478_v39  ;;  %v1034_v50 = vadd.f32 %v4737_v9, %v1033_v40  ;;  %v2979_v53 = vpop.f32.mrb[77].mxu0  ;;  %v3134_v54 = vpop.f32.mrb[77].mxu1  ;;  %3300 = vmatmul.mubr.msk.f32.gmra.mrb[182].mxu0 %vm74_vm1, %v1227_v30  ;;  %3455 = vmatmul.mubr.msk.f32.gmra.mrb[182].mxu1 %vm74_vm1, %v1782_v35 }
 0x178   :  { %3302 = vmatprep.mubr.msk.f32.mxu0 %vm3505_vm0, %v3506_v6  ;;  %3457 = vmatprep.mubr.msk.f32.mxu1 %vm3505_vm0, %v3506_v6  ;;  %v1230_v53 = vld [vmem:[%s5221_s0 + $0x478] sm:$0xff]  ;;  %v1785_v54 = vld [vmem:[%s5221_s0 + $0x600] sm:$0xff] }
 0x179   :  { %v570_v60 = vmax.f32 %v479_v45, 0.0  ;;  %v1125_v63 = vmax.f32 %v1034_v50, 0.0 }
 0x17a   :  { %v483_v0 = vpop.f32.mrb[78].mxu0  ;;  %v1038_v1 = vpop.f32.mrb[78].mxu1 }
 0x17b   :  { %v4817_v10 = vmax.f32 %v570_v60, %v1125_v63  ;;  %v484_v12 = vadd.f32 %v4737_v9, %v483_v0  ;;  %v1039_v15 = vadd.f32 %v4737_v9, %v1038_v1  ;;  %v2982_v17 = vpop.f32.mrb[79].mxu0  ;;  %v3137_v19 = vpop.f32.mrb[79].mxu1  ;;  %3303 = vmatmul.mubr.msk.f32.gmra.mrb[184].mxu0 %vm74_vm1, %v1228_v56  ;;  %3458 = vmatmul.mubr.msk.f32.gmra.mrb[184].mxu1 %vm74_vm1, %v1783_v51 }
 0x17c   :  { %3305 = vmatprep.mubr.msk.f32.mxu0 %vm3505_vm0, %v3506_v6  ;;  %3460 = vmatprep.mubr.msk.f32.mxu1 %vm3505_vm0, %v3506_v6  ;;  %v1231_v19 = vld [vmem:[%s5221_s0 + $0x480] sm:$0xff] }
 0x17d   :  { %v571_v29 = vmax.f32 %v484_v12, 0.0  ;;  %v1126_v30 = vmax.f32 %v1039_v15, 0.0 }
 0x17e   :  { %v488_v35 = vpop.f32.mrb[80].mxu0  ;;  %v1043_v37 = vpop.f32.mrb[80].mxu1 }
 0x17f   :  { %v4833_v38 = vmax.f32 %v571_v29, %v1126_v30  ;;  %v489_v39 = vadd.f32 %v4737_v9, %v488_v35  ;;  %v1044_v40 = vadd.f32 %v4737_v9, %v1043_v37  ;;  %v2985_v45 = vpop.f32.mrb[81].mxu0  ;;  %v3140_v50 = vpop.f32.mrb[81].mxu1  ;;  %3306 = vmatmul.mubr.msk.f32.gmra.mrb[186].mxu0 %vm74_vm1, %v1229_v22  ;;  %3461 = vmatmul.mubr.msk.f32.gmra.mrb[186].mxu1 %vm74_vm1, %v1784_v23  ;;  %v1786_v22 = vld [vmem:[%s5221_s0 + $0x608] sm:$0xff] }
 0x180   :  { %3308 = vmatprep.mubr.msk.f32.mxu0 %vm3505_vm0, %v3506_v6  ;;  %3463 = vmatprep.mubr.msk.f32.mxu1 %vm3505_vm0, %v3506_v6 }
 0x181   :  { %v572_v56 = vmax.f32 %v489_v39, 0.0  ;;  %v1127_v51 = vmax.f32 %v1044_v40, 0.0 }
 0x182   :  { %v493_v60 = vpop.f32.mrb[82].mxu0  ;;  %v1048_v63 = vpop.f32.mrb[82].mxu1 }
 0x183   :  { %v4849_v0 = vmax.f32 %v572_v56, %v1127_v51  ;;  %v494_v1 = vadd.f32 %v4737_v9, %v493_v60  ;;  %v1049_v12 = vadd.f32 %v4737_v9, %v1048_v63  ;;  %v2988_v15 = vpop.f32.mrb[83].mxu0  ;;  %v3143_v17 = vpop.f32.mrb[83].mxu1  ;;  %3309 = vmatmul.mubr.msk.f32.gmra.mrb[188].mxu0 %vm74_vm1, %v1230_v53  ;;  %3464 = vmatmul.mubr.msk.f32.gmra.mrb[188].mxu1 %vm74_vm1, %v1785_v54  ;;  %v1232_v53 = vld [vmem:[%s5221_s0 + $0x488] sm:$0xff]  ;;  %v1787_v54 = vld [vmem:[%s5221_s0 + $0x610] sm:$0xff] }
 0x184   :  { %3311 = vmatprep.mubr.msk.f32.mxu0 %vm3505_vm0, %v3506_v6  ;;  %3466 = vmatprep.mubr.msk.f32.mxu1 %vm3505_vm0, %v3506_v6 }
 0x185   :  { %v573_v23 = vmax.f32 %v494_v1, 0.0  ;;  %v1128_v29 = vmax.f32 %v1049_v12, 0.0 }
 0x186   :  { %v498_v30 = vpop.f32.mrb[84].mxu0  ;;  %v1053_v35 = vpop.f32.mrb[84].mxu1 }
 0x187   :  { %v4865_v37 = vmax.f32 %v573_v23, %v1128_v29  ;;  %v499_v39 = vadd.f32 %v4737_v9, %v498_v30  ;;  %v1054_v40 = vadd.f32 %v4737_v9, %v1053_v35  ;;  %v2991_v45 = vpop.f32.mrb[85].mxu0  ;;  %v3146_v50 = vpop.f32.mrb[85].mxu1  ;;  %3312 = vmatmul.mubr.msk.f32.gmra.mrb[190].mxu0 %vm74_vm1, %v1231_v19  ;;  %3467 = vmatmul.mubr.msk.f32.gmra.mrb[190].mxu1 %vm74_vm1, %v1786_v22  ;;  %v1233_v22 = vld [vmem:[%s5221_s0 + $0x490] sm:$0xff]  ;;  %v1788_v23 = vld [vmem:[%s5221_s0 + $0x618] sm:$0xff] }
 0x188   :  { %3314 = vmatprep.mubr.msk.f32.mxu0 %vm3505_vm0, %v3506_v6  ;;  %3469 = vmatprep.mubr.msk.f32.mxu1 %vm3505_vm0, %v3506_v6 }
 0x189   :  { %v574_v56 = vmax.f32 %v499_v39, 0.0  ;;  %v1129_v51 = vmax.f32 %v1054_v40, 0.0 }
 0x18a   :  { %v503_v60 = vpop.f32.mrb[86].mxu0  ;;  %v1058_v63 = vpop.f32.mrb[86].mxu1 }
 0x18b   :  { %v4881_v1 = vmax.f32 %v574_v56, %v1129_v51  ;;  %v504_v12 = vadd.f32 %v4737_v9, %v503_v60  ;;  %v1059_v15 = vadd.f32 %v4737_v9, %v1058_v63  ;;  %v2994_v17 = vpop.f32.mrb[87].mxu0  ;;  %v3149_v19 = vpop.f32.mrb[87].mxu1  ;;  %3315 = vmatmul.mubr.msk.f32.gmra.mrb[192].mxu0 %vm74_vm1, %v1232_v53  ;;  %3470 = vmatmul.mubr.msk.f32.gmra.mrb[192].mxu1 %vm74_vm1, %v1787_v54 }
 0x18c   :  { %3317 = vmatprep.mubr.msk.f32.mxu0 %vm3505_vm0, %v3506_v6  ;;  %3472 = vmatprep.mubr.msk.f32.mxu1 %vm3505_vm0, %v3506_v6 }
 0x18d   :  { %v575_v29 = vmax.f32 %v504_v12, 0.0  ;;  %v1130_v30 = vmax.f32 %v1059_v15, 0.0 }
 0x18e   :  { %v508_v35 = vpop.f32.mrb[88].mxu0  ;;  %v1063_v39 = vpop.f32.mrb[88].mxu1 }
 0x18f   :  { %v4897_v40 = vmax.f32 %v575_v29, %v1130_v30  ;;  %v509_v45 = vadd.f32 %v4737_v9, %v508_v35  ;;  %v1064_v50 = vadd.f32 %v4737_v9, %v1063_v39  ;;  %v2997_v53 = vpop.f32.mrb[89].mxu0  ;;  %v3152_v6 = vpop.f32.mrb[89].mxu1  ;;  %3318 = vmatmul.mubr.msk.f32.gmra.mrb[194].mxu0 %vm74_vm1, %v1233_v22  ;;  %3473 = vmatmul.mubr.msk.f32.gmra.mrb[194].mxu1 %vm74_vm1, %v1788_v23 }
 0x191   :  { %v576_v54 = vmax.f32 %v509_v45, 0.0  ;;  %v1131_v56 = vmax.f32 %v1064_v50, 0.0 }
 0x192   :  { %v513_v51 = vpop.f32.mrb[90].mxu0  ;;  %v1068_v60 = vpop.f32.mrb[90].mxu1 }
 0x193   :  { %v4903_v63 = vmax.f32 %v576_v54, %v1131_v56  ;;  %v514_v12 = vadd.f32 %v4737_v9, %v513_v51  ;;  %v1069_v15 = vadd.f32 %v4737_v9, %v1068_v60  ;;  %v3000_v17 = vpop.f32.mrb[91].mxu0  ;;  %v3155_v19 = vpop.f32.mrb[91].mxu1 }
 0x195   :  { %5224 = vst [vmem:[#allocation2_spill] sm:$0xff] %v4903_v63  ;;  %v577_v29 = vmax.f32 %v514_v12, 0.0  ;;  %v1132_v30 = vmax.f32 %v1069_v15, 0.0 }
 0x196   :  { %v518_v35 = vpop.f32.mrb[92].mxu0  ;;  %v1073_v39 = vpop.f32.mrb[92].mxu1 }
 0x197   :  { %v4907_v53 = vmax.f32 %v577_v29, %v1132_v30  ;;  %v519_v22 = vadd.f32 %v4737_v9, %v518_v35  ;;  %v1074_v23 = vadd.f32 %v4737_v9, %v1073_v39  ;;  %v3003_v45 = vpop.f32.mrb[93].mxu0  ;;  %v3158_v50 = vpop.f32.mrb[93].mxu1 }
 0x199   :  { %5225 = vst [vmem:[#allocation3_spill] sm:$0xff] %v4907_v53  ;;  %v578_v6 = vmax.f32 %v519_v22, 0.0  ;;  %v1133_v54 = vmax.f32 %v1074_v23, 0.0 }
 0x19a   :  { %v523_v56 = vpop.f32.mrb[94].mxu0  ;;  %v1078_v51 = vpop.f32.mrb[94].mxu1 }
 0x19b   :  { %v4911_v63 = vmax.f32 %v578_v6, %v1133_v54  ;;  %v524_v60 = vadd.f32 %v4737_v9, %v523_v56  ;;  %v1079_v12 = vadd.f32 %v4737_v9, %v1078_v51  ;;  %v3006_v15 = vpop.f32.mrb[95].mxu0  ;;  %v3161_v17 = vpop.f32.mrb[95].mxu1 }
 0x19d   :  { %5226 = vst [vmem:[#allocation4_spill] sm:$0xff] %v4911_v63  ;;  %v579_v19 = vmax.f32 %v524_v60, 0.0  ;;  %v1134_v29 = vmax.f32 %v1079_v12, 0.0 }
 0x19e   :  { %v528_v30 = vpop.f32.mrb[96].mxu0  ;;  %v1083_v35 = vpop.f32.mrb[96].mxu1 }
 0x19f   :  { %v4915_v53 = vmax.f32 %v579_v19, %v1134_v29  ;;  %v529_v39 = vadd.f32 %v4737_v9, %v528_v30  ;;  %v1084_v22 = vadd.f32 %v4737_v9, %v1083_v35  ;;  %v3009_v23 = vpop.f32.mrb[97].mxu0  ;;  %v3164_v45 = vpop.f32.mrb[97].mxu1 }
 0x1a1   :  { %5227 = vst [vmem:[#allocation5_spill] sm:$0xff] %v4915_v53  ;;  %v580_v50 = vmax.f32 %v529_v39, 0.0  ;;  %v1135_v6 = vmax.f32 %v1084_v22, 0.0 }
 0x1a2   :  { %v1447_v54 = vpop.f32.mrb[98].mxu0  ;;  %v2002_v56 = vpop.f32.mrb[98].mxu1 }
 0x1a3   :  { %v4919_v63 = vmax.f32 %v580_v50, %v1135_v6  ;;  %v1448_v51 = vadd.f32 %v4737_v9, %v1447_v54  ;;  %v2003_v60 = vadd.f32 %v4737_v9, %v2002_v56  ;;  %v3175_v12 = vpop.f32.mrb[99].mxu0  ;;  %v3330_v15 = vpop.f32.mrb[99].mxu1 }
 0x1a5   :  { %5228 = vst [vmem:[#allocation6_spill] sm:$0xff] %v4919_v63  ;;  %v1691_v17 = vmax.f32 %v1448_v51, 0.0  ;;  %v2246_v19 = vmax.f32 %v2003_v60, 0.0 }
 0x1a6   :  { %v1452_v29 = vpop.f32.mrb[100].mxu0  ;;  %v2007_v30 = vpop.f32.mrb[100].mxu1 }
 0x1a7   :  { %v2295_v53 = vmax.f32 %v1691_v17, %v2246_v19  ;;  %v1453_v35 = vadd.f32 %v4737_v9, %v1452_v29  ;;  %v2008_v39 = vadd.f32 %v4737_v9, %v2007_v30  ;;  %v3178_v22 = vpop.f32.mrb[101].mxu0  ;;  %v3333_v23 = vpop.f32.mrb[101].mxu1 }
 0x1a9   :  { %v2344_v45 = vmax.f32 %v4204_v2, %v2295_v53  ;;  %v1692_v50 = vmax.f32 %v1453_v35, 0.0  ;;  %v2247_v6 = vmax.f32 %v2008_v39, 0.0 }
 0x1aa   :  { %v1457_v54 = vpop.f32.mrb[102].mxu0  ;;  %v2012_v63 = vpop.f32.mrb[102].mxu1 }
 0x1ab   :  { %2393 = vst [vmem:[%s5223_s3] sm:$0xff] %v2344_v45  ;;  %v2296_v56 = vmax.f32 %v1692_v50, %v2247_v6  ;;  %v1458_v51 = vadd.f32 %v4737_v9, %v1457_v54  ;;  %v2013_v60 = vadd.f32 %v4737_v9, %v2012_v63  ;;  %v3181_v12 = vpop.f32.mrb[103].mxu0  ;;  %v3336_v15 = vpop.f32.mrb[103].mxu1 }
 0x1ad   :  { %v2345_v17 = vmax.f32 %v4220_v14, %v2296_v56  ;;  %v1693_v19 = vmax.f32 %v1458_v51, 0.0  ;;  %v2248_v29 = vmax.f32 %v2013_v60, 0.0 }
 0x1ae   :  { %v1462_v2 = vpop.f32.mrb[104].mxu0  ;;  %v2017_v53 = vpop.f32.mrb[104].mxu1 }
 0x1af   :  { %2394 = vst [vmem:[%s5223_s3 + $0x8] sm:$0xff] %v2345_v17  ;;  %v2297_v30 = vmax.f32 %v1693_v19, %v2248_v29  ;;  %v1463_v35 = vadd.f32 %v4737_v9, %v1462_v2  ;;  %v2018_v39 = vadd.f32 %v4737_v9, %v2017_v53  ;;  %v3184_v22 = vpop.f32.mrb[105].mxu0  ;;  %v3339_v23 = vpop.f32.mrb[105].mxu1 }
 0x1b1   :  { %v2346_v63 = vmax.f32 %v4236_v25, %v2297_v30  ;;  %v1694_v45 = vmax.f32 %v1463_v35, 0.0  ;;  %v2249_v50 = vmax.f32 %v2018_v39, 0.0 }
 0x1b2   :  { %v1467_v14 = vpop.f32.mrb[106].mxu0  ;;  %v2022_v6 = vpop.f32.mrb[106].mxu1 }
 0x1b3   :  { %2395 = vst [vmem:[%s5223_s3 + $0x10] sm:$0xff] %v2346_v63  ;;  %v2298_v54 = vmax.f32 %v1694_v45, %v2249_v50  ;;  %v1468_v56 = vadd.f32 %v4737_v9, %v1467_v14  ;;  %v2023_v51 = vadd.f32 %v4737_v9, %v2022_v6  ;;  %v3187_v60 = vpop.f32.mrb[107].mxu0  ;;  %v3342_v12 = vpop.f32.mrb[107].mxu1 }
 0x1b5   :  { %v2347_v15 = vmax.f32 %v4252_v36, %v2298_v54  ;;  %v1695_v17 = vmax.f32 %v1468_v56, 0.0  ;;  %v2250_v19 = vmax.f32 %v2023_v51, 0.0 }
 0x1b6   :  { %v1472_v25 = vpop.f32.mrb[108].mxu0  ;;  %v2027_v29 = vpop.f32.mrb[108].mxu1 }
 0x1b7   :  { %2396 = vst [vmem:[%s5223_s3 + $0x18] sm:$0xff] %v2347_v15  ;;  %v2299_v2 = vmax.f32 %v1695_v17, %v2250_v19  ;;  %v1473_v53 = vadd.f32 %v4737_v9, %v1472_v25  ;;  %v2028_v30 = vadd.f32 %v4737_v9, %v2027_v29  ;;  %v3190_v35 = vpop.f32.mrb[109].mxu0  ;;  %v3345_v39 = vpop.f32.mrb[109].mxu1 }
 0x1b9   :  { %v2348_v22 = vmax.f32 %v4268_v47, %v2299_v2  ;;  %v1696_v23 = vmax.f32 %v1473_v53, 0.0  ;;  %v2251_v63 = vmax.f32 %v2028_v30, 0.0 }
 0x1ba   :  { %v1477_v36 = vpop.f32.mrb[110].mxu0  ;;  %v2032_v45 = vpop.f32.mrb[110].mxu1 }
 0x1bb   :  { %2397 = vst [vmem:[%s5223_s3 + $0x20] sm:$0xff] %v2348_v22  ;;  %v2300_v50 = vmax.f32 %v1696_v23, %v2251_v63  ;;  %v1478_v14 = vadd.f32 %v4737_v9, %v1477_v36  ;;  %v2033_v6 = vadd.f32 %v4737_v9, %v2032_v45  ;;  %v3193_v54 = vpop.f32.mrb[111].mxu0  ;;  %v3348_v56 = vpop.f32.mrb[111].mxu1 }
 0x1bd   :  { %v2349_v51 = vmax.f32 %v4284_v59, %v2300_v50  ;;  %v1697_v60 = vmax.f32 %v1478_v14, 0.0  ;;  %v2252_v12 = vmax.f32 %v2033_v6, 0.0 }
 0x1be   :  { %v1482_v47 = vpop.f32.mrb[112].mxu0  ;;  %v2037_v15 = vpop.f32.mrb[112].mxu1 }
 0x1bf   :  { %2398 = vst [vmem:[%s5223_s3 + $0x28] sm:$0xff] %v2349_v51  ;;  %v2301_v17 = vmax.f32 %v1697_v60, %v2252_v12  ;;  %v1483_v19 = vadd.f32 %v4737_v9, %v1482_v47  ;;  %v2038_v25 = vadd.f32 %v4737_v9, %v2037_v15  ;;  %v3196_v29 = vpop.f32.mrb[113].mxu0  ;;  %v3351_v2 = vpop.f32.mrb[113].mxu1 }
 0x1c1   :  { %v2350_v53 = vmax.f32 %v4300_v8, %v2301_v17  ;;  %v1698_v30 = vmax.f32 %v1483_v19, 0.0  ;;  %v2253_v35 = vmax.f32 %v2038_v25, 0.0 }
 0x1c2   :  { %v1487_v59 = vpop.f32.mrb[114].mxu0  ;;  %v2042_v39 = vpop.f32.mrb[114].mxu1 }
 0x1c3   :  { %2399 = vst [vmem:[%s5223_s3 + $0x30] sm:$0xff] %v2350_v53  ;;  %v2302_v22 = vmax.f32 %v1698_v30, %v2253_v35  ;;  %v1488_v23 = vadd.f32 %v4737_v9, %v1487_v59  ;;  %v2043_v63 = vadd.f32 %v4737_v9, %v2042_v39  ;;  %v3199_v36 = vpop.f32.mrb[115].mxu0  ;;  %v3354_v45 = vpop.f32.mrb[115].mxu1 }
 0x1c5   :  { %v2351_v50 = vmax.f32 %v4316_v20, %v2302_v22  ;;  %v1699_v14 = vmax.f32 %v1488_v23, 0.0  ;;  %v2254_v6 = vmax.f32 %v2043_v63, 0.0 }
 0x1c6   :  { %v1492_v8 = vpop.f32.mrb[116].mxu0  ;;  %v2047_v54 = vpop.f32.mrb[116].mxu1 }
 0x1c7   :  { %2400 = vst [vmem:[%s5223_s3 + $0x38] sm:$0xff] %v2351_v50  ;;  %v2303_v56 = vmax.f32 %v1699_v14, %v2254_v6  ;;  %v1493_v51 = vadd.f32 %v4737_v9, %v1492_v8  ;;  %v2048_v60 = vadd.f32 %v4737_v9, %v2047_v54  ;;  %v3202_v12 = vpop.f32.mrb[117].mxu0  ;;  %v3357_v47 = vpop.f32.mrb[117].mxu1 }
 0x1c9   :  { %v2352_v15 = vmax.f32 %v4332_v32, %v2303_v56  ;;  %v1700_v17 = vmax.f32 %v1493_v51, 0.0  ;;  %v2255_v19 = vmax.f32 %v2048_v60, 0.0 }
 0x1ca   :  { %v1497_v20 = vpop.f32.mrb[118].mxu0  ;;  %v2052_v25 = vpop.f32.mrb[118].mxu1 }
 0x1cb   :  { %2401 = vst [vmem:[%s5223_s3 + $0x40] sm:$0xff] %v2352_v15  ;;  %v2304_v29 = vmax.f32 %v1700_v17, %v2255_v19  ;;  %v1498_v2 = vadd.f32 %v4737_v9, %v1497_v20  ;;  %v2053_v53 = vadd.f32 %v4737_v9, %v2052_v25  ;;  %v3205_v30 = vpop.f32.mrb[119].mxu0  ;;  %v3360_v35 = vpop.f32.mrb[119].mxu1 }
 0x1cd   :  { %v2353_v59 = vmax.f32 %v4348_v44, %v2304_v29  ;;  %v1701_v39 = vmax.f32 %v1498_v2, 0.0  ;;  %v2256_v22 = vmax.f32 %v2053_v53, 0.0 }
 0x1ce   :  { %v1502_v32 = vpop.f32.mrb[120].mxu0  ;;  %v2057_v23 = vpop.f32.mrb[120].mxu1 }
 0x1cf   :  { %2402 = vst [vmem:[%s5223_s3 + $0x48] sm:$0xff] %v2353_v59  ;;  %v2305_v63 = vmax.f32 %v1701_v39, %v2256_v22  ;;  %v1503_v36 = vadd.f32 %v4737_v9, %v1502_v32  ;;  %v2058_v45 = vadd.f32 %v4737_v9, %v2057_v23  ;;  %v3208_v50 = vpop.f32.mrb[121].mxu0  ;;  %v3363_v14 = vpop.f32.mrb[121].mxu1 }
 0x1d1   :  { %v2354_v6 = vmax.f32 %v4364_v57, %v2305_v63  ;;  %v1702_v8 = vmax.f32 %v1503_v36, 0.0  ;;  %v2257_v54 = vmax.f32 %v2058_v45, 0.0 }
 0x1d2   :  { %v1507_v44 = vpop.f32.mrb[122].mxu0  ;;  %v2062_v56 = vpop.f32.mrb[122].mxu1 }
 0x1d3   :  { %2403 = vst [vmem:[%s5223_s3 + $0x50] sm:$0xff] %v2354_v6  ;;  %v2306_v51 = vmax.f32 %v1702_v8, %v2257_v54  ;;  %v1508_v60 = vadd.f32 %v4737_v9, %v1507_v44  ;;  %v2063_v12 = vadd.f32 %v4737_v9, %v2062_v56  ;;  %v3211_v47 = vpop.f32.mrb[123].mxu0  ;;  %v3366_v15 = vpop.f32.mrb[123].mxu1 }
 0x1d5   :  { %v2355_v17 = vmax.f32 %v4380_v7, %v2306_v51  ;;  %v1703_v19 = vmax.f32 %v1508_v60, 0.0  ;;  %v2258_v20 = vmax.f32 %v2063_v12, 0.0 }
 0x1d6   :  { %v1512_v57 = vpop.f32.mrb[124].mxu0  ;;  %v2067_v25 = vpop.f32.mrb[124].mxu1 }
 0x1d7   :  { %2404 = vst [vmem:[%s5223_s3 + $0x58] sm:$0xff] %v2355_v17  ;;  %v2307_v29 = vmax.f32 %v1703_v19, %v2258_v20  ;;  %v1513_v2 = vadd.f32 %v4737_v9, %v1512_v57  ;;  %v2068_v53 = vadd.f32 %v4737_v9, %v2067_v25  ;;  %v3214_v30 = vpop.f32.mrb[125].mxu0  ;;  %v3369_v35 = vpop.f32.mrb[125].mxu1 }
 0x1d9   :  { %v2356_v59 = vmax.f32 %v4396_v21, %v2307_v29  ;;  %v1704_v39 = vmax.f32 %v1513_v2, 0.0  ;;  %v2259_v22 = vmax.f32 %v2068_v53, 0.0 }
 0x1da   :  { %v1517_v7 = vpop.f32.mrb[126].mxu0  ;;  %v2072_v32 = vpop.f32.mrb[126].mxu1 }
 0x1db   :  { %2405 = vst [vmem:[%s5223_s3 + $0x60] sm:$0xff] %v2356_v59  ;;  %v2308_v23 = vmax.f32 %v1704_v39, %v2259_v22  ;;  %v1518_v63 = vadd.f32 %v4737_v9, %v1517_v7  ;;  %v2073_v36 = vadd.f32 %v4737_v9, %v2072_v32  ;;  %v3217_v45 = vpop.f32.mrb[127].mxu0  ;;  %v3372_v50 = vpop.f32.mrb[127].mxu1 }
 0x1dd   :  { %v2357_v14 = vmax.f32 %v4412_v34, %v2308_v23  ;;  %v1705_v6 = vmax.f32 %v1518_v63, 0.0  ;;  %v2260_v8 = vmax.f32 %v2073_v36, 0.0 }
 0x1de   :  { %v1522_v21 = vpop.f32.mrb[128].mxu0  ;;  %v2077_v54 = vpop.f32.mrb[128].mxu1 }
 0x1df   :  { %2406 = vst [vmem:[%s5223_s3 + $0x68] sm:$0xff] %v2357_v14  ;;  %v2309_v44 = vmax.f32 %v1705_v6, %v2260_v8  ;;  %v1523_v56 = vadd.f32 %v4737_v9, %v1522_v21  ;;  %v2078_v51 = vadd.f32 %v4737_v9, %v2077_v54  ;;  %v3220_v60 = vpop.f32.mrb[129].mxu0  ;;  %v3375_v12 = vpop.f32.mrb[129].mxu1 }
 0x1e1   :  { %v2358_v47 = vmax.f32 %v4428_v48, %v2309_v44  ;;  %v1706_v15 = vmax.f32 %v1523_v56, 0.0  ;;  %v2261_v17 = vmax.f32 %v2078_v51, 0.0 }
 0x1e2   :  { %v1527_v34 = vpop.f32.mrb[130].mxu0  ;;  %v2082_v19 = vpop.f32.mrb[130].mxu1 }
 0x1e3   :  { %2407 = vst [vmem:[%s5223_s3 + $0x70] sm:$0xff] %v2358_v47  ;;  %v2310_v20 = vmax.f32 %v1706_v15, %v2261_v17  ;;  %v1528_v57 = vadd.f32 %v4737_v9, %v1527_v34  ;;  %v2083_v25 = vadd.f32 %v4737_v9, %v2082_v19  ;;  %v3223_v29 = vpop.f32.mrb[131].mxu0  ;;  %v3378_v2 = vpop.f32.mrb[131].mxu1 }
 0x1e5   :  { %v2359_v53 = vmax.f32 %v4444_v62, %v2310_v20  ;;  %v1707_v30 = vmax.f32 %v1528_v57, 0.0  ;;  %v2262_v35 = vmax.f32 %v2083_v25, 0.0 }
 0x1e6   :  { %v1532_v48 = vpop.f32.mrb[132].mxu0  ;;  %v2087_v59 = vpop.f32.mrb[132].mxu1 }
 0x1e7   :  { %2408 = vst [vmem:[%s5223_s3 + $0x78] sm:$0xff] %v2359_v53  ;;  %v2311_v39 = vmax.f32 %v1707_v30, %v2262_v35  ;;  %v1533_v22 = vadd.f32 %v4737_v9, %v1532_v48  ;;  %v2088_v7 = vadd.f32 %v4737_v9, %v2087_v59  ;;  %v3226_v32 = vpop.f32.mrb[133].mxu0  ;;  %v3381_v23 = vpop.f32.mrb[133].mxu1 }
 0x1e9   :  { %v2360_v63 = vmax.f32 %v4460_v13, %v2311_v39  ;;  %v1708_v36 = vmax.f32 %v1533_v22, 0.0  ;;  %v2263_v45 = vmax.f32 %v2088_v7, 0.0 }
 0x1ea   :  { %v1537_v62 = vpop.f32.mrb[134].mxu0  ;;  %v2092_v50 = vpop.f32.mrb[134].mxu1 }
 0x1eb   :  { %2409 = vst [vmem:[%s5223_s3 + $0x80] sm:$0xff] %v2360_v63  ;;  %v2312_v14 = vmax.f32 %v1708_v36, %v2263_v45  ;;  %v1538_v6 = vadd.f32 %v4737_v9, %v1537_v62  ;;  %v2093_v8 = vadd.f32 %v4737_v9, %v2092_v50  ;;  %v3229_v21 = vpop.f32.mrb[135].mxu0  ;;  %v3384_v54 = vpop.f32.mrb[135].mxu1 }
 0x1ed   :  { %v2361_v44 = vmax.f32 %v4476_v28, %v2312_v14  ;;  %v1709_v56 = vmax.f32 %v1538_v6, 0.0  ;;  %v2264_v51 = vmax.f32 %v2093_v8, 0.0 }
 0x1ee   :  { %v1542_v13 = vpop.f32.mrb[136].mxu0  ;;  %v2097_v60 = vpop.f32.mrb[136].mxu1 }
 0x1ef   :  { %2410 = vst [vmem:[%s5223_s3 + $0x88] sm:$0xff] %v2361_v44  ;;  %v2313_v12 = vmax.f32 %v1709_v56, %v2264_v51  ;;  %v1543_v47 = vadd.f32 %v4737_v9, %v1542_v13  ;;  %v2098_v15 = vadd.f32 %v4737_v9, %v2097_v60  ;;  %v3232_v17 = vpop.f32.mrb[137].mxu0  ;;  %v3387_v34 = vpop.f32.mrb[137].mxu1 }
 0x1f1   :  { %v2362_v19 = vmax.f32 %v4492_v42, %v2313_v12  ;;  %v1710_v20 = vmax.f32 %v1543_v47, 0.0  ;;  %v2265_v57 = vmax.f32 %v2098_v15, 0.0 }
 0x1f2   :  { %v1547_v28 = vpop.f32.mrb[138].mxu0  ;;  %v2102_v25 = vpop.f32.mrb[138].mxu1 }
 0x1f3   :  { %2411 = vst [vmem:[%s5223_s3 + $0x90] sm:$0xff] %v2362_v19  ;;  %v2314_v29 = vmax.f32 %v1710_v20, %v2265_v57  ;;  %v1548_v2 = vadd.f32 %v4737_v9, %v1547_v28  ;;  %v2103_v53 = vadd.f32 %v4737_v9, %v2102_v25  ;;  %v3235_v30 = vpop.f32.mrb[139].mxu0  ;;  %v3390_v35 = vpop.f32.mrb[139].mxu1 }
 0x1f5   :  { %v2363_v48 = vmax.f32 %v4508_v58, %v2314_v29  ;;  %v1711_v59 = vmax.f32 %v1548_v2, 0.0  ;;  %v2266_v39 = vmax.f32 %v2103_v53, 0.0 }
 0x1f6   :  { %v1552_v42 = vpop.f32.mrb[140].mxu0  ;;  %v2107_v22 = vpop.f32.mrb[140].mxu1 }
 0x1f7   :  { %2412 = vst [vmem:[%s5223_s3 + $0x98] sm:$0xff] %v2363_v48  ;;  %v2315_v7 = vmax.f32 %v1711_v59, %v2266_v39  ;;  %v1553_v32 = vadd.f32 %v4737_v9, %v1552_v42  ;;  %v2108_v23 = vadd.f32 %v4737_v9, %v2107_v22  ;;  %v3238_v63 = vpop.f32.mrb[141].mxu0  ;;  %v3393_v36 = vpop.f32.mrb[141].mxu1 }
 0x1f9   :  { %v2364_v45 = vmax.f32 %v4524_v11, %v2315_v7  ;;  %v1712_v62 = vmax.f32 %v1553_v32, 0.0  ;;  %v2267_v50 = vmax.f32 %v2108_v23, 0.0 }
 0x1fa   :  { %v1557_v58 = vpop.f32.mrb[142].mxu0  ;;  %v2112_v14 = vpop.f32.mrb[142].mxu1 }
 0x1fb   :  { %2413 = vst [vmem:[%s5223_s3 + $0xa0] sm:$0xff] %v2364_v45  ;;  %v2316_v6 = vmax.f32 %v1712_v62, %v2267_v50  ;;  %v1558_v8 = vadd.f32 %v4737_v9, %v1557_v58  ;;  %v2113_v21 = vadd.f32 %v4737_v9, %v2112_v14  ;;  %v3241_v54 = vpop.f32.mrb[143].mxu0  ;;  %v3396_v44 = vpop.f32.mrb[143].mxu1 }
 0x1fd   :  { %v2365_v56 = vmax.f32 %v4540_v27, %v2316_v6  ;;  %v1713_v51 = vmax.f32 %v1558_v8, 0.0  ;;  %v2268_v13 = vmax.f32 %v2113_v21, 0.0 }
 0x1fe   :  { %v1562_v11 = vpop.f32.mrb[144].mxu0  ;;  %v2117_v60 = vpop.f32.mrb[144].mxu1 }
 0x1ff   :  { %2414 = vst [vmem:[%s5223_s3 + $0xa8] sm:$0xff] %v2365_v56  ;;  %v2317_v12 = vmax.f32 %v1713_v51, %v2268_v13  ;;  %v1563_v47 = vadd.f32 %v4737_v9, %v1562_v11  ;;  %v2118_v15 = vadd.f32 %v4737_v9, %v2117_v60  ;;  %v3244_v17 = vpop.f32.mrb[145].mxu0  ;;  %v3399_v34 = vpop.f32.mrb[145].mxu1 }
 0x201   :  { %v2366_v19 = vmax.f32 %v4556_v43, %v2317_v12  ;;  %v1714_v20 = vmax.f32 %v1563_v47, 0.0  ;;  %v2269_v57 = vmax.f32 %v2118_v15, 0.0 }
 0x202   :  { %v1567_v27 = vpop.f32.mrb[146].mxu0  ;;  %v2122_v28 = vpop.f32.mrb[146].mxu1 }
 0x203   :  { %2415 = vst [vmem:[%s5223_s3 + $0xb0] sm:$0xff] %v2366_v19  ;;  %v2318_v25 = vmax.f32 %v1714_v20, %v2269_v57  ;;  %v1568_v29 = vadd.f32 %v4737_v9, %v1567_v27  ;;  %v2123_v2 = vadd.f32 %v4737_v9, %v2122_v28  ;;  %v3247_v53 = vpop.f32.mrb[147].mxu0  ;;  %v3402_v30 = vpop.f32.mrb[147].mxu1 }
 0x205   :  { %v2367_v35 = vmax.f32 %v4572_v61, %v2318_v25  ;;  %v1715_v48 = vmax.f32 %v1568_v29, 0.0  ;;  %v2270_v59 = vmax.f32 %v2123_v2, 0.0 }
 0x206   :  { %v1572_v43 = vpop.f32.mrb[148].mxu0  ;;  %v2127_v39 = vpop.f32.mrb[148].mxu1 }
 0x207   :  { %2416 = vst [vmem:[%s5223_s3 + $0xb8] sm:$0xff] %v2367_v35  ;;  %v2319_v42 = vmax.f32 %v1715_v48, %v2270_v59  ;;  %v1573_v22 = vadd.f32 %v4737_v9, %v1572_v43  ;;  %v2128_v7 = vadd.f32 %v4737_v9, %v2127_v39  ;;  %v3250_v32 = vpop.f32.mrb[149].mxu0  ;;  %v3405_v23 = vpop.f32.mrb[149].mxu1  ;;  %v5094_v35 = vld [vmem:[%s5222_s2] ss:$0 sm:$0xff] }
 0x209   :  { %v2368_v63 = vmax.f32 %v4588_v16, %v2319_v42  ;;  %v1716_v36 = vmax.f32 %v1573_v22, 0.0  ;;  %v2271_v45 = vmax.f32 %v2128_v7, 0.0 }
 0x20a   :  { %v1577_v61 = vpop.f32.mrb[150].mxu0  ;;  %v2132_v62 = vpop.f32.mrb[150].mxu1 }
 0x20b   :  { %2417 = vst [vmem:[%s5223_s3 + $0xc0] sm:$0xff] %v2368_v63  ;;  %v2320_v50 = vmax.f32 %v1716_v36, %v2271_v45  ;;  %v1578_v58 = vadd.f32 %v4737_v9, %v1577_v61  ;;  %v2133_v14 = vadd.f32 %v4737_v9, %v2132_v62  ;;  %v3253_v6 = vpop.f32.mrb[151].mxu0  ;;  %v3408_v8 = vpop.f32.mrb[151].mxu1 }
 0x20d   :  { %v2369_v21 = vmax.f32 %v4604_v33, %v2320_v50  ;;  %v1717_v54 = vmax.f32 %v1578_v58, 0.0  ;;  %v2272_v44 = vmax.f32 %v2133_v14, 0.0 }
 0x20e   :  { %v1582_v16 = vpop.f32.mrb[152].mxu0  ;;  %v2137_v56 = vpop.f32.mrb[152].mxu1 }
 0x20f   :  { %2418 = vst [vmem:[%s5223_s3 + $0xc8] sm:$0xff] %v2369_v21  ;;  %v2321_v51 = vmax.f32 %v1717_v54, %v2272_v44  ;;  %v1583_v13 = vadd.f32 %v4737_v9, %v1582_v16  ;;  %v2138_v11 = vadd.f32 %v4737_v9, %v2137_v56  ;;  %v3256_v60 = vpop.f32.mrb[153].mxu0  ;;  %v3411_v12 = vpop.f32.mrb[153].mxu1 }
 0x211   :  { %v2370_v47 = vmax.f32 %v4620_v52, %v2321_v51  ;;  %v1718_v15 = vmax.f32 %v1583_v13, 0.0  ;;  %v2273_v17 = vmax.f32 %v2138_v11, 0.0 }
 0x212   :  { %v1587_v33 = vpop.f32.mrb[154].mxu0  ;;  %v2142_v34 = vpop.f32.mrb[154].mxu1 }
 0x213   :  { %2419 = vst [vmem:[%s5223_s3 + $0xd0] sm:$0xff] %v2370_v47  ;;  %v2322_v19 = vmax.f32 %v1718_v15, %v2273_v17  ;;  %v1588_v20 = vadd.f32 %v4737_v9, %v1587_v33  ;;  %v2143_v57 = vadd.f32 %v4737_v9, %v2142_v34  ;;  %v3259_v27 = vpop.f32.mrb[155].mxu0  ;;  %v3414_v28 = vpop.f32.mrb[155].mxu1 }
 0x215   :  { %v2371_v25 = vmax.f32 %v4636_v5, %v2322_v19  ;;  %v1719_v29 = vmax.f32 %v1588_v20, 0.0  ;;  %v2274_v2 = vmax.f32 %v2143_v57, 0.0 }
 0x216   :  { %v1592_v52 = vpop.f32.mrb[156].mxu0  ;;  %v2147_v53 = vpop.f32.mrb[156].mxu1 }
 0x217   :  { %2420 = vst [vmem:[%s5223_s3 + $0xd8] sm:$0xff] %v2371_v25  ;;  %v2323_v30 = vmax.f32 %v1719_v29, %v2274_v2  ;;  %v1593_v9 = vadd.f32 %v5094_v35, %v1592_v52  ;;  %v2148_v48 = vadd.f32 %v5094_v35, %v2147_v53  ;;  %v3262_v59 = vpop.f32.mrb[157].mxu0  ;;  %v3417_v5 = vpop.f32.mrb[157].mxu1 }
 0x219   :  { %v2372_v43 = vmax.f32 %v4652_v26, %v2323_v30  ;;  %v1720_v39 = vmax.f32 %v1593_v9, 0.0  ;;  %v2275_v42 = vmax.f32 %v2148_v48, 0.0 }
 0x21a   :  { %v1597_v22 = vpop.f32.mrb[158].mxu0  ;;  %v2152_v7 = vpop.f32.mrb[158].mxu1 }
 0x21b   :  { %2421 = vst [vmem:[%s5223_s3 + $0xe0] sm:$0xff] %v2372_v43  ;;  %v2324_v32 = vmax.f32 %v1720_v39, %v2275_v42  ;;  %v1598_v23 = vadd.f32 %v5094_v35, %v1597_v22  ;;  %v2153_v63 = vadd.f32 %v5094_v35, %v2152_v7  ;;  %v3265_v36 = vpop.f32.mrb[159].mxu0  ;;  %v3420_v45 = vpop.f32.mrb[159].mxu1 }
 0x21d   :  { %v2373_v61 = vmax.f32 %v4668_v46, %v2324_v32  ;;  %v1721_v62 = vmax.f32 %v1598_v23, 0.0  ;;  %v2276_v50 = vmax.f32 %v2153_v63, 0.0 }
 0x21e   :  { %v1602_v26 = vpop.f32.mrb[160].mxu0  ;;  %v2157_v58 = vpop.f32.mrb[160].mxu1 }
 0x21f   :  { %2422 = vst [vmem:[%s5223_s3 + $0xe8] sm:$0xff] %v2373_v61  ;;  %v2325_v14 = vmax.f32 %v1721_v62, %v2276_v50  ;;  %v1603_v6 = vadd.f32 %v5094_v35, %v1602_v26  ;;  %v2158_v8 = vadd.f32 %v5094_v35, %v2157_v58  ;;  %v3268_v21 = vpop.f32.mrb[161].mxu0  ;;  %v3423_v54 = vpop.f32.mrb[161].mxu1 }
 0x221   :  { %v2374_v44 = vmax.f32 %v4684_v3, %v2325_v14  ;;  %v1722_v16 = vmax.f32 %v1603_v6, 0.0  ;;  %v2277_v56 = vmax.f32 %v2158_v8, 0.0 }
 0x222   :  { %v1607_v46 = vpop.f32.mrb[162].mxu0  ;;  %v2162_v51 = vpop.f32.mrb[162].mxu1 }
 0x223   :  { %2423 = vst [vmem:[%s5223_s3 + $0xf0] sm:$0xff] %v2374_v44  ;;  %v2326_v13 = vmax.f32 %v1722_v16, %v2277_v56  ;;  %v1608_v11 = vadd.f32 %v5094_v35, %v1607_v46  ;;  %v2163_v60 = vadd.f32 %v5094_v35, %v2162_v51  ;;  %v3271_v12 = vpop.f32.mrb[163].mxu0  ;;  %v3426_v47 = vpop.f32.mrb[163].mxu1 }
 0x225   :  { %v2375_v15 = vmax.f32 %v4700_v24, %v2326_v13  ;;  %v1723_v17 = vmax.f32 %v1608_v11, 0.0  ;;  %v2278_v33 = vmax.f32 %v2163_v60, 0.0 }
 0x226   :  { %v1612_v3 = vpop.f32.mrb[164].mxu0  ;;  %v2167_v34 = vpop.f32.mrb[164].mxu1 }
 0x227   :  { %2424 = vst [vmem:[%s5223_s3 + $0xf8] sm:$0xff] %v2375_v15  ;;  %v2327_v19 = vmax.f32 %v1723_v17, %v2278_v33  ;;  %v1613_v20 = vadd.f32 %v5094_v35, %v1612_v3  ;;  %v2168_v57 = vadd.f32 %v5094_v35, %v2167_v34  ;;  %v3274_v27 = vpop.f32.mrb[165].mxu0  ;;  %v3429_v28 = vpop.f32.mrb[165].mxu1 }
 0x229   :  { %v2376_v25 = vmax.f32 %v4716_v49, %v2327_v19  ;;  %v1724_v29 = vmax.f32 %v1613_v20, 0.0  ;;  %v2279_v2 = vmax.f32 %v2168_v57, 0.0 }
 0x22a   :  { %v1617_v24 = vpop.f32.mrb[166].mxu0  ;;  %v2172_v52 = vpop.f32.mrb[166].mxu1 }
 0x22b   :  { %2425 = vst [vmem:[%s5223_s3 + $0x100] sm:$0xff] %v2376_v25  ;;  %v2328_v53 = vmax.f32 %v1724_v29, %v2279_v2  ;;  %v1618_v30 = vadd.f32 %v5094_v35, %v1617_v24  ;;  %v2173_v9 = vadd.f32 %v5094_v35, %v2172_v52  ;;  %v3277_v48 = vpop.f32.mrb[167].mxu0  ;;  %v3432_v59 = vpop.f32.mrb[167].mxu1 }
 0x22d   :  { %v2377_v5 = vmax.f32 %v4732_v4, %v2328_v53  ;;  %v1725_v43 = vmax.f32 %v1618_v30, 0.0  ;;  %v2280_v39 = vmax.f32 %v2173_v9, 0.0 }
 0x22e   :  { %v1622_v49 = vpop.f32.mrb[168].mxu0  ;;  %v2177_v42 = vpop.f32.mrb[168].mxu1 }
 0x22f   :  { %2426 = vst [vmem:[%s5223_s3 + $0x108] sm:$0xff] %v2377_v5  ;;  %v2329_v22 = vmax.f32 %v1725_v43, %v2280_v39  ;;  %v1623_v7 = vadd.f32 %v5094_v35, %v1622_v49  ;;  %v2178_v32 = vadd.f32 %v5094_v35, %v2177_v42  ;;  %v3280_v23 = vpop.f32.mrb[169].mxu0  ;;  %v3435_v63 = vpop.f32.mrb[169].mxu1 }
 0x231   :  { %v2378_v36 = vmax.f32 %v4753_v31, %v2329_v22  ;;  %v1726_v45 = vmax.f32 %v1623_v7, 0.0  ;;  %v2281_v61 = vmax.f32 %v2178_v32, 0.0 }
 0x232   :  { %v1627_v4 = vpop.f32.mrb[170].mxu0  ;;  %v2182_v62 = vpop.f32.mrb[170].mxu1 }
 0x233   :  { %2427 = vst [vmem:[%s5223_s3 + $0x110] sm:$0xff] %v2378_v36  ;;  %v2330_v50 = vmax.f32 %v1726_v45, %v2281_v61  ;;  %v1628_v26 = vadd.f32 %v5094_v35, %v1627_v4  ;;  %v2183_v58 = vadd.f32 %v5094_v35, %v2182_v62  ;;  %v3283_v14 = vpop.f32.mrb[171].mxu0  ;;  %v3438_v6 = vpop.f32.mrb[171].mxu1 }
 0x235   :  { %v2379_v8 = vmax.f32 %v4769_v55, %v2330_v50  ;;  %v1727_v21 = vmax.f32 %v1628_v26, 0.0  ;;  %v2282_v54 = vmax.f32 %v2183_v58, 0.0 }
 0x236   :  { %v1632_v31 = vpop.f32.mrb[172].mxu0  ;;  %v2187_v44 = vpop.f32.mrb[172].mxu1 }
 0x237   :  { %2428 = vst [vmem:[%s5223_s3 + $0x118] sm:$0xff] %v2379_v8  ;;  %v2331_v16 = vmax.f32 %v1727_v21, %v2282_v54  ;;  %v1633_v56 = vadd.f32 %v5094_v35, %v1632_v31  ;;  %v2188_v46 = vadd.f32 %v5094_v35, %v2187_v44  ;;  %v3286_v51 = vpop.f32.mrb[173].mxu0  ;;  %v3441_v13 = vpop.f32.mrb[173].mxu1 }
 0x239   :  { %v2380_v11 = vmax.f32 %v4785_v18, %v2331_v16  ;;  %v1728_v60 = vmax.f32 %v1633_v56, 0.0  ;;  %v2283_v12 = vmax.f32 %v2188_v46, 0.0 }
 0x23a   :  { %v1637_v55 = vpop.f32.mrb[174].mxu0  ;;  %v2192_v47 = vpop.f32.mrb[174].mxu1 }
 0x23b   :  { %2429 = vst [vmem:[%s5223_s3 + $0x120] sm:$0xff] %v2380_v11  ;;  %v2332_v15 = vmax.f32 %v1728_v60, %v2283_v12  ;;  %v1638_v17 = vadd.f32 %v5094_v35, %v1637_v55  ;;  %v2193_v33 = vadd.f32 %v5094_v35, %v2192_v47  ;;  %v3289_v3 = vpop.f32.mrb[175].mxu0  ;;  %v3444_v34 = vpop.f32.mrb[175].mxu1 }
 0x23d   :  { %v2381_v19 = vmax.f32 %v4801_v41, %v2332_v15  ;;  %v1729_v20 = vmax.f32 %v1638_v17, 0.0  ;;  %v2284_v57 = vmax.f32 %v2193_v33, 0.0 }
 0x23e   :  { %v1642_v18 = vpop.f32.mrb[176].mxu0  ;;  %v2197_v27 = vpop.f32.mrb[176].mxu1 }
 0x23f   :  { %2430 = vst [vmem:[%s5223_s3 + $0x128] sm:$0xff] %v2381_v19  ;;  %v2333_v28 = vmax.f32 %v1729_v20, %v2284_v57  ;;  %v1643_v25 = vadd.f32 %v5094_v35, %v1642_v18  ;;  %v2198_v29 = vadd.f32 %v5094_v35, %v2197_v27  ;;  %v3292_v2 = vpop.f32.mrb[177].mxu0  ;;  %v3447_v24 = vpop.f32.mrb[177].mxu1 }
 0x240   :  { %v5229_v2 = vld [vmem:[#allocation2_spill] sm:$0xff] }
 0x241   :  { %v2382_v52 = vmax.f32 %v4817_v10, %v2333_v28  ;;  %v1730_v53 = vmax.f32 %v1643_v25, 0.0  ;;  %v2285_v30 = vmax.f32 %v2198_v29, 0.0 }
 0x242   :  { %v1647_v41 = vpop.f32.mrb[178].mxu0  ;;  %v2202_v9 = vpop.f32.mrb[178].mxu1 }
 0x243   :  { %2431 = vst [vmem:[%s5223_s3 + $0x130] sm:$0xff] %v2382_v52  ;;  %v2334_v48 = vmax.f32 %v1730_v53, %v2285_v30  ;;  %v1648_v59 = vadd.f32 %v5094_v35, %v1647_v41  ;;  %v2203_v5 = vadd.f32 %v5094_v35, %v2202_v9  ;;  %v3295_v43 = vpop.f32.mrb[179].mxu0  ;;  %v3450_v39 = vpop.f32.mrb[179].mxu1 }
 0x244   :  { %v5230_v43 = vld [vmem:[#allocation3_spill] sm:$0xff] }
 0x245   :  { %v2383_v49 = vmax.f32 %v4833_v38, %v2334_v48  ;;  %v1731_v42 = vmax.f32 %v1648_v59, 0.0  ;;  %v2286_v22 = vmax.f32 %v2203_v5, 0.0 }
 0x246   :  { %v1652_v10 = vpop.f32.mrb[180].mxu0  ;;  %v2207_v7 = vpop.f32.mrb[180].mxu1 }
 0x247   :  { %2432 = vst [vmem:[%s5223_s3 + $0x138] sm:$0xff] %v2383_v49  ;;  %v2335_v32 = vmax.f32 %v1731_v42, %v2286_v22  ;;  %v1653_v23 = vadd.f32 %v5094_v35, %v1652_v10  ;;  %v2208_v63 = vadd.f32 %v5094_v35, %v2207_v7  ;;  %v3298_v36 = vpop.f32.mrb[181].mxu0  ;;  %v3453_v45 = vpop.f32.mrb[181].mxu1 }
 0x248   :  { %v5231_v45 = vld [vmem:[#allocation4_spill] sm:$0xff] }
 0x249   :  { %v2384_v61 = vmax.f32 %v4849_v0, %v2335_v32  ;;  %v1732_v4 = vmax.f32 %v1653_v23, 0.0  ;;  %v2287_v62 = vmax.f32 %v2208_v63, 0.0 }
 0x24a   :  { %v1657_v38 = vpop.f32.mrb[182].mxu0  ;;  %v2212_v50 = vpop.f32.mrb[182].mxu1 }
 0x24b   :  { %2433 = vst [vmem:[%s5223_s3 + $0x140] sm:$0xff] %v2384_v61  ;;  %v2336_v26 = vmax.f32 %v1732_v4, %v2287_v62  ;;  %v1658_v58 = vadd.f32 %v5094_v35, %v1657_v38  ;;  %v2213_v14 = vadd.f32 %v5094_v35, %v2212_v50  ;;  %v3301_v6 = vpop.f32.mrb[183].mxu0  ;;  %v3456_v8 = vpop.f32.mrb[183].mxu1 }
 0x24d   :  { %v2385_v21 = vmax.f32 %v4865_v37, %v2336_v26  ;;  %v1733_v54 = vmax.f32 %v1658_v58, 0.0  ;;  %v2288_v31 = vmax.f32 %v2213_v14, 0.0 }
 0x24e   :  { %v1662_v0 = vpop.f32.mrb[184].mxu0  ;;  %v2217_v44 = vpop.f32.mrb[184].mxu1 }
 0x24f   :  { %2434 = vst [vmem:[%s5223_s3 + $0x148] sm:$0xff] %v2385_v21  ;;  %v2337_v16 = vmax.f32 %v1733_v54, %v2288_v31  ;;  %v1663_v56 = vadd.f32 %v5094_v35, %v1662_v0  ;;  %v2218_v46 = vadd.f32 %v5094_v35, %v2217_v44  ;;  %v3304_v51 = vpop.f32.mrb[185].mxu0  ;;  %v3459_v13 = vpop.f32.mrb[185].mxu1  ;;  %v5232_v21 = vld [vmem:[#allocation5_spill] sm:$0xff] }
 0x251   :  { %v2386_v11 = vmax.f32 %v4881_v1, %v2337_v16  ;;  %v1734_v60 = vmax.f32 %v1663_v56, 0.0  ;;  %v2289_v12 = vmax.f32 %v2218_v46, 0.0  ;;  %v5233_v16 = vld [vmem:[#allocation6_spill] sm:$0xff] }
 0x252   :  { %v1667_v37 = vpop.f32.mrb[186].mxu0  ;;  %v2222_v55 = vpop.f32.mrb[186].mxu1 }
 0x253   :  { %2435 = vst [vmem:[%s5223_s3 + $0x150] sm:$0xff] %v2386_v11  ;;  %v2338_v47 = vmax.f32 %v1734_v60, %v2289_v12  ;;  %v1668_v15 = vadd.f32 %v5094_v35, %v1667_v37  ;;  %v2223_v17 = vadd.f32 %v5094_v35, %v2222_v55  ;;  %v3307_v33 = vpop.f32.mrb[187].mxu0  ;;  %v3462_v3 = vpop.f32.mrb[187].mxu1 }
 0x255   :  { %v2387_v34 = vmax.f32 %v4897_v40, %v2338_v47  ;;  %v1735_v19 = vmax.f32 %v1668_v15, 0.0  ;;  %v2290_v20 = vmax.f32 %v2223_v17, 0.0 }
 0x256   :  { %v1672_v1 = vpop.f32.mrb[188].mxu0  ;;  %v2227_v57 = vpop.f32.mrb[188].mxu1 }
 0x257   :  { %2436 = vst [vmem:[%s5223_s3 + $0x158] sm:$0xff] %v2387_v34  ;;  %v2339_v18 = vmax.f32 %v1735_v19, %v2290_v20  ;;  %v1673_v27 = vadd.f32 %v5094_v35, %v1672_v1  ;;  %v2228_v28 = vadd.f32 %v5094_v35, %v2227_v57  ;;  %v3310_v25 = vpop.f32.mrb[189].mxu0  ;;  %v3465_v29 = vpop.f32.mrb[189].mxu1 }
 0x259   :  { %v2388_v24 = vmax.f32 %v5229_v2, %v2339_v18  ;;  %v1736_v52 = vmax.f32 %v1673_v27, 0.0  ;;  %v2291_v53 = vmax.f32 %v2228_v28, 0.0 }
 0x25a   :  { %v1677_v40 = vpop.f32.mrb[190].mxu0  ;;  %v2232_v30 = vpop.f32.mrb[190].mxu1 }
 0x25b   :  { %2437 = vst [vmem:[%s5223_s3 + $0x160] sm:$0xff] %v2388_v24  ;;  %v2340_v41 = vmax.f32 %v1736_v52, %v2291_v53  ;;  %v1678_v9 = vadd.f32 %v5094_v35, %v1677_v40  ;;  %v2233_v48 = vadd.f32 %v5094_v35, %v2232_v30  ;;  %v3313_v59 = vpop.f32.mrb[191].mxu0  ;;  %v3468_v5 = vpop.f32.mrb[191].mxu1 }
 0x25d   :  { %v2389_v39 = vmax.f32 %v5230_v43, %v2340_v41  ;;  %v1737_v49 = vmax.f32 %v1678_v9, 0.0  ;;  %v2292_v42 = vmax.f32 %v2233_v48, 0.0 }
 0x25e   :  { %v1682_v22 = vpop.f32.mrb[192].mxu0  ;;  %v2237_v10 = vpop.f32.mrb[192].mxu1 }
 0x25f   :  { %2438 = vst [vmem:[%s5223_s3 + $0x168] sm:$0xff] %v2389_v39  ;;  %v2341_v7 = vmax.f32 %v1737_v49, %v2292_v42  ;;  %v1683_v32 = vadd.f32 %v5094_v35, %v1682_v22  ;;  %v2238_v23 = vadd.f32 %v5094_v35, %v2237_v10  ;;  %v3316_v63 = vpop.f32.mrb[193].mxu0  ;;  %v3471_v36 = vpop.f32.mrb[193].mxu1 }
 0x261   :  { %v2390_v61 = vmax.f32 %v5231_v45, %v2341_v7  ;;  %v1738_v4 = vmax.f32 %v1683_v32, 0.0  ;;  %v2293_v62 = vmax.f32 %v2238_v23, 0.0 }
 0x262   :  { %v1687_v38 = vpop.f32.mrb[194].mxu0  ;;  %v2242_v50 = vpop.f32.mrb[194].mxu1 }
 0x263   :  { %2439 = vst [vmem:[%s5223_s3 + $0x170] sm:$0xff] %v2390_v61  ;;  %v2342_v26 = vmax.f32 %v1738_v4, %v2293_v62  ;;  %v1688_v58 = vadd.f32 %v5094_v35, %v1687_v38  ;;  %v2243_v14 = vadd.f32 %v5094_v35, %v2242_v50  ;;  %v3319_v6 = vpop.f32.mrb[195].mxu0  ;;  %v3474_v8 = vpop.f32.mrb[195].mxu1 }
 0x265   :  { %v2391_v54 = vmax.f32 %v5232_v21, %v2342_v26  ;;  %v1739_v31 = vmax.f32 %v1688_v58, 0.0  ;;  %v2294_v0 = vmax.f32 %v2243_v14, 0.0 }
 0x267   :  { %2440 = vst [vmem:[%s5223_s3 + $0x178] sm:$0xff] %v2391_v54  ;;  %v2343_v44 = vmax.f32 %v1739_v31, %v2294_v0 }
 0x269   :  { %v2392_v56 = vmax.f32 %v5233_v16, %v2343_v44 }
 0x26b   :  { %2441 = vst [vmem:[%s5223_s3 + $0x180] sm:$0xff] %v2392_v56 }

// kernel: lenet5_forward.3
= control target key start
LH: loop header
LB: loop body
LE: loop exit
PB: predicated region body
PF: predicated region fallthrough
CT: control target
= control target key end

     0   :  { %v6240_v0 = vmov 0.0|0.0   ;;  %vm6241_vm0 = vmmov 0   ;;  %s9062_s1 = inlined_call_operand.vmem [shape: f32[256,128], index: 1, kind: input, shape index: {}]   ;;  %s9063_s0 = inlined_call_operand.vmem [shape: f32[800,256], index: 0, kind: input, shape index: {}]   ;;  %s9064_s3 = inlined_call_operand.vmem [shape: f32[25,128,128], index: 3, kind: input, shape index: {}]   ;;  %s9065_s2 = inlined_call_operand.vmem [shape: f32[1,128], index: 2, kind: input, shape index: {}]   ;;  %s9066_s5 = inlined_call_operand.vmem [shape: f32[128,128], index: 5, kind: input, shape index: {}]   ;;  %s9067_s7 = inlined_call_operand.vmem [shape: f32[128,128], index: 7, kind: input, shape index: {}]   ;;  %s9068_s4 = inlined_call_operand.vmem [shape: f32[1,128], index: 4, kind: input, shape index: {}]   ;;  %s9069_s6 = inlined_call_operand.vmem [shape: f32[1,128], index: 6, kind: input, shape index: {}]   ;;  %s9070_s8 = inlined_call_operand.vmem [shape: f32[1,128], index: 8, kind: input, shape index: {}]   ;;  %s9071_s9 = inlined_call_operand.vmem [shape: f32[8,128], index: 9, kind: output, shape index: {}]  }
   0x1   :  { %5396 = vmatprep.subr.bf16.mxu0 %v6240_v0  ;;  %5444 = vmatprep.subr.bf16.mxu1 %v6240_v0  ;;  %v32_v1 = vld [vmem:[%s9062_s1] sm:$0xff]  ;;  %v33_v2 = vld [vmem:[%s9062_s1 + $0x8] sm:$0xff]  ;;  %v34_v3 = vld [vmem:[%s9062_s1 + $0x10] sm:$0xff] }
   0x2   :  { %v6304_v4 = vpack.c.bf16 %v33_v2, %v32_v1  ;;  %v35_v5 = vld [vmem:[%s9062_s1 + $0x18] sm:$0xff]  ;;  %v36_v7 = vld [vmem:[%s9062_s1 + $0x20] sm:$0xff]  ;;  %v37_v8 = vld [vmem:[%s9062_s1 + $0x28] sm:$0xff] }
   0x3   :  { %v6311_v6 = vpack.c.bf16 %v35_v5, %v34_v3  ;;  %v6323_v9 = vpack.c.bf16 %v37_v8, %v36_v7  ;;  %v38_v10 = vld [vmem:[%s9062_s1 + $0x30] sm:$0xff]  ;;  %v39_v11 = vld [vmem:[%s9062_s1 + $0x38] sm:$0xff]  ;;  %v66_v12 = vld [vmem:[%s9063_s0 + $0x8] sm:$0xff] }
   0x4   :  { %5398 = vmatpush1.bf16.msra.mxu0 %v6304_v4  ;;  %5446 = vmatpush1.bf16.msra.mxu1 %v6304_v4  ;;  %v6338_v13 = vpack.c.bf16 %v39_v11, %v38_v10  ;;  %v337_v14 = vld [vmem:[%s9063_s0 + $0x198] sm:$0xff]  ;;  %v40_v15 = vld [vmem:[%s9062_s1 + $0x40] sm:$0xff]  ;;  %v41_v16 = vld [vmem:[%s9062_s1 + $0x48] sm:$0xff] }
   0x5   :  { %5399 = vmatprep.subr.bf16.mxu0 %v6240_v0  ;;  %5447 = vmatprep.subr.bf16.mxu1 %v6240_v0  ;;  %v6353_v17 = vpack.c.bf16 %v41_v16, %v40_v15  ;;  %v42_v18 = vld [vmem:[%s9062_s1 + $0x50] sm:$0xff]  ;;  %v43_v19 = vld [vmem:[%s9062_s1 + $0x58] sm:$0xff]  ;;  %v44_v21 = vld [vmem:[%s9062_s1 + $0x60] sm:$0xff] }
   0x6   :  { %185 = vmatprep.mubr.f32.mxu0 %v66_v12  ;;  %450 = vmatprep.mubr.f32.mxu1 %v337_v14  ;;  %v6365_v20 = vpack.c.bf16 %v43_v19, %v42_v18  ;;  %v45_v22 = vld [vmem:[%s9062_s1 + $0x68] sm:$0xff]  ;;  %v46_v24 = vld [vmem:[%s9062_s1 + $0x70] sm:$0xff]  ;;  %v47_v25 = vld [vmem:[%s9062_s1 + $0x78] sm:$0xff] }
   0x7   :  { %v6377_v23 = vpack.c.bf16 %v45_v22, %v44_v21  ;;  %v6389_v26 = vpack.c.bf16 %v47_v25, %v46_v24  ;;  %v48_v27 = vld [vmem:[%s9062_s1 + $0x80] sm:$0xff]  ;;  %v49_v28 = vld [vmem:[%s9062_s1 + $0x88] sm:$0xff]  ;;  %v50_v30 = vld [vmem:[%s9062_s1 + $0x90] sm:$0xff] }
   0x8   :  { %5401 = vmatpush1.bf16.msra.mxu0 %v6311_v6  ;;  %5449 = vmatpush1.bf16.msra.mxu1 %v6311_v6  ;;  %v6401_v29 = vpack.c.bf16 %v49_v28, %v48_v27  ;;  %v51_v31 = vld [vmem:[%s9062_s1 + $0x98] sm:$0xff]  ;;  %v52_v33 = vld [vmem:[%s9062_s1 + $0xa0] sm:$0xff]  ;;  %v53_v34 = vld [vmem:[%s9062_s1 + $0xa8] sm:$0xff] }
   0x9   :  { %5402 = vmatprep.subr.bf16.mxu0 %v6240_v0  ;;  %5450 = vmatprep.subr.bf16.mxu1 %v6240_v0  ;;  %v6413_v32 = vpack.c.bf16 %v51_v31, %v50_v30  ;;  %v6425_v35 = vpack.c.bf16 %v53_v34, %v52_v33  ;;  %v54_v36 = vld [vmem:[%s9062_s1 + $0xb0] sm:$0xff]  ;;  %v55_v37 = vld [vmem:[%s9062_s1 + $0xb8] sm:$0xff]  ;;  %v56_v39 = vld [vmem:[%s9062_s1 + $0xc0] sm:$0xff] }
   0xa   :  { %v6437_v38 = vpack.c.bf16 %v55_v37, %v54_v36  ;;  %v57_v40 = vld [vmem:[%s9062_s1 + $0xc8] sm:$0xff]  ;;  %v58_v42 = vld [vmem:[%s9062_s1 + $0xd0] sm:$0xff]  ;;  %v59_v43 = vld [vmem:[%s9062_s1 + $0xd8] sm:$0xff] }
   0xb   :  { %v6449_v41 = vpack.c.bf16 %v57_v40, %v56_v39  ;;  %v6461_v44 = vpack.c.bf16 %v59_v43, %v58_v42  ;;  %v60_v45 = vld [vmem:[%s9062_s1 + $0xe0] sm:$0xff]  ;;  %v61_v46 = vld [vmem:[%s9062_s1 + $0xe8] sm:$0xff]  ;;  %v62_v48 = vld [vmem:[%s9062_s1 + $0xf0] sm:$0xff] }
   0xc   :  { %5404 = vmatpush1.bf16.msra.mxu0 %v6323_v9  ;;  %5452 = vmatpush1.bf16.msra.mxu1 %v6323_v9  ;;  %v6473_v47 = vpack.c.bf16 %v61_v46, %v60_v45  ;;  %v63_v49 = vld [vmem:[%s9062_s1 + $0xf8] sm:$0xff]  ;;  %v65_v51 = vld [vmem:[%s9063_s0] sm:$0xff]  ;;  %v336_v52 = vld [vmem:[%s9063_s0 + $0x190] sm:$0xff] }
   0xd   :  { %5405 = vmatprep.subr.bf16.mxu0 %v6240_v0  ;;  %5453 = vmatprep.subr.bf16.mxu1 %v6240_v0  ;;  %v6485_v50 = vpack.c.bf16 %v63_v49, %v62_v48  ;;  %v68_v53 = vld [vmem:[%s9063_s0 + $0x18] sm:$0xff]  ;;  %v339_v54 = vld [vmem:[%s9063_s0 + $0x1a8] sm:$0xff]  ;;  %v67_v55 = vld [vmem:[%s9063_s0 + $0x10] sm:$0xff] }
   0xe   :  { %v338_v56 = vld [vmem:[%s9063_s0 + $0x1a0] sm:$0xff]  ;;  %v70_v57 = vld [vmem:[%s9063_s0 + $0x28] sm:$0xff]  ;;  %v341_v58 = vld [vmem:[%s9063_s0 + $0x1b8] sm:$0xff] }
   0xf   :  { %v69_v59 = vld [vmem:[%s9063_s0 + $0x20] sm:$0xff]  ;;  %v340_v60 = vld [vmem:[%s9063_s0 + $0x1b0] sm:$0xff]  ;;  %v72_v61 = vld [vmem:[%s9063_s0 + $0x38] sm:$0xff] }
  0x10   :  { %5407 = vmatpush1.bf16.msra.mxu0 %v6338_v13  ;;  %5455 = vmatpush1.bf16.msra.mxu1 %v6338_v13  ;;  %v343_v62 = vld [vmem:[%s9063_s0 + $0x1c8] sm:$0xff]  ;;  %v71_v63 = vld [vmem:[%s9063_s0 + $0x30] sm:$0xff]  ;;  %v342_v1 = vld [vmem:[%s9063_s0 + $0x1c0] sm:$0xff] }
  0x11   :  { %5408 = vmatprep.subr.bf16.mxu0 %v6240_v0  ;;  %5456 = vmatprep.subr.bf16.mxu1 %v6240_v0  ;;  %v74_v2 = vld [vmem:[%s9063_s0 + $0x48] sm:$0xff]  ;;  %v345_v3 = vld [vmem:[%s9063_s0 + $0x1d8] sm:$0xff]  ;;  %v344_v5 = vld [vmem:[%s9063_s0 + $0x1d0] sm:$0xff] }
  0x12   :  { %v347_v7 = vld [vmem:[%s9063_s0 + $0x1e8] sm:$0xff]  ;;  %v75_v8 = vld [vmem:[%s9063_s0 + $0x50] sm:$0xff]  ;;  %v349_v11 = vld [vmem:[%s9063_s0 + $0x1f8] sm:$0xff] }
  0x13   :  { %v78_v10 = vld [vmem:[%s9063_s0 + $0x68] sm:$0xff]  ;;  %v77_v12 = vld [vmem:[%s9063_s0 + $0x60] sm:$0xff]  ;;  %v80_v14 = vld [vmem:[%s9063_s0 + $0x78] sm:$0xff] }
  0x14   :  { %5410 = vmatpush1.bf16.msra.mxu0 %v6353_v17  ;;  %5458 = vmatpush1.bf16.msra.mxu1 %v6353_v17  ;;  %v351_v15 = vld [vmem:[%s9063_s0 + $0x208] sm:$0xff]  ;;  %v79_v16 = vld [vmem:[%s9063_s0 + $0x70] sm:$0xff]  ;;  %v353_v19 = vld [vmem:[%s9063_s0 + $0x218] sm:$0xff] }
  0x15   :  { %5411 = vmatprep.subr.bf16.mxu0 %v6240_v0  ;;  %5459 = vmatprep.subr.bf16.mxu1 %v6240_v0  ;;  %v82_v18 = vld [vmem:[%s9063_s0 + $0x88] sm:$0xff]  ;;  %v352_v21 = vld [vmem:[%s9063_s0 + $0x210] sm:$0xff]  ;;  %v84_v22 = vld [vmem:[%s9063_s0 + $0x98] sm:$0xff] }
  0x16   :  { %v83_v24 = vld [vmem:[%s9063_s0 + $0x90] sm:$0xff]  ;;  %v354_v25 = vld [vmem:[%s9063_s0 + $0x220] sm:$0xff]  ;;  %v357_v27 = vld [vmem:[%s9063_s0 + $0x238] sm:$0xff] }
  0x17   :  { %v85_v28 = vld [vmem:[%s9063_s0 + $0xa0] sm:$0xff]  ;;  %v356_v30 = vld [vmem:[%s9063_s0 + $0x230] sm:$0xff]  ;;  %v359_v31 = vld [vmem:[%s9063_s0 + $0x248] sm:$0xff] }
  0x18   :  { %5413 = vmatpush1.bf16.msra.mxu0 %v6365_v20  ;;  %5461 = vmatpush1.bf16.msra.mxu1 %v6365_v20  ;;  %v87_v33 = vld [vmem:[%s9063_s0 + $0xb0] sm:$0xff]  ;;  %v358_v34 = vld [vmem:[%s9063_s0 + $0x240] sm:$0xff]  ;;  %v361_v36 = vld [vmem:[%s9063_s0 + $0x258] sm:$0xff] }
  0x19   :  { %5414 = vmatprep.subr.bf16.mxu0 %v6240_v0  ;;  %5462 = vmatprep.subr.bf16.mxu1 %v6240_v0  ;;  %v89_v37 = vld [vmem:[%s9063_s0 + $0xc0] sm:$0xff]  ;;  %v360_v39 = vld [vmem:[%s9063_s0 + $0x250] sm:$0xff]  ;;  %v363_v40 = vld [vmem:[%s9063_s0 + $0x268] sm:$0xff] }
  0x1a   :  { %v91_v42 = vld [vmem:[%s9063_s0 + $0xd0] sm:$0xff]  ;;  %v362_v43 = vld [vmem:[%s9063_s0 + $0x260] sm:$0xff]  ;;  %v365_v45 = vld [vmem:[%s9063_s0 + $0x278] sm:$0xff] }
  0x1b   :  { %v93_v46 = vld [vmem:[%s9063_s0 + $0xe0] sm:$0xff]  ;;  %v364_v48 = vld [vmem:[%s9063_s0 + $0x270] sm:$0xff]  ;;  %v367_v49 = vld [vmem:[%s9063_s0 + $0x288] sm:$0xff] }
  0x1c   :  { %5416 = vmatpush1.bf16.msra.mxu0 %v6377_v23  ;;  %5464 = vmatpush1.bf16.msra.mxu1 %v6377_v23 }
  0x1d   :  { %5417 = vmatprep.subr.bf16.mxu0 %v6240_v0  ;;  %5465 = vmatprep.subr.bf16.mxu1 %v6240_v0 }
  0x20   :  { %5419 = vmatpush1.bf16.msra.mxu0 %v6389_v26  ;;  %5467 = vmatpush1.bf16.msra.mxu1 %v6389_v26 }
  0x21   :  { %5420 = vmatprep.subr.bf16.mxu0 %v6240_v0  ;;  %5468 = vmatprep.subr.bf16.mxu1 %v6240_v0 }
  0x24   :  { %5422 = vmatpush1.bf16.msra.mxu0 %v6401_v29  ;;  %5470 = vmatpush1.bf16.msra.mxu1 %v6401_v29 }
  0x25   :  { %5423 = vmatprep.subr.bf16.mxu0 %v6240_v0  ;;  %5471 = vmatprep.subr.bf16.mxu1 %v6240_v0 }
  0x28   :  { %5425 = vmatpush1.bf16.msra.mxu0 %v6413_v32  ;;  %5473 = vmatpush1.bf16.msra.mxu1 %v6413_v32 }
  0x29   :  { %5426 = vmatprep.subr.bf16.mxu0 %v6240_v0  ;;  %5474 = vmatprep.subr.bf16.mxu1 %v6240_v0 }
  0x2c   :  { %5428 = vmatpush1.bf16.msra.mxu0 %v6425_v35  ;;  %5476 = vmatpush1.bf16.msra.mxu1 %v6425_v35 }
  0x2d   :  { %5429 = vmatprep.subr.bf16.mxu0 %v6240_v0  ;;  %5477 = vmatprep.subr.bf16.mxu1 %v6240_v0 }
  0x30   :  { %5431 = vmatpush1.bf16.msra.mxu0 %v6437_v38  ;;  %5479 = vmatpush1.bf16.msra.mxu1 %v6437_v38 }
  0x31   :  { %5432 = vmatprep.subr.bf16.mxu0 %v6240_v0  ;;  %5480 = vmatprep.subr.bf16.mxu1 %v6240_v0 }
  0x34   :  { %5434 = vmatpush1.bf16.msra.mxu0 %v6449_v41  ;;  %5482 = vmatpush1.bf16.msra.mxu1 %v6449_v41 }
  0x35   :  { %5435 = vmatprep.subr.bf16.mxu0 %v6240_v0  ;;  %5483 = vmatprep.subr.bf16.mxu1 %v6240_v0 }
  0x38   :  { %5437 = vmatpush1.bf16.msra.mxu0 %v6461_v44  ;;  %5485 = vmatpush1.bf16.msra.mxu1 %v6461_v44 }
  0x39   :  { %5438 = vmatprep.subr.bf16.mxu0 %v6240_v0  ;;  %5486 = vmatprep.subr.bf16.mxu1 %v6240_v0 }
  0x3c   :  { %5440 = vmatpush1.bf16.msra.mxu0 %v6473_v47  ;;  %5488 = vmatpush1.bf16.msra.mxu1 %v6473_v47 }
  0x3d   :  { %5441 = vmatprep.subr.bf16.mxu0 %v6240_v0  ;;  %5489 = vmatprep.subr.bf16.mxu1 %v6240_v0 }
  0x40   :  { %5443 = vmatpush1.bf16.msra.mxu0 %v6485_v50  ;;  %5491 = vmatpush1.bf16.msra.mxu1 %v6485_v50 }
  0x41   :  { %5492 = vmatprep.subr.bf16.mxu0 %v6240_v0  ;;  %5540 = vmatprep.subr.bf16.mxu1 %v6240_v0 }
  0x43   :  { %186 = vmatmul.mubr.f32.vlgmr.msra.gmra.mrb[0].mxu0 %v65_v51  ;;  %451 = vmatmul.mubr.f32.vlgmr.msra.gmra.mrb[0].mxu1 %v336_v52  ;;  %v95_v51 = vld [vmem:[%s9063_s0 + $0xf0] sm:$0xff]  ;;  %v366_v52 = vld [vmem:[%s9063_s0 + $0x280] sm:$0xff] }
  0x44   :  { %5494 = vmatpush1.bf16.msra.mxu0 %v6304_v4  ;;  %5542 = vmatpush1.bf16.msra.mxu1 %v6304_v4  ;;  %v73_v4 = vld [vmem:[%s9063_s0 + $0x40] sm:$0xff] }
  0x45   :  { %190 = vmatprep.mubr.f32.mxu0 %v68_v53  ;;  %455 = vmatprep.mubr.f32.mxu1 %v339_v54  ;;  %v369_v53 = vld [vmem:[%s9063_s0 + $0x298] sm:$0xff]  ;;  %v97_v54 = vld [vmem:[%s9063_s0 + $0x100] sm:$0xff] }
  0x46   :  { %5495 = vmatprep.subr.bf16.mxu0 %v6240_v0  ;;  %5543 = vmatprep.subr.bf16.mxu1 %v6240_v0 }
  0x47   :  { %191 = vmatmul.mubr.f32.gmra.mrb[2].mxu0 %v67_v55  ;;  %456 = vmatmul.mubr.f32.gmra.mrb[2].mxu1 %v338_v56  ;;  %v368_v55 = vld [vmem:[%s9063_s0 + $0x290] sm:$0xff]  ;;  %v371_v56 = vld [vmem:[%s9063_s0 + $0x2a8] sm:$0xff] }
  0x48   :  { %195 = vmatprep.mubr.f32.mxu0 %v70_v57  ;;  %460 = vmatprep.mubr.f32.mxu1 %v341_v58  ;;  %v99_v57 = vld [vmem:[%s9063_s0 + $0x110] sm:$0xff]  ;;  %v370_v58 = vld [vmem:[%s9063_s0 + $0x2a0] sm:$0xff] }
  0x49   :  { %5497 = vmatpush1.bf16.msra.mxu0 %v6311_v6  ;;  %5545 = vmatpush1.bf16.msra.mxu1 %v6311_v6  ;;  %v76_v6 = vld [vmem:[%s9063_s0 + $0x58] sm:$0xff] }
  0x4a   :  { %5498 = vmatprep.subr.bf16.mxu0 %v6240_v0  ;;  %5546 = vmatprep.subr.bf16.mxu1 %v6240_v0 }
  0x4b   :  { %196 = vmatmul.mubr.f32.gmra.mrb[4].mxu0 %v69_v59  ;;  %461 = vmatmul.mubr.f32.gmra.mrb[4].mxu1 %v340_v60  ;;  %v373_v59 = vld [vmem:[%s9063_s0 + $0x2b8] sm:$0xff]  ;;  %v101_v60 = vld [vmem:[%s9063_s0 + $0x120] sm:$0xff] }
  0x4c   :  { %200 = vmatprep.mubr.f32.mxu0 %v72_v61  ;;  %465 = vmatprep.mubr.f32.mxu1 %v343_v62  ;;  %v372_v61 = vld [vmem:[%s9063_s0 + $0x2b0] sm:$0xff]  ;;  %v104_v62 = vld [vmem:[%s9063_s0 + $0x138] sm:$0xff] }
  0x4d   :  { %5500 = vmatpush1.bf16.msra.mxu0 %v6323_v9  ;;  %5548 = vmatpush1.bf16.msra.mxu1 %v6323_v9  ;;  %v346_v9 = vld [vmem:[%s9063_s0 + $0x1e0] sm:$0xff] }
  0x4e   :  { %5501 = vmatprep.subr.bf16.mxu0 %v6240_v0  ;;  %5549 = vmatprep.subr.bf16.mxu1 %v6240_v0 }
  0x4f   :  { %201 = vmatmul.mubr.f32.gmra.mrb[6].mxu0 %v71_v63  ;;  %466 = vmatmul.mubr.f32.gmra.mrb[6].mxu1 %v342_v1  ;;  %v375_v63 = vld [vmem:[%s9063_s0 + $0x2c8] sm:$0xff]  ;;  %v103_v1 = vld [vmem:[%s9063_s0 + $0x130] sm:$0xff] }
  0x50   :  { %205 = vmatprep.mubr.f32.mxu0 %v74_v2  ;;  %470 = vmatprep.mubr.f32.mxu1 %v345_v3  ;;  %v374_v2 = vld [vmem:[%s9063_s0 + $0x2c0] sm:$0xff]  ;;  %v106_v3 = vld [vmem:[%s9063_s0 + $0x148] sm:$0xff] }
  0x51   :  { %5503 = vmatpush1.bf16.msra.mxu0 %v6338_v13  ;;  %5551 = vmatpush1.bf16.msra.mxu1 %v6338_v13  ;;  %v348_v13 = vld [vmem:[%s9063_s0 + $0x1f0] sm:$0xff] }
  0x52   :  { %5504 = vmatprep.subr.bf16.mxu0 %v6240_v0  ;;  %5552 = vmatprep.subr.bf16.mxu1 %v6240_v0 }
  0x53   :  { %206 = vmatmul.mubr.f32.gmra.mrb[8].mxu0 %v73_v4  ;;  %471 = vmatmul.mubr.f32.gmra.mrb[8].mxu1 %v344_v5  ;;  %v377_v4 = vld [vmem:[%s9063_s0 + $0x2d8] sm:$0xff]  ;;  %v105_v5 = vld [vmem:[%s9063_s0 + $0x140] sm:$0xff] }
  0x54   :  { %210 = vmatprep.mubr.f32.mxu0 %v76_v6  ;;  %475 = vmatprep.mubr.f32.mxu1 %v347_v7  ;;  %v376_v6 = vld [vmem:[%s9063_s0 + $0x2d0] sm:$0xff]  ;;  %v108_v7 = vld [vmem:[%s9063_s0 + $0x158] sm:$0xff] }
  0x55   :  { %5506 = vmatpush1.bf16.msra.mxu0 %v6353_v17  ;;  %5554 = vmatpush1.bf16.msra.mxu1 %v6353_v17  ;;  %v350_v17 = vld [vmem:[%s9063_s0 + $0x200] sm:$0xff] }
  0x56   :  { %5507 = vmatprep.subr.bf16.mxu0 %v6240_v0  ;;  %5555 = vmatprep.subr.bf16.mxu1 %v6240_v0 }
  0x57   :  { %211 = vmatmul.mubr.f32.gmra.mrb[10].mxu0 %v75_v8  ;;  %476 = vmatmul.mubr.f32.gmra.mrb[10].mxu1 %v346_v9  ;;  %v379_v8 = vld [vmem:[%s9063_s0 + $0x2e8] sm:$0xff]  ;;  %v107_v9 = vld [vmem:[%s9063_s0 + $0x150] sm:$0xff] }
  0x58   :  { %215 = vmatprep.mubr.f32.mxu0 %v78_v10  ;;  %480 = vmatprep.mubr.f32.mxu1 %v349_v11  ;;  %v378_v10 = vld [vmem:[%s9063_s0 + $0x2e0] sm:$0xff]  ;;  %v110_v11 = vld [vmem:[%s9063_s0 + $0x168] sm:$0xff] }
  0x59   :  { %5509 = vmatpush1.bf16.msra.mxu0 %v6365_v20  ;;  %5557 = vmatpush1.bf16.msra.mxu1 %v6365_v20  ;;  %v81_v20 = vld [vmem:[%s9063_s0 + $0x80] sm:$0xff] }
  0x5a   :  { %5510 = vmatprep.subr.bf16.mxu0 %v6240_v0  ;;  %5558 = vmatprep.subr.bf16.mxu1 %v6240_v0 }
  0x5b   :  { %216 = vmatmul.mubr.f32.gmra.mrb[12].mxu0 %v77_v12  ;;  %481 = vmatmul.mubr.f32.gmra.mrb[12].mxu1 %v348_v13  ;;  %v381_v12 = vld [vmem:[%s9063_s0 + $0x2f8] sm:$0xff]  ;;  %v109_v13 = vld [vmem:[%s9063_s0 + $0x160] sm:$0xff] }
  0x5c   :  { %220 = vmatprep.mubr.f32.mxu0 %v80_v14  ;;  %485 = vmatprep.mubr.f32.mxu1 %v351_v15  ;;  %v380_v14 = vld [vmem:[%s9063_s0 + $0x2f0] sm:$0xff]  ;;  %v112_v15 = vld [vmem:[%s9063_s0 + $0x178] sm:$0xff] }
  0x5d   :  { %5512 = vmatpush1.bf16.msra.mxu0 %v6377_v23  ;;  %5560 = vmatpush1.bf16.msra.mxu1 %v6377_v23  ;;  %v355_v23 = vld [vmem:[%s9063_s0 + $0x228] sm:$0xff] }
  0x5e   :  { %5513 = vmatprep.subr.bf16.mxu0 %v6240_v0  ;;  %5561 = vmatprep.subr.bf16.mxu1 %v6240_v0 }
  0x5f   :  { %221 = vmatmul.mubr.f32.gmra.mrb[14].mxu0 %v79_v16  ;;  %486 = vmatmul.mubr.f32.gmra.mrb[14].mxu1 %v350_v17  ;;  %v383_v16 = vld [vmem:[%s9063_s0 + $0x308] sm:$0xff]  ;;  %v111_v17 = vld [vmem:[%s9063_s0 + $0x170] sm:$0xff] }
  0x60   :  { %225 = vmatprep.mubr.f32.mxu0 %v82_v18  ;;  %490 = vmatprep.mubr.f32.mxu1 %v353_v19  ;;  %v382_v18 = vld [vmem:[%s9063_s0 + $0x300] sm:$0xff]  ;;  %v114_v19 = vld [vmem:[%s9063_s0 + $0x188] sm:$0xff] }
  0x61   :  { %5515 = vmatpush1.bf16.msra.mxu0 %v6389_v26  ;;  %5563 = vmatpush1.bf16.msra.mxu1 %v6389_v26  ;;  %v86_v26 = vld [vmem:[%s9063_s0 + $0xa8] sm:$0xff] }
  0x62   :  { %5516 = vmatprep.subr.bf16.mxu0 %v6240_v0  ;;  %5564 = vmatprep.subr.bf16.mxu1 %v6240_v0 }
  0x63   :  { %226 = vmatmul.mubr.f32.gmra.mrb[16].mxu0 %v81_v20  ;;  %491 = vmatmul.mubr.f32.gmra.mrb[16].mxu1 %v352_v21  ;;  %v385_v20 = vld [vmem:[%s9063_s0 + $0x318] sm:$0xff]  ;;  %v113_v21 = vld [vmem:[%s9063_s0 + $0x180] sm:$0xff] }
  0x64   :  { %230 = vmatprep.mubr.f32.mxu0 %v84_v22  ;;  %495 = vmatprep.mubr.f32.mxu1 %v355_v23  ;;  %v384_v22 = vld [vmem:[%s9063_s0 + $0x310] sm:$0xff]  ;;  %v627_v23 = vld [vmem:[%s9063_s0 + $0x328] sm:$0xff] }
  0x65   :  { %5518 = vmatpush1.bf16.msra.mxu0 %v6401_v29  ;;  %5566 = vmatpush1.bf16.msra.mxu1 %v6401_v29  ;;  %v88_v29 = vld [vmem:[%s9063_s0 + $0xb8] sm:$0xff] }
  0x66   :  { %5519 = vmatprep.subr.bf16.mxu0 %v6240_v0  ;;  %5567 = vmatprep.subr.bf16.mxu1 %v6240_v0 }
  0x67   :  { %231 = vmatmul.mubr.f32.gmra.mrb[18].mxu0 %v83_v24  ;;  %496 = vmatmul.mubr.f32.gmra.mrb[18].mxu1 %v354_v25  ;;  %v892_v24 = vld [vmem:[%s9063_s0 + $0x4b8] sm:$0xff]  ;;  %v626_v25 = vld [vmem:[%s9063_s0 + $0x320] sm:$0xff] }
  0x68   :  { %235 = vmatprep.mubr.f32.mxu0 %v86_v26  ;;  %500 = vmatprep.mubr.f32.mxu1 %v357_v27  ;;  %v891_v26 = vld [vmem:[%s9063_s0 + $0x4b0] sm:$0xff]  ;;  %v629_v27 = vld [vmem:[%s9063_s0 + $0x338] sm:$0xff] }
  0x69   :  { %5521 = vmatpush1.bf16.msra.mxu0 %v6413_v32  ;;  %5569 = vmatpush1.bf16.msra.mxu1 %v6413_v32  ;;  %v90_v32 = vld [vmem:[%s9063_s0 + $0xc8] sm:$0xff] }
  0x6a   :  { %5522 = vmatprep.subr.bf16.mxu0 %v6240_v0  ;;  %5570 = vmatprep.subr.bf16.mxu1 %v6240_v0 }
  0x6b   :  { %236 = vmatmul.mubr.f32.gmra.mrb[20].mxu0 %v85_v28  ;;  %501 = vmatmul.mubr.f32.gmra.mrb[20].mxu1 %v356_v30  ;;  %v894_v28 = vld [vmem:[%s9063_s0 + $0x4c8] sm:$0xff]  ;;  %v628_v30 = vld [vmem:[%s9063_s0 + $0x330] sm:$0xff] }
  0x6c   :  { %240 = vmatprep.mubr.f32.mxu0 %v88_v29  ;;  %505 = vmatprep.mubr.f32.mxu1 %v359_v31  ;;  %v893_v29 = vld [vmem:[%s9063_s0 + $0x4c0] sm:$0xff] }
  0x6d   :  { %5524 = vmatpush1.bf16.msra.mxu0 %v6425_v35  ;;  %5572 = vmatpush1.bf16.msra.mxu1 %v6425_v35  ;;  %v92_v35 = vld [vmem:[%s9063_s0 + $0xd8] sm:$0xff]  ;;  %v3605_v31 = vld [vmem:[%s9064_s3 + $0x80] sm:$0xff] }
  0x6e   :  { %5525 = vmatprep.subr.bf16.mxu0 %v6240_v0  ;;  %5573 = vmatprep.subr.bf16.mxu1 %v6240_v0 }
  0x6f   :  { %241 = vmatmul.mubr.f32.gmra.mrb[22].mxu0 %v87_v33  ;;  %506 = vmatmul.mubr.f32.gmra.mrb[22].mxu1 %v358_v34  ;;  %v3606_v33 = vld [vmem:[%s9064_s3 + $0x88] sm:$0xff] }
  0x70   :  { %245 = vmatprep.mubr.f32.mxu0 %v90_v32  ;;  %510 = vmatprep.mubr.f32.mxu1 %v361_v36  ;;  %v631_v34 = vld [vmem:[%s9063_s0 + $0x348] sm:$0xff]  ;;  %v896_v32 = vld [vmem:[%s9063_s0 + $0x4d8] sm:$0xff]  ;;  %v5589_v36 = vpack.c.bf16 %v3606_v33, %v3605_v31  ;;  %v652_v33 = vld [vmem:[%s9063_s0 + $0x3f0] sm:$0xff] }
  0x71   :  { %5527 = vmatpush1.bf16.msra.mxu0 %v6437_v38  ;;  %5575 = vmatpush1.bf16.msra.mxu1 %v6437_v38  ;;  %v94_v38 = vld [vmem:[%s9063_s0 + $0xe8] sm:$0xff] }
  0x72   :  { %5528 = vmatprep.subr.bf16.mxu0 %v6240_v0  ;;  %5576 = vmatprep.subr.bf16.mxu1 %v6240_v0  ;;  %v918_v31 = vld [vmem:[%s9063_s0 + $0x588] sm:$0xff] }
  0x73   :  { %246 = vmatmul.mubr.f32.gmra.mrb[24].mxu0 %v89_v37  ;;  %511 = vmatmul.mubr.f32.gmra.mrb[24].mxu1 %v360_v39  ;;  %v630_v37 = vld [vmem:[%s9063_s0 + $0x340] sm:$0xff]  ;;  %v895_v39 = vld [vmem:[%s9063_s0 + $0x4d0] sm:$0xff] }
  0x74   :  { %250 = vmatprep.mubr.f32.mxu0 %v92_v35  ;;  %515 = vmatprep.mubr.f32.mxu1 %v363_v40  ;;  %v633_v35 = vld [vmem:[%s9063_s0 + $0x358] sm:$0xff]  ;;  %v898_v40 = vld [vmem:[%s9063_s0 + $0x4e8] sm:$0xff] }
  0x75   :  { %5530 = vmatpush1.bf16.msra.mxu0 %v6449_v41  ;;  %5578 = vmatpush1.bf16.msra.mxu1 %v6449_v41  ;;  %v96_v41 = vld [vmem:[%s9063_s0 + $0xf8] sm:$0xff] }
  0x76   :  { %5531 = vmatprep.subr.bf16.mxu0 %v6240_v0  ;;  %5579 = vmatprep.subr.bf16.mxu1 %v6240_v0 }
  0x77   :  { %251 = vmatmul.mubr.f32.gmra.mrb[26].mxu0 %v91_v42  ;;  %516 = vmatmul.mubr.f32.gmra.mrb[26].mxu1 %v362_v43  ;;  %v632_v42 = vld [vmem:[%s9063_s0 + $0x350] sm:$0xff]  ;;  %v897_v43 = vld [vmem:[%s9063_s0 + $0x4e0] sm:$0xff] }
  0x78   :  { %255 = vmatprep.mubr.f32.mxu0 %v94_v38  ;;  %520 = vmatprep.mubr.f32.mxu1 %v365_v45  ;;  %v635_v38 = vld [vmem:[%s9063_s0 + $0x368] sm:$0xff]  ;;  %v900_v45 = vld [vmem:[%s9063_s0 + $0x4f8] sm:$0xff] }
  0x79   :  { %5533 = vmatpush1.bf16.msra.mxu0 %v6461_v44  ;;  %5581 = vmatpush1.bf16.msra.mxu1 %v6461_v44  ;;  %v98_v44 = vld [vmem:[%s9063_s0 + $0x108] sm:$0xff] }
  0x7a   :  { %5534 = vmatprep.subr.bf16.mxu0 %v6240_v0  ;;  %5582 = vmatprep.subr.bf16.mxu1 %v6240_v0 }
  0x7b   :  { %256 = vmatmul.mubr.f32.gmra.mrb[28].mxu0 %v93_v46  ;;  %521 = vmatmul.mubr.f32.gmra.mrb[28].mxu1 %v364_v48  ;;  %v3607_v46 = vld [vmem:[%s9064_s3 + $0x90] sm:$0xff]  ;;  %v3608_v48 = vld [vmem:[%s9064_s3 + $0x98] sm:$0xff] }
  0x7c   :  { %260 = vmatprep.mubr.f32.mxu0 %v96_v41  ;;  %525 = vmatprep.mubr.f32.mxu1 %v367_v49  ;;  %v634_v41 = vld [vmem:[%s9063_s0 + $0x360] sm:$0xff]  ;;  %v899_v49 = vld [vmem:[%s9063_s0 + $0x4f0] sm:$0xff] }
  0x7d   :  { %5536 = vmatpush1.bf16.msra.mxu0 %v6473_v47  ;;  %5584 = vmatpush1.bf16.msra.mxu1 %v6473_v47  ;;  %v100_v47 = vld [vmem:[%s9063_s0 + $0x118] sm:$0xff] }
  0x7e   :  { %5537 = vmatprep.subr.bf16.mxu0 %v6240_v0  ;;  %5585 = vmatprep.subr.bf16.mxu1 %v6240_v0 }
  0x7f   :  { %261 = vmatmul.mubr.f32.gmra.mrb[30].mxu0 %v95_v51  ;;  %526 = vmatmul.mubr.f32.gmra.mrb[30].mxu1 %v366_v52  ;;  %v5592_v51 = vpack.c.bf16 %v3608_v48, %v3607_v46  ;;  %v637_v52 = vld [vmem:[%s9063_s0 + $0x378] sm:$0xff]  ;;  %v1211_v46 = vld [vmem:[%s9064_s3 + $0x28] sm:$0xff]  ;;  %v656_v48 = vld [vmem:[%s9063_s0 + $0x410] sm:$0xff] }
  0x80   :  { %265 = vmatprep.mubr.f32.mxu0 %v98_v44  ;;  %530 = vmatprep.mubr.f32.mxu1 %v369_v53  ;;  %v902_v44 = vld [vmem:[%s9063_s0 + $0x508] sm:$0xff]  ;;  %v636_v53 = vld [vmem:[%s9063_s0 + $0x370] sm:$0xff] }
  0x81   :  { %5539 = vmatpush1.bf16.msra.mxu0 %v6485_v50  ;;  %5587 = vmatpush1.bf16.msra.mxu1 %v6485_v50  ;;  %v102_v50 = vld [vmem:[%s9063_s0 + $0x128] sm:$0xff] }
  0x82   :  { %5588 = vmatprep.subr.bf16.mxu0 %v6240_v0  ;;  %5612 = vmatprep.subr.bf16.mxu1 %v6240_v0 }
  0x83   :  { %266 = vmatmul.mubr.f32.gmra.mrb[32].mxu0 %v97_v54  ;;  %531 = vmatmul.mubr.f32.gmra.mrb[32].mxu1 %v368_v55  ;;  %v901_v54 = vld [vmem:[%s9063_s0 + $0x500] sm:$0xff]  ;;  %v639_v55 = vld [vmem:[%s9063_s0 + $0x388] sm:$0xff] }
  0x84   :  { %270 = vmatprep.mubr.f32.mxu0 %v100_v47  ;;  %535 = vmatprep.mubr.f32.mxu1 %v371_v56  ;;  %v904_v47 = vld [vmem:[%s9063_s0 + $0x518] sm:$0xff]  ;;  %v638_v56 = vld [vmem:[%s9063_s0 + $0x380] sm:$0xff] }
  0x87   :  { %271 = vmatmul.mubr.f32.gmra.mrb[34].mxu0 %v99_v57  ;;  %536 = vmatmul.mubr.f32.gmra.mrb[34].mxu1 %v370_v58  ;;  %v903_v57 = vld [vmem:[%s9063_s0 + $0x510] sm:$0xff]  ;;  %v641_v58 = vld [vmem:[%s9063_s0 + $0x398] sm:$0xff] }
  0x88   :  { %275 = vmatprep.mubr.f32.mxu0 %v102_v50  ;;  %540 = vmatprep.mubr.f32.mxu1 %v373_v59  ;;  %v906_v50 = vld [vmem:[%s9063_s0 + $0x528] sm:$0xff]  ;;  %v3609_v59 = vld [vmem:[%s9064_s3 + $0xa0] sm:$0xff] }
  0x8b   :  { %276 = vmatmul.mubr.f32.gmra.mrb[36].mxu0 %v101_v60  ;;  %541 = vmatmul.mubr.f32.gmra.mrb[36].mxu1 %v372_v61  ;;  %v3610_v60 = vld [vmem:[%s9064_s3 + $0xa8] sm:$0xff]  ;;  %v640_v61 = vld [vmem:[%s9063_s0 + $0x390] sm:$0xff] }
  0x8c   :  { %280 = vmatprep.mubr.f32.mxu0 %v104_v62  ;;  %545 = vmatprep.mubr.f32.mxu1 %v375_v63  ;;  %v905_v62 = vld [vmem:[%s9063_s0 + $0x520] sm:$0xff]  ;;  %v5595_v63 = vpack.c.bf16 %v3610_v60, %v3609_v59  ;;  %v663_v59 = vld [vmem:[%s9063_s0 + $0x448] sm:$0xff]  ;;  %v928_v60 = vld [vmem:[%s9063_s0 + $0x5d8] sm:$0xff] }
  0x8f   :  { %281 = vmatmul.mubr.f32.gmra.mrb[38].mxu0 %v103_v1  ;;  %546 = vmatmul.mubr.f32.gmra.mrb[38].mxu1 %v374_v2  ;;  %v643_v1 = vld [vmem:[%s9063_s0 + $0x3a8] sm:$0xff]  ;;  %v908_v2 = vld [vmem:[%s9063_s0 + $0x538] sm:$0xff] }
  0x90   :  { %285 = vmatprep.mubr.f32.mxu0 %v106_v3  ;;  %550 = vmatprep.mubr.f32.mxu1 %v377_v4  ;;  %v642_v3 = vld [vmem:[%s9063_s0 + $0x3a0] sm:$0xff]  ;;  %v907_v4 = vld [vmem:[%s9063_s0 + $0x530] sm:$0xff] }
  0x93   :  { %286 = vmatmul.mubr.f32.gmra.mrb[40].mxu0 %v105_v5  ;;  %551 = vmatmul.mubr.f32.gmra.mrb[40].mxu1 %v376_v6  ;;  %v645_v5 = vld [vmem:[%s9063_s0 + $0x3b8] sm:$0xff]  ;;  %v910_v6 = vld [vmem:[%s9063_s0 + $0x548] sm:$0xff] }
  0x94   :  { %290 = vmatprep.mubr.f32.mxu0 %v108_v7  ;;  %555 = vmatprep.mubr.f32.mxu1 %v379_v8  ;;  %v1206_v7 = vld [vmem:[%s9064_s3] sm:$0xff]  ;;  %v1207_v8 = vld [vmem:[%s9064_s3 + $0x8] sm:$0xff] }
  0x97   :  { %291 = vmatmul.mubr.f32.gmra.mrb[42].mxu0 %v107_v9  ;;  %556 = vmatmul.mubr.f32.gmra.mrb[42].mxu1 %v378_v10  ;;  %v644_v9 = vld [vmem:[%s9063_s0 + $0x3b0] sm:$0xff]  ;;  %v909_v10 = vld [vmem:[%s9063_s0 + $0x540] sm:$0xff] }
  0x98   :  { %295 = vmatprep.mubr.f32.mxu0 %v110_v11  ;;  %560 = vmatprep.mubr.f32.mxu1 %v381_v12  ;;  %v5613_v11 = vpack.c.bf16 %v1207_v8, %v1206_v7  ;;  %v647_v12 = vld [vmem:[%s9063_s0 + $0x3c8] sm:$0xff]  ;;  %v1214_v7 = vld [vmem:[%s9064_s3 + $0x40] sm:$0xff] }
  0x99   :  { %v1215_v8 = vld [vmem:[%s9064_s3 + $0x48] sm:$0xff] }
  0x9b   :  { %296 = vmatmul.mubr.f32.gmra.mrb[44].mxu0 %v109_v13  ;;  %561 = vmatmul.mubr.f32.gmra.mrb[44].mxu1 %v380_v14  ;;  %v912_v13 = vld [vmem:[%s9063_s0 + $0x558] sm:$0xff]  ;;  %v646_v14 = vld [vmem:[%s9063_s0 + $0x3c0] sm:$0xff] }
  0x9c   :  { %300 = vmatprep.mubr.f32.mxu0 %v112_v15  ;;  %565 = vmatprep.mubr.f32.mxu1 %v383_v16  ;;  %v911_v15 = vld [vmem:[%s9063_s0 + $0x550] sm:$0xff]  ;;  %v649_v16 = vld [vmem:[%s9063_s0 + $0x3d8] sm:$0xff] }
  0x9f   :  { %301 = vmatmul.mubr.f32.gmra.mrb[46].mxu0 %v111_v17  ;;  %566 = vmatmul.mubr.f32.gmra.mrb[46].mxu1 %v382_v18  ;;  %v914_v17 = vld [vmem:[%s9063_s0 + $0x568] sm:$0xff]  ;;  %v3611_v18 = vld [vmem:[%s9064_s3 + $0xb0] sm:$0xff] }
  0xa0   :  { %305 = vmatprep.mubr.f32.mxu0 %v114_v19  ;;  %570 = vmatprep.mubr.f32.mxu1 %v385_v20  ;;  %v3612_v19 = vld [vmem:[%s9064_s3 + $0xb8] sm:$0xff]  ;;  %v648_v20 = vld [vmem:[%s9063_s0 + $0x3d0] sm:$0xff] }
  0xa3   :  { %306 = vmatmul.mubr.f32.gmra.mrb[48].mxu0 %v113_v21  ;;  %571 = vmatmul.mubr.f32.gmra.mrb[48].mxu1 %v384_v22  ;;  %v913_v21 = vld [vmem:[%s9063_s0 + $0x560] sm:$0xff]  ;;  %v5598_v22 = vpack.c.bf16 %v3612_v19, %v3611_v18  ;;  %v1217_v18 = vld [vmem:[%s9064_s3 + $0x58] sm:$0xff] }
  0xa4   :  { %740 = vmatprep.mubr.f32.mxu0 %v627_v23  ;;  %1005 = vmatprep.mubr.f32.mxu1 %v892_v24  ;;  %v651_v23 = vld [vmem:[%s9063_s0 + $0x3e8] sm:$0xff]  ;;  %v916_v24 = vld [vmem:[%s9063_s0 + $0x578] sm:$0xff] }
  0xa5   :  { %v669_v19 = vld [vmem:[%s9063_s0 + $0x478] sm:$0xff] }
  0xa7   :  { %741 = vmatmul.mubr.f32.vlgmr.msra.gmra.mrb[50].mxu0 %v626_v25  ;;  %1006 = vmatmul.mubr.f32.vlgmr.msra.gmra.mrb[50].mxu1 %v891_v26  ;;  %v1208_v25 = vld [vmem:[%s9064_s3 + $0x10] sm:$0xff]  ;;  %v1209_v26 = vld [vmem:[%s9064_s3 + $0x18] sm:$0xff] }
  0xa8   :  { %745 = vmatprep.mubr.f32.mxu0 %v629_v27  ;;  %1010 = vmatprep.mubr.f32.mxu1 %v894_v28  ;;  %v650_v27 = vld [vmem:[%s9063_s0 + $0x3e0] sm:$0xff]  ;;  %v915_v28 = vld [vmem:[%s9063_s0 + $0x570] sm:$0xff] }
  0xa9   :  { %5590 = vmatpush3.bf16.msra.mxu0 %v5589_v36  ;;  %5614 = vmatpush3.bf16.msra.mxu1 %v5613_v11  ;;  %v920_v36 = vld [vmem:[%s9063_s0 + $0x598] sm:$0xff]  ;;  %v5625_v11 = vpack.c.bf16 %v1215_v8, %v1214_v7 }
  0xaa   :  { %5591 = vmatprep.subr.bf16.mxu0 %v6240_v0  ;;  %5615 = vmatprep.subr.bf16.mxu1 %v6240_v0 }
  0xab   :  { %746 = vmatmul.mubr.f32.gmra.mrb[52].mxu0 %v628_v30  ;;  %1011 = vmatmul.mubr.f32.gmra.mrb[52].mxu1 %v893_v29  ;;  %v5616_v30 = vpack.c.bf16 %v1209_v26, %v1208_v25  ;;  %v653_v29 = vld [vmem:[%s9063_s0 + $0x3f8] sm:$0xff]  ;;  %v1219_v25 = vld [vmem:[%s9064_s3 + $0x68] sm:$0xff] }
  0xac   :  { %750 = vmatprep.mubr.f32.mxu0 %v631_v34  ;;  %1015 = vmatprep.mubr.f32.mxu1 %v896_v32  ;;  %v917_v34 = vld [vmem:[%s9063_s0 + $0x580] sm:$0xff]  ;;  %v655_v32 = vld [vmem:[%s9063_s0 + $0x408] sm:$0xff] }
  0xad   :  { %5593 = vmatpush3.bf16.msra.mxu0 %v5592_v51  ;;  %5617 = vmatpush3.bf16.msra.mxu1 %v5616_v30  ;;  %v659_v51 = vld [vmem:[%s9063_s0 + $0x428] sm:$0xff]  ;;  %v670_v30 = vld [vmem:[%s9063_s0 + $0x480] sm:$0xff] }
  0xae   :  { %5594 = vmatprep.subr.bf16.mxu0 %v6240_v0  ;;  %5618 = vmatprep.subr.bf16.mxu1 %v6240_v0  ;;  %v671_v26 = vld [vmem:[%s9063_s0 + $0x488] sm:$0xff] }
  0xaf   :  { %751 = vmatmul.mubr.f32.gmra.mrb[54].mxu0 %v630_v37  ;;  %1016 = vmatmul.mubr.f32.gmra.mrb[54].mxu1 %v895_v39  ;;  %v3613_v37 = vld [vmem:[%s9064_s3 + $0xc0] sm:$0xff]  ;;  %v3614_v39 = vld [vmem:[%s9064_s3 + $0xc8] sm:$0xff] }
  0xb0   :  { %755 = vmatprep.mubr.f32.mxu0 %v633_v35  ;;  %1020 = vmatprep.mubr.f32.mxu1 %v898_v40  ;;  %v654_v35 = vld [vmem:[%s9063_s0 + $0x400] sm:$0xff]  ;;  %v919_v40 = vld [vmem:[%s9063_s0 + $0x590] sm:$0xff] }
  0xb1   :  { %5596 = vmatpush3.bf16.msra.mxu0 %v5595_v63  ;;  %v662_v63 = vld [vmem:[%s9063_s0 + $0x440] sm:$0xff] }
  0xb2   :  { %5597 = vmatprep.subr.bf16.mxu0 %v6240_v0 }
  0xb3   :  { %756 = vmatmul.mubr.f32.gmra.mrb[56].mxu0 %v632_v42  ;;  %1021 = vmatmul.mubr.f32.gmra.mrb[56].mxu1 %v897_v43  ;;  %v5601_v42 = vpack.c.bf16 %v3614_v39, %v3613_v37  ;;  %v657_v43 = vld [vmem:[%s9063_s0 + $0x418] sm:$0xff]  ;;  %v672_v37 = vld [vmem:[%s9063_s0 + $0x490] sm:$0xff]  ;;  %v937_v39 = vld [vmem:[%s9063_s0 + $0x620] sm:$0xff] }
  0xb4   :  { %760 = vmatprep.mubr.f32.mxu0 %v635_v38  ;;  %1025 = vmatprep.mubr.f32.mxu1 %v900_v45  ;;  %v922_v38 = vld [vmem:[%s9063_s0 + $0x5a8] sm:$0xff]  ;;  %v1210_v45 = vld [vmem:[%s9064_s3 + $0x20] sm:$0xff] }
  0xb5   :  { %5599 = vmatpush3.bf16.msra.mxu0 %v5598_v22  ;;  %v668_v22 = vld [vmem:[%s9063_s0 + $0x470] sm:$0xff] }
  0xb6   :  { %5600 = vmatprep.subr.bf16.mxu0 %v6240_v0 }
  0xb7   :  { %761 = vmatmul.mubr.f32.gmra.mrb[58].mxu0 %v634_v41  ;;  %1026 = vmatmul.mubr.f32.gmra.mrb[58].mxu1 %v899_v49  ;;  %v921_v41 = vld [vmem:[%s9063_s0 + $0x5a0] sm:$0xff]  ;;  %v5619_v49 = vpack.c.bf16 %v1211_v46, %v1210_v45  ;;  %v939_v46 = vld [vmem:[%s9063_s0 + $0x630] sm:$0xff] }
  0xb8   :  { %765 = vmatprep.mubr.f32.mxu0 %v637_v52  ;;  %1030 = vmatprep.mubr.f32.mxu1 %v902_v44  ;;  %v924_v52 = vld [vmem:[%s9063_s0 + $0x5b8] sm:$0xff]  ;;  %v658_v44 = vld [vmem:[%s9063_s0 + $0x420] sm:$0xff] }
  0xb9   :  { %5602 = vmatpush3.bf16.msra.mxu0 %v5601_v42  ;;  %5620 = vmatpush3.bf16.msra.mxu1 %v5619_v49  ;;  %v675_v42 = vld [vmem:[%s9063_s0 + $0x4a8] sm:$0xff]  ;;  %v674_v45 = vld [vmem:[%s9063_s0 + $0x4a0] sm:$0xff] }
  0xba   :  { %5603 = vmatprep.subr.bf16.mxu0 %v6240_v0  ;;  %5621 = vmatprep.subr.bf16.mxu1 %v6240_v0 }
  0xbb   :  { %766 = vmatmul.mubr.f32.gmra.mrb[60].mxu0 %v636_v53  ;;  %1031 = vmatmul.mubr.f32.gmra.mrb[60].mxu1 %v901_v54  ;;  %v923_v53 = vld [vmem:[%s9063_s0 + $0x5b0] sm:$0xff]  ;;  %v661_v54 = vld [vmem:[%s9063_s0 + $0x438] sm:$0xff] }
  0xbc   :  { %770 = vmatprep.mubr.f32.mxu0 %v639_v55  ;;  %1035 = vmatprep.mubr.f32.mxu1 %v904_v47  ;;  %v926_v55 = vld [vmem:[%s9063_s0 + $0x5c8] sm:$0xff]  ;;  %v3615_v47 = vld [vmem:[%s9064_s3 + $0xd0] sm:$0xff] }
  0xbf   :  { %771 = vmatmul.mubr.f32.gmra.mrb[62].mxu0 %v638_v56  ;;  %1036 = vmatmul.mubr.f32.gmra.mrb[62].mxu1 %v903_v57  ;;  %v3616_v56 = vld [vmem:[%s9064_s3 + $0xd8] sm:$0xff]  ;;  %v660_v57 = vld [vmem:[%s9063_s0 + $0x430] sm:$0xff] }
  0xc0   :  { %775 = vmatprep.mubr.f32.mxu0 %v641_v58  ;;  %1040 = vmatprep.mubr.f32.mxu1 %v906_v50  ;;  %v925_v58 = vld [vmem:[%s9063_s0 + $0x5c0] sm:$0xff]  ;;  %v5604_v50 = vpack.c.bf16 %v3616_v56, %v3615_v47 }
  0xc2   :  { %5605 = vmatpush3.bf16.msra.mxu0 %v5604_v50 }
  0xc3   :  { %776 = vmatmul.mubr.f32.gmra.mrb[64].mxu0 %v640_v61  ;;  %1041 = vmatmul.mubr.f32.gmra.mrb[64].mxu1 %v905_v62  ;;  %v1212_v61 = vld [vmem:[%s9064_s3 + $0x30] sm:$0xff]  ;;  %v1213_v62 = vld [vmem:[%s9064_s3 + $0x38] sm:$0xff] }
  0xc4   :  { %780 = vmatprep.mubr.f32.mxu0 %v643_v1  ;;  %1045 = vmatprep.mubr.f32.mxu1 %v908_v2  ;;  %v927_v1 = vld [vmem:[%s9063_s0 + $0x5d0] sm:$0xff]  ;;  %v5622_v2 = vpack.c.bf16 %v1213_v62, %v1212_v61 }
  0xc5   :  { %5606 = vmatprep.subr.bf16.mxu0 %v6240_v0 }
  0xc6   :  { %5623 = vmatpush3.bf16.msra.mxu1 %v5622_v2 }
  0xc7   :  { %781 = vmatmul.mubr.f32.gmra.mrb[66].mxu0 %v642_v3  ;;  %1046 = vmatmul.mubr.f32.gmra.mrb[66].mxu1 %v907_v4  ;;  %v665_v3 = vld [vmem:[%s9063_s0 + $0x458] sm:$0xff]  ;;  %v930_v4 = vld [vmem:[%s9063_s0 + $0x5e8] sm:$0xff] }
  0xc8   :  { %785 = vmatprep.mubr.f32.mxu0 %v645_v5  ;;  %1050 = vmatprep.mubr.f32.mxu1 %v910_v6  ;;  %v664_v5 = vld [vmem:[%s9063_s0 + $0x450] sm:$0xff]  ;;  %v929_v6 = vld [vmem:[%s9063_s0 + $0x5e0] sm:$0xff] }
  0xc9   :  { %5624 = vmatprep.subr.bf16.mxu1 %v6240_v0 }
  0xca   :  { %5626 = vmatpush3.bf16.msra.mxu1 %v5625_v11 }
  0xcb   :  { %786 = vmatmul.mubr.f32.gmra.mrb[68].mxu0 %v644_v9  ;;  %1051 = vmatmul.mubr.f32.gmra.mrb[68].mxu1 %v909_v10  ;;  %v667_v9 = vld [vmem:[%s9063_s0 + $0x468] sm:$0xff]  ;;  %v932_v10 = vld [vmem:[%s9063_s0 + $0x5f8] sm:$0xff] }
  0xcc   :  { %790 = vmatprep.mubr.f32.mxu0 %v647_v12  ;;  %1055 = vmatprep.mubr.f32.mxu1 %v912_v13  ;;  %v666_v12 = vld [vmem:[%s9063_s0 + $0x460] sm:$0xff] }
  0xcd   :  { %v3617_v13 = vld [vmem:[%s9064_s3 + $0xe0] sm:$0xff]  ;;  %5627 = vmatprep.subr.bf16.mxu1 %v6240_v0 }
  0xcf   :  { %791 = vmatmul.mubr.f32.gmra.mrb[70].mxu0 %v646_v14  ;;  %1056 = vmatmul.mubr.f32.gmra.mrb[70].mxu1 %v911_v15  ;;  %v3618_v14 = vld [vmem:[%s9064_s3 + $0xe8] sm:$0xff]  ;;  %v931_v15 = vld [vmem:[%s9063_s0 + $0x5f0] sm:$0xff] }
  0xd0   :  { %795 = vmatprep.mubr.f32.mxu0 %v649_v16  ;;  %1060 = vmatprep.mubr.f32.mxu1 %v914_v17  ;;  %v5607_v16 = vpack.c.bf16 %v3618_v14, %v3617_v13  ;;  %v1216_v17 = vld [vmem:[%s9064_s3 + $0x50] sm:$0xff] }
  0xd2   :  { %5608 = vmatpush3.bf16.msra.mxu0 %v5607_v16 }
  0xd3   :  { %796 = vmatmul.mubr.f32.gmra.mrb[72].mxu0 %v648_v20  ;;  %1061 = vmatmul.mubr.f32.gmra.mrb[72].mxu1 %v913_v21  ;;  %v934_v20 = vld [vmem:[%s9063_s0 + $0x608] sm:$0xff]  ;;  %v5628_v21 = vpack.c.bf16 %v1217_v18, %v1216_v17 }
  0xd4   :  { %800 = vmatprep.mubr.f32.mxu0 %v651_v23  ;;  %1065 = vmatprep.mubr.f32.mxu1 %v916_v24  ;;  %v933_v23 = vld [vmem:[%s9063_s0 + $0x600] sm:$0xff] }
  0xd5   :  { %v1218_v24 = vld [vmem:[%s9064_s3 + $0x60] sm:$0xff]  ;;  %5629 = vmatpush3.bf16.msra.mxu1 %v5628_v21  ;;  %5609 = vmatprep.subr.bf16.mxu0 %v6240_v0 }
  0xd6   :  { %5630 = vmatprep.subr.bf16.mxu1 %v6240_v0 }
  0xd7   :  { %801 = vmatmul.mubr.f32.gmra.mrb[74].mxu0 %v650_v27  ;;  %1066 = vmatmul.mubr.f32.gmra.mrb[74].mxu1 %v915_v28  ;;  %v936_v27 = vld [vmem:[%s9063_s0 + $0x618] sm:$0xff]  ;;  %v5631_v28 = vpack.c.bf16 %v1219_v25, %v1218_v24 }
  0xd8   :  { %805 = vmatprep.mubr.f32.mxu0 %v653_v29  ;;  %1070 = vmatprep.mubr.f32.mxu1 %v918_v31  ;;  %v935_v29 = vld [vmem:[%s9063_s0 + $0x610] sm:$0xff] }
  0xd9   :  { %v1220_v31 = vld [vmem:[%s9064_s3 + $0x70] sm:$0xff]  ;;  %5632 = vmatpush3.bf16.msra.mxu1 %v5631_v28 }
  0xda   :  { %5633 = vmatprep.subr.bf16.mxu1 %v6240_v0 }
  0xdb   :  { %806 = vmatmul.mubr.f32.gmra.mrb[76].mxu0 %v652_v33  ;;  %1071 = vmatmul.mubr.f32.gmra.mrb[76].mxu1 %v917_v34  ;;  %v1221_v33 = vld [vmem:[%s9064_s3 + $0x78] sm:$0xff] }
  0xdc   :  { %810 = vmatprep.mubr.f32.mxu0 %v655_v32  ;;  %1075 = vmatprep.mubr.f32.mxu1 %v920_v36  ;;  %v673_v34 = vld [vmem:[%s9063_s0 + $0x498] sm:$0xff]  ;;  %v938_v32 = vld [vmem:[%s9063_s0 + $0x628] sm:$0xff]  ;;  %v5634_v36 = vpack.c.bf16 %v1221_v33, %v1220_v31 }
  0xde   :  { %5635 = vmatpush3.bf16.msra.mxu1 %v5634_v36 }
  0xdf   :  { %811 = vmatmul.mubr.f32.gmra.mrb[78].mxu0 %v654_v35  ;;  %1076 = vmatmul.mubr.f32.gmra.mrb[78].mxu1 %v919_v40  ;;  %v3619_v35 = vld [vmem:[%s9064_s3 + $0xf0] sm:$0xff]  ;;  %v3620_v40 = vld [vmem:[%s9064_s3 + $0xf8] sm:$0xff] }
  0xe0   :  { %815 = vmatprep.mubr.f32.mxu0 %v657_v43  ;;  %1080 = vmatprep.mubr.f32.mxu1 %v922_v38  ;;  %v940_v43 = vld [vmem:[%s9063_s0 + $0x638] sm:$0xff]  ;;  %v5610_v38 = vpack.c.bf16 %v3620_v40, %v3619_v35 }
  0xe1   :  { %5660 = vmatprep.subr.bf16.mxu1 %v6240_v0 }
  0xe2   :  { %5611 = vmatpush3.bf16.msra.mxu0 %v5610_v38 }
  0xe3   :  { %816 = vmatmul.mubr.f32.gmra.mrb[80].mxu0 %v656_v48  ;;  %1081 = vmatmul.mubr.f32.gmra.mrb[80].mxu1 %v921_v41  ;;  %v6242_v48 = vmov 0.0   ;;  %v7270_v41 = vld [vmem:[%s9065_s2] ss:$0 sm:$0xff] }
  0xe4   :  { %820 = vmatprep.mubr.f32.mxu0 %v659_v51  ;;  %1085 = vmatprep.mubr.f32.mxu1 %v924_v52 }
  0xe5   :  { %5636 = vmatprep.subr.bf16.mxu0 %v6240_v0 }
  0xe7   :  { %821 = vmatmul.mubr.f32.gmra.mrb[82].mxu0 %v658_v44  ;;  %1086 = vmatmul.mubr.f32.gmra.mrb[82].mxu1 %v923_v53 }
  0xe8   :  { %825 = vmatprep.mubr.f32.mxu0 %v661_v54  ;;  %1090 = vmatprep.mubr.f32.mxu1 %v926_v55 }
  0xeb   :  { %826 = vmatmul.mubr.f32.gmra.mrb[84].mxu0 %v660_v57  ;;  %1091 = vmatmul.mubr.f32.gmra.mrb[84].mxu1 %v925_v58 }
  0xec   :  { %830 = vmatprep.mubr.f32.mxu0 %v663_v59  ;;  %1095 = vmatprep.mubr.f32.mxu1 %v928_v60 }
  0xef   :  { %831 = vmatmul.mubr.f32.gmra.mrb[86].mxu0 %v662_v63  ;;  %1096 = vmatmul.mubr.f32.gmra.mrb[86].mxu1 %v927_v1 }
  0xf0   :  { %835 = vmatprep.mubr.f32.mxu0 %v665_v3  ;;  %1100 = vmatprep.mubr.f32.mxu1 %v930_v4 }
  0xf3   :  { %836 = vmatmul.mubr.f32.gmra.mrb[88].mxu0 %v664_v5  ;;  %1101 = vmatmul.mubr.f32.gmra.mrb[88].mxu1 %v929_v6 }
  0xf4   :  { %840 = vmatprep.mubr.f32.mxu0 %v667_v9  ;;  %1105 = vmatprep.mubr.f32.mxu1 %v932_v10 }
  0xf7   :  { %841 = vmatmul.mubr.f32.gmra.mrb[90].mxu0 %v666_v12  ;;  %1106 = vmatmul.mubr.f32.gmra.mrb[90].mxu1 %v931_v15 }
  0xf8   :  { %845 = vmatprep.mubr.f32.mxu0 %v669_v19  ;;  %1110 = vmatprep.mubr.f32.mxu1 %v934_v20 }
  0xfb   :  { %846 = vmatmul.mubr.f32.gmra.mrb[92].mxu0 %v668_v22  ;;  %1111 = vmatmul.mubr.f32.gmra.mrb[92].mxu1 %v933_v23 }
  0xfc   :  { %850 = vmatprep.mubr.f32.mxu0 %v671_v26  ;;  %1115 = vmatprep.mubr.f32.mxu1 %v936_v27 }
  0xff   :  { %851 = vmatmul.mubr.f32.gmra.mrb[94].mxu0 %v670_v30  ;;  %1116 = vmatmul.mubr.f32.gmra.mrb[94].mxu1 %v935_v29 }
 0x100   :  { %855 = vmatprep.mubr.f32.mxu0 %v673_v34  ;;  %1120 = vmatprep.mubr.f32.mxu1 %v938_v32 }
 0x103   :  { %856 = vmatmul.mubr.f32.gmra.mrb[96].mxu0 %v672_v37  ;;  %1121 = vmatmul.mubr.f32.gmra.mrb[96].mxu1 %v937_v39 }
 0x104   :  { %860 = vmatprep.mubr.f32.mxu0 %v675_v42  ;;  %1125 = vmatprep.mubr.f32.mxu1 %v940_v43 }
 0x107   :  { %861 = vmatmul.mubr.f32.gmra.mrb[98].mxu0 %v674_v45  ;;  %1126 = vmatmul.mubr.f32.gmra.mrb[98].mxu1 %v939_v46 }
 0x108   :  { %4518 = vmatprep.mubr.msk.f32.mxu1 %vm6241_vm0, %v6242_v48  ;;  %4483 = vmatprep.mubr.msk.f32.mxu0 %vm6241_vm0, %v6242_v48 }
 0x116   :  { %v187_v49 = vpop.f32.mrb[0].mxu0  ;;  %v452_v51 = vpop.f32.mrb[0].mxu1 }
 0x117   :  { %v188_v52 = vadd.f32 %v7270_v41, %v187_v49  ;;  %v453_v44 = vadd.f32 %v7270_v41, %v452_v51  ;;  %v189_v53 = vpop.f32.mrb[1].mxu0  ;;  %v454_v54 = vpop.f32.mrb[1].mxu1 }
 0x119   :  { %v311_v55 = vmax.f32 %v188_v52, 0.0  ;;  %v576_v47 = vmax.f32 %v453_v44, 0.0 }
 0x11a   :  { %v192_v56 = vpop.f32.mrb[2].mxu0  ;;  %v457_v57 = vpop.f32.mrb[2].mxu1 }
 0x11b   :  { %v7274_v58 = vmax.f32 %v311_v55, %v576_v47  ;;  %v193_v50 = vadd.f32 %v7270_v41, %v192_v56  ;;  %v458_v59 = vadd.f32 %v7270_v41, %v457_v57  ;;  %v194_v60 = vpop.f32.mrb[3].mxu0  ;;  %v459_v61 = vpop.f32.mrb[3].mxu1 }
 0x11d   :  { %v312_v62 = vmax.f32 %v193_v50, 0.0  ;;  %v577_v63 = vmax.f32 %v458_v59, 0.0 }
 0x11e   :  { %v197_v1 = vpop.f32.mrb[4].mxu0  ;;  %v462_v2 = vpop.f32.mrb[4].mxu1 }
 0x11f   :  { %v7278_v3 = vmax.f32 %v312_v62, %v577_v63  ;;  %v198_v4 = vadd.f32 %v7270_v41, %v197_v1  ;;  %v463_v5 = vadd.f32 %v7270_v41, %v462_v2  ;;  %v199_v6 = vpop.f32.mrb[5].mxu0  ;;  %v464_v7 = vpop.f32.mrb[5].mxu1 }
 0x121   :  { %v313_v8 = vmax.f32 %v198_v4, 0.0  ;;  %v578_v9 = vmax.f32 %v463_v5, 0.0 }
 0x122   :  { %v202_v10 = vpop.f32.mrb[6].mxu0  ;;  %v467_v11 = vpop.f32.mrb[6].mxu1 }
 0x123   :  { %v7282_v12 = vmax.f32 %v313_v8, %v578_v9  ;;  %v203_v13 = vadd.f32 %v7270_v41, %v202_v10  ;;  %v468_v14 = vadd.f32 %v7270_v41, %v467_v11  ;;  %v204_v15 = vpop.f32.mrb[7].mxu0  ;;  %v469_v16 = vpop.f32.mrb[7].mxu1 }
 0x125   :  { %v314_v17 = vmax.f32 %v203_v13, 0.0  ;;  %v579_v18 = vmax.f32 %v468_v14, 0.0 }
 0x126   :  { %v207_v19 = vpop.f32.mrb[8].mxu0  ;;  %v472_v20 = vpop.f32.mrb[8].mxu1 }
 0x127   :  { %v7286_v21 = vmax.f32 %v314_v17, %v579_v18  ;;  %v208_v22 = vadd.f32 %v7270_v41, %v207_v19  ;;  %v473_v23 = vadd.f32 %v7270_v41, %v472_v20  ;;  %v209_v24 = vpop.f32.mrb[9].mxu0  ;;  %v474_v25 = vpop.f32.mrb[9].mxu1 }
 0x129   :  { %v315_v26 = vmax.f32 %v208_v22, 0.0  ;;  %v580_v27 = vmax.f32 %v473_v23, 0.0 }
 0x12a   :  { %v212_v28 = vpop.f32.mrb[10].mxu0  ;;  %v477_v30 = vpop.f32.mrb[10].mxu1 }
 0x12b   :  { %v7290_v29 = vmax.f32 %v315_v26, %v580_v27  ;;  %v213_v31 = vadd.f32 %v7270_v41, %v212_v28  ;;  %v478_v33 = vadd.f32 %v7270_v41, %v477_v30  ;;  %v214_v34 = vpop.f32.mrb[11].mxu0  ;;  %v479_v32 = vpop.f32.mrb[11].mxu1 }
 0x12d   :  { %v316_v36 = vmax.f32 %v213_v31, 0.0  ;;  %v581_v37 = vmax.f32 %v478_v33, 0.0 }
 0x12e   :  { %v217_v39 = vpop.f32.mrb[12].mxu0  ;;  %v482_v35 = vpop.f32.mrb[12].mxu1 }
 0x12f   :  { %v7294_v40 = vmax.f32 %v316_v36, %v581_v37  ;;  %v218_v42 = vadd.f32 %v7270_v41, %v217_v39  ;;  %v483_v43 = vadd.f32 %v7270_v41, %v482_v35  ;;  %v219_v38 = vpop.f32.mrb[13].mxu0  ;;  %v484_v45 = vpop.f32.mrb[13].mxu1 }
 0x131   :  { %v317_v46 = vmax.f32 %v218_v42, 0.0  ;;  %v582_v49 = vmax.f32 %v483_v43, 0.0 }
 0x132   :  { %v222_v51 = vpop.f32.mrb[14].mxu0  ;;  %v487_v52 = vpop.f32.mrb[14].mxu1 }
 0x133   :  { %v7298_v44 = vmax.f32 %v317_v46, %v582_v49  ;;  %v223_v53 = vadd.f32 %v7270_v41, %v222_v51  ;;  %v488_v54 = vadd.f32 %v7270_v41, %v487_v52  ;;  %v224_v55 = vpop.f32.mrb[15].mxu0  ;;  %v489_v47 = vpop.f32.mrb[15].mxu1 }
 0x135   :  { %v318_v56 = vmax.f32 %v223_v53, 0.0  ;;  %v583_v57 = vmax.f32 %v488_v54, 0.0 }
 0x136   :  { %v227_v50 = vpop.f32.mrb[16].mxu0  ;;  %v492_v59 = vpop.f32.mrb[16].mxu1 }
 0x137   :  { %v7302_v60 = vmax.f32 %v318_v56, %v583_v57  ;;  %v228_v61 = vadd.f32 %v7270_v41, %v227_v50  ;;  %v493_v62 = vadd.f32 %v7270_v41, %v492_v59  ;;  %v229_v63 = vpop.f32.mrb[17].mxu0  ;;  %v494_v1 = vpop.f32.mrb[17].mxu1 }
 0x139   :  { %v319_v2 = vmax.f32 %v228_v61, 0.0  ;;  %v584_v4 = vmax.f32 %v493_v62, 0.0 }
 0x13a   :  { %v232_v5 = vpop.f32.mrb[18].mxu0  ;;  %v497_v6 = vpop.f32.mrb[18].mxu1 }
 0x13b   :  { %v7306_v7 = vmax.f32 %v319_v2, %v584_v4  ;;  %v233_v8 = vadd.f32 %v7270_v41, %v232_v5  ;;  %v498_v9 = vadd.f32 %v7270_v41, %v497_v6  ;;  %v234_v10 = vpop.f32.mrb[19].mxu0  ;;  %v499_v11 = vpop.f32.mrb[19].mxu1 }
 0x13d   :  { %v320_v13 = vmax.f32 %v233_v8, 0.0  ;;  %v585_v14 = vmax.f32 %v498_v9, 0.0 }
 0x13e   :  { %v237_v15 = vpop.f32.mrb[20].mxu0  ;;  %v502_v16 = vpop.f32.mrb[20].mxu1 }
 0x13f   :  { %v7310_v17 = vmax.f32 %v320_v13, %v585_v14  ;;  %v238_v18 = vadd.f32 %v7270_v41, %v237_v15  ;;  %v503_v19 = vadd.f32 %v7270_v41, %v502_v16  ;;  %v239_v20 = vpop.f32.mrb[21].mxu0  ;;  %v504_v22 = vpop.f32.mrb[21].mxu1 }
 0x141   :  { %v321_v23 = vmax.f32 %v238_v18, 0.0  ;;  %v586_v24 = vmax.f32 %v503_v19, 0.0 }
 0x142   :  { %v242_v25 = vpop.f32.mrb[22].mxu0  ;;  %v507_v26 = vpop.f32.mrb[22].mxu1 }
 0x143   :  { %v7314_v27 = vmax.f32 %v321_v23, %v586_v24  ;;  %v243_v28 = vadd.f32 %v7270_v41, %v242_v25  ;;  %v508_v30 = vadd.f32 %v7270_v41, %v507_v26  ;;  %v244_v31 = vpop.f32.mrb[23].mxu0  ;;  %v509_v33 = vpop.f32.mrb[23].mxu1 }
 0x145   :  { %v322_v34 = vmax.f32 %v243_v28, 0.0  ;;  %v587_v32 = vmax.f32 %v508_v30, 0.0 }
 0x146   :  { %v247_v36 = vpop.f32.mrb[24].mxu0  ;;  %v512_v37 = vpop.f32.mrb[24].mxu1 }
 0x147   :  { %v7318_v39 = vmax.f32 %v322_v34, %v587_v32  ;;  %v248_v35 = vadd.f32 %v7270_v41, %v247_v36  ;;  %v513_v42 = vadd.f32 %v7270_v41, %v512_v37  ;;  %v249_v43 = vpop.f32.mrb[25].mxu0  ;;  %v514_v38 = vpop.f32.mrb[25].mxu1 }
 0x149   :  { %v323_v45 = vmax.f32 %v248_v35, 0.0  ;;  %v588_v46 = vmax.f32 %v513_v42, 0.0 }
 0x14a   :  { %v252_v49 = vpop.f32.mrb[26].mxu0  ;;  %v517_v51 = vpop.f32.mrb[26].mxu1 }
 0x14b   :  { %v7322_v52 = vmax.f32 %v323_v45, %v588_v46  ;;  %v253_v53 = vadd.f32 %v7270_v41, %v252_v49  ;;  %v518_v54 = vadd.f32 %v7270_v41, %v517_v51  ;;  %v254_v55 = vpop.f32.mrb[27].mxu0  ;;  %v519_v47 = vpop.f32.mrb[27].mxu1 }
 0x14d   :  { %v324_v56 = vmax.f32 %v253_v53, 0.0  ;;  %v589_v57 = vmax.f32 %v518_v54, 0.0 }
 0x14e   :  { %v257_v50 = vpop.f32.mrb[28].mxu0  ;;  %v522_v59 = vpop.f32.mrb[28].mxu1 }
 0x14f   :  { %v7326_v61 = vmax.f32 %v324_v56, %v589_v57  ;;  %v258_v62 = vadd.f32 %v7270_v41, %v257_v50  ;;  %v523_v63 = vadd.f32 %v7270_v41, %v522_v59  ;;  %v259_v1 = vpop.f32.mrb[29].mxu0  ;;  %v524_v2 = vpop.f32.mrb[29].mxu1 }
 0x151   :  { %v325_v4 = vmax.f32 %v258_v62, 0.0  ;;  %v590_v5 = vmax.f32 %v523_v63, 0.0 }
 0x152   :  { %v262_v6 = vpop.f32.mrb[30].mxu0  ;;  %v527_v8 = vpop.f32.mrb[30].mxu1 }
 0x153   :  { %v7330_v9 = vmax.f32 %v325_v4, %v590_v5  ;;  %v263_v10 = vadd.f32 %v7270_v41, %v262_v6  ;;  %v528_v11 = vadd.f32 %v7270_v41, %v527_v8  ;;  %v264_v13 = vpop.f32.mrb[31].mxu0  ;;  %v529_v14 = vpop.f32.mrb[31].mxu1 }
 0x155   :  { %v326_v15 = vmax.f32 %v263_v10, 0.0  ;;  %v591_v16 = vmax.f32 %v528_v11, 0.0 }
 0x156   :  { %v267_v18 = vpop.f32.mrb[32].mxu0  ;;  %v532_v19 = vpop.f32.mrb[32].mxu1 }
 0x157   :  { %v7334_v20 = vmax.f32 %v326_v15, %v591_v16  ;;  %v268_v22 = vadd.f32 %v7270_v41, %v267_v18  ;;  %v533_v23 = vadd.f32 %v7270_v41, %v532_v19  ;;  %v269_v24 = vpop.f32.mrb[33].mxu0  ;;  %v534_v25 = vpop.f32.mrb[33].mxu1 }
 0x159   :  { %v327_v26 = vmax.f32 %v268_v22, 0.0  ;;  %v592_v28 = vmax.f32 %v533_v23, 0.0 }
 0x15a   :  { %v272_v30 = vpop.f32.mrb[34].mxu0  ;;  %v537_v31 = vpop.f32.mrb[34].mxu1 }
 0x15b   :  { %v7338_v33 = vmax.f32 %v327_v26, %v592_v28  ;;  %v273_v34 = vadd.f32 %v7270_v41, %v272_v30  ;;  %v538_v32 = vadd.f32 %v7270_v41, %v537_v31  ;;  %v274_v36 = vpop.f32.mrb[35].mxu0  ;;  %v539_v37 = vpop.f32.mrb[35].mxu1 }
 0x15d   :  { %v328_v35 = vmax.f32 %v273_v34, 0.0  ;;  %v593_v42 = vmax.f32 %v538_v32, 0.0 }
 0x15e   :  { %v277_v43 = vpop.f32.mrb[36].mxu0  ;;  %v542_v38 = vpop.f32.mrb[36].mxu1 }
 0x15f   :  { %v7342_v45 = vmax.f32 %v328_v35, %v593_v42  ;;  %v278_v46 = vadd.f32 %v7270_v41, %v277_v43  ;;  %v543_v49 = vadd.f32 %v7270_v41, %v542_v38  ;;  %v279_v51 = vpop.f32.mrb[37].mxu0  ;;  %v544_v53 = vpop.f32.mrb[37].mxu1 }
 0x161   :  { %v329_v54 = vmax.f32 %v278_v46, 0.0  ;;  %v594_v55 = vmax.f32 %v543_v49, 0.0 }
 0x162   :  { %v282_v47 = vpop.f32.mrb[38].mxu0  ;;  %v547_v56 = vpop.f32.mrb[38].mxu1 }
 0x163   :  { %v7346_v57 = vmax.f32 %v329_v54, %v594_v55  ;;  %v283_v50 = vadd.f32 %v7270_v41, %v282_v47  ;;  %v548_v59 = vadd.f32 %v7270_v41, %v547_v56  ;;  %v284_v62 = vpop.f32.mrb[39].mxu0  ;;  %v549_v63 = vpop.f32.mrb[39].mxu1 }
 0x165   :  { %v330_v1 = vmax.f32 %v283_v50, 0.0  ;;  %v595_v2 = vmax.f32 %v548_v59, 0.0 }
 0x166   :  { %v287_v4 = vpop.f32.mrb[40].mxu0  ;;  %v552_v5 = vpop.f32.mrb[40].mxu1 }
 0x167   :  { %v7350_v6 = vmax.f32 %v330_v1, %v595_v2  ;;  %v288_v8 = vadd.f32 %v7270_v41, %v287_v4  ;;  %v553_v10 = vadd.f32 %v7270_v41, %v552_v5  ;;  %v289_v11 = vpop.f32.mrb[41].mxu0  ;;  %v554_v13 = vpop.f32.mrb[41].mxu1 }
 0x169   :  { %v331_v14 = vmax.f32 %v288_v8, 0.0  ;;  %v596_v15 = vmax.f32 %v553_v10, 0.0 }
 0x16a   :  { %v292_v16 = vpop.f32.mrb[42].mxu0  ;;  %v557_v18 = vpop.f32.mrb[42].mxu1 }
 0x16b   :  { %v7354_v19 = vmax.f32 %v331_v14, %v596_v15  ;;  %v293_v22 = vadd.f32 %v7270_v41, %v292_v16  ;;  %v558_v23 = vadd.f32 %v7270_v41, %v557_v18  ;;  %v294_v24 = vpop.f32.mrb[43].mxu0  ;;  %v559_v25 = vpop.f32.mrb[43].mxu1 }
 0x16c   :  { %v3637_v24 = vld [vmem:[%s9064_s3 + $0x180] sm:$0xff]  ;;  %v3638_v25 = vld [vmem:[%s9064_s3 + $0x188] sm:$0xff] }
 0x16d   :  { %v332_v26 = vmax.f32 %v293_v22, 0.0  ;;  %v597_v28 = vmax.f32 %v558_v23, 0.0 }
 0x16e   :  { %v297_v30 = vpop.f32.mrb[44].mxu0  ;;  %v562_v31 = vpop.f32.mrb[44].mxu1 }
 0x16f   :  { %v7358_v34 = vmax.f32 %v332_v26, %v597_v28  ;;  %v298_v32 = vadd.f32 %v7270_v41, %v297_v30  ;;  %v563_v36 = vadd.f32 %v7270_v41, %v562_v31  ;;  %v299_v37 = vpop.f32.mrb[45].mxu0  ;;  %v564_v35 = vpop.f32.mrb[45].mxu1 }
 0x170   :  { %v5661_v35 = vpack.c.bf16 %v3638_v25, %v3637_v24 }
 0x171   :  { %v333_v42 = vmax.f32 %v298_v32, 0.0  ;;  %v598_v43 = vmax.f32 %v563_v36, 0.0 }
 0x172   :  { %v302_v38 = vpop.f32.mrb[46].mxu0  ;;  %v567_v46 = vpop.f32.mrb[46].mxu1 }
 0x173   :  { %v7362_v49 = vmax.f32 %v333_v42, %v598_v43  ;;  %v303_v51 = vadd.f32 %v7270_v41, %v302_v38  ;;  %v568_v53 = vadd.f32 %v7270_v41, %v567_v46  ;;  %v304_v54 = vpop.f32.mrb[47].mxu0  ;;  %v569_v55 = vpop.f32.mrb[47].mxu1  ;;  %v3621_v42 = vld [vmem:[%s9064_s3 + $0x100] sm:$0xff] }
 0x174   :  { %v3640_v54 = vld [vmem:[%s9064_s3 + $0x198] sm:$0xff] }
 0x175   :  { %v334_v47 = vmax.f32 %v303_v51, 0.0  ;;  %v599_v56 = vmax.f32 %v568_v53, 0.0  ;;  %v3622_v51 = vld [vmem:[%s9064_s3 + $0x108] sm:$0xff]  ;;  %v3639_v53 = vld [vmem:[%s9064_s3 + $0x190] sm:$0xff] }
 0x176   :  { %v307_v50 = vpop.f32.mrb[48].mxu0  ;;  %v572_v59 = vpop.f32.mrb[48].mxu1 }
 0x177   :  { %v7366_v62 = vmax.f32 %v334_v47, %v599_v56  ;;  %v308_v63 = vadd.f32 %v7270_v41, %v307_v50  ;;  %v573_v1 = vadd.f32 %v7270_v41, %v572_v59  ;;  %v309_v2 = vpop.f32.mrb[49].mxu0  ;;  %v574_v4 = vpop.f32.mrb[49].mxu1 }
 0x178   :  { %v5664_v2 = vpack.c.bf16 %v3640_v54, %v3639_v53  ;;  %v3623_v4 = vld [vmem:[%s9064_s3 + $0x110] sm:$0xff] }
 0x179   :  { %v335_v5 = vmax.f32 %v308_v63, 0.0  ;;  %v600_v8 = vmax.f32 %v573_v1, 0.0  ;;  %v5637_v1 = vpack.c.bf16 %v3622_v51, %v3621_v42  ;;  %v3644_v42 = vld [vmem:[%s9064_s3 + $0x1b8] sm:$0xff] }
 0x17a   :  { %v742_v10 = vpop.f32.mrb[50].mxu0  ;;  %v1007_v11 = vpop.f32.mrb[50].mxu1 }
 0x17b   :  { %v7370_v13 = vmax.f32 %v335_v5, %v600_v8  ;;  %v743_v14 = vadd.f32 %v7270_v41, %v742_v10  ;;  %v1008_v15 = vadd.f32 %v7270_v41, %v1007_v11  ;;  %v744_v16 = vpop.f32.mrb[51].mxu0  ;;  %v1009_v18 = vpop.f32.mrb[51].mxu1  ;;  %v3624_v11 = vld [vmem:[%s9064_s3 + $0x118] sm:$0xff] }
 0x17d   :  { %v866_v22 = vmax.f32 %v743_v14, 0.0  ;;  %v1131_v23 = vmax.f32 %v1008_v15, 0.0  ;;  %v3641_v14 = vld [vmem:[%s9064_s3 + $0x1a0] sm:$0xff]  ;;  %v3642_v15 = vld [vmem:[%s9064_s3 + $0x1a8] sm:$0xff] }
 0x17e   :  { %v747_v26 = vpop.f32.mrb[52].mxu0  ;;  %v1012_v28 = vpop.f32.mrb[52].mxu1 }
 0x17f   :  { %v1156_v30 = vmax.f32 %v866_v22, %v1131_v23  ;;  %v748_v31 = vadd.f32 %v7270_v41, %v747_v26  ;;  %v1013_v32 = vadd.f32 %v7270_v41, %v1012_v28  ;;  %v749_v36 = vpop.f32.mrb[53].mxu0  ;;  %v1014_v37 = vpop.f32.mrb[53].mxu1  ;;  %v5640_v26 = vpack.c.bf16 %v3624_v11, %v3623_v4  ;;  %v3646_v4 = vld [vmem:[%s9064_s3 + $0x1c8] sm:$0xff] }
 0x180   :  { %v5667_v28 = vpack.c.bf16 %v3642_v15, %v3641_v14  ;;  %v3626_v37 = vld [vmem:[%s9064_s3 + $0x128] sm:$0xff] }
 0x181   :  { %v1181_v43 = vmax.f32 %v7274_v58, %v1156_v30  ;;  %v867_v38 = vmax.f32 %v748_v31, 0.0  ;;  %v1132_v46 = vmax.f32 %v1013_v32, 0.0  ;;  %v3625_v30 = vld [vmem:[%s9064_s3 + $0x120] sm:$0xff] }
 0x182   :  { %v752_v55 = vpop.f32.mrb[54].mxu0  ;;  %v1017_v47 = vpop.f32.mrb[54].mxu1 }
 0x183   :  { %v1157_v56 = vmax.f32 %v867_v38, %v1132_v46  ;;  %v753_v50 = vadd.f32 %v7270_v41, %v752_v55  ;;  %v1018_v58 = vadd.f32 %v7270_v41, %v1017_v47  ;;  %4519 = vmatmul.mubr.f32.vlgmr.msra.gmra.mrb[100].mxu1 %v1181_v43  ;;  %v754_v59 = vpop.f32.mrb[55].mxu0  ;;  %v1019_v63 = vpop.f32.mrb[55].mxu1  ;;  %v5643_v47 = vpack.c.bf16 %v3626_v37, %v3625_v30  ;;  %v3647_v30 = vld [vmem:[%s9064_s3 + $0x1d0] sm:$0xff] }
 0x184   :  { %5662 = vmatpush3.bf16.msra.mxu1 %v5661_v35  ;;  %4588 = vmatprep.mubr.msk.f32.mxu1 %vm6241_vm0, %v6242_v48  ;;  %v3643_v35 = vld [vmem:[%s9064_s3 + $0x1b0] sm:$0xff] }
 0x185   :  { %v1182_v5 = vmax.f32 %v7278_v3, %v1157_v56  ;;  %v868_v8 = vmax.f32 %v753_v50, 0.0  ;;  %v1133_v10 = vmax.f32 %v1018_v58, 0.0  ;;  %5663 = vmatprep.subr.bf16.mxu1 %v6240_v0  ;;  %v5670_v56 = vpack.c.bf16 %v3644_v42, %v3643_v35  ;;  %v3627_v50 = vld [vmem:[%s9064_s3 + $0x130] sm:$0xff] }
 0x186   :  { %v757_v16 = vpop.f32.mrb[56].mxu0  ;;  %v1022_v18 = vpop.f32.mrb[56].mxu1 }
 0x187   :  { %v7413_v22 = vmax.f32 %v868_v8, %v1133_v10  ;;  %v758_v3 = vadd.f32 %v7270_v41, %v757_v16  ;;  %v1023_v23 = vadd.f32 %v7270_v41, %v1022_v18  ;;  %4484 = vmatmul.mubr.f32.vlgmr.msra.gmra.mrb[100].mxu0 %v1182_v5  ;;  %v759_v24 = vpop.f32.mrb[57].mxu0  ;;  %v1024_v25 = vpop.f32.mrb[57].mxu1 }
 0x188   :  { %5638 = vmatpush3.bf16.msra.mxu0 %v5637_v1  ;;  %5665 = vmatpush3.bf16.msra.mxu1 %v5664_v2  ;;  %v3628_v1 = vld [vmem:[%s9064_s3 + $0x138] sm:$0xff]  ;;  %v3645_v2 = vld [vmem:[%s9064_s3 + $0x1c0] sm:$0xff] }
 0x189   :  { %v1183_v31 = vmax.f32 %v7282_v12, %v7413_v22  ;;  %v869_v32 = vmax.f32 %v758_v3, 0.0  ;;  %v1134_v36 = vmax.f32 %v1023_v23, 0.0  ;;  %5639 = vmatprep.subr.bf16.mxu0 %v6240_v0  ;;  %5666 = vmatprep.subr.bf16.mxu1 %v6240_v0  ;;  %v5646_v18 = vpack.c.bf16 %v3628_v1, %v3627_v50  ;;  %v3629_v23 = vld [vmem:[%s9064_s3 + $0x140] sm:$0xff]  ;;  %v3650_v1 = vld [vmem:[%s9064_s3 + $0x1e8] sm:$0xff]  ;;  %v3675_v22 = vld [vmem:[%s9064_s3 + $0x2b0] sm:$0xff] }
 0x18a   :  { %v762_v43 = vpop.f32.mrb[58].mxu0  ;;  %v1027_v38 = vpop.f32.mrb[58].mxu1  ;;  %4553 = vmatprep.mubr.msk.f32.mxu0 %vm6241_vm0, %v6242_v48  ;;  %v5673_v3 = vpack.c.bf16 %v3646_v4, %v3645_v2  ;;  %v3658_v12 = vld [vmem:[%s9064_s3 + $0x228] sm:$0xff] }
 0x18b   :  { %v7435_v46 = vmax.f32 %v869_v32, %v1134_v36  ;;  %v763_v51 = vadd.f32 %v7270_v41, %v762_v43  ;;  %v1028_v53 = vadd.f32 %v7270_v41, %v1027_v38  ;;  %v764_v54 = vpop.f32.mrb[59].mxu0  ;;  %v1029_v55 = vpop.f32.mrb[59].mxu1  ;;  %v3648_v32 = vld [vmem:[%s9064_s3 + $0x1d8] sm:$0xff] }
 0x18c   :  { %5641 = vmatpush3.bf16.msra.mxu0 %v5640_v26  ;;  %5668 = vmatpush3.bf16.msra.mxu1 %v5667_v28  ;;  %v3630_v28 = vld [vmem:[%s9064_s3 + $0x148] sm:$0xff]  ;;  %v5676_v54 = vpack.c.bf16 %v3648_v32, %v3647_v30  ;;  %v3631_v55 = vld [vmem:[%s9064_s3 + $0x150] sm:$0xff]  ;;  %v3652_v32 = vld [vmem:[%s9064_s3 + $0x1f8] sm:$0xff] }
 0x18d   :  { %v1184_v58 = vmax.f32 %v7286_v21, %v7435_v46  ;;  %v870_v59 = vmax.f32 %v763_v51, 0.0  ;;  %v1135_v63 = vmax.f32 %v1028_v53, 0.0  ;;  %5642 = vmatprep.subr.bf16.mxu0 %v6240_v0  ;;  %5669 = vmatprep.subr.bf16.mxu1 %v6240_v0  ;;  %v5649_v53 = vpack.c.bf16 %v3630_v28, %v3629_v23  ;;  %v3634_v28 = vld [vmem:[%s9064_s3 + $0x168] sm:$0xff]  ;;  %v3651_v30 = vld [vmem:[%s9064_s3 + $0x1f0] sm:$0xff]  ;;  %v3656_v21 = vld [vmem:[%s9064_s3 + $0x218] sm:$0xff] }
 0x18e   :  { %v767_v5 = vpop.f32.mrb[60].mxu0  ;;  %v1032_v8 = vpop.f32.mrb[60].mxu1  ;;  %v3673_v46 = vld [vmem:[%s9064_s3 + $0x2a0] sm:$0xff] }
 0x18f   :  { %v7455_v10 = vmax.f32 %v870_v59, %v1135_v63  ;;  %v768_v11 = vadd.f32 %v7270_v41, %v767_v5  ;;  %v1033_v14 = vadd.f32 %v7270_v41, %v1032_v8  ;;  %v769_v15 = vpop.f32.mrb[61].mxu0  ;;  %v1034_v16 = vpop.f32.mrb[61].mxu1  ;;  %v3632_v59 = vld [vmem:[%s9064_s3 + $0x158] sm:$0xff]  ;;  %v3649_v63 = vld [vmem:[%s9064_s3 + $0x1e0] sm:$0xff] }
 0x190   :  { %5644 = vmatpush3.bf16.msra.mxu0 %v5643_v47  ;;  %5671 = vmatpush3.bf16.msra.mxu1 %v5670_v56  ;;  %v5652_v16 = vpack.c.bf16 %v3632_v59, %v3631_v55  ;;  %v5682_v55 = vpack.c.bf16 %v3652_v32, %v3651_v30 }
 0x191   :  { %v1185_v24 = vmax.f32 %v7290_v29, %v7455_v10  ;;  %v871_v25 = vmax.f32 %v768_v11, 0.0  ;;  %v1136_v26 = vmax.f32 %v1033_v14, 0.0  ;;  %5645 = vmatprep.subr.bf16.mxu0 %v6240_v0  ;;  %5672 = vmatprep.subr.bf16.mxu1 %v6240_v0  ;;  %v3690_v29 = vld [vmem:[%s9064_s3 + $0x328] sm:$0xff]  ;;  %v3707_v10 = vld [vmem:[%s9064_s3 + $0x3b0] sm:$0xff] }
 0x192   :  { %v772_v36 = vpop.f32.mrb[62].mxu0  ;;  %v1037_v37 = vpop.f32.mrb[62].mxu1 }
 0x193   :  { %v7475_v35 = vmax.f32 %v871_v25, %v1136_v26  ;;  %v773_v42 = vadd.f32 %v7270_v41, %v772_v36  ;;  %v1038_v43 = vadd.f32 %v7270_v41, %v1037_v37  ;;  %v774_v38 = vpop.f32.mrb[63].mxu0  ;;  %v1039_v51 = vpop.f32.mrb[63].mxu1 }
 0x194   :  { %5647 = vmatpush3.bf16.msra.mxu0 %v5646_v18  ;;  %5674 = vmatpush3.bf16.msra.mxu1 %v5673_v3  ;;  %v5679_v18 = vpack.c.bf16 %v3650_v1, %v3649_v63  ;;  %v3633_v3 = vld [vmem:[%s9064_s3 + $0x160] sm:$0xff]  ;;  %v3636_v1 = vld [vmem:[%s9064_s3 + $0x178] sm:$0xff] }
 0x195   :  { %v1186_v47 = vmax.f32 %v7294_v40, %v7475_v35  ;;  %v872_v56 = vmax.f32 %v773_v42, 0.0  ;;  %v1137_v50 = vmax.f32 %v1038_v43, 0.0  ;;  %5648 = vmatprep.subr.bf16.mxu0 %v6240_v0  ;;  %5675 = vmatprep.subr.bf16.mxu1 %v6240_v0  ;;  %v3688_v40 = vld [vmem:[%s9064_s3 + $0x318] sm:$0xff]  ;;  %v3705_v35 = vld [vmem:[%s9064_s3 + $0x3a0] sm:$0xff] }
 0x196   :  { %v777_v2 = vpop.f32.mrb[64].mxu0  ;;  %v1042_v4 = vpop.f32.mrb[64].mxu1 }
 0x197   :  { %v7495_v5 = vmax.f32 %v872_v56, %v1137_v50  ;;  %v778_v8 = vadd.f32 %v7270_v41, %v777_v2  ;;  %v1043_v11 = vadd.f32 %v7270_v41, %v1042_v4  ;;  %v779_v14 = vpop.f32.mrb[65].mxu0  ;;  %v1044_v15 = vpop.f32.mrb[65].mxu1  ;;  %v3635_v56 = vld [vmem:[%s9064_s3 + $0x170] sm:$0xff]  ;;  %v3669_v2 = vld [vmem:[%s9064_s3 + $0x280] sm:$0xff]  ;;  %v3670_v4 = vld [vmem:[%s9064_s3 + $0x288] sm:$0xff] }
 0x198   :  { %5650 = vmatpush3.bf16.msra.mxu0 %v5649_v53  ;;  %5677 = vmatpush3.bf16.msra.mxu1 %v5676_v54  ;;  %v5655_v54 = vpack.c.bf16 %v3634_v28, %v3633_v3  ;;  %v3653_v28 = vld [vmem:[%s9064_s3 + $0x200] sm:$0xff] }
 0x199   :  { %v1187_v23 = vmax.f32 %v7298_v44, %v7495_v5  ;;  %v873_v25 = vmax.f32 %v778_v8, 0.0  ;;  %v1138_v26 = vmax.f32 %v1043_v11, 0.0  ;;  %5651 = vmatprep.subr.bf16.mxu0 %v6240_v0  ;;  %5678 = vmatprep.subr.bf16.mxu1 %v6240_v0  ;;  %v3739_v44 = vld [vmem:[%s9064_s3 + $0x4b0] sm:$0xff]  ;;  %v3740_v5 = vld [vmem:[%s9064_s3 + $0x4b8] sm:$0xff] }
 0x19a   :  { %v782_v36 = vpop.f32.mrb[66].mxu0  ;;  %v1047_v37 = vpop.f32.mrb[66].mxu1 }
 0x19b   :  { %v7515_v42 = vmax.f32 %v873_v25, %v1138_v26  ;;  %v783_v43 = vadd.f32 %v7270_v41, %v782_v36  ;;  %v1048_v38 = vadd.f32 %v7270_v41, %v1047_v37  ;;  %v784_v51 = vpop.f32.mrb[67].mxu0  ;;  %v1049_v53 = vpop.f32.mrb[67].mxu1  ;;  %v5658_v25 = vpack.c.bf16 %v3636_v1, %v3635_v56  ;;  %v3654_v37 = vld [vmem:[%s9064_s3 + $0x208] sm:$0xff] }
 0x19c   :  { %5653 = vmatpush3.bf16.msra.mxu0 %v5652_v16  ;;  %5680 = vmatpush3.bf16.msra.mxu1 %v5679_v18  ;;  %v5709_v26 = vpack.c.bf16 %v3670_v4, %v3669_v2  ;;  %v5685_v1 = vpack.c.bf16 %v3654_v37, %v3653_v28  ;;  %v3655_v4 = vld [vmem:[%s9064_s3 + $0x210] sm:$0xff] }
 0x19d   :  { %v1188_v50 = vmax.f32 %v7302_v60, %v7515_v42  ;;  %v874_v59 = vmax.f32 %v783_v43, 0.0  ;;  %v1139_v63 = vmax.f32 %v1048_v38, 0.0  ;;  %5654 = vmatprep.subr.bf16.mxu0 %v6240_v0  ;;  %5681 = vmatprep.subr.bf16.mxu1 %v6240_v0  ;;  %v3671_v43 = vld [vmem:[%s9064_s3 + $0x290] sm:$0xff]  ;;  %v3672_v38 = vld [vmem:[%s9064_s3 + $0x298] sm:$0xff]  ;;  %v3737_v60 = vld [vmem:[%s9064_s3 + $0x4a0] sm:$0xff] }
 0x19e   :  { %v787_v8 = vpop.f32.mrb[68].mxu0  ;;  %v1052_v11 = vpop.f32.mrb[68].mxu1  ;;  %v5712_v2 = vpack.c.bf16 %v3672_v38, %v3671_v43  ;;  %v3657_v43 = vld [vmem:[%s9064_s3 + $0x220] sm:$0xff]  ;;  %v3738_v42 = vld [vmem:[%s9064_s3 + $0x4a8] sm:$0xff] }
 0x19f   :  { %v7535_v14 = vmax.f32 %v874_v59, %v1139_v63  ;;  %v788_v15 = vadd.f32 %v7270_v41, %v787_v8  ;;  %v1053_v16 = vadd.f32 %v7270_v41, %v1052_v11  ;;  %v789_v18 = vpop.f32.mrb[69].mxu0  ;;  %v1054_v3 = vpop.f32.mrb[69].mxu1 }
 0x1a0   :  { %5656 = vmatpush3.bf16.msra.mxu0 %v5655_v54  ;;  %5683 = vmatpush3.bf16.msra.mxu1 %v5682_v55 }
 0x1a1   :  { %v1189_v30 = vmax.f32 %v7306_v7, %v7535_v14  ;;  %v875_v32 = vmax.f32 %v788_v15, 0.0  ;;  %v1140_v36 = vmax.f32 %v1053_v16, 0.0  ;;  %5657 = vmatprep.subr.bf16.mxu0 %v6240_v0  ;;  %5708 = vmatprep.subr.bf16.mxu1 %v6240_v0  ;;  %v3771_v7 = vld [vmem:[%s9064_s3 + $0x5b0] sm:$0xff]  ;;  %v3772_v14 = vld [vmem:[%s9064_s3 + $0x5b8] sm:$0xff] }
 0x1a2   :  { %v792_v51 = vpop.f32.mrb[70].mxu0  ;;  %v1057_v53 = vpop.f32.mrb[70].mxu1 }
 0x1a3   :  { %v7555_v54 = vmax.f32 %v875_v32, %v1140_v36  ;;  %v793_v55 = vadd.f32 %v7270_v41, %v792_v51  ;;  %v1058_v56 = vadd.f32 %v7270_v41, %v1057_v53  ;;  %4589 = vmatmul.mubr.f32.vlgmr.msra.gmra.mrb[102].mxu1 %v1184_v58  ;;  %v794_v59 = vpop.f32.mrb[71].mxu0  ;;  %v1059_v63 = vpop.f32.mrb[71].mxu1  ;;  %v3674_v58 = vld [vmem:[%s9064_s3 + $0x2a8] sm:$0xff]  ;;  %v5688_v36 = vpack.c.bf16 %v3656_v21, %v3655_v4  ;;  %v3659_v21 = vld [vmem:[%s9064_s3 + $0x230] sm:$0xff] }
 0x1a4   :  { %5659 = vmatpush3.bf16.msra.mxu0 %v5658_v25  ;;  %5710 = vmatpush3.bf16.msra.mxu1 %v5709_v26  ;;  %v5715_v37 = vpack.c.bf16 %v3674_v58, %v3673_v46 }
 0x1a5   :  { %v1190_v8 = vmax.f32 %v7310_v17, %v7555_v54  ;;  %v876_v11 = vmax.f32 %v793_v55, 0.0  ;;  %v1141_v15 = vmax.f32 %v1058_v56, 0.0  ;;  %5684 = vmatprep.subr.bf16.mxu0 %v6240_v0  ;;  %5711 = vmatprep.subr.bf16.mxu1 %v6240_v0  ;;  %v3769_v17 = vld [vmem:[%s9064_s3 + $0x5a0] sm:$0xff]  ;;  %v3770_v54 = vld [vmem:[%s9064_s3 + $0x5a8] sm:$0xff] }
 0x1a6   :  { %v797_v16 = vpop.f32.mrb[72].mxu0  ;;  %v1062_v18 = vpop.f32.mrb[72].mxu1  ;;  %4658 = vmatprep.mubr.msk.f32.mxu1 %vm6241_vm0, %v6242_v48 }
 0x1a7   :  { %v7580_v3 = vmax.f32 %v876_v11, %v1141_v15  ;;  %v798_v25 = vadd.f32 %v7270_v41, %v797_v16  ;;  %v1063_v26 = vadd.f32 %v7270_v41, %v1062_v18  ;;  %4554 = vmatmul.mubr.f32.vlgmr.msra.gmra.mrb[102].mxu0 %v1183_v31  ;;  %v799_v28 = vpop.f32.mrb[73].mxu0  ;;  %v1064_v32 = vpop.f32.mrb[73].mxu1  ;;  %v3676_v31 = vld [vmem:[%s9064_s3 + $0x2b8] sm:$0xff]  ;;  %v5691_v11 = vpack.c.bf16 %v3658_v12, %v3657_v43 }
 0x1a8   :  { %5686 = vmatpush3.bf16.msra.mxu0 %v5685_v1  ;;  %5713 = vmatpush3.bf16.msra.mxu1 %v5712_v2  ;;  %v5718_v15 = vpack.c.bf16 %v3676_v31, %v3675_v22  ;;  %v3660_v18 = vld [vmem:[%s9064_s3 + $0x238] sm:$0xff]  ;;  %v3661_v31 = vld [vmem:[%s9064_s3 + $0x240] sm:$0xff] }
 0x1a9   :  { %v877_v51 = vmax.f32 %v798_v25, 0.0  ;;  %v1142_v53 = vmax.f32 %v1063_v26, 0.0  ;;  %5687 = vmatprep.subr.bf16.mxu0 %v6240_v0  ;;  %5714 = vmatprep.subr.bf16.mxu1 %v6240_v0  ;;  %v3677_v25 = vld [vmem:[%s9064_s3 + $0x2c0] sm:$0xff]  ;;  %v3678_v26 = vld [vmem:[%s9064_s3 + $0x2c8] sm:$0xff]  ;;  %v5694_v12 = vpack.c.bf16 %v3660_v18, %v3659_v21 }
 0x1aa   :  { %v802_v55 = vpop.f32.mrb[74].mxu0  ;;  %v1067_v56 = vpop.f32.mrb[74].mxu1  ;;  %4623 = vmatprep.mubr.msk.f32.mxu0 %vm6241_vm0, %v6242_v48  ;;  %v5721_v22 = vpack.c.bf16 %v3678_v26, %v3677_v25 }
 0x1ab   :  { %v7605_v59 = vmax.f32 %v877_v51, %v1142_v53  ;;  %v803_v63 = vadd.f32 %v7270_v41, %v802_v55  ;;  %v1068_v1 = vadd.f32 %v7270_v41, %v1067_v56  ;;  %v804_v2 = vpop.f32.mrb[75].mxu0  ;;  %v1069_v4 = vpop.f32.mrb[75].mxu1 }
 0x1ac   :  { %5689 = vmatpush3.bf16.msra.mxu0 %v5688_v36  ;;  %5716 = vmatpush3.bf16.msra.mxu1 %v5715_v37  ;;  %v3679_v2 = vld [vmem:[%s9064_s3 + $0x2d0] sm:$0xff]  ;;  %v3680_v4 = vld [vmem:[%s9064_s3 + $0x2d8] sm:$0xff] }
 0x1ad   :  { %v1192_v46 = vmax.f32 %v7318_v39, %v7605_v59  ;;  %v878_v58 = vmax.f32 %v803_v63, 0.0  ;;  %v1143_v16 = vmax.f32 %v1068_v1, 0.0  ;;  %5690 = vmatprep.subr.bf16.mxu0 %v6240_v0  ;;  %5717 = vmatprep.subr.bf16.mxu1 %v6240_v0  ;;  %v3662_v1 = vld [vmem:[%s9064_s3 + $0x248] sm:$0xff]  ;;  %v3801_v39 = vld [vmem:[%s9064_s3 + $0x6a0] sm:$0xff] }
 0x1ae   :  { %v807_v28 = vpop.f32.mrb[76].mxu0  ;;  %v1072_v32 = vpop.f32.mrb[76].mxu1  ;;  %v5697_v26 = vpack.c.bf16 %v3662_v1, %v3661_v31  ;;  %v3802_v59 = vld [vmem:[%s9064_s3 + $0x6a8] sm:$0xff] }
 0x1af   :  { %v7625_v36 = vmax.f32 %v878_v58, %v1143_v16  ;;  %v808_v37 = vadd.f32 %v7270_v41, %v807_v28  ;;  %v1073_v43 = vadd.f32 %v7270_v41, %v1072_v32  ;;  %v809_v51 = vpop.f32.mrb[77].mxu0  ;;  %v1074_v53 = vpop.f32.mrb[77].mxu1  ;;  %v5724_v28 = vpack.c.bf16 %v3680_v4, %v3679_v2  ;;  %v3663_v32 = vld [vmem:[%s9064_s3 + $0x250] sm:$0xff] }
 0x1b0   :  { %5692 = vmatpush3.bf16.msra.mxu0 %v5691_v11  ;;  %5719 = vmatpush3.bf16.msra.mxu1 %v5718_v15  ;;  %v3681_v53 = vld [vmem:[%s9064_s3 + $0x2e0] sm:$0xff] }
 0x1b1   :  { %v879_v56 = vmax.f32 %v808_v37, 0.0  ;;  %v1144_v63 = vmax.f32 %v1073_v43, 0.0  ;;  %5693 = vmatprep.subr.bf16.mxu0 %v6240_v0  ;;  %5720 = vmatprep.subr.bf16.mxu1 %v6240_v0 }
 0x1b2   :  { %v812_v11 = vpop.f32.mrb[78].mxu0  ;;  %v1077_v15 = vpop.f32.mrb[78].mxu1 }
 0x1b3   :  { %v7645_v21 = vmax.f32 %v879_v56, %v1144_v63  ;;  %v813_v58 = vadd.f32 %v7270_v41, %v812_v11  ;;  %v1078_v16 = vadd.f32 %v7270_v41, %v1077_v15  ;;  %v814_v18 = vpop.f32.mrb[79].mxu0  ;;  %v1079_v25 = vpop.f32.mrb[79].mxu1  ;;  %v3664_v41 = vld [vmem:[%s9064_s3 + $0x258] sm:$0xff]  ;;  %v7670_v63 = vld [vmem:[%s9065_s2] ss:$0 sm:$0xff] }
 0x1b4   :  { %5695 = vmatpush3.bf16.msra.mxu0 %v5694_v12  ;;  %5722 = vmatpush3.bf16.msra.mxu1 %v5721_v22  ;;  %v3682_v12 = vld [vmem:[%s9064_s3 + $0x2e8] sm:$0xff]  ;;  %v5700_v15 = vpack.c.bf16 %v3664_v41, %v3663_v32  ;;  %v3684_v32 = vld [vmem:[%s9064_s3 + $0x2f8] sm:$0xff] }
 0x1b5   :  { %v880_v43 = vmax.f32 %v813_v58, 0.0  ;;  %v1145_v51 = vmax.f32 %v1078_v16, 0.0  ;;  %5696 = vmatprep.subr.bf16.mxu0 %v6240_v0  ;;  %5723 = vmatprep.subr.bf16.mxu1 %v6240_v0  ;;  %v5727_v58 = vpack.c.bf16 %v3682_v12, %v3681_v53  ;;  %v3665_v16 = vld [vmem:[%s9064_s3 + $0x260] sm:$0xff] }
 0x1b6   :  { %v817_v22 = vpop.f32.mrb[80].mxu0  ;;  %v1082_v31 = vpop.f32.mrb[80].mxu1 }
 0x1b7   :  { %v7665_v56 = vmax.f32 %v880_v43, %v1145_v51  ;;  %v818_v1 = vadd.f32 %v7670_v63, %v817_v22  ;;  %v1083_v2 = vadd.f32 %v7670_v63, %v1082_v31  ;;  %v819_v4 = vpop.f32.mrb[81].mxu0  ;;  %v1084_v11 = vpop.f32.mrb[81].mxu1 }
 0x1b8   :  { %5698 = vmatpush3.bf16.msra.mxu0 %v5697_v26  ;;  %5725 = vmatpush3.bf16.msra.mxu1 %v5724_v28  ;;  %v3666_v26 = vld [vmem:[%s9064_s3 + $0x268] sm:$0xff]  ;;  %v3683_v28 = vld [vmem:[%s9064_s3 + $0x2f0] sm:$0xff] }
 0x1b9   :  { %v881_v25 = vmax.f32 %v818_v1, 0.0  ;;  %v1146_v43 = vmax.f32 %v1083_v2, 0.0  ;;  %5699 = vmatprep.subr.bf16.mxu0 %v6240_v0  ;;  %5726 = vmatprep.subr.bf16.mxu1 %v6240_v0  ;;  %v5703_v2 = vpack.c.bf16 %v3666_v26, %v3665_v16  ;;  %v5730_v4 = vpack.c.bf16 %v3684_v32, %v3683_v28  ;;  %v3667_v11 = vld [vmem:[%s9064_s3 + $0x270] sm:$0xff]  ;;  %v3702_v16 = vld [vmem:[%s9064_s3 + $0x388] sm:$0xff] }
 0x1ba   :  { %v822_v51 = vpop.f32.mrb[82].mxu0  ;;  %v1087_v41 = vpop.f32.mrb[82].mxu1 }
 0x1bb   :  { %v7690_v53 = vmax.f32 %v881_v25, %v1146_v43  ;;  %v823_v12 = vadd.f32 %v7670_v63, %v822_v51  ;;  %v1088_v22 = vadd.f32 %v7670_v63, %v1087_v41  ;;  %v824_v31 = vpop.f32.mrb[83].mxu0  ;;  %v1089_v1 = vpop.f32.mrb[83].mxu1 }
 0x1bc   :  { %5701 = vmatpush3.bf16.msra.mxu0 %v5700_v15  ;;  %5728 = vmatpush3.bf16.msra.mxu1 %v5727_v58  ;;  %v3668_v15 = vld [vmem:[%s9064_s3 + $0x278] sm:$0xff]  ;;  %v3701_v58 = vld [vmem:[%s9064_s3 + $0x380] sm:$0xff] }
 0x1bd   :  { %v882_v55 = vmax.f32 %v823_v12, 0.0  ;;  %v1147_v25 = vmax.f32 %v1088_v22, 0.0  ;;  %5702 = vmatprep.subr.bf16.mxu0 %v6240_v0  ;;  %5729 = vmatprep.subr.bf16.mxu1 %v6240_v0  ;;  %v5706_v22 = vpack.c.bf16 %v3668_v15, %v3667_v11  ;;  %v5757_v31 = vpack.c.bf16 %v3702_v16, %v3701_v58  ;;  %v3685_v1 = vld [vmem:[%s9064_s3 + $0x300] sm:$0xff]  ;;  %v3704_v11 = vld [vmem:[%s9064_s3 + $0x398] sm:$0xff] }
 0x1be   :  { %v827_v43 = vpop.f32.mrb[84].mxu0  ;;  %v1092_v26 = vpop.f32.mrb[84].mxu1 }
 0x1bf   :  { %v7710_v28 = vmax.f32 %v882_v55, %v1147_v25  ;;  %v828_v32 = vadd.f32 %v7670_v63, %v827_v43  ;;  %v1093_v51 = vadd.f32 %v7670_v63, %v1092_v26  ;;  %v829_v41 = vpop.f32.mrb[85].mxu0  ;;  %v1094_v12 = vpop.f32.mrb[85].mxu1 }
 0x1c0   :  { %5704 = vmatpush3.bf16.msra.mxu0 %v5703_v2  ;;  %5731 = vmatpush3.bf16.msra.mxu1 %v5730_v4  ;;  %v3686_v2 = vld [vmem:[%s9064_s3 + $0x308] sm:$0xff]  ;;  %v3703_v4 = vld [vmem:[%s9064_s3 + $0x390] sm:$0xff] }
 0x1c1   :  { %v883_v37 = vmax.f32 %v828_v32, 0.0  ;;  %v1148_v55 = vmax.f32 %v1093_v51, 0.0  ;;  %5705 = vmatprep.subr.bf16.mxu0 %v6240_v0  ;;  %5756 = vmatprep.subr.bf16.mxu1 %v6240_v0  ;;  %v5733_v51 = vpack.c.bf16 %v3686_v2, %v3685_v1  ;;  %v5760_v41 = vpack.c.bf16 %v3704_v11, %v3703_v4  ;;  %v3687_v12 = vld [vmem:[%s9064_s3 + $0x310] sm:$0xff] }
 0x1c2   :  { %v832_v25 = vpop.f32.mrb[86].mxu0  ;;  %v1097_v15 = vpop.f32.mrb[86].mxu1 }
 0x1c3   :  { %v7730_v58 = vmax.f32 %v883_v37, %v1148_v55  ;;  %v833_v16 = vadd.f32 %v7670_v63, %v832_v25  ;;  %v1098_v43 = vadd.f32 %v7670_v63, %v1097_v15  ;;  %4659 = vmatmul.mubr.f32.vlgmr.msra.gmra.mrb[104].mxu1 %v1186_v47  ;;  %v834_v26 = vpop.f32.mrb[87].mxu0  ;;  %v1099_v32 = vpop.f32.mrb[87].mxu1  ;;  %v3706_v47 = vld [vmem:[%s9064_s3 + $0x3a8] sm:$0xff] }
 0x1c4   :  { %5707 = vmatpush3.bf16.msra.mxu0 %v5706_v22  ;;  %5758 = vmatpush3.bf16.msra.mxu1 %v5757_v31  ;;  %v3689_v26 = vld [vmem:[%s9064_s3 + $0x320] sm:$0xff] }
 0x1c5   :  { %v884_v55 = vmax.f32 %v833_v16, 0.0  ;;  %v1149_v25 = vmax.f32 %v1098_v43, 0.0  ;;  %5732 = vmatprep.subr.bf16.mxu0 %v6240_v0  ;;  %5759 = vmatprep.subr.bf16.mxu1 %v6240_v0  ;;  %v5736_v16 = vpack.c.bf16 %v3688_v40, %v3687_v12  ;;  %v5763_v43 = vpack.c.bf16 %v3706_v47, %v3705_v35 }
 0x1c6   :  { %v837_v22 = vpop.f32.mrb[88].mxu0  ;;  %v1102_v31 = vpop.f32.mrb[88].mxu1  ;;  %4728 = vmatprep.mubr.msk.f32.mxu1 %vm6241_vm0, %v6242_v48 }
 0x1c7   :  { %v7755_v1 = vmax.f32 %v884_v55, %v1149_v25  ;;  %v838_v2 = vadd.f32 %v7670_v63, %v837_v22  ;;  %v1103_v4 = vadd.f32 %v7670_v63, %v1102_v31  ;;  %4624 = vmatmul.mubr.f32.vlgmr.msra.gmra.mrb[104].mxu0 %v1185_v24  ;;  %v839_v11 = vpop.f32.mrb[89].mxu0  ;;  %v1104_v15 = vpop.f32.mrb[89].mxu1  ;;  %v3708_v24 = vld [vmem:[%s9064_s3 + $0x3b8] sm:$0xff]  ;;  %v5739_v31 = vpack.c.bf16 %v3690_v29, %v3689_v26  ;;  %v3710_v26 = vld [vmem:[%s9064_s3 + $0x3c8] sm:$0xff] }
 0x1c8   :  { %5734 = vmatpush3.bf16.msra.mxu0 %v5733_v51  ;;  %5761 = vmatpush3.bf16.msra.mxu1 %v5760_v41 }
 0x1c9   :  { %v885_v55 = vmax.f32 %v838_v2, 0.0  ;;  %v1150_v25 = vmax.f32 %v1103_v4, 0.0  ;;  %5735 = vmatprep.subr.bf16.mxu0 %v6240_v0  ;;  %5762 = vmatprep.subr.bf16.mxu1 %v6240_v0  ;;  %v5766_v2 = vpack.c.bf16 %v3708_v24, %v3707_v10  ;;  %v3691_v4 = vld [vmem:[%s9064_s3 + $0x330] sm:$0xff] }
 0x1ca   :  { %v842_v51 = vpop.f32.mrb[90].mxu0  ;;  %v1107_v41 = vpop.f32.mrb[90].mxu1  ;;  %4693 = vmatprep.mubr.msk.f32.mxu0 %vm6241_vm0, %v6242_v48 }
 0x1cb   :  { %v7780_v12 = vmax.f32 %v885_v55, %v1150_v25  ;;  %v843_v40 = vadd.f32 %v7670_v63, %v842_v51  ;;  %v1108_v35 = vadd.f32 %v7670_v63, %v1107_v41  ;;  %v844_v47 = vpop.f32.mrb[91].mxu0  ;;  %v1109_v22 = vpop.f32.mrb[91].mxu1 }
 0x1cc   :  { %5737 = vmatpush3.bf16.msra.mxu0 %v5736_v16  ;;  %5764 = vmatpush3.bf16.msra.mxu1 %v5763_v43  ;;  %v3692_v16 = vld [vmem:[%s9064_s3 + $0x338] sm:$0xff]  ;;  %v3709_v43 = vld [vmem:[%s9064_s3 + $0x3c0] sm:$0xff] }
 0x1cd   :  { %v886_v15 = vmax.f32 %v843_v40, 0.0  ;;  %v1151_v55 = vmax.f32 %v1108_v35, 0.0  ;;  %5738 = vmatprep.subr.bf16.mxu0 %v6240_v0  ;;  %5765 = vmatprep.subr.bf16.mxu1 %v6240_v0  ;;  %v5742_v35 = vpack.c.bf16 %v3692_v16, %v3691_v4  ;;  %v5769_v47 = vpack.c.bf16 %v3710_v26, %v3709_v43  ;;  %v3693_v22 = vld [vmem:[%s9064_s3 + $0x340] sm:$0xff]  ;;  %v3712_v4 = vld [vmem:[%s9064_s3 + $0x3d8] sm:$0xff] }
 0x1ce   :  { %v847_v25 = vpop.f32.mrb[92].mxu0  ;;  %v1112_v29 = vpop.f32.mrb[92].mxu1 }
 0x1cf   :  { %v7800_v10 = vmax.f32 %v886_v15, %v1151_v55  ;;  %v848_v24 = vadd.f32 %v7670_v63, %v847_v25  ;;  %v1113_v51 = vadd.f32 %v7670_v63, %v1112_v29  ;;  %v849_v41 = vpop.f32.mrb[93].mxu0  ;;  %v1114_v40 = vpop.f32.mrb[93].mxu1 }
 0x1d0   :  { %5740 = vmatpush3.bf16.msra.mxu0 %v5739_v31  ;;  %5767 = vmatpush3.bf16.msra.mxu1 %v5766_v2  ;;  %v3694_v31 = vld [vmem:[%s9064_s3 + $0x348] sm:$0xff]  ;;  %v3711_v2 = vld [vmem:[%s9064_s3 + $0x3d0] sm:$0xff] }
 0x1d1   :  { %v887_v11 = vmax.f32 %v848_v24, 0.0  ;;  %v1152_v15 = vmax.f32 %v1113_v51, 0.0  ;;  %5741 = vmatprep.subr.bf16.mxu0 %v6240_v0  ;;  %5768 = vmatprep.subr.bf16.mxu1 %v6240_v0  ;;  %v5745_v51 = vpack.c.bf16 %v3694_v31, %v3693_v22  ;;  %v5772_v41 = vpack.c.bf16 %v3712_v4, %v3711_v2  ;;  %v3695_v40 = vld [vmem:[%s9064_s3 + $0x350] sm:$0xff]  ;;  %v3714_v22 = vld [vmem:[%s9064_s3 + $0x3e8] sm:$0xff] }
 0x1d2   :  { %v852_v55 = vpop.f32.mrb[94].mxu0  ;;  %v1117_v16 = vpop.f32.mrb[94].mxu1 }
 0x1d3   :  { %v7820_v43 = vmax.f32 %v887_v11, %v1152_v15  ;;  %v853_v26 = vadd.f32 %v7670_v63, %v852_v55  ;;  %v1118_v25 = vadd.f32 %v7670_v63, %v1117_v16  ;;  %v854_v29 = vpop.f32.mrb[95].mxu0  ;;  %v1119_v24 = vpop.f32.mrb[95].mxu1 }
 0x1d4   :  { %5743 = vmatpush3.bf16.msra.mxu0 %v5742_v35  ;;  %5770 = vmatpush3.bf16.msra.mxu1 %v5769_v47  ;;  %v3696_v35 = vld [vmem:[%s9064_s3 + $0x358] sm:$0xff]  ;;  %v3713_v47 = vld [vmem:[%s9064_s3 + $0x3e0] sm:$0xff] }
 0x1d5   :  { %v888_v18 = vmax.f32 %v853_v26, 0.0  ;;  %v1153_v11 = vmax.f32 %v1118_v25, 0.0  ;;  %5744 = vmatprep.subr.bf16.mxu0 %v6240_v0  ;;  %5771 = vmatprep.subr.bf16.mxu1 %v6240_v0  ;;  %v5748_v25 = vpack.c.bf16 %v3696_v35, %v3695_v40  ;;  %v5775_v29 = vpack.c.bf16 %v3714_v22, %v3713_v47  ;;  %v3697_v24 = vld [vmem:[%s9064_s3 + $0x360] sm:$0xff]  ;;  %v3716_v40 = vld [vmem:[%s9064_s3 + $0x3f8] sm:$0xff] }
 0x1d6   :  { %v857_v15 = vpop.f32.mrb[96].mxu0  ;;  %v1122_v31 = vpop.f32.mrb[96].mxu1 }
 0x1d7   :  { %v7840_v2 = vmax.f32 %v888_v18, %v1153_v11  ;;  %v858_v4 = vadd.f32 %v7670_v63, %v857_v15  ;;  %v1123_v55 = vadd.f32 %v7670_v63, %v1122_v31  ;;  %v859_v16 = vpop.f32.mrb[97].mxu0  ;;  %v1124_v26 = vpop.f32.mrb[97].mxu1 }
 0x1d8   :  { %5746 = vmatpush3.bf16.msra.mxu0 %v5745_v51  ;;  %5773 = vmatpush3.bf16.msra.mxu1 %v5772_v41  ;;  %v3698_v51 = vld [vmem:[%s9064_s3 + $0x368] sm:$0xff]  ;;  %v3715_v41 = vld [vmem:[%s9064_s3 + $0x3f0] sm:$0xff] }
 0x1d9   :  { %v889_v37 = vmax.f32 %v858_v4, 0.0  ;;  %v1154_v18 = vmax.f32 %v1123_v55, 0.0  ;;  %5747 = vmatprep.subr.bf16.mxu0 %v6240_v0  ;;  %5774 = vmatprep.subr.bf16.mxu1 %v6240_v0  ;;  %v5751_v55 = vpack.c.bf16 %v3698_v51, %v3697_v24  ;;  %v5778_v16 = vpack.c.bf16 %v3716_v40, %v3715_v41  ;;  %v3699_v26 = vld [vmem:[%s9064_s3 + $0x370] sm:$0xff]  ;;  %v3717_v41 = vld [vmem:[%s9064_s3 + $0x400] sm:$0xff] }
 0x1da   :  { %v862_v11 = vpop.f32.mrb[98].mxu0  ;;  %v1127_v35 = vpop.f32.mrb[98].mxu1 }
 0x1db   :  { %v7860_v47 = vmax.f32 %v889_v37, %v1154_v18  ;;  %v863_v22 = vadd.f32 %v7670_v63, %v862_v11  ;;  %v1128_v15 = vadd.f32 %v7670_v63, %v1127_v35  ;;  %v1129_v31 = vpop.f32.mrb[99].mxu1  ;;  %v864_v4 = vpop.f32.mrb[99].mxu0  ;;  %v3700_v63 = vld [vmem:[%s9064_s3 + $0x378] sm:$0xff]  ;;  %v3735_v11 = vld [vmem:[%s9064_s3 + $0x490] sm:$0xff] }
 0x1dc   :  { %5749 = vmatpush3.bf16.msra.mxu0 %v5748_v25  ;;  %5776 = vmatpush3.bf16.msra.mxu1 %v5775_v29  ;;  %v3733_v25 = vld [vmem:[%s9064_s3 + $0x480] sm:$0xff]  ;;  %v3734_v29 = vld [vmem:[%s9064_s3 + $0x488] sm:$0xff]  ;;  %v5754_v18 = vpack.c.bf16 %v3700_v63, %v3699_v26  ;;  %v3736_v35 = vld [vmem:[%s9064_s3 + $0x498] sm:$0xff] }
 0x1dd   :  { %v1204_v32 = vmax.f32 %v7366_v62, %v7860_v47  ;;  %v890_v38 = vmax.f32 %v863_v22, 0.0  ;;  %v1155_v37 = vmax.f32 %v1128_v15, 0.0  ;;  %5750 = vmatprep.subr.bf16.mxu0 %v6240_v0  ;;  %5777 = vmatprep.subr.bf16.mxu1 %v6240_v0  ;;  %v5805_v51 = vpack.c.bf16 %v3734_v29, %v3733_v25  ;;  %v3719_v31 = vld [vmem:[%s9064_s3 + $0x410] sm:$0xff]  ;;  %v3720_v4 = vld [vmem:[%s9064_s3 + $0x418] sm:$0xff]  ;;  %v3722_v26 = vld [vmem:[%s9064_s3 + $0x428] sm:$0xff] }
 0x1de   :  { %v5808_v15 = vpack.c.bf16 %v3736_v35, %v3735_v11  ;;  %v3723_v63 = vld [vmem:[%s9064_s3 + $0x430] sm:$0xff]  ;;  %v3724_v25 = vld [vmem:[%s9064_s3 + $0x438] sm:$0xff]  ;;  %v3741_v29 = vld [vmem:[%s9064_s3 + $0x4c0] sm:$0xff] }
 0x1df   :  { %v7880_v24 = vmax.f32 %v890_v38, %v1155_v37  ;;  %v3718_v38 = vld [vmem:[%s9064_s3 + $0x408] sm:$0xff]  ;;  %v5814_v37 = vpack.c.bf16 %v3740_v5, %v3739_v44  ;;  %v3743_v35 = vld [vmem:[%s9064_s3 + $0x4d0] sm:$0xff] }
 0x1e0   :  { %5752 = vmatpush3.bf16.msra.mxu0 %v5751_v55  ;;  %5779 = vmatpush3.bf16.msra.mxu1 %v5778_v16  ;;  %v5781_v22 = vpack.c.bf16 %v3718_v38, %v3717_v41  ;;  %v5811_v55 = vpack.c.bf16 %v3738_v42, %v3737_v60  ;;  %v3721_v16 = vld [vmem:[%s9064_s3 + $0x420] sm:$0xff]  ;;  %v3726_v11 = vld [vmem:[%s9064_s3 + $0x448] sm:$0xff]  ;;  %v3728_v60 = vld [vmem:[%s9064_s3 + $0x458] sm:$0xff] }
 0x1e1   :  { %v1205_v40 = vmax.f32 %v7370_v13, %v7880_v24  ;;  %5753 = vmatprep.subr.bf16.mxu0 %v6240_v0  ;;  %5804 = vmatprep.subr.bf16.mxu1 %v6240_v0  ;;  %v3725_v38 = vld [vmem:[%s9064_s3 + $0x440] sm:$0xff]  ;;  %v3730_v44 = vld [vmem:[%s9064_s3 + $0x468] sm:$0xff]  ;;  %v3747_v5 = vld [vmem:[%s9064_s3 + $0x4f0] sm:$0xff] }
 0x1e2   :  { %v3745_v42 = vld [vmem:[%s9064_s3 + $0x4e0] sm:$0xff]  ;;  %v3978_v47 = vld [vmem:[%s9064_s3 + $0xc28] sm:$0xff] }
 0x1e3   :  { %4729 = vmatmul.mubr.f32.vlgmr.msra.gmra.mrb[106].mxu1 %v1188_v50  ;;  %v5784_v50 = vpack.c.bf16 %v3720_v4, %v3719_v31  ;;  %v3727_v4 = vld [vmem:[%s9064_s3 + $0x450] sm:$0xff]  ;;  %v3413_v13 = vld [vmem:[%s9066_s5 + $0x8] sm:$0xff] }
 0x1e4   :  { %5755 = vmatpush3.bf16.msra.mxu0 %v5754_v18  ;;  %5806 = vmatpush3.bf16.msra.mxu1 %v5805_v51  ;;  %v3742_v18 = vld [vmem:[%s9064_s3 + $0x4c8] sm:$0xff]  ;;  %v5790_v51 = vpack.c.bf16 %v3724_v25, %v3723_v63  ;;  %v3731_v25 = vld [vmem:[%s9064_s3 + $0x470] sm:$0xff] }
 0x1e5   :  { %5780 = vmatprep.subr.bf16.mxu0 %v6240_v0  ;;  %5807 = vmatprep.subr.bf16.mxu1 %v6240_v0  ;;  %v5817_v41 = vpack.c.bf16 %v3742_v18, %v3741_v29  ;;  %v3732_v29 = vld [vmem:[%s9064_s3 + $0x478] sm:$0xff]  ;;  %v3765_v18 = vld [vmem:[%s9064_s3 + $0x580] sm:$0xff] }
 0x1e6   :  { %4798 = vmatprep.mubr.msk.f32.mxu1 %vm6241_vm0, %v6242_v48 }
 0x1e7   :  { %4694 = vmatmul.mubr.f32.vlgmr.msra.gmra.mrb[106].mxu0 %v1187_v23  ;;  %v5787_v23 = vpack.c.bf16 %v3722_v26, %v3721_v16  ;;  %v3729_v26 = vld [vmem:[%s9064_s3 + $0x460] sm:$0xff] }
 0x1e8   :  { %5782 = vmatpush3.bf16.msra.mxu0 %v5781_v22  ;;  %5809 = vmatpush3.bf16.msra.mxu1 %v5808_v15  ;;  %v3744_v22 = vld [vmem:[%s9064_s3 + $0x4d8] sm:$0xff]  ;;  %v5793_v15 = vpack.c.bf16 %v3726_v11, %v3725_v38  ;;  %v3749_v11 = vld [vmem:[%s9064_s3 + $0x500] sm:$0xff] }
 0x1e9   :  { %5783 = vmatprep.subr.bf16.mxu0 %v6240_v0  ;;  %5810 = vmatprep.subr.bf16.mxu1 %v6240_v0  ;;  %v5820_v31 = vpack.c.bf16 %v3744_v22, %v3743_v35  ;;  %v3750_v35 = vld [vmem:[%s9064_s3 + $0x508] sm:$0xff]  ;;  %v3767_v22 = vld [vmem:[%s9064_s3 + $0x590] sm:$0xff] }
 0x1ea   :  { %4763 = vmatprep.mubr.msk.f32.mxu0 %vm6241_vm0, %v6242_v48 }
 0x1ec   :  { %5785 = vmatpush3.bf16.msra.mxu0 %v5784_v50  ;;  %5812 = vmatpush3.bf16.msra.mxu1 %v5811_v55  ;;  %v3746_v50 = vld [vmem:[%s9064_s3 + $0x4e8] sm:$0xff]  ;;  %v5796_v55 = vpack.c.bf16 %v3728_v60, %v3727_v4  ;;  %v3751_v60 = vld [vmem:[%s9064_s3 + $0x510] sm:$0xff] }
 0x1ed   :  { %5786 = vmatprep.subr.bf16.mxu0 %v6240_v0  ;;  %5813 = vmatprep.subr.bf16.mxu1 %v6240_v0  ;;  %v5823_v16 = vpack.c.bf16 %v3746_v50, %v3745_v42  ;;  %v3752_v42 = vld [vmem:[%s9064_s3 + $0x518] sm:$0xff]  ;;  %v5859_v50 = vpack.c.bf16 %v3770_v54, %v3769_v17  ;;  %v3762_v17 = vld [vmem:[%s9064_s3 + $0x568] sm:$0xff]  ;;  %v3779_v54 = vld [vmem:[%s9064_s3 + $0x5f0] sm:$0xff] }
 0x1f0   :  { %5788 = vmatpush3.bf16.msra.mxu0 %v5787_v23  ;;  %5815 = vmatpush3.bf16.msra.mxu1 %v5814_v37  ;;  %v3748_v23 = vld [vmem:[%s9064_s3 + $0x4f8] sm:$0xff]  ;;  %v5799_v37 = vpack.c.bf16 %v3730_v44, %v3729_v26  ;;  %v5862_v26 = vpack.c.bf16 %v3772_v14, %v3771_v7  ;;  %v3755_v44 = vld [vmem:[%s9064_s3 + $0x530] sm:$0xff]  ;;  %v3797_v14 = vld [vmem:[%s9064_s3 + $0x680] sm:$0xff] }
 0x1f1   :  { %5789 = vmatprep.subr.bf16.mxu0 %v6240_v0  ;;  %5816 = vmatprep.subr.bf16.mxu1 %v6240_v0  ;;  %v5826_v63 = vpack.c.bf16 %v3748_v23, %v3747_v5  ;;  %v3756_v5 = vld [vmem:[%s9064_s3 + $0x538] sm:$0xff]  ;;  %v3773_v23 = vld [vmem:[%s9064_s3 + $0x5c0] sm:$0xff] }
 0x1f2   :  { %v3764_v7 = vld [vmem:[%s9064_s3 + $0x578] sm:$0xff] }
 0x1f4   :  { %5791 = vmatpush3.bf16.msra.mxu0 %v5790_v51  ;;  %5818 = vmatpush3.bf16.msra.mxu1 %v5817_v41  ;;  %v3766_v51 = vld [vmem:[%s9064_s3 + $0x588] sm:$0xff]  ;;  %v5802_v41 = vpack.c.bf16 %v3732_v29, %v3731_v25  ;;  %v3757_v29 = vld [vmem:[%s9064_s3 + $0x540] sm:$0xff] }
 0x1f5   :  { %5792 = vmatprep.subr.bf16.mxu0 %v6240_v0  ;;  %5819 = vmatprep.subr.bf16.mxu1 %v6240_v0  ;;  %v5853_v38 = vpack.c.bf16 %v3766_v51, %v3765_v18  ;;  %v3758_v18 = vld [vmem:[%s9064_s3 + $0x548] sm:$0xff]  ;;  %v3775_v51 = vld [vmem:[%s9064_s3 + $0x5d0] sm:$0xff] }
 0x1f8   :  { %5794 = vmatpush3.bf16.msra.mxu0 %v5793_v15  ;;  %5821 = vmatpush3.bf16.msra.mxu1 %v5820_v31  ;;  %v3768_v15 = vld [vmem:[%s9064_s3 + $0x598] sm:$0xff]  ;;  %v5829_v31 = vpack.c.bf16 %v3750_v35, %v3749_v11  ;;  %v3759_v35 = vld [vmem:[%s9064_s3 + $0x550] sm:$0xff] }
 0x1f9   :  { %5795 = vmatprep.subr.bf16.mxu0 %v6240_v0  ;;  %5822 = vmatprep.subr.bf16.mxu1 %v6240_v0  ;;  %v5856_v4 = vpack.c.bf16 %v3768_v15, %v3767_v22  ;;  %v3760_v22 = vld [vmem:[%s9064_s3 + $0x558] sm:$0xff]  ;;  %v3777_v15 = vld [vmem:[%s9064_s3 + $0x5e0] sm:$0xff] }
 0x1fc   :  { %5797 = vmatpush3.bf16.msra.mxu0 %v5796_v55  ;;  %5824 = vmatpush3.bf16.msra.mxu1 %v5823_v16  ;;  %v3753_v55 = vld [vmem:[%s9064_s3 + $0x520] sm:$0xff]  ;;  %v3754_v16 = vld [vmem:[%s9064_s3 + $0x528] sm:$0xff] }
 0x1fd   :  { %5798 = vmatprep.subr.bf16.mxu0 %v6240_v0  ;;  %5825 = vmatprep.subr.bf16.mxu1 %v6240_v0 }
 0x200   :  { %5800 = vmatpush3.bf16.msra.mxu0 %v5799_v37  ;;  %5827 = vmatpush3.bf16.msra.mxu1 %v5826_v63  ;;  %v3774_v37 = vld [vmem:[%s9064_s3 + $0x5c8] sm:$0xff]  ;;  %v5838_v63 = vpack.c.bf16 %v3756_v5, %v3755_v44  ;;  %v3781_v5 = vld [vmem:[%s9064_s3 + $0x600] sm:$0xff] }
 0x201   :  { %5801 = vmatprep.subr.bf16.mxu0 %v6240_v0  ;;  %5852 = vmatprep.subr.bf16.mxu1 %v6240_v0  ;;  %v5865_v25 = vpack.c.bf16 %v3774_v37, %v3773_v23  ;;  %v3782_v23 = vld [vmem:[%s9064_s3 + $0x608] sm:$0xff]  ;;  %v3799_v37 = vld [vmem:[%s9064_s3 + $0x690] sm:$0xff] }
 0x203   :  { %4799 = vmatmul.mubr.f32.vlgmr.msra.gmra.mrb[108].mxu1 %v1190_v8  ;;  %v5832_v8 = vpack.c.bf16 %v3752_v42, %v3751_v60  ;;  %v3761_v42 = vld [vmem:[%s9064_s3 + $0x560] sm:$0xff] }
 0x204   :  { %5803 = vmatpush3.bf16.msra.mxu0 %v5802_v41  ;;  %5854 = vmatpush3.bf16.msra.mxu1 %v5853_v38  ;;  %v3776_v41 = vld [vmem:[%s9064_s3 + $0x5d8] sm:$0xff]  ;;  %v5841_v38 = vpack.c.bf16 %v3758_v18, %v3757_v29  ;;  %v3783_v18 = vld [vmem:[%s9064_s3 + $0x610] sm:$0xff] }
 0x205   :  { %5828 = vmatprep.subr.bf16.mxu0 %v6240_v0  ;;  %5855 = vmatprep.subr.bf16.mxu1 %v6240_v0  ;;  %v5868_v11 = vpack.c.bf16 %v3776_v41, %v3775_v51  ;;  %v3784_v51 = vld [vmem:[%s9064_s3 + $0x618] sm:$0xff] }
 0x206   :  { %4868 = vmatprep.mubr.msk.f32.mxu1 %vm6241_vm0, %v6242_v48  ;;  %v5880_v41 = vpack.c.bf16 %v3784_v51, %v3783_v18  ;;  %v3812_v18 = vld [vmem:[%s9064_s3 + $0x6f8] sm:$0xff] }
 0x207   :  { %4764 = vmatmul.mubr.f32.vlgmr.msra.gmra.mrb[108].mxu0 %v1189_v30  ;;  %v5835_v30 = vpack.c.bf16 %v3754_v16, %v3753_v55  ;;  %v3763_v16 = vld [vmem:[%s9064_s3 + $0x570] sm:$0xff] }
 0x208   :  { %5830 = vmatpush3.bf16.msra.mxu0 %v5829_v31  ;;  %5857 = vmatpush3.bf16.msra.mxu1 %v5856_v4  ;;  %v3778_v31 = vld [vmem:[%s9064_s3 + $0x5e8] sm:$0xff]  ;;  %v5844_v4 = vpack.c.bf16 %v3760_v22, %v3759_v35 }
 0x209   :  { %5831 = vmatprep.subr.bf16.mxu0 %v6240_v0  ;;  %5858 = vmatprep.subr.bf16.mxu1 %v6240_v0  ;;  %v5871_v60 = vpack.c.bf16 %v3778_v31, %v3777_v15  ;;  %v3786_v35 = vld [vmem:[%s9064_s3 + $0x628] sm:$0xff]  ;;  %v3787_v31 = vld [vmem:[%s9064_s3 + $0x630] sm:$0xff] }
 0x20a   :  { %4833 = vmatprep.mubr.msk.f32.mxu0 %vm6241_vm0, %v6242_v48 }
 0x20c   :  { %5833 = vmatpush3.bf16.msra.mxu0 %v5832_v8  ;;  %5860 = vmatpush3.bf16.msra.mxu1 %v5859_v50  ;;  %v3780_v8 = vld [vmem:[%s9064_s3 + $0x5f8] sm:$0xff]  ;;  %v5847_v50 = vpack.c.bf16 %v3762_v17, %v3761_v42  ;;  %v3806_v42 = vld [vmem:[%s9064_s3 + $0x6c8] sm:$0xff] }
 0x20d   :  { %5834 = vmatprep.subr.bf16.mxu0 %v6240_v0  ;;  %5861 = vmatprep.subr.bf16.mxu1 %v6240_v0  ;;  %v5874_v55 = vpack.c.bf16 %v3780_v8, %v3779_v54  ;;  %v3789_v8 = vld [vmem:[%s9064_s3 + $0x640] sm:$0xff] }
 0x210   :  { %5836 = vmatpush3.bf16.msra.mxu0 %v5835_v30  ;;  %5863 = vmatpush3.bf16.msra.mxu1 %v5862_v26  ;;  %v3798_v30 = vld [vmem:[%s9064_s3 + $0x688] sm:$0xff]  ;;  %v5850_v26 = vpack.c.bf16 %v3764_v7, %v3763_v16  ;;  %v3808_v16 = vld [vmem:[%s9064_s3 + $0x6d8] sm:$0xff] }
 0x211   :  { %5837 = vmatprep.subr.bf16.mxu0 %v6240_v0  ;;  %5864 = vmatprep.subr.bf16.mxu1 %v6240_v0  ;;  %v5901_v44 = vpack.c.bf16 %v3798_v30, %v3797_v14  ;;  %v3791_v30 = vld [vmem:[%s9064_s3 + $0x650] sm:$0xff] }
 0x214   :  { %5839 = vmatpush3.bf16.msra.mxu0 %v5838_v63  ;;  %5866 = vmatpush3.bf16.msra.mxu1 %v5865_v25  ;;  %v3800_v63 = vld [vmem:[%s9064_s3 + $0x698] sm:$0xff]  ;;  %v5877_v25 = vpack.c.bf16 %v3782_v23, %v3781_v5  ;;  %v3810_v5 = vld [vmem:[%s9064_s3 + $0x6e8] sm:$0xff] }
 0x215   :  { %5840 = vmatprep.subr.bf16.mxu0 %v6240_v0  ;;  %5867 = vmatprep.subr.bf16.mxu1 %v6240_v0  ;;  %v5904_v29 = vpack.c.bf16 %v3800_v63, %v3799_v37  ;;  %v3793_v63 = vld [vmem:[%s9064_s3 + $0x660] sm:$0xff] }
 0x218   :  { %5842 = vmatpush3.bf16.msra.mxu0 %v5841_v38  ;;  %5869 = vmatpush3.bf16.msra.mxu1 %v5868_v11  ;;  %v5907_v38 = vpack.c.bf16 %v3802_v59, %v3801_v39  ;;  %v3785_v11 = vld [vmem:[%s9064_s3 + $0x620] sm:$0xff]  ;;  %v3795_v59 = vld [vmem:[%s9064_s3 + $0x670] sm:$0xff] }
 0x219   :  { %5843 = vmatprep.subr.bf16.mxu0 %v6240_v0  ;;  %5870 = vmatprep.subr.bf16.mxu1 %v6240_v0  ;;  %v5883_v22 = vpack.c.bf16 %v3786_v35, %v3785_v11 }
 0x21c   :  { %5845 = vmatpush3.bf16.msra.mxu0 %v5844_v4  ;;  %5872 = vmatpush3.bf16.msra.mxu1 %v5871_v60  ;;  %v3788_v4 = vld [vmem:[%s9064_s3 + $0x638] sm:$0xff]  ;;  %v3805_v60 = vld [vmem:[%s9064_s3 + $0x6c0] sm:$0xff] }
 0x21d   :  { %5846 = vmatprep.subr.bf16.mxu0 %v6240_v0  ;;  %5873 = vmatprep.subr.bf16.mxu1 %v6240_v0  ;;  %v5886_v17 = vpack.c.bf16 %v3788_v4, %v3787_v31  ;;  %v5913_v54 = vpack.c.bf16 %v3806_v42, %v3805_v60  ;;  %v9073_v31 = vmax.f32 %v7326_v61, %v7645_v21  ;;  %v3815_v42 = vld [vmem:[%s9064_s3 + $0x710] sm:$0xff]  ;;  %v3833_v61 = vld [vmem:[%s9064_s3 + $0x7a0] sm:$0xff]  ;;  %v3834_v21 = vld [vmem:[%s9064_s3 + $0x7a8] sm:$0xff] }
 0x220   :  { %5848 = vmatpush3.bf16.msra.mxu0 %v5847_v50  ;;  %5875 = vmatpush3.bf16.msra.mxu1 %v5874_v55  ;;  %v3790_v50 = vld [vmem:[%s9064_s3 + $0x648] sm:$0xff]  ;;  %v3807_v55 = vld [vmem:[%s9064_s3 + $0x6d0] sm:$0xff] }
 0x221   :  { %5849 = vmatprep.subr.bf16.mxu0 %v6240_v0  ;;  %5900 = vmatprep.subr.bf16.mxu1 %v6240_v0  ;;  %v5889_v7 = vpack.c.bf16 %v3790_v50, %v3789_v8  ;;  %v5916_v14 = vpack.c.bf16 %v3808_v16, %v3807_v55  ;;  %v5955_v50 = vpack.c.bf16 %v3834_v21, %v3833_v61  ;;  %v3817_v55 = vld [vmem:[%s9064_s3 + $0x720] sm:$0xff]  ;;  %v3818_v16 = vld [vmem:[%s9064_s3 + $0x728] sm:$0xff] }
 0x223   :  { %4869 = vmatmul.mubr.f32.vlgmr.msra.gmra.mrb[110].mxu1 %v1192_v46  ;;  %v9072_v46 = vmax.f32 %v7314_v27, %v7580_v3  ;;  %v3803_v27 = vld [vmem:[%s9064_s3 + $0x6b0] sm:$0xff]  ;;  %v3804_v3 = vld [vmem:[%s9064_s3 + $0x6b8] sm:$0xff] }
 0x224   :  { %5851 = vmatpush3.bf16.msra.mxu0 %v5850_v26  ;;  %5902 = vmatpush3.bf16.msra.mxu1 %v5901_v44  ;;  %v5910_v15 = vpack.c.bf16 %v3804_v3, %v3803_v27  ;;  %v3792_v26 = vld [vmem:[%s9064_s3 + $0x658] sm:$0xff]  ;;  %v3809_v44 = vld [vmem:[%s9064_s3 + $0x6e0] sm:$0xff]  ;;  %v3814_v3 = vld [vmem:[%s9064_s3 + $0x708] sm:$0xff] }
 0x225   :  { %5876 = vmatprep.subr.bf16.mxu0 %v6240_v0  ;;  %5903 = vmatprep.subr.bf16.mxu1 %v6240_v0  ;;  %v5892_v23 = vpack.c.bf16 %v3792_v26, %v3791_v30  ;;  %v5919_v37 = vpack.c.bf16 %v3810_v5, %v3809_v44  ;;  %v3813_v27 = vld [vmem:[%s9064_s3 + $0x700] sm:$0xff]  ;;  %v3819_v30 = vld [vmem:[%s9064_s3 + $0x730] sm:$0xff]  ;;  %v3820_v26 = vld [vmem:[%s9064_s3 + $0x738] sm:$0xff] }
 0x226   :  { %4938 = vmatprep.mubr.msk.f32.mxu1 %vm6241_vm0, %v6242_v48  ;;  %v5925_v4 = vpack.c.bf16 %v3814_v3, %v3813_v27  ;;  %v3837_v44 = vld [vmem:[%s9064_s3 + $0x7c0] sm:$0xff]  ;;  %v3838_v5 = vld [vmem:[%s9064_s3 + $0x7c8] sm:$0xff] }
 0x227   :  { %4834 = vmatmul.mubr.f32.vlgmr.msra.gmra.mrb[110].mxu0 %v9072_v46  ;;  %v3796_v46 = vld [vmem:[%s9064_s3 + $0x678] sm:$0xff] }
 0x228   :  { %5878 = vmatpush3.bf16.msra.mxu0 %v5877_v25  ;;  %5905 = vmatpush3.bf16.msra.mxu1 %v5904_v29  ;;  %v3794_v25 = vld [vmem:[%s9064_s3 + $0x668] sm:$0xff]  ;;  %v3811_v29 = vld [vmem:[%s9064_s3 + $0x6f0] sm:$0xff]  ;;  %v5898_v11 = vpack.c.bf16 %v3796_v46, %v3795_v59  ;;  %v3824_v46 = vld [vmem:[%s9064_s3 + $0x758] sm:$0xff] }
 0x229   :  { %5879 = vmatprep.subr.bf16.mxu0 %v6240_v0  ;;  %5906 = vmatprep.subr.bf16.mxu1 %v6240_v0  ;;  %v5895_v51 = vpack.c.bf16 %v3794_v25, %v3793_v63  ;;  %v5922_v39 = vpack.c.bf16 %v3812_v18, %v3811_v29  ;;  %v3821_v63 = vld [vmem:[%s9064_s3 + $0x740] sm:$0xff]  ;;  %v3822_v25 = vld [vmem:[%s9064_s3 + $0x748] sm:$0xff]  ;;  %v3839_v29 = vld [vmem:[%s9064_s3 + $0x7d0] sm:$0xff] }
 0x22a   :  { %4903 = vmatprep.mubr.msk.f32.mxu0 %vm6241_vm0, %v6242_v48  ;;  %v3840_v18 = vld [vmem:[%s9064_s3 + $0x7d8] sm:$0xff]  ;;  %v3823_v59 = vld [vmem:[%s9064_s3 + $0x750] sm:$0xff] }
 0x22b   :  { %v5940_v27 = vpack.c.bf16 %v3824_v46, %v3823_v59  ;;  %v3851_v46 = vld [vmem:[%s9064_s3 + $0x830] sm:$0xff] }
 0x22c   :  { %5881 = vmatpush3.bf16.msra.mxu0 %v5880_v41  ;;  %5908 = vmatpush3.bf16.msra.mxu1 %v5907_v38  ;;  %v3829_v41 = vld [vmem:[%s9064_s3 + $0x780] sm:$0xff]  ;;  %v3830_v38 = vld [vmem:[%s9064_s3 + $0x788] sm:$0xff] }
 0x22d   :  { %5882 = vmatprep.subr.bf16.mxu0 %v6240_v0  ;;  %5909 = vmatprep.subr.bf16.mxu1 %v6240_v0  ;;  %v5949_v35 = vpack.c.bf16 %v3830_v38, %v3829_v41  ;;  %v3841_v41 = vld [vmem:[%s9064_s3 + $0x7e0] sm:$0xff]  ;;  %v3842_v38 = vld [vmem:[%s9064_s3 + $0x7e8] sm:$0xff] }
 0x22e   :  { %v5967_v3 = vpack.c.bf16 %v3842_v38, %v3841_v41  ;;  %v3852_v41 = vld [vmem:[%s9064_s3 + $0x838] sm:$0xff]  ;;  %v3869_v38 = vld [vmem:[%s9064_s3 + $0x8c0] sm:$0xff] }
 0x230   :  { %5884 = vmatpush3.bf16.msra.mxu0 %v5883_v22  ;;  %5911 = vmatpush3.bf16.msra.mxu1 %v5910_v15  ;;  %v3831_v22 = vld [vmem:[%s9064_s3 + $0x790] sm:$0xff]  ;;  %v3832_v15 = vld [vmem:[%s9064_s3 + $0x798] sm:$0xff] }
 0x231   :  { %5885 = vmatprep.subr.bf16.mxu0 %v6240_v0  ;;  %5912 = vmatprep.subr.bf16.mxu1 %v6240_v0  ;;  %v5952_v60 = vpack.c.bf16 %v3832_v15, %v3831_v22  ;;  %v3825_v22 = vld [vmem:[%s9064_s3 + $0x760] sm:$0xff]  ;;  %v3826_v15 = vld [vmem:[%s9064_s3 + $0x768] sm:$0xff] }
 0x232   :  { %v5943_v61 = vpack.c.bf16 %v3826_v15, %v3825_v22  ;;  %v3854_v22 = vld [vmem:[%s9064_s3 + $0x848] sm:$0xff]  ;;  %v3871_v15 = vld [vmem:[%s9064_s3 + $0x8d0] sm:$0xff] }
 0x234   :  { %5887 = vmatpush3.bf16.msra.mxu0 %v5886_v17  ;;  %5914 = vmatpush3.bf16.msra.mxu1 %v5913_v54  ;;  %v3816_v17 = vld [vmem:[%s9064_s3 + $0x718] sm:$0xff]  ;;  %v9074_v54 = vmax.f32 %v7322_v52, %v7625_v36  ;;  %v3835_v52 = vld [vmem:[%s9064_s3 + $0x7b0] sm:$0xff] }
 0x235   :  { %5888 = vmatprep.subr.bf16.mxu0 %v6240_v0  ;;  %5915 = vmatprep.subr.bf16.mxu1 %v6240_v0  ;;  %v5928_v8 = vpack.c.bf16 %v3816_v17, %v3815_v42  ;;  %v3836_v36 = vld [vmem:[%s9064_s3 + $0x7b8] sm:$0xff] }
 0x238   :  { %5890 = vmatpush3.bf16.msra.mxu0 %v5889_v7  ;;  %5917 = vmatpush3.bf16.msra.mxu1 %v5916_v14  ;;  %v5931_v7 = vpack.c.bf16 %v3818_v16, %v3817_v55  ;;  %v5958_v14 = vpack.c.bf16 %v3836_v36, %v3835_v52  ;;  %v3862_v55 = vld [vmem:[%s9064_s3 + $0x888] sm:$0xff]  ;;  %v3845_v36 = vld [vmem:[%s9064_s3 + $0x800] sm:$0xff] }
 0x239   :  { %5891 = vmatprep.subr.bf16.mxu0 %v6240_v0  ;;  %5918 = vmatprep.subr.bf16.mxu1 %v6240_v0 }
 0x23c   :  { %5893 = vmatpush3.bf16.msra.mxu0 %v5892_v23  ;;  %5920 = vmatpush3.bf16.msra.mxu1 %v5919_v37  ;;  %v5934_v23 = vpack.c.bf16 %v3820_v26, %v3819_v30  ;;  %v5961_v37 = vpack.c.bf16 %v3838_v5, %v3837_v44  ;;  %v3864_v30 = vld [vmem:[%s9064_s3 + $0x898] sm:$0xff]  ;;  %v9075_v26 = vmax.f32 %v7334_v20, %v7690_v53  ;;  %v3865_v20 = vld [vmem:[%s9064_s3 + $0x8a0] sm:$0xff]  ;;  %v3866_v53 = vld [vmem:[%s9064_s3 + $0x8a8] sm:$0xff] }
 0x23d   :  { %5894 = vmatprep.subr.bf16.mxu0 %v6240_v0  ;;  %5921 = vmatprep.subr.bf16.mxu1 %v6240_v0 }
 0x240   :  { %5896 = vmatpush3.bf16.msra.mxu0 %v5895_v51  ;;  %5923 = vmatpush3.bf16.msra.mxu1 %v5922_v39  ;;  %v5937_v51 = vpack.c.bf16 %v3822_v25, %v3821_v63  ;;  %v5964_v39 = vpack.c.bf16 %v3840_v18, %v3839_v29  ;;  %v9076_v63 = vmax.f32 %v7330_v9, %v7665_v56  ;;  %v3849_v18 = vld [vmem:[%s9064_s3 + $0x820] sm:$0xff]  ;;  %v3867_v9 = vld [vmem:[%s9064_s3 + $0x8b0] sm:$0xff]  ;;  %v3868_v56 = vld [vmem:[%s9064_s3 + $0x8b8] sm:$0xff] }
 0x241   :  { %5897 = vmatprep.subr.bf16.mxu0 %v6240_v0  ;;  %5948 = vmatprep.subr.bf16.mxu1 %v6240_v0  ;;  %v6003_v29 = vpack.c.bf16 %v3866_v53, %v3865_v20  ;;  %v6006_v59 = vpack.c.bf16 %v3868_v56, %v3867_v9  ;;  %v3860_v20 = vld [vmem:[%s9064_s3 + $0x878] sm:$0xff]  ;;  %v3894_v53 = vld [vmem:[%s9064_s3 + $0x988] sm:$0xff]  ;;  %v3895_v9 = vld [vmem:[%s9064_s3 + $0x990] sm:$0xff] }
 0x242   :  { %v3896_v56 = vld [vmem:[%s9064_s3 + $0x998] sm:$0xff] }
 0x243   :  { %4939 = vmatmul.mubr.f32.vlgmr.msra.gmra.mrb[112].mxu1 %v9073_v31  ;;  %v3843_v31 = vld [vmem:[%s9064_s3 + $0x7f0] sm:$0xff] }
 0x244   :  { %5899 = vmatpush3.bf16.msra.mxu0 %v5898_v11  ;;  %5950 = vmatpush3.bf16.msra.mxu1 %v5949_v35 }
 0x245   :  { %5924 = vmatprep.subr.bf16.mxu0 %v6240_v0  ;;  %5951 = vmatprep.subr.bf16.mxu1 %v6240_v0 }
 0x246   :  { %5008 = vmatprep.mubr.msk.f32.mxu1 %vm6241_vm0, %v6242_v48 }
 0x247   :  { %4904 = vmatmul.mubr.f32.vlgmr.msra.gmra.mrb[112].mxu0 %v9074_v54  ;;  %v3827_v54 = vld [vmem:[%s9064_s3 + $0x770] sm:$0xff] }
 0x248   :  { %5926 = vmatpush3.bf16.msra.mxu0 %v5925_v4  ;;  %5953 = vmatpush3.bf16.msra.mxu1 %v5952_v60  ;;  %v3844_v4 = vld [vmem:[%s9064_s3 + $0x7f8] sm:$0xff] }
 0x249   :  { %5927 = vmatprep.subr.bf16.mxu0 %v6240_v0  ;;  %5954 = vmatprep.subr.bf16.mxu1 %v6240_v0  ;;  %v5970_v21 = vpack.c.bf16 %v3844_v4, %v3843_v31  ;;  %v3872_v31 = vld [vmem:[%s9064_s3 + $0x8d8] sm:$0xff] }
 0x24a   :  { %4973 = vmatprep.mubr.msk.f32.mxu0 %vm6241_vm0, %v6242_v48 }
 0x24c   :  { %5929 = vmatpush3.bf16.msra.mxu0 %v5928_v8  ;;  %5956 = vmatpush3.bf16.msra.mxu1 %v5955_v50  ;;  %v3828_v8 = vld [vmem:[%s9064_s3 + $0x778] sm:$0xff]  ;;  %v3861_v50 = vld [vmem:[%s9064_s3 + $0x880] sm:$0xff] }
 0x24d   :  { %5930 = vmatprep.subr.bf16.mxu0 %v6240_v0  ;;  %5957 = vmatprep.subr.bf16.mxu1 %v6240_v0  ;;  %v5946_v16 = vpack.c.bf16 %v3828_v8, %v3827_v54  ;;  %v5997_v52 = vpack.c.bf16 %v3862_v55, %v3861_v50  ;;  %v3874_v54 = vld [vmem:[%s9064_s3 + $0x8e8] sm:$0xff] }
 0x250   :  { %5932 = vmatpush3.bf16.msra.mxu0 %v5931_v7  ;;  %5959 = vmatpush3.bf16.msra.mxu1 %v5958_v14  ;;  %v3846_v7 = vld [vmem:[%s9064_s3 + $0x808] sm:$0xff]  ;;  %v3863_v14 = vld [vmem:[%s9064_s3 + $0x890] sm:$0xff] }
 0x251   :  { %5933 = vmatprep.subr.bf16.mxu0 %v6240_v0  ;;  %5960 = vmatprep.subr.bf16.mxu1 %v6240_v0  ;;  %v5973_v44 = vpack.c.bf16 %v3846_v7, %v3845_v36  ;;  %v6000_v5 = vpack.c.bf16 %v3864_v30, %v3863_v14  ;;  %v3858_v36 = vld [vmem:[%s9064_s3 + $0x868] sm:$0xff]  ;;  %v3875_v7 = vld [vmem:[%s9064_s3 + $0x8f0] sm:$0xff]  ;;  %v3876_v14 = vld [vmem:[%s9064_s3 + $0x8f8] sm:$0xff] }
 0x254   :  { %5935 = vmatpush3.bf16.msra.mxu0 %v5934_v23  ;;  %5962 = vmatpush3.bf16.msra.mxu1 %v5961_v37  ;;  %v3847_v23 = vld [vmem:[%s9064_s3 + $0x810] sm:$0xff]  ;;  %v3848_v37 = vld [vmem:[%s9064_s3 + $0x818] sm:$0xff] }
 0x255   :  { %5936 = vmatprep.subr.bf16.mxu0 %v6240_v0  ;;  %5963 = vmatprep.subr.bf16.mxu1 %v6240_v0  ;;  %v5976_v25 = vpack.c.bf16 %v3848_v37, %v3847_v23  ;;  %v6018_v23 = vpack.c.bf16 %v3876_v14, %v3875_v7  ;;  %v3859_v37 = vld [vmem:[%s9064_s3 + $0x870] sm:$0xff]  ;;  %v3888_v14 = vld [vmem:[%s9064_s3 + $0x958] sm:$0xff] }
 0x256   :  { %v1375_v11 = vpop.f32.mrb[100].mxu1  ;;  %v3887_v7 = vld [vmem:[%s9064_s3 + $0x950] sm:$0xff] }
 0x257   :  { %v4520_v35 = vpop.f32.mrb[101].mxu1 }
 0x258   :  { %5938 = vmatpush3.bf16.msra.mxu0 %v5937_v51  ;;  %5965 = vmatpush3.bf16.msra.mxu1 %v5964_v39  ;;  %v3850_v51 = vld [vmem:[%s9064_s3 + $0x828] sm:$0xff]  ;;  %v5982_v35 = vpack.c.bf16 %v3852_v41, %v3851_v46  ;;  %v6048_v46 = vpack.c.bf16 %v3896_v56, %v3895_v9  ;;  %v3879_v41 = vld [vmem:[%s9064_s3 + $0x910] sm:$0xff] }
 0x259   :  { %5939 = vmatprep.subr.bf16.mxu0 %v6240_v0  ;;  %5966 = vmatprep.subr.bf16.mxu1 %v6240_v0  ;;  %v5979_v39 = vpack.c.bf16 %v3850_v51, %v3849_v18  ;;  %v3877_v18 = vld [vmem:[%s9064_s3 + $0x900] sm:$0xff]  ;;  %v3878_v51 = vld [vmem:[%s9064_s3 + $0x908] sm:$0xff] }
 0x25a   :  { %v1305_v60 = vpop.f32.mrb[100].mxu0 }
 0x25b   :  { %v8358_v42 = vadd.f32 %v1375_v11, %v1305_v60  ;;  %v4485_v17 = vpop.f32.mrb[101].mxu0  ;;  %v3870_v11 = vld [vmem:[%s9064_s3 + $0x8c8] sm:$0xff]  ;;  %v6012_v60 = vpack.c.bf16 %v3872_v31, %v3871_v15 }
 0x25c   :  { %5941 = vmatpush3.bf16.msra.mxu0 %v5940_v27  ;;  %5968 = vmatpush3.bf16.msra.mxu1 %v5967_v3  ;;  %v6009_v27 = vpack.c.bf16 %v3870_v11, %v3869_v38  ;;  %v3853_v3 = vld [vmem:[%s9064_s3 + $0x840] sm:$0xff]  ;;  %v3855_v17 = vld [vmem:[%s9064_s3 + $0x850] sm:$0xff]  ;;  %v3880_v38 = vld [vmem:[%s9064_s3 + $0x918] sm:$0xff]  ;;  %v9078_v11 = vmax.f32 %v7338_v33, %v7710_v28 }
 0x25d   :  { %5942 = vmatprep.subr.bf16.mxu0 %v6240_v0  ;;  %5969 = vmatprep.subr.bf16.mxu1 %v6240_v0  ;;  %v5985_v4 = vpack.c.bf16 %v3854_v22, %v3853_v3  ;;  %v3881_v3 = vld [vmem:[%s9064_s3 + $0x920] sm:$0xff]  ;;  %v3882_v22 = vld [vmem:[%s9064_s3 + $0x928] sm:$0xff]  ;;  %v3899_v33 = vld [vmem:[%s9064_s3 + $0x9b0] sm:$0xff] }
 0x25e   :  { %v3900_v28 = vld [vmem:[%s9064_s3 + $0x9b8] sm:$0xff]  ;;  %v6027_v15 = vpack.c.bf16 %v3882_v22, %v3881_v3  ;;  %v9079_v3 = vmax.f32 %v7350_v6, %v7780_v12  ;;  %v3929_v6 = vld [vmem:[%s9064_s3 + $0xaa0] sm:$0xff]  ;;  %v3930_v12 = vld [vmem:[%s9064_s3 + $0xaa8] sm:$0xff] }
 0x25f   :  { %v6054_v31 = vpack.c.bf16 %v3900_v28, %v3899_v33  ;;  %v3911_v28 = vld [vmem:[%s9064_s3 + $0xa10] sm:$0xff] }
 0x260   :  { %5944 = vmatpush3.bf16.msra.mxu0 %v5943_v61  ;;  %5971 = vmatpush3.bf16.msra.mxu1 %v5970_v21  ;;  %v3856_v61 = vld [vmem:[%s9064_s3 + $0x858] sm:$0xff]  ;;  %v3873_v21 = vld [vmem:[%s9064_s3 + $0x8e0] sm:$0xff] }
 0x261   :  { %5945 = vmatprep.subr.bf16.mxu0 %v6240_v0  ;;  %5996 = vmatprep.subr.bf16.mxu1 %v6240_v0  ;;  %v5988_v55 = vpack.c.bf16 %v3856_v61, %v3855_v17  ;;  %v3901_v17 = vld [vmem:[%s9064_s3 + $0x9c0] sm:$0xff]  ;;  %v3902_v61 = vld [vmem:[%s9064_s3 + $0x9c8] sm:$0xff] }
 0x263   :  { %5009 = vmatmul.mubr.f32.vlgmr.msra.gmra.mrb[114].mxu1 %v9075_v26 }
 0x264   :  { %5947 = vmatpush3.bf16.msra.mxu0 %v5946_v16  ;;  %5998 = vmatpush3.bf16.msra.mxu1 %v5997_v52  ;;  %v6015_v16 = vpack.c.bf16 %v3874_v54, %v3873_v21  ;;  %v3857_v52 = vld [vmem:[%s9064_s3 + $0x860] sm:$0xff]  ;;  %v6057_v54 = vpack.c.bf16 %v3902_v61, %v3901_v17  ;;  %v3914_v61 = vld [vmem:[%s9064_s3 + $0xa28] sm:$0xff] }
 0x265   :  { %5972 = vmatprep.subr.bf16.mxu0 %v6240_v0  ;;  %5999 = vmatprep.subr.bf16.mxu1 %v6240_v0  ;;  %v3913_v17 = vld [vmem:[%s9064_s3 + $0xa20] sm:$0xff] }
 0x266   :  { %5078 = vmatprep.mubr.msk.f32.mxu1 %vm6241_vm0, %v6242_v48 }
 0x267   :  { %4974 = vmatmul.mubr.f32.vlgmr.msra.gmra.mrb[114].mxu0 %v9076_v63 }
 0x268   :  { %5974 = vmatpush3.bf16.msra.mxu0 %v5973_v44  ;;  %6001 = vmatpush3.bf16.msra.mxu1 %v6000_v5  ;;  %v5991_v5 = vpack.c.bf16 %v3858_v36, %v3857_v52 }
 0x269   :  { %5975 = vmatprep.subr.bf16.mxu0 %v6240_v0  ;;  %6002 = vmatprep.subr.bf16.mxu1 %v6240_v0 }
 0x26a   :  { %5043 = vmatprep.mubr.msk.f32.mxu0 %vm6241_vm0, %v6242_v48 }
 0x26c   :  { %5977 = vmatpush3.bf16.msra.mxu0 %v5976_v25  ;;  %6004 = vmatpush3.bf16.msra.mxu1 %v6003_v29  ;;  %v5994_v25 = vpack.c.bf16 %v3860_v20, %v3859_v37  ;;  %v3889_v20 = vld [vmem:[%s9064_s3 + $0x960] sm:$0xff] }
 0x26d   :  { %5978 = vmatprep.subr.bf16.mxu0 %v6240_v0  ;;  %6005 = vmatprep.subr.bf16.mxu1 %v6240_v0 }
 0x270   :  { %5980 = vmatpush3.bf16.msra.mxu0 %v5979_v39  ;;  %6007 = vmatpush3.bf16.msra.mxu1 %v6006_v59  ;;  %v9077_v39 = vmax.f32 %v7342_v45, %v7730_v58  ;;  %v6021_v59 = vpack.c.bf16 %v3878_v51, %v3877_v18  ;;  %v3897_v45 = vld [vmem:[%s9064_s3 + $0x9a0] sm:$0xff]  ;;  %v3898_v58 = vld [vmem:[%s9064_s3 + $0x9a8] sm:$0xff] }
 0x271   :  { %5981 = vmatprep.subr.bf16.mxu0 %v6240_v0  ;;  %6008 = vmatprep.subr.bf16.mxu1 %v6240_v0 }
 0x274   :  { %5983 = vmatpush3.bf16.msra.mxu0 %v5982_v35  ;;  %6010 = vmatpush3.bf16.msra.mxu1 %v6009_v27  ;;  %v6024_v35 = vpack.c.bf16 %v3880_v38, %v3879_v41  ;;  %v6051_v27 = vpack.c.bf16 %v3898_v58, %v3897_v45  ;;  %v3909_v58 = vld [vmem:[%s9064_s3 + $0xa00] sm:$0xff] }
 0x275   :  { %5984 = vmatprep.subr.bf16.mxu0 %v6240_v0  ;;  %6011 = vmatprep.subr.bf16.mxu1 %v6240_v0 }
 0x276   :  { %v1550_v8 = vpop.f32.mrb[102].mxu1 }
 0x277   :  { %v4590_v50 = vpop.f32.mrb[103].mxu1 }
 0x278   :  { %5986 = vmatpush3.bf16.msra.mxu0 %v5985_v4  ;;  %6013 = vmatpush3.bf16.msra.mxu1 %v6012_v60  ;;  %v3883_v4 = vld [vmem:[%s9064_s3 + $0x930] sm:$0xff]  ;;  %v3884_v60 = vld [vmem:[%s9064_s3 + $0x938] sm:$0xff]  ;;  %v3886_v50 = vld [vmem:[%s9064_s3 + $0x948] sm:$0xff] }
 0x279   :  { %5987 = vmatprep.subr.bf16.mxu0 %v6240_v0  ;;  %6014 = vmatprep.subr.bf16.mxu1 %v6240_v0  ;;  %v6030_v21 = vpack.c.bf16 %v3884_v60, %v3883_v4  ;;  %v6099_v60 = vpack.c.bf16 %v3930_v12, %v3929_v6  ;;  %v3960_v6 = vld [vmem:[%s9064_s3 + $0xb98] sm:$0xff]  ;;  %v9081_v12 = vmax.f32 %v7358_v34, %v7820_v43  ;;  %v3961_v34 = vld [vmem:[%s9064_s3 + $0xba0] sm:$0xff]  ;;  %v3962_v43 = vld [vmem:[%s9064_s3 + $0xba8] sm:$0xff] }
 0x27a   :  { %v1462_v30 = vpop.f32.mrb[102].mxu0 }
 0x27b   :  { %v1466_v26 = vadd.f32 %v1462_v30, %v8358_v42  ;;  %v4555_v44 = vpop.f32.mrb[103].mxu0  ;;  %v3893_v42 = vld [vmem:[%s9064_s3 + $0x980] sm:$0xff] }
 0x27c   :  { %5989 = vmatpush3.bf16.msra.mxu0 %v5988_v55  ;;  %6016 = vmatpush3.bf16.msra.mxu1 %v6015_v16  ;;  %v6045_v29 = vpack.c.bf16 %v3894_v53, %v3893_v42  ;;  %v3903_v55 = vld [vmem:[%s9064_s3 + $0x9d0] sm:$0xff]  ;;  %v3904_v16 = vld [vmem:[%s9064_s3 + $0x9d8] sm:$0xff]  ;;  %v3905_v30 = vld [vmem:[%s9064_s3 + $0x9e0] sm:$0xff] }
 0x27d   :  { %5990 = vmatprep.subr.bf16.mxu0 %v6240_v0  ;;  %6017 = vmatprep.subr.bf16.mxu1 %v6240_v0  ;;  %v8497_v63 = vadd.f32 %v1550_v8, %v1466_v26  ;;  %v3885_v8 = vld [vmem:[%s9064_s3 + $0x940] sm:$0xff]  ;;  %v6060_v36 = vpack.c.bf16 %v3904_v16, %v3903_v55  ;;  %v3906_v26 = vld [vmem:[%s9064_s3 + $0x9e8] sm:$0xff]  ;;  %v3907_v53 = vld [vmem:[%s9064_s3 + $0x9f0] sm:$0xff] }
 0x27e   :  { %v6033_v52 = vpack.c.bf16 %v3886_v50, %v3885_v8  ;;  %v6063_v37 = vpack.c.bf16 %v3906_v26, %v3905_v30  ;;  %v3890_v42 = vld [vmem:[%s9064_s3 + $0x968] sm:$0xff]  ;;  %v3915_v8 = vld [vmem:[%s9064_s3 + $0xa30] sm:$0xff]  ;;  %v3916_v50 = vld [vmem:[%s9064_s3 + $0xa38] sm:$0xff] }
 0x27f   :  { %v6039_v9 = vpack.c.bf16 %v3890_v42, %v3889_v20  ;;  %v3933_v55 = vld [vmem:[%s9064_s3 + $0xac0] sm:$0xff]  ;;  %v3934_v16 = vld [vmem:[%s9064_s3 + $0xac8] sm:$0xff]  ;;  %v3935_v30 = vld [vmem:[%s9064_s3 + $0xad0] sm:$0xff] }
 0x280   :  { %5992 = vmatpush3.bf16.msra.mxu0 %v5991_v5  ;;  %6019 = vmatpush3.bf16.msra.mxu1 %v6018_v23  ;;  %v6036_v23 = vpack.c.bf16 %v3888_v14, %v3887_v7  ;;  %v3917_v7 = vld [vmem:[%s9064_s3 + $0xa40] sm:$0xff]  ;;  %v3918_v14 = vld [vmem:[%s9064_s3 + $0xa48] sm:$0xff]  ;;  %v3936_v26 = vld [vmem:[%s9064_s3 + $0xad8] sm:$0xff] }
 0x281   :  { %5993 = vmatprep.subr.bf16.mxu0 %v6240_v0  ;;  %6044 = vmatprep.subr.bf16.mxu1 %v6240_v0  ;;  %v3937_v20 = vld [vmem:[%s9064_s3 + $0xae0] sm:$0xff]  ;;  %v3938_v42 = vld [vmem:[%s9064_s3 + $0xae8] sm:$0xff] }
 0x283   :  { %5079 = vmatmul.mubr.f32.vlgmr.msra.gmra.mrb[116].mxu1 %v9077_v39  ;;  %v3891_v39 = vld [vmem:[%s9064_s3 + $0x970] sm:$0xff] }
 0x284   :  { %5995 = vmatpush3.bf16.msra.mxu0 %v5994_v25  ;;  %6046 = vmatpush3.bf16.msra.mxu1 %v6045_v29  ;;  %v3908_v25 = vld [vmem:[%s9064_s3 + $0x9f8] sm:$0xff] }
 0x285   :  { %6020 = vmatprep.subr.bf16.mxu0 %v6240_v0  ;;  %6047 = vmatprep.subr.bf16.mxu1 %v6240_v0  ;;  %v6066_v56 = vpack.c.bf16 %v3908_v25, %v3907_v53 }
 0x286   :  { %5148 = vmatprep.mubr.msk.f32.mxu1 %vm6241_vm0, %v6242_v48 }
 0x287   :  { %5044 = vmatmul.mubr.f32.vlgmr.msra.gmra.mrb[116].mxu0 %v9078_v11  ;;  %v3910_v11 = vld [vmem:[%s9064_s3 + $0xa08] sm:$0xff] }
 0x288   :  { %6022 = vmatpush3.bf16.msra.mxu0 %v6021_v59  ;;  %6049 = vmatpush3.bf16.msra.mxu1 %v6048_v46  ;;  %v3892_v59 = vld [vmem:[%s9064_s3 + $0x978] sm:$0xff]  ;;  %v3926_v46 = vld [vmem:[%s9064_s3 + $0xa88] sm:$0xff]  ;;  %v6069_v22 = vpack.c.bf16 %v3910_v11, %v3909_v58  ;;  %v3923_v58 = vld [vmem:[%s9064_s3 + $0xa70] sm:$0xff] }
 0x289   :  { %6023 = vmatprep.subr.bf16.mxu0 %v6240_v0  ;;  %6050 = vmatprep.subr.bf16.mxu1 %v6240_v0  ;;  %v6042_v38 = vpack.c.bf16 %v3892_v59, %v3891_v39  ;;  %v3940_v39 = vld [vmem:[%s9064_s3 + $0xaf8] sm:$0xff] }
 0x28a   :  { %5113 = vmatprep.mubr.msk.f32.mxu0 %vm6241_vm0, %v6242_v48  ;;  %v3924_v11 = vld [vmem:[%s9064_s3 + $0xa78] sm:$0xff] }
 0x28c   :  { %6025 = vmatpush3.bf16.msra.mxu0 %v6024_v35  ;;  %6052 = vmatpush3.bf16.msra.mxu1 %v6051_v27  ;;  %v3927_v35 = vld [vmem:[%s9064_s3 + $0xa90] sm:$0xff]  ;;  %v3928_v27 = vld [vmem:[%s9064_s3 + $0xa98] sm:$0xff] }
 0x28d   :  { %6026 = vmatprep.subr.bf16.mxu0 %v6240_v0  ;;  %6053 = vmatprep.subr.bf16.mxu1 %v6240_v0  ;;  %v6096_v33 = vpack.c.bf16 %v3928_v27, %v3927_v35  ;;  %v3958_v35 = vld [vmem:[%s9064_s3 + $0xb88] sm:$0xff] }
 0x290   :  { %6028 = vmatpush3.bf16.msra.mxu0 %v6027_v15  ;;  %6055 = vmatpush3.bf16.msra.mxu1 %v6054_v31  ;;  %v3912_v15 = vld [vmem:[%s9064_s3 + $0xa18] sm:$0xff]  ;;  %v9080_v31 = vmax.f32 %v7346_v57, %v7755_v1  ;;  %v3931_v57 = vld [vmem:[%s9064_s3 + $0xab0] sm:$0xff] }
 0x291   :  { %6029 = vmatprep.subr.bf16.mxu0 %v6240_v0  ;;  %6056 = vmatprep.subr.bf16.mxu1 %v6240_v0  ;;  %v6072_v4 = vpack.c.bf16 %v3912_v15, %v3911_v28  ;;  %v3932_v1 = vld [vmem:[%s9064_s3 + $0xab8] sm:$0xff]  ;;  %v3942_v28 = vld [vmem:[%s9064_s3 + $0xb08] sm:$0xff]  ;;  %v3959_v15 = vld [vmem:[%s9064_s3 + $0xb90] sm:$0xff] }
 0x294   :  { %6031 = vmatpush3.bf16.msra.mxu0 %v6030_v21  ;;  %6058 = vmatpush3.bf16.msra.mxu1 %v6057_v54  ;;  %v6075_v21 = vpack.c.bf16 %v3914_v61, %v3913_v17  ;;  %v6102_v54 = vpack.c.bf16 %v3932_v1, %v3931_v57  ;;  %v3944_v17 = vld [vmem:[%s9064_s3 + $0xb18] sm:$0xff]  ;;  %v9082_v61 = vmax.f32 %v7354_v19, %v7800_v10  ;;  %v3963_v19 = vld [vmem:[%s9064_s3 + $0xbb0] sm:$0xff] }
 0x295   :  { %6032 = vmatprep.subr.bf16.mxu0 %v6240_v0  ;;  %6059 = vmatprep.subr.bf16.mxu1 %v6240_v0  ;;  %v6147_v1 = vpack.c.bf16 %v3962_v43, %v3961_v34  ;;  %v3964_v10 = vld [vmem:[%s9064_s3 + $0xbb8] sm:$0xff]  ;;  %v3983_v43 = vld [vmem:[%s9064_s3 + $0xc50] sm:$0xff] }
 0x296   :  { %v1726_v44 = vpop.f32.mrb[104].mxu1 }
 0x297   :  { %v4660_v5 = vpop.f32.mrb[105].mxu1 }
 0x298   :  { %6034 = vmatpush3.bf16.msra.mxu0 %v6033_v52  ;;  %6061 = vmatpush3.bf16.msra.mxu1 %v6060_v36  ;;  %v6078_v52 = vpack.c.bf16 %v3916_v50, %v3915_v8  ;;  %v6105_v36 = vpack.c.bf16 %v3934_v16, %v3933_v55  ;;  %v6108_v5 = vpack.c.bf16 %v3936_v26, %v3935_v30  ;;  %v3947_v55 = vld [vmem:[%s9064_s3 + $0xb30] sm:$0xff]  ;;  %v3948_v16 = vld [vmem:[%s9064_s3 + $0xb38] sm:$0xff]  ;;  %v3949_v30 = vld [vmem:[%s9064_s3 + $0xb40] sm:$0xff] }
 0x299   :  { %6035 = vmatprep.subr.bf16.mxu0 %v6240_v0  ;;  %6062 = vmatprep.subr.bf16.mxu1 %v6240_v0  ;;  %v6150_v50 = vpack.c.bf16 %v3964_v10, %v3963_v19  ;;  %v3950_v26 = vld [vmem:[%s9064_s3 + $0xb48] sm:$0xff] }
 0x29a   :  { %v1638_v29 = vpop.f32.mrb[104].mxu0  ;;  %v3986_v19 = vld [vmem:[%s9064_s3 + $0xc68] sm:$0xff] }
 0x29b   :  { %v1642_v18 = vadd.f32 %v1638_v29, %v8497_v63  ;;  %v4625_v51 = vpop.f32.mrb[105].mxu0  ;;  %v3925_v63 = vld [vmem:[%s9064_s3 + $0xa80] sm:$0xff] }
 0x29c   :  { %6037 = vmatpush3.bf16.msra.mxu0 %v6036_v23  ;;  %6064 = vmatpush3.bf16.msra.mxu1 %v6063_v37  ;;  %v6093_v45 = vpack.c.bf16 %v3926_v46, %v3925_v63  ;;  %v3919_v23 = vld [vmem:[%s9064_s3 + $0xa50] sm:$0xff]  ;;  %v3920_v37 = vld [vmem:[%s9064_s3 + $0xa58] sm:$0xff]  ;;  %v3921_v51 = vld [vmem:[%s9064_s3 + $0xa60] sm:$0xff] }
 0x29d   :  { %6038 = vmatprep.subr.bf16.mxu0 %v6240_v0  ;;  %6065 = vmatprep.subr.bf16.mxu1 %v6240_v0  ;;  %v8622_v41 = vadd.f32 %v1726_v44, %v1642_v18  ;;  %v6081_v44 = vpack.c.bf16 %v3918_v14, %v3917_v7  ;;  %v6084_v29 = vpack.c.bf16 %v3920_v37, %v3919_v23 }
 0x29e   :  { %v6111_v18 = vpack.c.bf16 %v3938_v42, %v3937_v20  ;;  %v6126_v7 = vpack.c.bf16 %v3948_v16, %v3947_v55  ;;  %v6129_v23 = vpack.c.bf16 %v3950_v26, %v3949_v30  ;;  %v3951_v20 = vld [vmem:[%s9064_s3 + $0xb50] sm:$0xff]  ;;  %v3952_v42 = vld [vmem:[%s9064_s3 + $0xb58] sm:$0xff] }
 0x29f   :  { %v3987_v16 = vld [vmem:[%s9064_s3 + $0xc70] sm:$0xff] }
 0x2a0   :  { %6040 = vmatpush3.bf16.msra.mxu0 %v6039_v9  ;;  %6067 = vmatpush3.bf16.msra.mxu1 %v6066_v56  ;;  %v3922_v9 = vld [vmem:[%s9064_s3 + $0xa68] sm:$0xff]  ;;  %v3939_v56 = vld [vmem:[%s9064_s3 + $0xaf0] sm:$0xff] }
 0x2a1   :  { %6041 = vmatprep.subr.bf16.mxu0 %v6240_v0  ;;  %6092 = vmatprep.subr.bf16.mxu1 %v6240_v0 }
 0x2a3   :  { %5149 = vmatmul.mubr.f32.vlgmr.msra.gmra.mrb[118].mxu1 %v9079_v3  ;;  %v6090_v3 = vpack.c.bf16 %v3924_v11, %v3923_v58 }
 0x2a4   :  { %6043 = vmatpush3.bf16.msra.mxu0 %v6042_v38  ;;  %6094 = vmatpush3.bf16.msra.mxu1 %v6093_v45  ;;  %v6087_v38 = vpack.c.bf16 %v3922_v9, %v3921_v51  ;;  %v6114_v45 = vpack.c.bf16 %v3940_v39, %v3939_v56  ;;  %v6132_v51 = vpack.c.bf16 %v3952_v42, %v3951_v20  ;;  %v3953_v56 = vld [vmem:[%s9064_s3 + $0xb60] sm:$0xff]  ;;  %v3954_v39 = vld [vmem:[%s9064_s3 + $0xb68] sm:$0xff] }
 0x2a5   :  { %6068 = vmatprep.subr.bf16.mxu0 %v6240_v0  ;;  %6095 = vmatprep.subr.bf16.mxu1 %v6240_v0  ;;  %v6135_v58 = vpack.c.bf16 %v3954_v39, %v3953_v56  ;;  %v3417_v56 = vld [vmem:[%s9066_s5 + $0x28] sm:$0xff] }
 0x2a6   :  { %5218 = vmatprep.mubr.msk.f32.mxu1 %vm6241_vm0, %v6242_v48 }
 0x2a7   :  { %5114 = vmatmul.mubr.f32.vlgmr.msra.gmra.mrb[118].mxu0 %v9080_v31 }
 0x2a8   :  { %6070 = vmatpush3.bf16.msra.mxu0 %v6069_v22  ;;  %6097 = vmatpush3.bf16.msra.mxu1 %v6096_v33  ;;  %v3941_v33 = vld [vmem:[%s9064_s3 + $0xb00] sm:$0xff] }
 0x2a9   :  { %6071 = vmatprep.subr.bf16.mxu0 %v6240_v0  ;;  %6098 = vmatprep.subr.bf16.mxu1 %v6240_v0  ;;  %v6117_v31 = vpack.c.bf16 %v3942_v28, %v3941_v33  ;;  %v3974_v33 = vld [vmem:[%s9064_s3 + $0xc08] sm:$0xff] }
 0x2aa   :  { %5183 = vmatprep.mubr.msk.f32.mxu0 %vm6241_vm0, %v6242_v48 }
 0x2ac   :  { %6073 = vmatpush3.bf16.msra.mxu0 %v6072_v4  ;;  %6100 = vmatpush3.bf16.msra.mxu1 %v6099_v60  ;;  %v6144_v4 = vpack.c.bf16 %v3960_v6, %v3959_v15  ;;  %v3943_v60 = vld [vmem:[%s9064_s3 + $0xb10] sm:$0xff]  ;;  %v3976_v6 = vld [vmem:[%s9064_s3 + $0xc18] sm:$0xff] }
 0x2ad   :  { %6074 = vmatprep.subr.bf16.mxu0 %v6240_v0  ;;  %6101 = vmatprep.subr.bf16.mxu1 %v6240_v0  ;;  %v6120_v57 = vpack.c.bf16 %v3944_v17, %v3943_v60  ;;  %v3975_v15 = vld [vmem:[%s9064_s3 + $0xc10] sm:$0xff]  ;;  %v3981_v60 = vld [vmem:[%s9064_s3 + $0xc40] sm:$0xff]  ;;  %v3982_v17 = vld [vmem:[%s9064_s3 + $0xc48] sm:$0xff] }
 0x2ae   :  { %v6168_v62 = vpack.c.bf16 %v3976_v6, %v3975_v15  ;;  %v6177_v34 = vpack.c.bf16 %v3982_v17, %v3981_v60  ;;  %v3509_v17 = vld [vmem:[%s9067_s7 + $0x18] sm:$0xff] }
 0x2b0   :  { %6076 = vmatpush3.bf16.msra.mxu0 %v6075_v21  ;;  %6103 = vmatpush3.bf16.msra.mxu1 %v6102_v54  ;;  %v3945_v21 = vld [vmem:[%s9064_s3 + $0xb20] sm:$0xff]  ;;  %v3946_v54 = vld [vmem:[%s9064_s3 + $0xb28] sm:$0xff] }
 0x2b1   :  { %6077 = vmatprep.subr.bf16.mxu0 %v6240_v0  ;;  %6104 = vmatprep.subr.bf16.mxu1 %v6240_v0  ;;  %v6123_v8 = vpack.c.bf16 %v3946_v54, %v3945_v21  ;;  %v3985_v54 = vld [vmem:[%s9064_s3 + $0xc60] sm:$0xff] }
 0x2b2   :  { %v6183_v55 = vpack.c.bf16 %v3986_v19, %v3985_v54  ;;  %v3514_v19 = vld [vmem:[%s9067_s7 + $0x40] sm:$0xff] }
 0x2b4   :  { %6079 = vmatpush3.bf16.msra.mxu0 %v6078_v52  ;;  %6106 = vmatpush3.bf16.msra.mxu1 %v6105_v36  ;;  %v3965_v52 = vld [vmem:[%s9064_s3 + $0xbc0] sm:$0xff]  ;;  %v3966_v36 = vld [vmem:[%s9064_s3 + $0xbc8] sm:$0xff] }
 0x2b5   :  { %6080 = vmatprep.subr.bf16.mxu0 %v6240_v0  ;;  %6107 = vmatprep.subr.bf16.mxu1 %v6240_v0  ;;  %v6153_v14 = vpack.c.bf16 %v3966_v36, %v3965_v52  ;;  %v3988_v52 = vld [vmem:[%s9064_s3 + $0xc78] sm:$0xff] }
 0x2b6   :  { %v1902_v53 = vpop.f32.mrb[106].mxu1 }
 0x2b7   :  { %v4730_v25 = vpop.f32.mrb[107].mxu1 }
 0x2b8   :  { %6082 = vmatpush3.bf16.msra.mxu0 %v6081_v44  ;;  %6109 = vmatpush3.bf16.msra.mxu1 %v6108_v5  ;;  %v3967_v44 = vld [vmem:[%s9064_s3 + $0xbd0] sm:$0xff]  ;;  %v3968_v5 = vld [vmem:[%s9064_s3 + $0xbd8] sm:$0xff]  ;;  %v3970_v25 = vld [vmem:[%s9064_s3 + $0xbe8] sm:$0xff] }
 0x2b9   :  { %6083 = vmatprep.subr.bf16.mxu0 %v6240_v0  ;;  %6110 = vmatprep.subr.bf16.mxu1 %v6240_v0  ;;  %v6156_v37 = vpack.c.bf16 %v3968_v5, %v3967_v44 }
 0x2ba   :  { %v1814_v59 = vpop.f32.mrb[106].mxu0 }
 0x2bb   :  { %v1818_v63 = vadd.f32 %v1814_v59, %v8622_v41  ;;  %v4695_v46 = vpop.f32.mrb[107].mxu0  ;;  %v3957_v41 = vld [vmem:[%s9064_s3 + $0xb80] sm:$0xff]  ;;  %v3971_v59 = vld [vmem:[%s9064_s3 + $0xbf0] sm:$0xff] }
 0x2bc   :  { %6085 = vmatpush3.bf16.msra.mxu0 %v6084_v29  ;;  %6112 = vmatpush3.bf16.msra.mxu1 %v6111_v18  ;;  %v6141_v22 = vpack.c.bf16 %v3958_v35, %v3957_v41  ;;  %v3955_v41 = vld [vmem:[%s9064_s3 + $0xb70] sm:$0xff]  ;;  %v3956_v35 = vld [vmem:[%s9064_s3 + $0xb78] sm:$0xff] }
 0x2bd   :  { %6086 = vmatprep.subr.bf16.mxu0 %v6240_v0  ;;  %6113 = vmatprep.subr.bf16.mxu1 %v6240_v0  ;;  %v8747_v27 = vadd.f32 %v1902_v53, %v1818_v63  ;;  %v3969_v53 = vld [vmem:[%s9064_s3 + $0xbe0] sm:$0xff]  ;;  %v3972_v63 = vld [vmem:[%s9064_s3 + $0xbf8] sm:$0xff] }
 0x2be   :  { %v6159_v9 = vpack.c.bf16 %v3970_v25, %v3969_v53  ;;  %v6162_v11 = vpack.c.bf16 %v3972_v63, %v3971_v59  ;;  %v3418_v59 = vld [vmem:[%s9066_s5 + $0x30] sm:$0xff]  ;;  %v3419_v63 = vld [vmem:[%s9066_s5 + $0x38] sm:$0xff] }
 0x2c0   :  { %6088 = vmatpush3.bf16.msra.mxu0 %v6087_v38  ;;  %6115 = vmatpush3.bf16.msra.mxu1 %v6114_v45 }
 0x2c1   :  { %6089 = vmatprep.subr.bf16.mxu0 %v6240_v0  ;;  %6140 = vmatprep.subr.bf16.mxu1 %v6240_v0 }
 0x2c3   :  { %5219 = vmatmul.mubr.f32.vlgmr.msra.gmra.mrb[120].mxu1 %v9081_v12  ;;  %v9083_v12 = vmax.f32 %v7362_v49, %v7840_v2  ;;  %v3979_v49 = vld [vmem:[%s9064_s3 + $0xc30] sm:$0xff]  ;;  %v3980_v2 = vld [vmem:[%s9064_s3 + $0xc38] sm:$0xff] }
 0x2c4   :  { %6091 = vmatpush3.bf16.msra.mxu0 %v6090_v3  ;;  %6142 = vmatpush3.bf16.msra.mxu1 %v6141_v22  ;;  %v3973_v22 = vld [vmem:[%s9064_s3 + $0xc00] sm:$0xff] }
 0x2c5   :  { %6116 = vmatprep.subr.bf16.mxu0 %v6240_v0  ;;  %6143 = vmatprep.subr.bf16.mxu1 %v6240_v0  ;;  %v6165_v28 = vpack.c.bf16 %v3974_v33, %v3973_v22  ;;  %v3424_v22 = vld [vmem:[%s9066_s5 + $0x60] sm:$0xff]  ;;  %v3425_v33 = vld [vmem:[%s9066_s5 + $0x68] sm:$0xff] }
 0x2c6   :  { %5288 = vmatprep.mubr.msk.f32.mxu1 %vm6241_vm0, %v6242_v48 }
 0x2c7   :  { %5184 = vmatmul.mubr.f32.vlgmr.msra.gmra.mrb[120].mxu0 %v9082_v61  ;;  %v3984_v61 = vld [vmem:[%s9064_s3 + $0xc58] sm:$0xff] }
 0x2c8   :  { %6118 = vmatpush3.bf16.msra.mxu0 %v6117_v31  ;;  %6145 = vmatpush3.bf16.msra.mxu1 %v6144_v4  ;;  %v6174_v4 = vpack.c.bf16 %v3980_v2, %v3979_v49  ;;  %v6180_v21 = vpack.c.bf16 %v3984_v61, %v3983_v43  ;;  %v3506_v49 = vld [vmem:[%s9067_s7] sm:$0xff]  ;;  %v3507_v2 = vld [vmem:[%s9067_s7 + $0x8] sm:$0xff] }
 0x2c9   :  { %6119 = vmatprep.subr.bf16.mxu0 %v6240_v0  ;;  %6146 = vmatprep.subr.bf16.mxu1 %v6240_v0  ;;  %v6213_v60 = vpack.c.bf16 %v3507_v2, %v3506_v49  ;;  %v3510_v43 = vld [vmem:[%s9067_s7 + $0x20] sm:$0xff]  ;;  %v3511_v61 = vld [vmem:[%s9067_s7 + $0x28] sm:$0xff] }
 0x2ca   :  { %5253 = vmatprep.mubr.msk.f32.mxu0 %vm6241_vm0, %v6242_v48 }
 0x2cc   :  { %6121 = vmatpush3.bf16.msra.mxu0 %v6120_v57  ;;  %6148 = vmatpush3.bf16.msra.mxu1 %v6147_v1 }
 0x2cd   :  { %6122 = vmatprep.subr.bf16.mxu0 %v6240_v0  ;;  %6149 = vmatprep.subr.bf16.mxu1 %v6240_v0 }
 0x2d0   :  { %6124 = vmatpush3.bf16.msra.mxu0 %v6123_v8  ;;  %6151 = vmatpush3.bf16.msra.mxu1 %v6150_v50 }
 0x2d1   :  { %6125 = vmatprep.subr.bf16.mxu0 %v6240_v0  ;;  %6152 = vmatprep.subr.bf16.mxu1 %v6240_v0 }
 0x2d4   :  { %6127 = vmatpush3.bf16.msra.mxu0 %v6126_v7  ;;  %6154 = vmatpush3.bf16.msra.mxu1 %v6153_v14  ;;  %v6186_v7 = vpack.c.bf16 %v3988_v52, %v3987_v16 }
 0x2d5   :  { %6128 = vmatprep.subr.bf16.mxu0 %v6240_v0  ;;  %6155 = vmatprep.subr.bf16.mxu1 %v6240_v0 }
 0x2d6   :  { %v2078_v29 = vpop.f32.mrb[108].mxu1 }
 0x2d7   :  { %v4800_v18 = vpop.f32.mrb[109].mxu1 }
 0x2d8   :  { %6130 = vmatpush3.bf16.msra.mxu0 %v6129_v23  ;;  %6157 = vmatpush3.bf16.msra.mxu1 %v6156_v37  ;;  %v3415_v18 = vld [vmem:[%s9066_s5 + $0x18] sm:$0xff] }
 0x2d9   :  { %6131 = vmatprep.subr.bf16.mxu0 %v6240_v0  ;;  %6158 = vmatprep.subr.bf16.mxu1 %v6240_v0 }
 0x2da   :  { %v1990_v46 = vpop.f32.mrb[108].mxu0 }
 0x2db   :  { %v1994_v38 = vadd.f32 %v1990_v46, %v8747_v27  ;;  %v4765_v45 = vpop.f32.mrb[109].mxu0  ;;  %v6138_v27 = vpack.c.bf16 %v3956_v35, %v3955_v41  ;;  %v6198_v46 = vpack.c.bf16 %v3419_v63, %v3418_v59  ;;  %v3423_v41 = vld [vmem:[%s9066_s5 + $0x58] sm:$0xff] }
 0x2dc   :  { %6133 = vmatpush3.bf16.msra.mxu0 %v6132_v51  ;;  %6160 = vmatpush3.bf16.msra.mxu1 %v6159_v9  ;;  %v3416_v9 = vld [vmem:[%s9066_s5 + $0x20] sm:$0xff]  ;;  %v3421_v45 = vld [vmem:[%s9066_s5 + $0x48] sm:$0xff] }
 0x2dd   :  { %6134 = vmatprep.subr.bf16.mxu0 %v6240_v0  ;;  %6161 = vmatprep.subr.bf16.mxu1 %v6240_v0  ;;  %v2082_v3 = vadd.f32 %v2078_v29, %v1994_v38  ;;  %v3412_v29 = vld [vmem:[%s9066_s5] sm:$0xff]  ;;  %v6195_v39 = vpack.c.bf16 %v3417_v56, %v3416_v9 }
 0x2de   :  { %v3420_v38 = vld [vmem:[%s9066_s5 + $0x40] sm:$0xff] }
 0x2df   :  { %v3989_v56 = vld [vmem:[%s9068_s4] ss:$0 sm:$0xff] }
 0x2e0   :  { %6136 = vmatpush3.bf16.msra.mxu0 %v6135_v58  ;;  %6163 = vmatpush3.bf16.msra.mxu1 %v6162_v11  ;;  %v6201_v58 = vpack.c.bf16 %v3421_v45, %v3420_v38  ;;  %v3422_v11 = vld [vmem:[%s9066_s5 + $0x50] sm:$0xff]  ;;  %v3521_v38 = vld [vmem:[%s9067_s7 + $0x78] sm:$0xff] }
 0x2e1   :  { %6137 = vmatprep.subr.bf16.mxu0 %v6240_v0  ;;  %6188 = vmatprep.subr.bf16.mxu1 %v6240_v0  ;;  %v6204_v35 = vpack.c.bf16 %v3423_v41, %v3422_v11 }
 0x2e3   :  { %5289 = vmatmul.mubr.f32.vlgmr.msra.gmra.mrb[122].mxu1 %v1204_v32  ;;  %v3977_v32 = vld [vmem:[%s9064_s3 + $0xc20] sm:$0xff] }
 0x2e4   :  { %6139 = vmatpush3.bf16.msra.mxu0 %v6138_v27  ;;  %5358 = vmatprep.mubr.msk.f32.mxu1 %vm6241_vm0, %v6242_v48  ;;  %v6171_v31 = vpack.c.bf16 %v3978_v47, %v3977_v32  ;;  %v3427_v32 = vld [vmem:[%s9066_s5 + $0x78] sm:$0xff] }
 0x2e5   :  { %6164 = vmatprep.subr.bf16.mxu0 %v6240_v0 }
 0x2e7   :  { %5254 = vmatmul.mubr.f32.vlgmr.msra.gmra.mrb[122].mxu0 %v9083_v12 }
 0x2e8   :  { %6166 = vmatpush3.bf16.msra.mxu0 %v6165_v28  ;;  %5323 = vmatprep.mubr.msk.f32.mxu0 %vm6241_vm0, %v6242_v48  ;;  %v6207_v28 = vpack.c.bf16 %v3425_v33, %v3424_v22 }
 0x2e9   :  { %6167 = vmatprep.subr.bf16.mxu0 %v6240_v0 }
 0x2ec   :  { %6169 = vmatpush3.bf16.msra.mxu0 %v6168_v62  ;;  %v3426_v62 = vld [vmem:[%s9066_s5 + $0x70] sm:$0xff] }
 0x2ed   :  { %6170 = vmatprep.subr.bf16.mxu0 %v6240_v0  ;;  %v6210_v47 = vpack.c.bf16 %v3427_v32, %v3426_v62 }
 0x2f0   :  { %6172 = vmatpush3.bf16.msra.mxu0 %v6171_v31 }
 0x2f1   :  { %6173 = vmatprep.subr.bf16.mxu0 %v6240_v0 }
 0x2f4   :  { %6175 = vmatpush3.bf16.msra.mxu0 %v6174_v4  ;;  %v3508_v4 = vld [vmem:[%s9067_s7 + $0x10] sm:$0xff] }
 0x2f5   :  { %6176 = vmatprep.subr.bf16.mxu0 %v6240_v0 }
 0x2f6   :  { %v2254_v57 = vpop.f32.mrb[110].mxu1 }
 0x2f7   :  { %v4870_v1 = vpop.f32.mrb[111].mxu1 }
 0x2f8   :  { %6178 = vmatpush3.bf16.msra.mxu0 %v6177_v34  ;;  %v6216_v34 = vpack.c.bf16 %v3509_v17, %v3508_v4  ;;  %v3512_v1 = vld [vmem:[%s9067_s7 + $0x30] sm:$0xff] }
 0x2f9   :  { %6179 = vmatprep.subr.bf16.mxu0 %v6240_v0 }
 0x2fa   :  { %v2166_v10 = vpop.f32.mrb[110].mxu0 }
 0x2fb   :  { %v2170_v8 = vadd.f32 %v2166_v10, %v2082_v3  ;;  %v4835_v50 = vpop.f32.mrb[111].mxu0  ;;  %v3515_v10 = vld [vmem:[%s9067_s7 + $0x48] sm:$0xff] }
 0x2fc   :  { %6181 = vmatpush3.bf16.msra.mxu0 %v6180_v21  ;;  %v3513_v21 = vld [vmem:[%s9067_s7 + $0x38] sm:$0xff]  ;;  %v3516_v50 = vld [vmem:[%s9067_s7 + $0x50] sm:$0xff] }
 0x2fd   :  { %6182 = vmatprep.subr.bf16.mxu0 %v6240_v0  ;;  %v2258_v36 = vadd.f32 %v2254_v57, %v2170_v8  ;;  %v6219_v57 = vpack.c.bf16 %v3511_v61, %v3510_v43  ;;  %v6222_v54 = vpack.c.bf16 %v3513_v21, %v3512_v1  ;;  %v6225_v8 = vpack.c.bf16 %v3515_v10, %v3514_v19 }
 0x300   :  { %6184 = vmatpush3.bf16.msra.mxu0 %v6183_v55  ;;  %v3517_v55 = vld [vmem:[%s9067_s7 + $0x58] sm:$0xff] }
 0x301   :  { %6185 = vmatprep.subr.bf16.mxu0 %v6240_v0  ;;  %v6228_v16 = vpack.c.bf16 %v3517_v55, %v3516_v50 }
 0x304   :  { %6187 = vmatpush3.bf16.msra.mxu0 %v6186_v7  ;;  %v3519_v7 = vld [vmem:[%s9067_s7 + $0x68] sm:$0xff] }
 0x305   :  { %6212 = vmatprep.subr.bf16.mxu0 %v6240_v0 }
 0x307   :  { %5324 = vmatmul.mubr.f32.vlgmr.msra.gmra.mrb[124].mxu0 %v1205_v40  ;;  %v6189_v40 = vpack.c.bf16 %v3413_v13, %v3412_v29 }
 0x308   :  { %5393 = vmatprep.mubr.msk.f32.mxu0 %vm6241_vm0, %v6242_v48  ;;  %v3414_v48 = vld [vmem:[%s9066_s5 + $0x10] sm:$0xff]  ;;  %6214 = vmatpush3.bf16.msra.mxu0 %v6213_v60 }
 0x309   :  { %6190 = vmatpush3.bf16.msra.mxu1 %v6189_v40  ;;  %v6192_v51 = vpack.c.bf16 %v3415_v18, %v3414_v48  ;;  %6215 = vmatprep.subr.bf16.mxu0 %v6240_v0 }
 0x30a   :  { %6191 = vmatprep.subr.bf16.mxu1 %v6240_v0 }
 0x30c   :  { %6217 = vmatpush3.bf16.msra.mxu0 %v6216_v34 }
 0x30d   :  { %6193 = vmatpush3.bf16.msra.mxu1 %v6192_v51  ;;  %6218 = vmatprep.subr.bf16.mxu0 %v6240_v0 }
 0x30e   :  { %6194 = vmatprep.subr.bf16.mxu1 %v6240_v0 }
 0x310   :  { %6220 = vmatpush3.bf16.msra.mxu0 %v6219_v57 }
 0x311   :  { %6196 = vmatpush3.bf16.msra.mxu1 %v6195_v39  ;;  %6221 = vmatprep.subr.bf16.mxu0 %v6240_v0 }
 0x312   :  { %6197 = vmatprep.subr.bf16.mxu1 %v6240_v0 }
 0x314   :  { %6223 = vmatpush3.bf16.msra.mxu0 %v6222_v54 }
 0x315   :  { %6199 = vmatpush3.bf16.msra.mxu1 %v6198_v46  ;;  %6224 = vmatprep.subr.bf16.mxu0 %v6240_v0  ;;  %v3520_v46 = vld [vmem:[%s9067_s7 + $0x70] sm:$0xff] }
 0x316   :  { %v2430_v14 = vpop.f32.mrb[112].mxu1  ;;  %6200 = vmatprep.subr.bf16.mxu1 %v6240_v0  ;;  %v6234_v45 = vpack.c.bf16 %v3521_v38, %v3520_v46 }
 0x317   :  { %v4940_v30 = vpop.f32.mrb[113].mxu1 }
 0x318   :  { %6226 = vmatpush3.bf16.msra.mxu0 %v6225_v8 }
 0x319   :  { %6202 = vmatpush3.bf16.msra.mxu1 %v6201_v58  ;;  %6227 = vmatprep.subr.bf16.mxu0 %v6240_v0  ;;  %v3990_v58 = vld [vmem:[%s9069_s6] ss:$0 sm:$0xff] }
 0x31a   :  { %v2342_v26 = vpop.f32.mrb[112].mxu0  ;;  %6203 = vmatprep.subr.bf16.mxu1 %v6240_v0 }
 0x31b   :  { %v2346_v44 = vadd.f32 %v2342_v26, %v2258_v36  ;;  %v4905_v5 = vpop.f32.mrb[113].mxu0  ;;  %v3518_v36 = vld [vmem:[%s9067_s7 + $0x60] sm:$0xff] }
 0x31c   :  { %6229 = vmatpush3.bf16.msra.mxu0 %v6228_v16  ;;  %v6231_v30 = vpack.c.bf16 %v3519_v7, %v3518_v36 }
 0x31d   :  { %v2434_v23 = vadd.f32 %v2430_v14, %v2346_v44  ;;  %6205 = vmatpush3.bf16.msra.mxu1 %v6204_v35  ;;  %6230 = vmatprep.subr.bf16.mxu0 %v6240_v0 }
 0x31e   :  { %6206 = vmatprep.subr.bf16.mxu1 %v6240_v0 }
 0x320   :  { %6232 = vmatpush3.bf16.msra.mxu0 %v6231_v30 }
 0x321   :  { %6208 = vmatpush3.bf16.msra.mxu1 %v6207_v28  ;;  %6233 = vmatprep.subr.bf16.mxu0 %v6240_v0 }
 0x322   :  { %6209 = vmatprep.subr.bf16.mxu1 %v6240_v0 }
 0x324   :  { %6235 = vmatpush3.bf16.msra.mxu0 %v6234_v45 }
 0x325   :  { %6211 = vmatpush3.bf16.msra.mxu1 %v6210_v47 }
 0x336   :  { %v2606_v37 = vpop.f32.mrb[114].mxu1 }
 0x337   :  { %v5010_v20 = vpop.f32.mrb[115].mxu1 }
 0x33a   :  { %v2518_v42 = vpop.f32.mrb[114].mxu0 }
 0x33b   :  { %v2522_v53 = vadd.f32 %v2518_v42, %v2434_v23  ;;  %v4975_v25 = vpop.f32.mrb[115].mxu0 }
 0x33d   :  { %v2610_v24 = vadd.f32 %v2606_v37, %v2522_v53 }
 0x356   :  { %v2782_v3 = vpop.f32.mrb[116].mxu1 }
 0x357   :  { %v5080_v27 = vpop.f32.mrb[117].mxu1 }
 0x358   :  { %v3991_v27 = vld [vmem:[%s9070_s8] ss:$0 sm:$0xff] }
 0x35a   :  { %v2694_v15 = vpop.f32.mrb[116].mxu0 }
 0x35b   :  { %v2698_v6 = vadd.f32 %v2694_v15, %v2610_v24  ;;  %v5045_v12 = vpop.f32.mrb[117].mxu0 }
 0x35d   :  { %v2786_v31 = vadd.f32 %v2782_v3, %v2698_v6 }
 0x376   :  { %v2958_v52 = vpop.f32.mrb[118].mxu1 }
 0x377   :  { %v5150_v14 = vpop.f32.mrb[119].mxu1 }
 0x37a   :  { %v2870_v26 = vpop.f32.mrb[118].mxu0 }
 0x37b   :  { %v2874_v44 = vadd.f32 %v2870_v26, %v2786_v31  ;;  %v5115_v5 = vpop.f32.mrb[119].mxu0 }
 0x37d   :  { %v2962_v23 = vadd.f32 %v2958_v52, %v2874_v44 }
 0x396   :  { %v3134_v37 = vpop.f32.mrb[120].mxu1 }
 0x397   :  { %v5220_v20 = vpop.f32.mrb[121].mxu1 }
 0x39a   :  { %v3046_v42 = vpop.f32.mrb[120].mxu0 }
 0x39b   :  { %v3050_v53 = vadd.f32 %v3046_v42, %v2962_v23  ;;  %v5185_v25 = vpop.f32.mrb[121].mxu0 }
 0x39d   :  { %v3138_v29 = vadd.f32 %v3134_v37, %v3050_v53 }
 0x3b6   :  { %v3310_v13 = vpop.f32.mrb[122].mxu1 }
 0x3b7   :  { %v5290_v48 = vpop.f32.mrb[123].mxu1 }
 0x3ba   :  { %v3222_v24 = vpop.f32.mrb[122].mxu0 }
 0x3bb   :  { %v3226_v40 = vadd.f32 %v3222_v24, %v3138_v29  ;;  %v5255_v18 = vpop.f32.mrb[123].mxu0 }
 0x3bd   :  { %v3314_v51 = vadd.f32 %v3310_v13, %v3226_v40 }
 0x3da   :  { %v3398_v9 = vpop.f32.mrb[124].mxu0 }
 0x3db   :  { %v3402_v39 = vadd.f32 %v3398_v9, %v3314_v51  ;;  %v5325_v59 = vpop.f32.mrb[125].mxu0 }
 0x3dd   :  { %v3410_v0 = vadd.f32 %v3989_v56, %v3402_v39 }
 0x3df   :  { %v3411_v63 = vmax.f32 %v3410_v0, 0.0 }
 0x3e1   :  { %5359 = vmatmul.mubr.f32.vlgmr.msra.gmra.mrb[124].mxu1 %v3411_v63 }
 0x4b4   :  { %v3501_v11 = vpop.f32.mrb[124].mxu1 }
 0x4b5   :  { %v3502_v41 = vadd.f32 %v3990_v58, %v3501_v11  ;;  %v5360_v35 = vpop.f32.mrb[125].mxu1 }
 0x4b7   :  { %v3505_v3 = vmax.f32 %v3502_v41, 0.0 }
 0x4b9   :  { %5394 = vmatmul.mubr.f32.vlgmr.msra.gmra.mrb[126].mxu0 %v3505_v3 }
 0x58c   :  { %v3595_v22 = vpop.f32.mrb[126].mxu0 }
 0x58d   :  { %v3596_v33 = vadd.f32 %v3991_v27, %v3595_v22  ;;  %v5395_v28 = vpop.f32.mrb[127].mxu0 }
 0x58f   :  { %3599 = vst [vmem:[%s9071_s9] sm:$0xff] %v3596_v33 }

</bundles_post_ra>
